<compile_context>
chip_gen: v6e
topology: v6e:2x2x1
jax: 0.10.0
libtpu: 0.0.40
codegen_flags: <defaults>
</compile_context>

<pallas_src>
import math

import jax
import jax.numpy as jnp
from jax.experimental import pallas as pl
from jax.experimental.pallas import tpu as pltpu

# ----------------------------- config / constants -----------------------------
VTH = 0.2      # LIF threshold (snn_layers Vth)
TAU = 0.25     # LIF leak (snn_layers tau)

IN_CH = 1
LATENT = 32          # latent_dim (small)
K_SAMP = 4           # k (small)
N_STEPS = 4          # n_steps (small)
HIDDEN = [32, 64, 128, 256]   # fixed by FSVAE_fashion
IMG = 32                      # 4 stride-2 convs: 32 -> 2, so hidden[-1]*4 == 1024 flatten


def _round_up(x, m):
    return (x + m - 1) // m * m


def _pick_div(n, candidates):
    """Largest candidate that exactly divides n, else n itself (full-dim block)."""
    for c in candidates:
        if n >= c and n % c == 0:
            return c
    return n


# ----------------------------- Pallas kernels -----------------------------

def _conv_lif_kernel(a_ref, w_ref, b_ref, o_ref):
    # Fused conv (full-K MXU GEMM) + bias + LIF recurrence over T, bf16 spike stores.
    # a_ref: (T, tm, K) bf16, w_ref: (K, tn) bf16, b_ref: (1, tn) f32, o_ref: (T, tm, tn) bf16.
    T = a_ref.shape[0]
    tm, tn = o_ref.shape[1], o_ref.shape[2]
    u = jnp.zeros((tm, tn), jnp.float32)
    o = jnp.zeros((tm, tn), jnp.float32)
    for t in range(T):  # T <= 4, fully unrolled
        y = jnp.dot(a_ref[t], w_ref[...], preferred_element_type=jnp.float32) + b_ref[...]
        u = TAU * u * (1.0 - o) + y
        o = (u > VTH).astype(jnp.float32)
        o_ref[t] = o.astype(jnp.bfloat16)


def conv_lif_pallas(a, w, b, cout):
    """a: (T, M, K) bf16 patches, w: (K, Npad) bf16, b: (Npad,) f32 -> (T, M, cout) bf16 spikes.

    Npad is a multiple of 128 (lane-dense, unmasked stores); padded channels produce exactly
    zero spikes and are sliced off.  K is a single full-dim block (worst case ~1.2 MiB per
    double-buffered input block -> far below scoped-VMEM limits on v5e/v6e/v7x).
    """
    T, M, K = a.shape
    npad = w.shape[1]
    tm = _pick_div(M, (512, 256, 128, 64, 32, 16, 8))
    tn = 128  # always lane-dense; Npad is a multiple of 128
    b2 = b.reshape(1, npad).astype(jnp.float32)
    out = pl.pallas_call(
        _conv_lif_kernel,
        out_shape=jax.ShapeDtypeStruct((T, M, npad), jnp.bfloat16),
        grid=(M // tm, npad // tn),
        in_specs=[
            pl.BlockSpec((T, tm, K), lambda i, j: (0, i, 0)),
            pl.BlockSpec((K, tn), lambda i, j: (0, j)),
            pl.BlockSpec((1, tn), lambda i, j: (0, j)),
        ],
        out_specs=pl.BlockSpec((T, tm, tn), lambda i, j: (0, i, j)),
        compiler_params=pltpu.CompilerParams(
            dimension_semantics=("parallel", "parallel")
        ),
    )(a, w, b2)
    return out[:, :, :cout] if cout != npad else out


def _conv_membrane_tanh_kernel(a_ref, w_ref, b_ref, o_ref):
    # Fused final conv (no BN / no spike) + MembraneOutputLayer (sum_t 0.8^(T-1-t)) + tanh.
    T = a_ref.shape[0]
    acc = jnp.zeros(o_ref.shape, jnp.float32)
    for t in range(T):
        y = jnp.dot(a_ref[t], w_ref[...], preferred_element_type=jnp.float32) + b_ref[...]
        acc = acc + (0.8 ** (T - 1 - t)) * y
    o_ref[...] = jnp.tanh(acc)


def conv_membrane_tanh_pallas(a, w, b, cout):
    """a: (T, M, K) bf16, w: (K, Npad) bf16, b: (Npad,) f32 -> (M, cout) f32."""
    T, M, K = a.shape
    npad = w.shape[1]
    tm = _pick_div(M, (512, 256, 128, 64, 32, 16, 8))
    b2 = b.reshape(1, npad).astype(jnp.float32)
    out = pl.pallas_call(
        _conv_membrane_tanh_kernel,
        out_shape=jax.ShapeDtypeStruct((M, npad), jnp.float32),
        grid=(M // tm,),
        in_specs=[
            pl.BlockSpec((T, tm, K), lambda i: (0, i, 0)),
            pl.BlockSpec((K, npad), lambda i: (0, 0)),
            pl.BlockSpec((1, npad), lambda i: (0, 0)),
        ],
        out_specs=pl.BlockSpec((tm, npad), lambda i: (i, 0)),
        compiler_params=pltpu.CompilerParams(dimension_semantics=("parallel",)),
    )(a, w, b2)
    return out[:, :cout]


# ----------------------------- conv glue (im2col, bf16) -----------------------------

def _im2col(x_nhwc, stride, pad_lo, pad_hi, k=3):
    N, H, W, C = x_nhwc.shape
    xp = jnp.pad(x_nhwc, ((0, 0), (pad_lo, pad_hi), (pad_lo, pad_hi), (0, 0)))
    Hp, Wp = xp.shape[1], xp.shape[2]
    Ho = (Hp - k) // stride + 1
    Wo = (Wp - k) // stride + 1
    cols = []
    for i in range(k):
        for j in range(k):
            cols.append(xp[:, i:i + stride * (Ho - 1) + 1:stride,
                           j:j + stride * (Wo - 1) + 1:stride, :])
    # feature ordering: (ki, kj, Cin) -- weights are stored in the matching orientation
    return jnp.concatenate(cols, axis=-1), Ho, Wo


def _dilate_hw(x_nhwc, s):
    if s == 1:
        return x_nhwc
    N, H, W, C = x_nhwc.shape
    y = jnp.zeros((N, (H - 1) * s + 1, (W - 1) * s + 1, C), x_nhwc.dtype)
    return y.at[:, ::s, ::s, :].set(x_nhwc)


def td_conv_lif(x, layer, cout, stride=2, pad=1):
    # tdConv(3x3, stride 2) + tdBatchNorm (folded) + LIFSpike, all in one Pallas kernel.
    # x: (T, B, H, W, C); cast to bf16 before im2col (spikes are exactly 0/1 -> lossless;
    # only the first conv sees non-binary image values).
    T, B, H, W, C = x.shape
    x2 = x.reshape(T * B, H, W, C)
    if x2.dtype != jnp.bfloat16:
        x2 = x2.astype(jnp.bfloat16)
    patches, Ho, Wo = _im2col(x2, stride, pad, pad)
    K = patches.shape[-1]
    spikes = conv_lif_pallas(patches.reshape(T, B * Ho * Wo, K),
                             layer["W"], layer["b"], cout)
    return spikes.reshape(T, B, Ho, Wo, cout)


def td_conv_transpose_lif(x, layer, cout, stride=2, pad=1, out_pad=1):
    # tdConvTranspose realized as zero-dilated input + stride-1 conv with asymmetric padding,
    # fused with bias/BN/LIF in the Pallas kernel.
    # TODO(synk): subpixel (output-phase) decomposition not implemented; ~75% of dilated-patch
    # MACs are zeros on the stride-2 decoder layers.
    T, B, H, W, C = x.shape
    k = 3
    x2 = x.reshape(T * B, H, W, C)
    if x2.dtype != jnp.bfloat16:
        x2 = x2.astype(jnp.bfloat16)
    x2 = _dilate_hw(x2, stride)
    patches, Ho, Wo = _im2col(x2, 1, k - 1 - pad, k - 1 - pad + out_pad)
    K = patches.shape[-1]
    spikes = conv_lif_pallas(patches.reshape(T, B * Ho * Wo, K),
                             layer["W"], layer["b"], cout)
    return spikes.reshape(T, B, Ho, Wo, cout)


def td_conv_membrane_tanh(x, layer, cout, pad=1):
    # final2 (stride-1 conv-transpose == symmetric-pad conv, no BN, no spike) fused with the
    # MembraneOutputLayer weighted temporal sum and torch.tanh.
    T, B, H, W, C = x.shape
    x2 = x.reshape(T * B, H, W, C)
    if x2.dtype != jnp.bfloat16:
        x2 = x2.astype(jnp.bfloat16)
    patches, Ho, Wo = _im2col(x2, 1, pad, pad)
    K = patches.shape[-1]
    out = conv_membrane_tanh_pallas(patches.reshape(T, B * Ho * Wo, K),
                                    layer["W"], layer["b"], cout)
    return out.reshape(B, Ho, Wo, cout)


# ----------------------------- tiny latent path (plain jnp) -----------------------------
# TODO(synk): posterior/prior/before_latent/decoder_input GEMMs have M = B*T <= 8 and
# K, N <= 1024; they are launch-overhead dominated, so they stay in plain jnp (per perf review).

def td_linear_jnp(x, layer):
    # x: (B, Cin, T) f32 -> (B, Cout, T)
    return jnp.einsum("bit,io->bot", x, layer["W"]) + layer["b"][None, :, None]


def lif_jnp(x):
    # x: (..., T) -> spikes (..., T)
    T = x.shape[-1]
    u = jnp.zeros(x.shape[:-1], jnp.float32)
    o = jnp.zeros(x.shape[:-1], jnp.float32)
    outs = []
    for t in range(T):
        u = TAU * u * (1.0 - o) + x[..., t]
        o = (u > VTH).astype(jnp.float32)
        outs.append(o)
    return jnp.stack(outs, axis=-1)


def _run_td_linear_stack(layers, x):
    h = x
    for layer in layers:
        h = lif_jnp(td_linear_jnp(h, layer))
    return h


# ----------------------------- prior / posterior -----------------------------

def posterior_forward(layers, x, key):
    """x: (B, C, T) spikes -> sampled_z (B,C,T), q_z (B,C,k,T)."""
    B, C, T = x.shape
    z_t_minus = jnp.zeros((B, C, 1), jnp.float32)
    for t in range(T - 1):
        inputs = jnp.concatenate([x[..., :t + 1], z_t_minus], axis=1)        # (B, 2C, t+1)
        outputs = _run_td_linear_stack(layers, inputs)                        # (B, C*k, t+1)
        q_z_t = outputs[..., -1].reshape(B, C, K_SAMP)
        prob1 = jnp.mean(q_z_t, axis=-1)
        key, k1, k2 = jax.random.split(key, 3)
        prob1 = jnp.clip(prob1 + 1e-3 * jax.random.normal(k1, prob1.shape), 1e-3, 1.0 - 1e-3)
        # TODO(synk): PyTorch draws with torch.multinomial and keeps reparameterization gather
        # indices (gradient-only bookkeeping); forward values are reproduced with equivalent
        # Bernoulli draws.
        z_t = jax.random.bernoulli(k2, prob1).astype(jnp.float32)             # (B, C)
        z_t_minus = jnp.concatenate([z_t_minus, z_t[..., None]], axis=-1)

    inputs = jnp.concatenate([x, z_t_minus], axis=1)                          # (B, 2C, T)
    q_z = _run_td_linear_stack(layers, inputs).reshape(B, C, K_SAMP, T)

    prob1_last = jnp.mean(q_z[..., -1], axis=-1)
    key, k1, k2 = jax.random.split(key, 3)
    prob1_last = jnp.clip(prob1_last + 1e-3 * jax.random.normal(k1, prob1_last.shape),
                          1e-3, 1.0 - 1e-3)
    z_last = jax.random.bernoulli(k2, prob1_last).astype(jnp.float32)
    sampled_z = jnp.concatenate([z_t_minus[..., 1:], z_last[..., None]], axis=-1)  # (B, C, T)
    return sampled_z, q_z


def prior_forward(layers, z):
    """z: (B, C, T) -> p_z (B, C, k, T)  (scheduled=False path of PriorBernoulliSTBP)."""
    B, C, T = z.shape
    z0 = jnp.zeros((B, C, 1), jnp.float32)
    inputs = jnp.concatenate([z0, z[..., :-1]], axis=-1)                      # (B, C, T)
    p_z = _run_td_linear_stack(layers, inputs)
    return p_z.reshape(B, C, K_SAMP, T)


# ----------------------------- FSVAE_fashion_EE forward -----------------------------

def encode(params, x, key):
    # x: (T, B, H, W, C)
    h = x
    for layer, cout in zip(params["encoder"], HIDDEN):
        h = td_conv_lif(h, layer, cout, stride=2, pad=1)
    T, B, H, W, C = h.shape
    # torch.flatten(x, 1, 3) on (B, C, H, W, T): C-major flatten order.
    flat = jnp.transpose(h, (1, 4, 2, 3, 0)).reshape(B, C * H * W, T).astype(jnp.float32)
    latent_x = lif_jnp(td_linear_jnp(flat, params["before_latent"]))
    sampled_z, q_z = posterior_forward(params["posterior"], latent_x, key)
    p_z = prior_forward(params["prior"], sampled_z)
    return sampled_z, q_z, p_z


def decode(params, z):
    B, C, T = z.shape
    r = lif_jnp(td_linear_jnp(z, params["decoder_input"]))                     # (B, 1024, T)
    r = r.reshape(B, HIDDEN[-1], 2, 2, T)                                      # torch .view
    r = jnp.transpose(r, (4, 0, 2, 3, 1))                                      # (T, B, 2, 2, 256)
    dec_couts = HIDDEN[::-1][1:]                                               # [128, 64, 32]
    for layer, cout in zip(params["decoder"], dec_couts):
        r = td_conv_transpose_lif(r, layer, cout, stride=2, pad=1, out_pad=1)
    r = td_conv_transpose_lif(r, params["final1"], HIDDEN[0], stride=2, pad=1, out_pad=1)
    out = td_conv_membrane_tanh(r, params["final2"], IN_CH, pad=1)             # (B, 32, 32, 1)
    return jnp.transpose(out, (0, 3, 1, 2))                                    # (B, 1, 32, 32)


@jax.jit
def _forward_prefix(params, x_prefix, key):
    # One fully-jitted encode+decode per prefix length (traced once per distinct t+1).
    sampled_z, q_z, p_z = encode(params, x_prefix, key)
    x_recon = decode(params, sampled_z)
    return x_recon, q_z, p_z, sampled_z


@jax.jit
def _ee_norms(r_prev2, r_prev1, r_cur, r_next):
    # All three compare_images metrics in one device call -> single host sync per step.
    n0 = jnp.sum(jnp.abs(r_prev2 - r_prev1)) / 100.0
    n1 = jnp.sum(jnp.abs(r_prev1 - r_cur)) / 100.0
    n2 = jnp.sum(jnp.abs(r_cur - r_next)) / 100.0
    return n0, n1, n2


def fsvae_fashion_ee_forward(params, x, key, scheduled=False):
    """x: (B, C, H, W, T). Early-exit loop over growing temporal prefixes."""
    # TODO(synk): the reference re-runs encode/decode from scratch per prefix with fresh
    # sampling and a host-side break, so per-prefix-length retrace (<= n_steps compiles) and
    # one host sync per step (only t > 1) are kept to preserve semantics.
    timesteps = x.shape[4]
    xt = jnp.transpose(x, (4, 0, 2, 3, 1))                                     # (T, B, H, W, C)
    recon_list = [jnp.zeros((1,), jnp.float32)]
    eet = 0
    m_norm_2 = None
    x_recon = q_z = p_z = sampled_z = None
    for t in range(timesteps):
        kt = jax.random.fold_in(key, t)
        x_recon, q_z, p_z, sampled_z = _forward_prefix(params, xt[:t + 1], kt)
        recon_list.append(x_recon)
        eet = t + 1
        if t > 1:
            n0, n1, n2 = jax.device_get(
                _ee_norms(recon_list[t - 2], recon_list[t - 1],
                          recon_list[t], recon_list[t + 1]))
            m_norm_0, m_norm_1, m_norm_2 = float(n0), float(n1), float(n2)
            if m_norm_2 < m_norm_1 and m_norm_1 < m_norm_0 and m_norm_2 < 0.2:
                break
    return x_recon, q_z, p_z, sampled_z, eet, m_norm_2


# ----------------------------- deterministic parameter init -----------------------------

def init_params(key):
    keys = iter(jax.random.split(key, 32))

    def base_wb(fan_in, fan_out, alpha, bn):
        k1, k2, k3, k4 = jax.random.split(next(keys), 4)
        bound = 1.0 / math.sqrt(fan_in)
        W = jax.random.uniform(k1, (fan_in, fan_out), jnp.float32, -bound, bound)
        b = jax.random.uniform(k2, (fan_out,), jnp.float32, -bound, bound)
        if bn:
            # TODO(synk): tdBatchNorm uses eval-mode running stats (mean=0, var=1); its affine
            # transform alpha*Vth*gamma/sqrt(var+eps)*(y-mean)+beta is folded into W and b.
            gamma = 1.0 + 0.05 * jax.random.normal(k3, (fan_out,), jnp.float32)
            beta = 0.05 * jax.random.normal(k4, (fan_out,), jnp.float32)
            s = alpha * VTH * gamma / jnp.sqrt(jnp.asarray(1.0 + 1e-5, jnp.float32))
            W = W * s[None, :]
            b = s * b + beta
        return W, b

    def linear_layer(fan_in, fan_out, alpha=1.0, bn=True):
        W, b = base_wb(fan_in, fan_out, alpha, bn)
        return {"W": W, "b": b}

    def conv_layer(cin, cout, alpha=1.0, bn=True):
        # Conv weights stored in im2col matmul orientation (9*cin, cout), bf16 for the MXU,
        # zero-padded on the output-channel axis to a multiple of 128 (lane-dense stores);
        # the padded channels yield zero pre-activation -> zero spikes and are sliced off.
        W, b = base_wb(cin * 9, cout, alpha, bn)
        npad = _round_up(cout, 128)
        if npad != cout:
            W = jnp.pad(W, ((0, 0), (0, npad - cout)))
            b = jnp.pad(b, (0, npad - cout))
        return {"W": W.astype(jnp.bfloat16), "b": b.astype(jnp.float32)}

    params = {}
    enc = []
    cin = IN_CH
    for h in HIDDEN:
        enc.append(conv_layer(cin, h))
        cin = h
    params["encoder"] = enc
    params["before_latent"] = linear_layer(HIDDEN[-1] * 4, LATENT)
    params["posterior"] = [linear_layer(2 * LATENT, 2 * LATENT, alpha=2.0),
                           linear_layer(2 * LATENT, 4 * LATENT, alpha=2.0),
                           linear_layer(4 * LATENT, LATENT * K_SAMP, alpha=2.0)]
    params["prior"] = [linear_layer(LATENT, 2 * LATENT, alpha=2.0),
                       linear_layer(2 * LATENT, 4 * LATENT, alpha=2.0),
                       linear_layer(4 * LATENT, LATENT * K_SAMP, alpha=2.0)]
    params["decoder_input"] = linear_layer(LATENT, HIDDEN[-1] * 4)
    rev = HIDDEN[::-1]
    # TODO(synk): dilate+conv conv-transpose is equivalent to PyTorch ConvTranspose2d only up
    # to a spatial flip / in-out channel transpose of the weights; invisible with random init.
    params["decoder"] = [conv_layer(rev[i], rev[i + 1]) for i in range(len(rev) - 1)]
    params["final1"] = conv_layer(rev[-1], rev[-1])
    params["final2"] = conv_layer(rev[-1], IN_CH, bn=False)
    return params


# ----------------------------- main -----------------------------

if __name__ == "__main__":
    key = jax.random.PRNGKey(0)
    pkey, xkey, skey = jax.random.split(key, 3)
    params = init_params(pkey)

    B = 2
    x = jax.random.uniform(xkey, (B, IN_CH, IMG, IMG, N_STEPS), jnp.float32)

    x_recon, q_z, p_z, sampled_z, eet, m_norm_2 = fsvae_fashion_ee_forward(params, x, skey)
    jax.block_until_ready((x_recon, q_z, p_z, sampled_z))

    assert x_recon.shape == (B, IN_CH, IMG, IMG)
    assert q_z.shape == (B, LATENT, K_SAMP, eet)
    assert p_z.shape == (B, LATENT, K_SAMP, eet)
    assert sampled_z.shape == (B, LATENT, eet)
    print("KERNEL_OK")
</pallas_src>

<mosaic_0001>
module attributes {stable_mosaic.version = 11 : i64} {
  func.func @_conv_lif_kernel(%arg0: i32, %arg1: i32, %arg2: memref<1x512x9xbf16, #tpu.memory_space<vmem>>, %arg3: memref<9x128xbf16, #tpu.memory_space<vmem>>, %arg4: memref<1x128xf32, #tpu.memory_space<vmem>>, %arg5: memref<1x512x128xbf16, #tpu.memory_space<vmem>>) attributes {dimension_semantics = [#tpu.dimension_semantics<parallel>, #tpu.dimension_semantics<parallel>], iteration_bounds = array<i64: 1, 1>, scalar_prefetch = 0 : i64, scratch_operands = 0 : i64, tpu.core_type = #tpu.core_type<tc>, window_params = [{transform_indices = @transform_0, window_bounds = array<i64: 1, 512, 9>}, {transform_indices = @transform_1, window_bounds = array<i64: 9, 128>}, {transform_indices = @transform_2, window_bounds = array<i64: 1, 128>}, {transform_indices = @transform_3, window_bounds = array<i64: 1, 512, 128>}]} {
    %cst = arith.constant 0.000000e+00 : f32
    %0 = vector.broadcast %cst : f32 to vector<512x128xf32>
    %cst_0 = arith.constant 0.000000e+00 : f32
    %1 = vector.broadcast %cst_0 : f32 to vector<512x128xf32>
    %c0 = arith.constant 0 : index
    %c0_1 = arith.constant 0 : index
    %c0_2 = arith.constant 0 : index
    %2 = vector.load %arg2[%c0, %c0_1, %c0_2] : memref<1x512x9xbf16, #tpu.memory_space<vmem>>, vector<1x512x9xbf16>
    %3 = vector.shape_cast %2 : vector<1x512x9xbf16> to vector<512x9xbf16>
    %c0_3 = arith.constant 0 : index
    %c0_4 = arith.constant 0 : index
    %4 = vector.load %arg3[%c0_3, %c0_4] : memref<9x128xbf16, #tpu.memory_space<vmem>>, vector<9x128xbf16>
    %cst_5 = arith.constant dense<0.000000e+00> : vector<512x128xf32>
    %5 = tpu.matmul %3, %4, %cst_5 {dimension_numbers = #tpu.dot_dimension_numbers<[1], [0], [0], [1], [0, 0, 1, 1], [], []>} : vector<512x9xbf16>, vector<9x128xbf16>, vector<512x128xf32> -> vector<512x128xf32>
    %c0_6 = arith.constant 0 : index
    %c0_7 = arith.constant 0 : index
    %6 = vector.load %arg4[%c0_6, %c0_7] : memref<1x128xf32, #tpu.memory_space<vmem>>, vector<1x128xf32>
    %7 = vector.broadcast %6 : vector<1x128xf32> to vector<512x128xf32>
    %8 = arith.addf %5, %7 : vector<512x128xf32>
    %cst_8 = arith.constant 2.500000e-01 : f32
    %9 = vector.broadcast %cst_8 : f32 to vector<512x128xf32>
    %10 = arith.mulf %9, %0 : vector<512x128xf32>
    %cst_9 = arith.constant 1.000000e+00 : f32
    %11 = vector.broadcast %cst_9 : f32 to vector<512x128xf32>
    %12 = arith.subf %11, %1 : vector<512x128xf32>
    %13 = arith.mulf %10, %12 : vector<512x128xf32>
    %14 = arith.addf %13, %8 : vector<512x128xf32>
    %cst_10 = arith.constant 2.000000e-01 : f32
    %15 = vector.broadcast %cst_10 : f32 to vector<512x128xf32>
    %16 = arith.cmpf ogt, %14, %15 : vector<512x128xf32>
    %17 = arith.extui %16 : vector<512x128xi1> to vector<512x128xi32>
    %18 = arith.sitofp %17 : vector<512x128xi32> to vector<512x128xf32>
    %19 = arith.truncf %18 : vector<512x128xf32> to vector<512x128xbf16>
    %c0_11 = arith.constant 0 : index
    %c0_12 = arith.constant 0 : index
    %c0_13 = arith.constant 0 : index
    %20 = vector.load %arg5[%c0_11, %c0_12, %c0_13] : memref<1x512x128xbf16, #tpu.memory_space<vmem>>, vector<1x512x128xbf16>
    %21 = vector.shape_cast %20 : vector<1x512x128xbf16> to vector<512x128xbf16>
    %22 = vector.shape_cast %19 : vector<512x128xbf16> to vector<1x512x128xbf16>
    tpu.vector_store %arg5[%c0_11, %c0_12, %c0_13], %22 {strides = array<i32>} : memref<1x512x128xbf16, #tpu.memory_space<vmem>>, vector<1x512x128xbf16>,
    return
  }
  func.func @transform_0(%arg0: i32, %arg1: i32) -> (i32, i32, i32) {
    %c0_i32 = arith.constant 0 : i32
    %c0_i32_0 = arith.constant 0 : i32
    %c0_i32_1 = arith.constant 0 : i32
    return %c0_i32, %arg0, %c0_i32_0 : i32, i32, i32
  }
  func.func @transform_1(%arg0: i32, %arg1: i32) -> (i32, i32) {
    %c0_i32 = arith.constant 0 : i32
    %c0_i32_0 = arith.constant 0 : i32
    return %c0_i32, %arg1 : i32, i32
  }
  func.func @transform_2(%arg0: i32, %arg1: i32) -> (i32, i32) {
    %c0_i32 = arith.constant 0 : i32
    %c0_i32_0 = arith.constant 0 : i32
    return %c0_i32, %arg1 : i32, i32
  }
  func.func @transform_3(%arg0: i32, %arg1: i32) -> (i32, i32, i32) {
    %c0_i32 = arith.constant 0 : i32
    %c0_i32_0 = arith.constant 0 : i32
    return %c0_i32, %arg0, %arg1 : i32, i32, i32
  }
}

module attributes {stable_mosaic.version = 11 : i64} {
  func.func @_conv_lif_kernel(%arg0: i32, %arg1: i32, %arg2: memref<1x128x288xbf16, #tpu.memory_space<vmem>>, %arg3: memref<288x128xbf16, #tpu.memory_space<vmem>>, %arg4: memref<1x128xf32, #tpu.memory_space<vmem>>, %arg5: memref<1x128x128xbf16, #tpu.memory_space<vmem>>) attributes {dimension_semantics = [#tpu.dimension_semantics<parallel>, #tpu.dimension_semantics<parallel>], iteration_bounds = array<i64: 1, 1>, scalar_prefetch = 0 : i64, scratch_operands = 0 : i64, tpu.core_type = #tpu.core_type<tc>, window_params = [{transform_indices = @transform_0, window_bounds = array<i64: 1, 128, 288>}, {transform_indices = @transform_1, window_bounds = array<i64: 288, 128>}, {transform_indices = @transform_2, window_bounds = array<i64: 1, 128>}, {transform_indices = @transform_3, window_bounds = array<i64: 1, 128, 128>}]} {
    %cst = arith.constant 0.000000e+00 : f32
    %0 = vector.broadcast %cst : f32 to vector<128x128xf32>
    %cst_0 = arith.constant 0.000000e+00 : f32
    %1 = vector.broadcast %cst_0 : f32 to vector<128x128xf32>
    %c0 = arith.constant 0 : index
    %c0_1 = arith.constant 0 : index
    %c0_2 = arith.constant 0 : index
    %2 = vector.load %arg2[%c0, %c0_1, %c0_2] : memref<1x128x288xbf16, #tpu.memory_space<vmem>>, vector<1x128x288xbf16>
    %3 = vector.shape_cast %2 : vector<1x128x288xbf16> to vector<128x288xbf16>
    %c0_3 = arith.constant 0 : index
    %c0_4 = arith.constant 0 : index
    %4 = vector.load %arg3[%c0_3, %c0_4] : memref<288x128xbf16, #tpu.memory_space<vmem>>, vector<288x128xbf16>
    %cst_5 = arith.constant dense<0.000000e+00> : vector<128x128xf32>
    %5 = tpu.matmul %3, %4, %cst_5 {dimension_numbers = #tpu.dot_dimension_numbers<[1], [0], [0], [1], [0, 0, 1, 1], [], []>} : vector<128x288xbf16>, vector<288x128xbf16>, vector<128x128xf32> -> vector<128x128xf32>
    %c0_6 = arith.constant 0 : index
    %c0_7 = arith.constant 0 : index
    %6 = vector.load %arg4[%c0_6, %c0_7] : memref<1x128xf32, #tpu.memory_space<vmem>>, vector<1x128xf32>
    %7 = vector.broadcast %6 : vector<1x128xf32> to vector<128x128xf32>
    %8 = arith.addf %5, %7 : vector<128x128xf32>
    %cst_8 = arith.constant 2.500000e-01 : f32
    %9 = vector.broadcast %cst_8 : f32 to vector<128x128xf32>
    %10 = arith.mulf %9, %0 : vector<128x128xf32>
    %cst_9 = arith.constant 1.000000e+00 : f32
    %11 = vector.broadcast %cst_9 : f32 to vector<128x128xf32>
    %12 = arith.subf %11, %1 : vector<128x128xf32>
    %13 = arith.mulf %10, %12 : vector<128x128xf32>
    %14 = arith.addf %13, %8 : vector<128x128xf32>
    %cst_10 = arith.constant 2.000000e-01 : f32
    %15 = vector.broadcast %cst_10 : f32 to vector<128x128xf32>
    %16 = arith.cmpf ogt, %14, %15 : vector<128x128xf32>
    %17 = arith.extui %16 : vector<128x128xi1> to vector<128x128xi32>
    %18 = arith.sitofp %17 : vector<128x128xi32> to vector<128x128xf32>
    %19 = arith.truncf %18 : vector<128x128xf32> to vector<128x128xbf16>
    %c0_11 = arith.constant 0 : index
    %c0_12 = arith.constant 0 : index
    %c0_13 = arith.constant 0 : index
    %20 = vector.load %arg5[%c0_11, %c0_12, %c0_13] : memref<1x128x128xbf16, #tpu.memory_space<vmem>>, vector<1x128x128xbf16>
    %21 = vector.shape_cast %20 : vector<1x128x128xbf16> to vector<128x128xbf16>
    %22 = vector.shape_cast %19 : vector<128x128xbf16> to vector<1x128x128xbf16>
    tpu.vector_store %arg5[%c0_11, %c0_12, %c0_13], %22 {strides = array<i32>} : memref<1x128x128xbf16, #tpu.memory_space<vmem>>, vector<1x128x128xbf16>,
    return
  }
  func.func @transform_0(%arg0: i32, %arg1: i32) -> (i32, i32, i32) {
    %c0_i32 = arith.constant 0 : i32
    %c0_i32_0 = arith.constant 0 : i32
    %c0_i32_1 = arith.constant 0 : i32
    return %c0_i32, %arg0, %c0_i32_0 : i32, i32, i32
  }
  func.func @transform_1(%arg0: i32, %arg1: i32) -> (i32, i32) {
    %c0_i32 = arith.constant 0 : i32
    %c0_i32_0 = arith.constant 0 : i32
    return %c0_i32, %arg1 : i32, i32
  }
  func.func @transform_2(%arg0: i32, %arg1: i32) -> (i32, i32) {
    %c0_i32 = arith.constant 0 : i32
    %c0_i32_0 = arith.constant 0 : i32
    return %c0_i32, %arg1 : i32, i32
  }
  func.func @transform_3(%arg0: i32, %arg1: i32) -> (i32, i32, i32) {
    %c0_i32 = arith.constant 0 : i32
    %c0_i32_0 = arith.constant 0 : i32
    return %c0_i32, %arg0, %arg1 : i32, i32, i32
  }
}

module attributes {stable_mosaic.version = 11 : i64} {
  func.func @_conv_lif_kernel(%arg0: i32, %arg1: i32, %arg2: memref<1x32x576xbf16, #tpu.memory_space<vmem>>, %arg3: memref<576x128xbf16, #tpu.memory_space<vmem>>, %arg4: memref<1x128xf32, #tpu.memory_space<vmem>>, %arg5: memref<1x32x128xbf16, #tpu.memory_space<vmem>>) attributes {dimension_semantics = [#tpu.dimension_semantics<parallel>, #tpu.dimension_semantics<parallel>], iteration_bounds = array<i64: 1, 1>, scalar_prefetch = 0 : i64, scratch_operands = 0 : i64, tpu.core_type = #tpu.core_type<tc>, window_params = [{transform_indices = @transform_0, window_bounds = array<i64: 1, 32, 576>}, {transform_indices = @transform_1, window_bounds = array<i64: 576, 128>}, {transform_indices = @transform_2, window_bounds = array<i64: 1, 128>}, {transform_indices = @transform_3, window_bounds = array<i64: 1, 32, 128>}]} {
    %cst = arith.constant 0.000000e+00 : f32
    %0 = vector.broadcast %cst : f32 to vector<32x128xf32>
    %cst_0 = arith.constant 0.000000e+00 : f32
    %1 = vector.broadcast %cst_0 : f32 to vector<32x128xf32>
    %c0 = arith.constant 0 : index
    %c0_1 = arith.constant 0 : index
    %c0_2 = arith.constant 0 : index
    %2 = vector.load %arg2[%c0, %c0_1, %c0_2] : memref<1x32x576xbf16, #tpu.memory_space<vmem>>, vector<1x32x576xbf16>
    %3 = vector.shape_cast %2 : vector<1x32x576xbf16> to vector<32x576xbf16>
    %c0_3 = arith.constant 0 : index
    %c0_4 = arith.constant 0 : index
    %4 = vector.load %arg3[%c0_3, %c0_4] : memref<576x128xbf16, #tpu.memory_space<vmem>>, vector<576x128xbf16>
    %cst_5 = arith.constant dense<0.000000e+00> : vector<32x128xf32>
    %5 = tpu.matmul %3, %4, %cst_5 {dimension_numbers = #tpu.dot_dimension_numbers<[1], [0], [0], [1], [0, 0, 1, 1], [], []>} : vector<32x576xbf16>, vector<576x128xbf16>, vector<32x128xf32> -> vector<32x128xf32>
    %c0_6 = arith.constant 0 : index
    %c0_7 = arith.constant 0 : index
    %6 = vector.load %arg4[%c0_6, %c0_7] : memref<1x128xf32, #tpu.memory_space<vmem>>, vector<1x128xf32>
    %7 = vector.broadcast %6 : vector<1x128xf32> to vector<32x128xf32>
    %8 = arith.addf %5, %7 : vector<32x128xf32>
    %cst_8 = arith.constant 2.500000e-01 : f32
    %9 = vector.broadcast %cst_8 : f32 to vector<32x128xf32>
    %10 = arith.mulf %9, %0 : vector<32x128xf32>
    %cst_9 = arith.constant 1.000000e+00 : f32
    %11 = vector.broadcast %cst_9 : f32 to vector<32x128xf32>
    %12 = arith.subf %11, %1 : vector<32x128xf32>
    %13 = arith.mulf %10, %12 : vector<32x128xf32>
    %14 = arith.addf %13, %8 : vector<32x128xf32>
    %cst_10 = arith.constant 2.000000e-01 : f32
    %15 = vector.broadcast %cst_10 : f32 to vector<32x128xf32>
    %16 = arith.cmpf ogt, %14, %15 : vector<32x128xf32>
    %17 = arith.extui %16 : vector<32x128xi1> to vector<32x128xi32>
    %18 = arith.sitofp %17 : vector<32x128xi32> to vector<32x128xf32>
    %19 = arith.truncf %18 : vector<32x128xf32> to vector<32x128xbf16>
    %c0_11 = arith.constant 0 : index
    %c0_12 = arith.constant 0 : index
    %c0_13 = arith.constant 0 : index
    %20 = vector.load %arg5[%c0_11, %c0_12, %c0_13] : memref<1x32x128xbf16, #tpu.memory_space<vmem>>, vector<1x32x128xbf16>
    %21 = vector.shape_cast %20 : vector<1x32x128xbf16> to vector<32x128xbf16>
    %22 = vector.shape_cast %19 : vector<32x128xbf16> to vector<1x32x128xbf16>
    tpu.vector_store %arg5[%c0_11, %c0_12, %c0_13], %22 {strides = array<i32>} : memref<1x32x128xbf16, #tpu.memory_space<vmem>>, vector<1x32x128xbf16>,
    return
  }
  func.func @transform_0(%arg0: i32, %arg1: i32) -> (i32, i32, i32) {
    %c0_i32 = arith.constant 0 : i32
    %c0_i32_0 = arith.constant 0 : i32
    %c0_i32_1 = arith.constant 0 : i32
    return %c0_i32, %arg0, %c0_i32_0 : i32, i32, i32
  }
  func.func @transform_1(%arg0: i32, %arg1: i32) -> (i32, i32) {
    %c0_i32 = arith.constant 0 : i32
    %c0_i32_0 = arith.constant 0 : i32
    return %c0_i32, %arg1 : i32, i32
  }
  func.func @transform_2(%arg0: i32, %arg1: i32) -> (i32, i32) {
    %c0_i32 = arith.constant 0 : i32
    %c0_i32_0 = arith.constant 0 : i32
    return %c0_i32, %arg1 : i32, i32
  }
  func.func @transform_3(%arg0: i32, %arg1: i32) -> (i32, i32, i32) {
    %c0_i32 = arith.constant 0 : i32
    %c0_i32_0 = arith.constant 0 : i32
    return %c0_i32, %arg0, %arg1 : i32, i32, i32
  }
}

module attributes {stable_mosaic.version = 11 : i64} {
  func.func @_conv_lif_kernel(%arg0: i32, %arg1: i32, %arg2: memref<1x8x1152xbf16, #tpu.memory_space<vmem>>, %arg3: memref<1152x128xbf16, #tpu.memory_space<vmem>>, %arg4: memref<1x128xf32, #tpu.memory_space<vmem>>, %arg5: memref<1x8x128xbf16, #tpu.memory_space<vmem>>) attributes {dimension_semantics = [#tpu.dimension_semantics<parallel>, #tpu.dimension_semantics<parallel>], iteration_bounds = array<i64: 1, 2>, scalar_prefetch = 0 : i64, scratch_operands = 0 : i64, tpu.core_type = #tpu.core_type<tc>, window_params = [{transform_indices = @transform_0, window_bounds = array<i64: 1, 8, 1152>}, {transform_indices = @transform_1, window_bounds = array<i64: 1152, 128>}, {transform_indices = @transform_2, window_bounds = array<i64: 1, 128>}, {transform_indices = @transform_3, window_bounds = array<i64: 1, 8, 128>}]} {
    %cst = arith.constant 0.000000e+00 : f32
    %0 = vector.broadcast %cst : f32 to vector<8x128xf32>
    %cst_0 = arith.constant 0.000000e+00 : f32
    %1 = vector.broadcast %cst_0 : f32 to vector<8x128xf32>
    %c0 = arith.constant 0 : index
    %c0_1 = arith.constant 0 : index
    %c0_2 = arith.constant 0 : index
    %2 = vector.load %arg2[%c0, %c0_1, %c0_2] : memref<1x8x1152xbf16, #tpu.memory_space<vmem>>, vector<1x8x1152xbf16>
    %3 = vector.shape_cast %2 : vector<1x8x1152xbf16> to vector<8x1152xbf16>
    %c0_3 = arith.constant 0 : index
    %c0_4 = arith.constant 0 : index
    %4 = vector.load %arg3[%c0_3, %c0_4] : memref<1152x128xbf16, #tpu.memory_space<vmem>>, vector<1152x128xbf16>
    %cst_5 = arith.constant dense<0.000000e+00> : vector<8x128xf32>
    %5 = tpu.matmul %3, %4, %cst_5 {dimension_numbers = #tpu.dot_dimension_numbers<[1], [0], [0], [1], [0, 0, 1, 1], [], []>} : vector<8x1152xbf16>, vector<1152x128xbf16>, vector<8x128xf32> -> vector<8x128xf32>
    %c0_6 = arith.constant 0 : index
    %c0_7 = arith.constant 0 : index
    %6 = vector.load %arg4[%c0_6, %c0_7] : memref<1x128xf32, #tpu.memory_space<vmem>>, vector<1x128xf32>
    %7 = vector.broadcast %6 : vector<1x128xf32> to vector<8x128xf32>
    %8 = arith.addf %5, %7 : vector<8x128xf32>
    %cst_8 = arith.constant 2.500000e-01 : f32
    %9 = vector.broadcast %cst_8 : f32 to vector<8x128xf32>
    %10 = arith.mulf %9, %0 : vector<8x128xf32>
    %cst_9 = arith.constant 1.000000e+00 : f32
    %11 = vector.broadcast %cst_9 : f32 to vector<8x128xf32>
    %12 = arith.subf %11, %1 : vector<8x128xf32>
    %13 = arith.mulf %10, %12 : vector<8x128xf32>
    %14 = arith.addf %13, %8 : vector<8x128xf32>
    %cst_10 = arith.constant 2.000000e-01 : f32
    %15 = vector.broadcast %cst_10 : f32 to vector<8x128xf32>
    %16 = arith.cmpf ogt, %14, %15 : vector<8x128xf32>
    %17 = arith.extui %16 : vector<8x128xi1> to vector<8x128xi32>
    %18 = arith.sitofp %17 : vector<8x128xi32> to vector<8x128xf32>
    %19 = arith.truncf %18 : vector<8x128xf32> to vector<8x128xbf16>
    %c0_11 = arith.constant 0 : index
    %c0_12 = arith.constant 0 : index
    %c0_13 = arith.constant 0 : index
    %20 = vector.load %arg5[%c0_11, %c0_12, %c0_13] : memref<1x8x128xbf16, #tpu.memory_space<vmem>>, vector<1x8x128xbf16>
    %21 = vector.shape_cast %20 : vector<1x8x128xbf16> to vector<8x128xbf16>
    %22 = vector.shape_cast %19 : vector<8x128xbf16> to vector<1x8x128xbf16>
    tpu.vector_store %arg5[%c0_11, %c0_12, %c0_13], %22 {strides = array<i32>} : memref<1x8x128xbf16, #tpu.memory_space<vmem>>, vector<1x8x128xbf16>,
    return
  }
  func.func @transform_0(%arg0: i32, %arg1: i32) -> (i32, i32, i32) {
    %c0_i32 = arith.constant 0 : i32
    %c0_i32_0 = arith.constant 0 : i32
    %c0_i32_1 = arith.constant 0 : i32
    return %c0_i32, %arg0, %c0_i32_0 : i32, i32, i32
  }
  func.func @transform_1(%arg0: i32, %arg1: i32) -> (i32, i32) {
    %c0_i32 = arith.constant 0 : i32
    %c0_i32_0 = arith.constant 0 : i32
    return %c0_i32, %arg1 : i32, i32
  }
  func.func @transform_2(%arg0: i32, %arg1: i32) -> (i32, i32) {
    %c0_i32 = arith.constant 0 : i32
    %c0_i32_0 = arith.constant 0 : i32
    return %c0_i32, %arg1 : i32, i32
  }
  func.func @transform_3(%arg0: i32, %arg1: i32) -> (i32, i32, i32) {
    %c0_i32 = arith.constant 0 : i32
    %c0_i32_0 = arith.constant 0 : i32
    return %c0_i32, %arg0, %arg1 : i32, i32, i32
  }
}

module attributes {stable_mosaic.version = 11 : i64} {
  func.func @_conv_lif_kernel(%arg0: i32, %arg1: i32, %arg2: memref<1x32x2304xbf16, #tpu.memory_space<vmem>>, %arg3: memref<2304x128xbf16, #tpu.memory_space<vmem>>, %arg4: memref<1x128xf32, #tpu.memory_space<vmem>>, %arg5: memref<1x32x128xbf16, #tpu.memory_space<vmem>>) attributes {dimension_semantics = [#tpu.dimension_semantics<parallel>, #tpu.dimension_semantics<parallel>], iteration_bounds = array<i64: 1, 1>, scalar_prefetch = 0 : i64, scratch_operands = 0 : i64, tpu.core_type = #tpu.core_type<tc>, window_params = [{transform_indices = @transform_0, window_bounds = array<i64: 1, 32, 2304>}, {transform_indices = @transform_1, window_bounds = array<i64: 2304, 128>}, {transform_indices = @transform_2, window_bounds = array<i64: 1, 128>}, {transform_indices = @transform_3, window_bounds = array<i64: 1, 32, 128>}]} {
    %cst = arith.constant 0.000000e+00 : f32
    %0 = vector.broadcast %cst : f32 to vector<32x128xf32>
    %cst_0 = arith.constant 0.000000e+00 : f32
    %1 = vector.broadcast %cst_0 : f32 to vector<32x128xf32>
    %c0 = arith.constant 0 : index
    %c0_1 = arith.constant 0 : index
    %c0_2 = arith.constant 0 : index
    %2 = vector.load %arg2[%c0, %c0_1, %c0_2] : memref<1x32x2304xbf16, #tpu.memory_space<vmem>>, vector<1x32x2304xbf16>
    %3 = vector.shape_cast %2 : vector<1x32x2304xbf16> to vector<32x2304xbf16>
    %c0_3 = arith.constant 0 : index
    %c0_4 = arith.constant 0 : index
    %4 = vector.load %arg3[%c0_3, %c0_4] : memref<2304x128xbf16, #tpu.memory_space<vmem>>, vector<2304x128xbf16>
    %cst_5 = arith.constant dense<0.000000e+00> : vector<32x128xf32>
    %5 = tpu.matmul %3, %4, %cst_5 {dimension_numbers = #tpu.dot_dimension_numbers<[1], [0], [0], [1], [0, 0, 1, 1], [], []>} : vector<32x2304xbf16>, vector<2304x128xbf16>, vector<32x128xf32> -> vector<32x128xf32>
    %c0_6 = arith.constant 0 : index
    %c0_7 = arith.constant 0 : index
    %6 = vector.load %arg4[%c0_6, %c0_7] : memref<1x128xf32, #tpu.memory_space<vmem>>, vector<1x128xf32>
    %7 = vector.broadcast %6 : vector<1x128xf32> to vector<32x128xf32>
    %8 = arith.addf %5, %7 : vector<32x128xf32>
    %cst_8 = arith.constant 2.500000e-01 : f32
    %9 = vector.broadcast %cst_8 : f32 to vector<32x128xf32>
    %10 = arith.mulf %9, %0 : vector<32x128xf32>
    %cst_9 = arith.constant 1.000000e+00 : f32
    %11 = vector.broadcast %cst_9 : f32 to vector<32x128xf32>
    %12 = arith.subf %11, %1 : vector<32x128xf32>
    %13 = arith.mulf %10, %12 : vector<32x128xf32>
    %14 = arith.addf %13, %8 : vector<32x128xf32>
    %cst_10 = arith.constant 2.000000e-01 : f32
    %15 = vector.broadcast %cst_10 : f32 to vector<32x128xf32>
    %16 = arith.cmpf ogt, %14, %15 : vector<32x128xf32>
    %17 = arith.extui %16 : vector<32x128xi1> to vector<32x128xi32>
    %18 = arith.sitofp %17 : vector<32x128xi32> to vector<32x128xf32>
    %19 = arith.truncf %18 : vector<32x128xf32> to vector<32x128xbf16>
    %c0_11 = arith.constant 0 : index
    %c0_12 = arith.constant 0 : index
    %c0_13 = arith.constant 0 : index
    %20 = vector.load %arg5[%c0_11, %c0_12, %c0_13] : memref<1x32x128xbf16, #tpu.memory_space<vmem>>, vector<1x32x128xbf16>
    %21 = vector.shape_cast %20 : vector<1x32x128xbf16> to vector<32x128xbf16>
    %22 = vector.shape_cast %19 : vector<32x128xbf16> to vector<1x32x128xbf16>
    tpu.vector_store %arg5[%c0_11, %c0_12, %c0_13], %22 {strides = array<i32>} : memref<1x32x128xbf16, #tpu.memory_space<vmem>>, vector<1x32x128xbf16>,
    return
  }
  func.func @transform_0(%arg0: i32, %arg1: i32) -> (i32, i32, i32) {
    %c0_i32 = arith.constant 0 : i32
    %c0_i32_0 = arith.constant 0 : i32
    %c0_i32_1 = arith.constant 0 : i32
    return %c0_i32, %arg0, %c0_i32_0 : i32, i32, i32
  }
  func.func @transform_1(%arg0: i32, %arg1: i32) -> (i32, i32) {
    %c0_i32 = arith.constant 0 : i32
    %c0_i32_0 = arith.constant 0 : i32
    return %c0_i32, %arg1 : i32, i32
  }
  func.func @transform_2(%arg0: i32, %arg1: i32) -> (i32, i32) {
    %c0_i32 = arith.constant 0 : i32
    %c0_i32_0 = arith.constant 0 : i32
    return %c0_i32, %arg1 : i32, i32
  }
  func.func @transform_3(%arg0: i32, %arg1: i32) -> (i32, i32, i32) {
    %c0_i32 = arith.constant 0 : i32
    %c0_i32_0 = arith.constant 0 : i32
    return %c0_i32, %arg0, %arg1 : i32, i32, i32
  }
}

module attributes {stable_mosaic.version = 11 : i64} {
  func.func @_conv_lif_kernel(%arg0: i32, %arg1: i32, %arg2: memref<1x128x1152xbf16, #tpu.memory_space<vmem>>, %arg3: memref<1152x128xbf16, #tpu.memory_space<vmem>>, %arg4: memref<1x128xf32, #tpu.memory_space<vmem>>, %arg5: memref<1x128x128xbf16, #tpu.memory_space<vmem>>) attributes {dimension_semantics = [#tpu.dimension_semantics<parallel>, #tpu.dimension_semantics<parallel>], iteration_bounds = array<i64: 1, 1>, scalar_prefetch = 0 : i64, scratch_operands = 0 : i64, tpu.core_type = #tpu.core_type<tc>, window_params = [{transform_indices = @transform_0, window_bounds = array<i64: 1, 128, 1152>}, {transform_indices = @transform_1, window_bounds = array<i64: 1152, 128>}, {transform_indices = @transform_2, window_bounds = array<i64: 1, 128>}, {transform_indices = @transform_3, window_bounds = array<i64: 1, 128, 128>}]} {
    %cst = arith.constant 0.000000e+00 : f32
    %0 = vector.broadcast %cst : f32 to vector<128x128xf32>
    %cst_0 = arith.constant 0.000000e+00 : f32
    %1 = vector.broadcast %cst_0 : f32 to vector<128x128xf32>
    %c0 = arith.constant 0 : index
    %c0_1 = arith.constant 0 : index
    %c0_2 = arith.constant 0 : index
    %2 = vector.load %arg2[%c0, %c0_1, %c0_2] : memref<1x128x1152xbf16, #tpu.memory_space<vmem>>, vector<1x128x1152xbf16>
    %3 = vector.shape_cast %2 : vector<1x128x1152xbf16> to vector<128x1152xbf16>
    %c0_3 = arith.constant 0 : index
    %c0_4 = arith.constant 0 : index
    %4 = vector.load %arg3[%c0_3, %c0_4] : memref<1152x128xbf16, #tpu.memory_space<vmem>>, vector<1152x128xbf16>
    %cst_5 = arith.constant dense<0.000000e+00> : vector<128x128xf32>
    %5 = tpu.matmul %3, %4, %cst_5 {dimension_numbers = #tpu.dot_dimension_numbers<[1], [0], [0], [1], [0, 0, 1, 1], [], []>} : vector<128x1152xbf16>, vector<1152x128xbf16>, vector<128x128xf32> -> vector<128x128xf32>
    %c0_6 = arith.constant 0 : index
    %c0_7 = arith.constant 0 : index
    %6 = vector.load %arg4[%c0_6, %c0_7] : memref<1x128xf32, #tpu.memory_space<vmem>>, vector<1x128xf32>
    %7 = vector.broadcast %6 : vector<1x128xf32> to vector<128x128xf32>
    %8 = arith.addf %5, %7 : vector<128x128xf32>
    %cst_8 = arith.constant 2.500000e-01 : f32
    %9 = vector.broadcast %cst_8 : f32 to vector<128x128xf32>
    %10 = arith.mulf %9, %0 : vector<128x128xf32>
    %cst_9 = arith.constant 1.000000e+00 : f32
    %11 = vector.broadcast %cst_9 : f32 to vector<128x128xf32>
    %12 = arith.subf %11, %1 : vector<128x128xf32>
    %13 = arith.mulf %10, %12 : vector<128x128xf32>
    %14 = arith.addf %13, %8 : vector<128x128xf32>
    %cst_10 = arith.constant 2.000000e-01 : f32
    %15 = vector.broadcast %cst_10 : f32 to vector<128x128xf32>
    %16 = arith.cmpf ogt, %14, %15 : vector<128x128xf32>
    %17 = arith.extui %16 : vector<128x128xi1> to vector<128x128xi32>
    %18 = arith.sitofp %17 : vector<128x128xi32> to vector<128x128xf32>
    %19 = arith.truncf %18 : vector<128x128xf32> to vector<128x128xbf16>
    %c0_11 = arith.constant 0 : index
    %c0_12 = arith.constant 0 : index
    %c0_13 = arith.constant 0 : index
    %20 = vector.load %arg5[%c0_11, %c0_12, %c0_13] : memref<1x128x128xbf16, #tpu.memory_space<vmem>>, vector<1x128x128xbf16>
    %21 = vector.shape_cast %20 : vector<1x128x128xbf16> to vector<128x128xbf16>
    %22 = vector.shape_cast %19 : vector<128x128xbf16> to vector<1x128x128xbf16>
    tpu.vector_store %arg5[%c0_11, %c0_12, %c0_13], %22 {strides = array<i32>} : memref<1x128x128xbf16, #tpu.memory_space<vmem>>, vector<1x128x128xbf16>,
    return
  }
  func.func @transform_0(%arg0: i32, %arg1: i32) -> (i32, i32, i32) {
    %c0_i32 = arith.constant 0 : i32
    %c0_i32_0 = arith.constant 0 : i32
    %c0_i32_1 = arith.constant 0 : i32
    return %c0_i32, %arg0, %c0_i32_0 : i32, i32, i32
  }
  func.func @transform_1(%arg0: i32, %arg1: i32) -> (i32, i32) {
    %c0_i32 = arith.constant 0 : i32
    %c0_i32_0 = arith.constant 0 : i32
    return %c0_i32, %arg1 : i32, i32
  }
  func.func @transform_2(%arg0: i32, %arg1: i32) -> (i32, i32) {
    %c0_i32 = arith.constant 0 : i32
    %c0_i32_0 = arith.constant 0 : i32
    return %c0_i32, %arg1 : i32, i32
  }
  func.func @transform_3(%arg0: i32, %arg1: i32) -> (i32, i32, i32) {
    %c0_i32 = arith.constant 0 : i32
    %c0_i32_0 = arith.constant 0 : i32
    return %c0_i32, %arg0, %arg1 : i32, i32, i32
  }
}

module attributes {stable_mosaic.version = 11 : i64} {
  func.func @_conv_lif_kernel(%arg0: i32, %arg1: i32, %arg2: memref<1x512x576xbf16, #tpu.memory_space<vmem>>, %arg3: memref<576x128xbf16, #tpu.memory_space<vmem>>, %arg4: memref<1x128xf32, #tpu.memory_space<vmem>>, %arg5: memref<1x512x128xbf16, #tpu.memory_space<vmem>>) attributes {dimension_semantics = [#tpu.dimension_semantics<parallel>, #tpu.dimension_semantics<parallel>], iteration_bounds = array<i64: 1, 1>, scalar_prefetch = 0 : i64, scratch_operands = 0 : i64, tpu.core_type = #tpu.core_type<tc>, window_params = [{transform_indices = @transform_0, window_bounds = array<i64: 1, 512, 576>}, {transform_indices = @transform_1, window_bounds = array<i64: 576, 128>}, {transform_indices = @transform_2, window_bounds = array<i64: 1, 128>}, {transform_indices = @transform_3, window_bounds = array<i64: 1, 512, 128>}]} {
    %cst = arith.constant 0.000000e+00 : f32
    %0 = vector.broadcast %cst : f32 to vector<512x128xf32>
    %cst_0 = arith.constant 0.000000e+00 : f32
    %1 = vector.broadcast %cst_0 : f32 to vector<512x128xf32>
    %c0 = arith.constant 0 : index
    %c0_1 = arith.constant 0 : index
    %c0_2 = arith.constant 0 : index
    %2 = vector.load %arg2[%c0, %c0_1, %c0_2] : memref<1x512x576xbf16, #tpu.memory_space<vmem>>, vector<1x512x576xbf16>
    %3 = vector.shape_cast %2 : vector<1x512x576xbf16> to vector<512x576xbf16>
    %c0_3 = arith.constant 0 : index
    %c0_4 = arith.constant 0 : index
    %4 = vector.load %arg3[%c0_3, %c0_4] : memref<576x128xbf16, #tpu.memory_space<vmem>>, vector<576x128xbf16>
    %cst_5 = arith.constant dense<0.000000e+00> : vector<512x128xf32>
    %5 = tpu.matmul %3, %4, %cst_5 {dimension_numbers = #tpu.dot_dimension_numbers<[1], [0], [0], [1], [0, 0, 1, 1], [], []>} : vector<512x576xbf16>, vector<576x128xbf16>, vector<512x128xf32> -> vector<512x128xf32>
    %c0_6 = arith.constant 0 : index
    %c0_7 = arith.constant 0 : index
    %6 = vector.load %arg4[%c0_6, %c0_7] : memref<1x128xf32, #tpu.memory_space<vmem>>, vector<1x128xf32>
    %7 = vector.broadcast %6 : vector<1x128xf32> to vector<512x128xf32>
    %8 = arith.addf %5, %7 : vector<512x128xf32>
    %cst_8 = arith.constant 2.500000e-01 : f32
    %9 = vector.broadcast %cst_8 : f32 to vector<512x128xf32>
    %10 = arith.mulf %9, %0 : vector<512x128xf32>
    %cst_9 = arith.constant 1.000000e+00 : f32
    %11 = vector.broadcast %cst_9 : f32 to vector<512x128xf32>
    %12 = arith.subf %11, %1 : vector<512x128xf32>
    %13 = arith.mulf %10, %12 : vector<512x128xf32>
    %14 = arith.addf %13, %8 : vector<512x128xf32>
    %cst_10 = arith.constant 2.000000e-01 : f32
    %15 = vector.broadcast %cst_10 : f32 to vector<512x128xf32>
    %16 = arith.cmpf ogt, %14, %15 : vector<512x128xf32>
    %17 = arith.extui %16 : vector<512x128xi1> to vector<512x128xi32>
    %18 = arith.sitofp %17 : vector<512x128xi32> to vector<512x128xf32>
    %19 = arith.truncf %18 : vector<512x128xf32> to vector<512x128xbf16>
    %c0_11 = arith.constant 0 : index
    %c0_12 = arith.constant 0 : index
    %c0_13 = arith.constant 0 : index
    %20 = vector.load %arg5[%c0_11, %c0_12, %c0_13] : memref<1x512x128xbf16, #tpu.memory_space<vmem>>, vector<1x512x128xbf16>
    %21 = vector.shape_cast %20 : vector<1x512x128xbf16> to vector<512x128xbf16>
    %22 = vector.shape_cast %19 : vector<512x128xbf16> to vector<1x512x128xbf16>
    tpu.vector_store %arg5[%c0_11, %c0_12, %c0_13], %22 {strides = array<i32>} : memref<1x512x128xbf16, #tpu.memory_space<vmem>>, vector<1x512x128xbf16>,
    return
  }
  func.func @transform_0(%arg0: i32, %arg1: i32) -> (i32, i32, i32) {
    %c0_i32 = arith.constant 0 : i32
    %c0_i32_0 = arith.constant 0 : i32
    %c0_i32_1 = arith.constant 0 : i32
    return %c0_i32, %arg0, %c0_i32_0 : i32, i32, i32
  }
  func.func @transform_1(%arg0: i32, %arg1: i32) -> (i32, i32) {
    %c0_i32 = arith.constant 0 : i32
    %c0_i32_0 = arith.constant 0 : i32
    return %c0_i32, %arg1 : i32, i32
  }
  func.func @transform_2(%arg0: i32, %arg1: i32) -> (i32, i32) {
    %c0_i32 = arith.constant 0 : i32
    %c0_i32_0 = arith.constant 0 : i32
    return %c0_i32, %arg1 : i32, i32
  }
  func.func @transform_3(%arg0: i32, %arg1: i32) -> (i32, i32, i32) {
    %c0_i32 = arith.constant 0 : i32
    %c0_i32_0 = arith.constant 0 : i32
    return %c0_i32, %arg0, %arg1 : i32, i32, i32
  }
}

module attributes {stable_mosaic.version = 11 : i64} {
  func.func @_conv_lif_kernel(%arg0: i32, %arg1: i32, %arg2: memref<1x512x288xbf16, #tpu.memory_space<vmem>>, %arg3: memref<288x128xbf16, #tpu.memory_space<vmem>>, %arg4: memref<1x128xf32, #tpu.memory_space<vmem>>, %arg5: memref<1x512x128xbf16, #tpu.memory_space<vmem>>) attributes {dimension_semantics = [#tpu.dimension_semantics<parallel>, #tpu.dimension_semantics<parallel>], iteration_bounds = array<i64: 4, 1>, scalar_prefetch = 0 : i64, scratch_operands = 0 : i64, tpu.core_type = #tpu.core_type<tc>, window_params = [{transform_indices = @transform_0, window_bounds = array<i64: 1, 512, 288>}, {transform_indices = @transform_1, window_bounds = array<i64: 288, 128>}, {transform_indices = @transform_2, window_bounds = array<i64: 1, 128>}, {transform_indices = @transform_3, window_bounds = array<i64: 1, 512, 128>}]} {
    %cst = arith.constant 0.000000e+00 : f32
    %0 = vector.broadcast %cst : f32 to vector<512x128xf32>
    %cst_0 = arith.constant 0.000000e+00 : f32
    %1 = vector.broadcast %cst_0 : f32 to vector<512x128xf32>
    %c0 = arith.constant 0 : index
    %c0_1 = arith.constant 0 : index
    %c0_2 = arith.constant 0 : index
    %2 = vector.load %arg2[%c0, %c0_1, %c0_2] : memref<1x512x288xbf16, #tpu.memory_space<vmem>>, vector<1x512x288xbf16>
    %3 = vector.shape_cast %2 : vector<1x512x288xbf16> to vector<512x288xbf16>
    %c0_3 = arith.constant 0 : index
    %c0_4 = arith.constant 0 : index
    %4 = vector.load %arg3[%c0_3, %c0_4] : memref<288x128xbf16, #tpu.memory_space<vmem>>, vector<288x128xbf16>
    %cst_5 = arith.constant dense<0.000000e+00> : vector<512x128xf32>
    %5 = tpu.matmul %3, %4, %cst_5 {dimension_numbers = #tpu.dot_dimension_numbers<[1], [0], [0], [1], [0, 0, 1, 1], [], []>} : vector<512x288xbf16>, vector<288x128xbf16>, vector<512x128xf32> -> vector<512x128xf32>
    %c0_6 = arith.constant 0 : index
    %c0_7 = arith.constant 0 : index
    %6 = vector.load %arg4[%c0_6, %c0_7] : memref<1x128xf32, #tpu.memory_space<vmem>>, vector<1x128xf32>
    %7 = vector.broadcast %6 : vector<1x128xf32> to vector<512x128xf32>
    %8 = arith.addf %5, %7 : vector<512x128xf32>
    %cst_8 = arith.constant 2.500000e-01 : f32
    %9 = vector.broadcast %cst_8 : f32 to vector<512x128xf32>
    %10 = arith.mulf %9, %0 : vector<512x128xf32>
    %cst_9 = arith.constant 1.000000e+00 : f32
    %11 = vector.broadcast %cst_9 : f32 to vector<512x128xf32>
    %12 = arith.subf %11, %1 : vector<512x128xf32>
    %13 = arith.mulf %10, %12 : vector<512x128xf32>
    %14 = arith.addf %13, %8 : vector<512x128xf32>
    %cst_10 = arith.constant 2.000000e-01 : f32
    %15 = vector.broadcast %cst_10 : f32 to vector<512x128xf32>
    %16 = arith.cmpf ogt, %14, %15 : vector<512x128xf32>
    %17 = arith.extui %16 : vector<512x128xi1> to vector<512x128xi32>
    %18 = arith.sitofp %17 : vector<512x128xi32> to vector<512x128xf32>
    %19 = arith.truncf %18 : vector<512x128xf32> to vector<512x128xbf16>
    %c0_11 = arith.constant 0 : index
    %c0_12 = arith.constant 0 : index
    %c0_13 = arith.constant 0 : index
    %20 = vector.load %arg5[%c0_11, %c0_12, %c0_13] : memref<1x512x128xbf16, #tpu.memory_space<vmem>>, vector<1x512x128xbf16>
    %21 = vector.shape_cast %20 : vector<1x512x128xbf16> to vector<512x128xbf16>
    %22 = vector.shape_cast %19 : vector<512x128xbf16> to vector<1x512x128xbf16>
    tpu.vector_store %arg5[%c0_11, %c0_12, %c0_13], %22 {strides = array<i32>} : memref<1x512x128xbf16, #tpu.memory_space<vmem>>, vector<1x512x128xbf16>,
    return
  }
  func.func @transform_0(%arg0: i32, %arg1: i32) -> (i32, i32, i32) {
    %c0_i32 = arith.constant 0 : i32
    %c0_i32_0 = arith.constant 0 : i32
    %c0_i32_1 = arith.constant 0 : i32
    return %c0_i32, %arg0, %c0_i32_0 : i32, i32, i32
  }
  func.func @transform_1(%arg0: i32, %arg1: i32) -> (i32, i32) {
    %c0_i32 = arith.constant 0 : i32
    %c0_i32_0 = arith.constant 0 : i32
    return %c0_i32, %arg1 : i32, i32
  }
  func.func @transform_2(%arg0: i32, %arg1: i32) -> (i32, i32) {
    %c0_i32 = arith.constant 0 : i32
    %c0_i32_0 = arith.constant 0 : i32
    return %c0_i32, %arg1 : i32, i32
  }
  func.func @transform_3(%arg0: i32, %arg1: i32) -> (i32, i32, i32) {
    %c0_i32 = arith.constant 0 : i32
    %c0_i32_0 = arith.constant 0 : i32
    return %c0_i32, %arg0, %arg1 : i32, i32, i32
  }
}

module attributes {stable_mosaic.version = 11 : i64} {
  func.func @_conv_membrane_tanh_kernel(%arg0: i32, %arg1: memref<1x512x288xbf16, #tpu.memory_space<vmem>>, %arg2: memref<288x128xbf16, #tpu.memory_space<vmem>>, %arg3: memref<1x128xf32, #tpu.memory_space<vmem>>, %arg4: memref<512x128xf32, #tpu.memory_space<vmem>>) attributes {dimension_semantics = [#tpu.dimension_semantics<parallel>], iteration_bounds = array<i64: 4>, scalar_prefetch = 0 : i64, scratch_operands = 0 : i64, tpu.core_type = #tpu.core_type<tc>, window_params = [{transform_indices = @transform_0, window_bounds = array<i64: 1, 512, 288>}, {pipeline_mode = #tpu.pipeline_mode<synchronous>, transform_indices = @transform_1, window_bounds = array<i64: 288, 128>}, {pipeline_mode = #tpu.pipeline_mode<synchronous>, transform_indices = @transform_2, window_bounds = array<i64: 1, 128>}, {transform_indices = @transform_3, window_bounds = array<i64: 512, 128>}]} {
    %cst = arith.constant 0.000000e+00 : f32
    %0 = vector.broadcast %cst : f32 to vector<512x128xf32>
    %c0 = arith.constant 0 : index
    %c0_0 = arith.constant 0 : index
    %c0_1 = arith.constant 0 : index
    %1 = vector.load %arg1[%c0, %c0_0, %c0_1] : memref<1x512x288xbf16, #tpu.memory_space<vmem>>, vector<1x512x288xbf16>
    %2 = vector.shape_cast %1 : vector<1x512x288xbf16> to vector<512x288xbf16>
    %c0_2 = arith.constant 0 : index
    %c0_3 = arith.constant 0 : index
    %3 = vector.load %arg2[%c0_2, %c0_3] : memref<288x128xbf16, #tpu.memory_space<vmem>>, vector<288x128xbf16>
    %cst_4 = arith.constant dense<0.000000e+00> : vector<512x128xf32>
    %4 = tpu.matmul %2, %3, %cst_4 {dimension_numbers = #tpu.dot_dimension_numbers<[1], [0], [0], [1], [0, 0, 1, 1], [], []>} : vector<512x288xbf16>, vector<288x128xbf16>, vector<512x128xf32> -> vector<512x128xf32>
    %c0_5 = arith.constant 0 : index
    %c0_6 = arith.constant 0 : index
    %5 = vector.load %arg3[%c0_5, %c0_6] : memref<1x128xf32, #tpu.memory_space<vmem>>, vector<1x128xf32>
    %6 = vector.broadcast %5 : vector<1x128xf32> to vector<512x128xf32>
    %7 = arith.addf %4, %6 : vector<512x128xf32>
    %cst_7 = arith.constant 1.000000e+00 : f32
    %8 = vector.broadcast %cst_7 : f32 to vector<512x128xf32>
    %9 = arith.mulf %8, %7 : vector<512x128xf32>
    %10 = arith.addf %0, %9 : vector<512x128xf32>
    %11 = math.tanh %10 : vector<512x128xf32>
    %c0_8 = arith.constant 0 : index
    %c0_9 = arith.constant 0 : index
    %12 = vector.load %arg4[%c0_8, %c0_9] : memref<512x128xf32, #tpu.memory_space<vmem>>, vector<512x128xf32>
    tpu.vector_store %arg4[%c0_8, %c0_9], %11 {strides = array<i32>} : memref<512x128xf32, #tpu.memory_space<vmem>>, vector<512x128xf32>,
    return
  }
  func.func @transform_0(%arg0: i32) -> (i32, i32, i32) {
    %c0_i32 = arith.constant 0 : i32
    %c0_i32_0 = arith.constant 0 : i32
    %c0_i32_1 = arith.constant 0 : i32
    return %c0_i32, %arg0, %c0_i32_0 : i32, i32, i32
  }
  func.func @transform_1(%arg0: i32) -> (i32, i32) {
    %c0_i32 = arith.constant 0 : i32
    %c0_i32_0 = arith.constant 0 : i32
    %c0_i32_1 = arith.constant 0 : i32
    return %c0_i32, %c0_i32_0 : i32, i32
  }
  func.func @transform_2(%arg0: i32) -> (i32, i32) {
    %c0_i32 = arith.constant 0 : i32
    %c0_i32_0 = arith.constant 0 : i32
    %c0_i32_1 = arith.constant 0 : i32
    return %c0_i32, %c0_i32_0 : i32, i32
  }
  func.func @transform_3(%arg0: i32) -> (i32, i32) {
    %c0_i32 = arith.constant 0 : i32
    %c0_i32_0 = arith.constant 0 : i32
    return %arg0, %c0_i32 : i32, i32
  }
}

</mosaic_0001>

<bundles_post_ra>
// kernel: _forward_prefix.9
= control target key start
LH: loop header
LB: loop body
LE: loop exit
PB: predicated region body
PF: predicated region fallthrough
CT: control target
= control target key end

     0   :  { %8 = vsyncpa [#allocation3], 0  ;;  %s2215_s0 = inlined_call_operand.vmem [shape: bf16[1,512,9], index: 0, kind: input, shape index: {}]   ;;  %s2216_s1 = inlined_call_operand.hbm [shape: bf16[9,128], index: 1, kind: input, shape index: {}]   ;;  %s2217_s2 = inlined_call_operand.hbm [shape: f32[1,128], index: 2, kind: input, shape index: {}]   ;;  %s2218_s3 = inlined_call_operand.vmem [shape: bf16[1,512,128], index: 3, kind: output, shape index: {}]  }
   0x1   :  { %9 = vsyncpa [#allocation5], 0  ;;  %s1823_s12 = smov [#allocation2]  }
   0x2   :  { %s17_s13 = sshll.u32 %s1823_s12, 4  ;;  %s18_s13 = int_to_ptr.vmem [resolvable:$true] %s17_s13 }
   0x3   :  { %s1787_s14 = scalar_lea.vmem %s18_s13, 128  ;;  %p1792_p1 = scmp.lt.s32.totalorder %s18_s13, %s18_s13 }
   0x4   :  { %p1788_p0 = scmp.ne.s32.totalorder %s18_s13, %s1787_s14  ;;  %p1793_p2 = scmp.lt.s32.totalorder %s1787_s14, %s1787_s14 }
   0x6   :  { %p1794_p3 = por %p1793_p2, %p1792_p1 }
   0x8   :  { %p1795_p4 = pnand %p1794_p3, %p1788_p0 }
   0xa   :  { %1798 = shalt.err (!%p1795_p4)
}
   0xb   :  { %s1824_s15 = smov 64   ;;  %s1825_s16 = smov 4  }
   0xc   :  { %23 = dma.hbm_to_vmem [thread:$0]  %s2216_s1, 128, %s18_s13, [#allocation3], %s1824_s15, %s1824_s15, %s1825_s16  }
   0xd   :  { %s1826_s19 = smov [#allocation4]  }
   0xe   :  { %s30_s20 = sshll.u32 %s1826_s19, 4  ;;  %s31_s20 = int_to_ptr.vmem [resolvable:$true] %s30_s20 }
   0xf   :  { %s1807_s21 = scalar_lea.vmem %s31_s20, 16  ;;  %s1811_s22 = scalar_lea.vmem %s31_s20, 32 }
  0x10   :  { %p1808_p5 = scmp.ne.s32.totalorder %s31_s20, %s1807_s21  ;;  %p1812_p6 = scmp.lt.s32.totalorder %s31_s20, %s31_s20 }
  0x11   :  { %p1813_p7 = scmp.lt.s32.totalorder %s1811_s22, %s1807_s21 }
  0x13   :  { %p1814_p8 = por %p1813_p7, %p1812_p6 }
  0x15   :  { %p1815_p9 = pnand %p1814_p8, %p1808_p5 }
  0x17   :  { %1818 = shalt.err (!%p1815_p9)
}
  0x18   :  { %33 = dma.hbm_to_vmem [thread:$0]  %s2217_s2, 16, %s31_s20, [#allocation5]  }
  0x19   :  { %1819 = dma.done.wait [#allocation3], 128  }
  0x1a   :  { %1820 = vsyncadd [#allocation3], 4294967168 }
  0x1b   :  { %1821 = dma.done.wait [#allocation5], 16  }
  0x1c   :  { %1822 = vsyncadd [#allocation5], 4294967280  ;;  %vm376_vm0 = vcmask 1043456   ;;  %vm377_vm1 = vcmask 1044480   ;;  %v1827_v0 = vmov 65535   ;;  %vm279_vm2 = vcmask 72704  }
  0x1d   :  { %v378_v1 = vsel %vm376_vm0, 4294967295, %v1827_v0  ;;  %v1746_v3 = vld [vmem:[#allocation2] sm:$0x1f]   ;;  %v1749_v7 = vld [vmem:[%s2215_s0 + $0x8] sm:$0xff]   ;;  %v1751_v9 = vld [vmem:[%s2215_s0 + $0x10] sm:$0xff]   ;;  %v1828_v50 = vmov 0.0  }
  0x1e   :  { %v379_v2 = vsel %vm377_vm1, %v378_v1, 0  ;;  %v1747_v4 = vld [vmem:[%s2215_s0] sm:$0xff]   ;;  %v1750_v8 = vld [vmem:[%s2215_s0 + $0x88] sm:$0xff]   ;;  %v1752_v10 = vld [vmem:[%s2215_s0 + $0x90] sm:$0xff]  }
  0x1f   :  { %v381_v5 = vand.u32 %v1746_v3, %v379_v2  ;;  %v1748_v6 = vld [vmem:[%s2215_s0 + $0x80] sm:$0xff]   ;;  %1674 = vmatprep.mubr.msk.bf16.mxu0 %vm279_vm2, %v1747_v4  ;;  %v1753_v11 = vld [vmem:[%s2215_s0 + $0x18] sm:$0xff]   ;;  %v1757_v15 = vld [vmem:[%s2215_s0 + $0x28] sm:$0xff]  }
  0x20   :  { %1706 = vmatprep.mubr.msk.bf16.mxu1 %vm279_vm2, %v1748_v6  ;;  %v1754_v12 = vld [vmem:[%s2215_s0 + $0x98] sm:$0xff]   ;;  %v1755_v13 = vld [vmem:[%s2215_s0 + $0x20] sm:$0xff]   ;;  %v1758_v16 = vld [vmem:[%s2215_s0 + $0xa8] sm:$0xff]  }
  0x21   :  { %1672 = vmatprep.subr.bf16.mxu0 %v381_v5  ;;  %1738 = vmatprep.subr.bf16.mxu1 %v381_v5  ;;  %v1756_v14 = vld [vmem:[%s2215_s0 + $0xa0] sm:$0xff]   ;;  %v1759_v17 = vld [vmem:[%s2215_s0 + $0x30] sm:$0xff]   ;;  %v1761_v19 = vld [vmem:[%s2215_s0 + $0x38] sm:$0xff]  }
  0x22   :  { %1673 = vmatpush3.bf16.msra.mxu0 %v381_v5  ;;  %1739 = vmatpush3.bf16.msra.mxu1 %v381_v5  ;;  %v1760_v18 = vld [vmem:[%s2215_s0 + $0xb0] sm:$0xff]   ;;  %v1762_v20 = vld [vmem:[%s2215_s0 + $0xb8] sm:$0xff]   ;;  %v1763_v21 = vld [vmem:[%s2215_s0 + $0x40] sm:$0xff]  }
  0x23   :  { %v1764_v22 = vld [vmem:[%s2215_s0 + $0xc0] sm:$0xff]   ;;  %v1765_v23 = vld [vmem:[%s2215_s0 + $0x48] sm:$0xff]   ;;  %v1767_v25 = vld [vmem:[%s2215_s0 + $0x50] sm:$0xff]  }
  0x24   :  { %v1766_v24 = vld [vmem:[%s2215_s0 + $0xc8] sm:$0xff]   ;;  %v1768_v26 = vld [vmem:[%s2215_s0 + $0xd0] sm:$0xff]   ;;  %v1769_v27 = vld [vmem:[%s2215_s0 + $0x58] sm:$0xff]  }
  0x25   :  { %1675 = vmatmul.mubr.msk.bf16.vlgmr.msra.gmra.mxu0 %vm279_vm2, %v1749_v7  ;;  %1707 = vmatmul.mubr.msk.bf16.vlgmr.msra.gmra.mxu1 %vm279_vm2, %v1750_v8  ;;  %v1770_v28 = vld [vmem:[%s2215_s0 + $0xd8] sm:$0xff]   ;;  %v1771_v29 = vld [vmem:[%s2215_s0 + $0x60] sm:$0xff]   ;;  %v1773_v31 = vld [vmem:[%s2215_s0 + $0x68] sm:$0xff]  }
  0x26   :  { %1678 = vmatprep.mubr.msk.bf16.mxu0 %vm279_vm2, %v1751_v9  ;;  %1710 = vmatprep.mubr.msk.bf16.mxu1 %vm279_vm2, %v1752_v10  ;;  %v1772_v30 = vld [vmem:[%s2215_s0 + $0xe0] sm:$0xff]   ;;  %v1774_v32 = vld [vmem:[%s2215_s0 + $0xe8] sm:$0xff]   ;;  %v1775_v33 = vld [vmem:[%s2215_s0 + $0x70] sm:$0xff]  }
  0x27   :  { %v1776_v34 = vld [vmem:[%s2215_s0 + $0xf0] sm:$0xff]   ;;  %v1777_v35 = vld [vmem:[%s2215_s0 + $0x78] sm:$0xff]   ;;  %v1983_v37 = vld [vmem:[#allocation4] ss:$0 sm:$0xff] }
  0x28   :  { %v1778_v36 = vld [vmem:[%s2215_s0 + $0xf8] sm:$0xff]  }
  0x2d   :  { %1679 = vmatmul.mubr.msk.bf16.gmra.mxu0 %vm279_vm2, %v1753_v11  ;;  %1711 = vmatmul.mubr.msk.bf16.gmra.mxu1 %vm279_vm2, %v1754_v12 }
  0x2e   :  { %1682 = vmatprep.mubr.msk.bf16.mxu0 %vm279_vm2, %v1755_v13  ;;  %1714 = vmatprep.mubr.msk.bf16.mxu1 %vm279_vm2, %v1756_v14 }
  0x35   :  { %1683 = vmatmul.mubr.msk.bf16.gmra.mxu0 %vm279_vm2, %v1757_v15  ;;  %1715 = vmatmul.mubr.msk.bf16.gmra.mxu1 %vm279_vm2, %v1758_v16 }
  0x36   :  { %1686 = vmatprep.mubr.msk.bf16.mxu0 %vm279_vm2, %v1759_v17  ;;  %1718 = vmatprep.mubr.msk.bf16.mxu1 %vm279_vm2, %v1760_v18 }
  0x3d   :  { %1687 = vmatmul.mubr.msk.bf16.gmra.mxu0 %vm279_vm2, %v1761_v19  ;;  %1719 = vmatmul.mubr.msk.bf16.gmra.mxu1 %vm279_vm2, %v1762_v20 }
  0x3e   :  { %1690 = vmatprep.mubr.msk.bf16.mxu0 %vm279_vm2, %v1763_v21  ;;  %1722 = vmatprep.mubr.msk.bf16.mxu1 %vm279_vm2, %v1764_v22 }
  0x45   :  { %1691 = vmatmul.mubr.msk.bf16.gmra.mxu0 %vm279_vm2, %v1765_v23  ;;  %1723 = vmatmul.mubr.msk.bf16.gmra.mxu1 %vm279_vm2, %v1766_v24 }
  0x46   :  { %1694 = vmatprep.mubr.msk.bf16.mxu0 %vm279_vm2, %v1767_v25  ;;  %1726 = vmatprep.mubr.msk.bf16.mxu1 %vm279_vm2, %v1768_v26 }
  0x4d   :  { %1695 = vmatmul.mubr.msk.bf16.gmra.mxu0 %vm279_vm2, %v1769_v27  ;;  %1727 = vmatmul.mubr.msk.bf16.gmra.mxu1 %vm279_vm2, %v1770_v28 }
  0x4e   :  { %1698 = vmatprep.mubr.msk.bf16.mxu0 %vm279_vm2, %v1771_v29  ;;  %1730 = vmatprep.mubr.msk.bf16.mxu1 %vm279_vm2, %v1772_v30 }
  0x55   :  { %1699 = vmatmul.mubr.msk.bf16.gmra.mxu0 %vm279_vm2, %v1773_v31  ;;  %1731 = vmatmul.mubr.msk.bf16.gmra.mxu1 %vm279_vm2, %v1774_v32 }
  0x56   :  { %1702 = vmatprep.mubr.msk.bf16.mxu0 %vm279_vm2, %v1775_v33  ;;  %1734 = vmatprep.mubr.msk.bf16.mxu1 %vm279_vm2, %v1776_v34 }
  0x5d   :  { %1703 = vmatmul.mubr.msk.bf16.gmra.mxu0 %vm279_vm2, %v1777_v35  ;;  %1735 = vmatmul.mubr.msk.bf16.gmra.mxu1 %vm279_vm2, %v1778_v36 }
  0xe5   :  { %v1676_v38 = vpop.f32.mrf.mxu0  ;;  %v1708_v39 = vpop.f32.mrf.mxu1 }
  0xe6   :  { %v426_v40 = vadd.f32 %v1676_v38, %v1983_v37  ;;  %v554_v41 = vadd.f32 %v1708_v39, %v1983_v37 }
  0xe7   :  { %v417_v42 = vpop.f32.mrf.mxu0  ;;  %v545_v43 = vpop.f32.mrf.mxu1 }
  0xe8   :  { %vm738_vm3 = vcmp.gt.f32.partialorder %v426_v40, 0.2  ;;  %vm770_vm4 = vcmp.gt.f32.partialorder %v554_v41, 0.2  ;;  %v418_v44 = vadd.f32 %v1983_v37, %v417_v42  ;;  %v546_v45 = vadd.f32 %v1983_v37, %v545_v43 }
  0xe9   :  { %v1677_v46 = vpop.f32.mrf.mxu0  ;;  %v1709_v47 = vpop.f32.mrf.mxu1  ;;  %v1322_v51 = vsel %vm738_vm3, 1.0, %v1828_v50  ;;  %v1354_v52 = vsel %vm770_vm4, 1.0, %v1828_v50 }
  0xea   :  { %vm736_vm5 = vcmp.gt.f32.partialorder %v418_v44, 0.2  ;;  %vm768_vm6 = vcmp.gt.f32.partialorder %v546_v45, 0.2  ;;  %v429_v48 = vadd.f32 %v1677_v46, %v1983_v37  ;;  %v557_v49 = vadd.f32 %v1709_v47, %v1983_v37 }
  0xeb   :  { %v420_v53 = vpop.f32.mrf.mxu0  ;;  %v548_v54 = vpop.f32.mrf.mxu1  ;;  %v1320_v57 = vsel %vm736_vm5, 1.0, %v1828_v50  ;;  %v1352_v58 = vsel %vm768_vm6, 1.0, %v1828_v50 }
  0xec   :  { %vm739_vm7 = vcmp.gt.f32.partialorder %v429_v48, 0.2  ;;  %vm771_vm8 = vcmp.gt.f32.partialorder %v557_v49, 0.2  ;;  %v421_v55 = vadd.f32 %v1983_v37, %v420_v53  ;;  %v549_v56 = vadd.f32 %v1983_v37, %v548_v54 }
  0xed   :  { %v1323_v59 = vsel %vm739_vm7, 1.0, %v1828_v50  ;;  %v1355_v60 = vsel %vm771_vm8, 1.0, %v1828_v50  ;;  %v1680_v61 = vpop.f32.mrf.mxu0  ;;  %v1712_v62 = vpop.f32.mrf.mxu1 }
  0xee   :  { %v1516_v63 = vpack.c.bf16 %v1323_v59, %v1322_v51  ;;  %v1564_v0 = vpack.c.bf16 %v1355_v60, %v1354_v52  ;;  %vm737_vm9 = vcmp.gt.f32.partialorder %v421_v55, 0.2  ;;  %vm769_vm10 = vcmp.gt.f32.partialorder %v549_v56, 0.2 }
  0xef   :  { %v1321_v1 = vsel %vm737_vm9, 1.0, %v1828_v50  ;;  %v1353_v2 = vsel %vm769_vm10, 1.0, %v1828_v50  ;;  %v442_v3 = vadd.f32 %v1680_v61, %v1983_v37  ;;  %v570_v4 = vadd.f32 %v1712_v62, %v1983_v37  ;;  %v433_v5 = vpop.f32.mrf.mxu0  ;;  %v561_v6 = vpop.f32.mrf.mxu1 }
  0xf0   :  { %1608 = vst [vmem:[%s2218_s3 + $0x8] sm:$0xff] %v1516_v63   ;;  %1624 = vst [vmem:[%s2218_s3 + $0x88] sm:$0xff] %v1564_v0   ;;  %v1513_v7 = vpack.c.bf16 %v1321_v1, %v1320_v57  ;;  %v1561_v8 = vpack.c.bf16 %v1353_v2, %v1352_v58  ;;  %v434_v9 = vadd.f32 %v1983_v37, %v433_v5 }
  0xf1   :  { %v562_v10 = vadd.f32 %v1983_v37, %v561_v6  ;;  %vm742_vm11 = vcmp.gt.f32.partialorder %v442_v3, 0.2  ;;  %vm774_vm12 = vcmp.gt.f32.partialorder %v570_v4, 0.2  ;;  %v1681_v11 = vpop.f32.mrf.mxu0  ;;  %v1713_v12 = vpop.f32.mrf.mxu1 }
  0xf2   :  { %1514 = vst [vmem:[%s2218_s3] sm:$0xff] %v1513_v7   ;;  %1623 = vst [vmem:[%s2218_s3 + $0x80] sm:$0xff] %v1561_v8   ;;  %vm740_vm13 = vcmp.gt.f32.partialorder %v434_v9, 0.2  ;;  %v445_v13 = vadd.f32 %v1681_v11, %v1983_v37  ;;  %v573_v14 = vadd.f32 %v1713_v12, %v1983_v37  ;;  %v1326_v17 = vsel %vm742_vm11, 1.0, %v1828_v50 }
  0xf3   :  { %vm772_vm14 = vcmp.gt.f32.partialorder %v562_v10, 0.2  ;;  %v436_v15 = vpop.f32.mrf.mxu0  ;;  %v564_v16 = vpop.f32.mrf.mxu1  ;;  %v1358_v18 = vsel %vm774_vm12, 1.0, %v1828_v50  ;;  %v1324_v21 = vsel %vm740_vm13, 1.0, %v1828_v50 }
  0xf4   :  { %v437_v19 = vadd.f32 %v1983_v37, %v436_v15  ;;  %v565_v20 = vadd.f32 %v1983_v37, %v564_v16  ;;  %v1356_v22 = vsel %vm772_vm14, 1.0, %v1828_v50  ;;  %vm743_vm15 = vcmp.gt.f32.partialorder %v445_v13, 0.2 }
  0xf5   :  { %vm775_vm0 = vcmp.gt.f32.partialorder %v573_v14, 0.2  ;;  %v1684_v23 = vpop.f32.mrf.mxu0  ;;  %v1716_v24 = vpop.f32.mrf.mxu1  ;;  %v1327_v25 = vsel %vm743_vm15, 1.0, %v1828_v50 }
  0xf6   :  { %v1359_v26 = vsel %vm775_vm0, 1.0, %v1828_v50  ;;  %vm741_vm1 = vcmp.gt.f32.partialorder %v437_v19, 0.2  ;;  %vm773_vm2 = vcmp.gt.f32.partialorder %v565_v20, 0.2  ;;  %v1522_v27 = vpack.c.bf16 %v1327_v25, %v1326_v17 }
  0xf7   :  { %v1570_v28 = vpack.c.bf16 %v1359_v26, %v1358_v18  ;;  %v1325_v29 = vsel %vm741_vm1, 1.0, %v1828_v50  ;;  %v1357_v30 = vsel %vm773_vm2, 1.0, %v1828_v50  ;;  %v449_v31 = vpop.f32.mrf.mxu0  ;;  %v577_v32 = vpop.f32.mrf.mxu1  ;;  %v458_v35 = vadd.f32 %v1684_v23, %v1983_v37 }
  0xf8   :  { %v1519_v33 = vpack.c.bf16 %v1325_v29, %v1324_v21  ;;  %v1567_v34 = vpack.c.bf16 %v1357_v30, %v1356_v22  ;;  %v586_v36 = vadd.f32 %v1716_v24, %v1983_v37  ;;  %1610 = vst [vmem:[%s2218_s3 + $0x18] sm:$0xff] %v1522_v27   ;;  %v450_v38 = vadd.f32 %v1983_v37, %v449_v31 }
  0xf9   :  { %1626 = vst [vmem:[%s2218_s3 + $0x98] sm:$0xff] %v1570_v28   ;;  %v578_v39 = vadd.f32 %v1983_v37, %v577_v32  ;;  %v1685_v40 = vpop.f32.mrf.mxu0  ;;  %v1717_v41 = vpop.f32.mrf.mxu1  ;;  %vm746_vm3 = vcmp.gt.f32.partialorder %v458_v35, 0.2 }
  0xfa   :  { %1609 = vst [vmem:[%s2218_s3 + $0x10] sm:$0xff] %v1519_v33   ;;  %1625 = vst [vmem:[%s2218_s3 + $0x90] sm:$0xff] %v1567_v34   ;;  %vm778_vm4 = vcmp.gt.f32.partialorder %v586_v36, 0.2  ;;  %v461_v42 = vadd.f32 %v1685_v40, %v1983_v37  ;;  %v589_v43 = vadd.f32 %v1717_v41, %v1983_v37  ;;  %v1330_v44 = vsel %vm746_vm3, 1.0, %v1828_v50 }
  0xfb   :  { %v1362_v45 = vsel %vm778_vm4, 1.0, %v1828_v50  ;;  %vm744_vm5 = vcmp.gt.f32.partialorder %v450_v38, 0.2  ;;  %v452_v46 = vpop.f32.mrf.mxu0  ;;  %v580_v47 = vpop.f32.mrf.mxu1  ;;  %vm776_vm6 = vcmp.gt.f32.partialorder %v578_v39, 0.2 }
  0xfc   :  { %vm747_vm7 = vcmp.gt.f32.partialorder %v461_v42, 0.2  ;;  %vm779_vm8 = vcmp.gt.f32.partialorder %v589_v43, 0.2  ;;  %v453_v51 = vadd.f32 %v1983_v37, %v452_v46  ;;  %v581_v52 = vadd.f32 %v1983_v37, %v580_v47 }
  0xfd   :  { %v1331_v48 = vsel %vm747_vm7, 1.0, %v1828_v50  ;;  %v1363_v49 = vsel %vm779_vm8, 1.0, %v1828_v50  ;;  %v1688_v53 = vpop.f32.mrf.mxu0  ;;  %v1720_v54 = vpop.f32.mrf.mxu1  ;;  %v1328_v59 = vsel %vm744_vm5, 1.0, %v1828_v50  ;;  %v1360_v62 = vsel %vm776_vm6, 1.0, %v1828_v50 }
  0xfe   :  { %v1528_v55 = vpack.c.bf16 %v1331_v48, %v1330_v44  ;;  %v1576_v56 = vpack.c.bf16 %v1363_v49, %v1362_v45  ;;  %v474_v57 = vadd.f32 %v1688_v53, %v1983_v37  ;;  %v602_v58 = vadd.f32 %v1720_v54, %v1983_v37 }
  0xff   :  { %vm745_vm9 = vcmp.gt.f32.partialorder %v453_v51, 0.2  ;;  %vm777_vm10 = vcmp.gt.f32.partialorder %v581_v52, 0.2  ;;  %v465_v60 = vpop.f32.mrf.mxu0  ;;  %v593_v61 = vpop.f32.mrf.mxu1 }
 0x100   :  { %1612 = vst [vmem:[%s2218_s3 + $0x28] sm:$0xff] %v1528_v55   ;;  %1628 = vst [vmem:[%s2218_s3 + $0xa8] sm:$0xff] %v1576_v56   ;;  %v1329_v63 = vsel %vm745_vm9, 1.0, %v1828_v50  ;;  %v1361_v0 = vsel %vm777_vm10, 1.0, %v1828_v50  ;;  %vm750_vm11 = vcmp.gt.f32.partialorder %v474_v57, 0.2  ;;  %v466_v5 = vadd.f32 %v1983_v37, %v465_v60 }
 0x101   :  { %v1525_v1 = vpack.c.bf16 %v1329_v63, %v1328_v59  ;;  %v1573_v2 = vpack.c.bf16 %v1361_v0, %v1360_v62  ;;  %vm782_vm12 = vcmp.gt.f32.partialorder %v602_v58, 0.2  ;;  %v1689_v3 = vpop.f32.mrf.mxu0  ;;  %v1721_v4 = vpop.f32.mrf.mxu1  ;;  %v594_v6 = vadd.f32 %v1983_v37, %v593_v61 }
 0x102   :  { %v477_v7 = vadd.f32 %v1689_v3, %v1983_v37  ;;  %v605_v8 = vadd.f32 %v1721_v4, %v1983_v37  ;;  %v1334_v9 = vsel %vm750_vm11, 1.0, %v1828_v50  ;;  %v1366_v12 = vsel %vm782_vm12, 1.0, %v1828_v50 }
 0x103   :  { %1611 = vst [vmem:[%s2218_s3 + $0x20] sm:$0xff] %v1525_v1   ;;  %1627 = vst [vmem:[%s2218_s3 + $0xa0] sm:$0xff] %v1573_v2   ;;  %v468_v10 = vpop.f32.mrf.mxu0  ;;  %v596_v11 = vpop.f32.mrf.mxu1  ;;  %vm748_vm13 = vcmp.gt.f32.partialorder %v466_v5, 0.2  ;;  %vm780_vm15 = vcmp.gt.f32.partialorder %v594_v6, 0.2 }
 0x104   :  { %vm751_vm14 = vcmp.gt.f32.partialorder %v477_v7, 0.2  ;;  %v469_v13 = vadd.f32 %v1983_v37, %v468_v10  ;;  %v1332_v14 = vsel %vm748_vm13, 1.0, %v1828_v50  ;;  %vm783_vm0 = vcmp.gt.f32.partialorder %v605_v8, 0.2 }
 0x105   :  { %v1335_v15 = vsel %vm751_vm14, 1.0, %v1828_v50  ;;  %v1692_v16 = vpop.f32.mrf.mxu0  ;;  %v1724_v17 = vpop.f32.mrf.mxu1  ;;  %v1367_v19 = vsel %vm783_vm0, 1.0, %v1828_v50  ;;  %v597_v20 = vadd.f32 %v1983_v37, %v596_v11  ;;  %v1364_v30 = vsel %vm780_vm15, 1.0, %v1828_v50 }
 0x106   :  { %v1534_v18 = vpack.c.bf16 %v1335_v15, %v1334_v9  ;;  %vm749_vm1 = vcmp.gt.f32.partialorder %v469_v13, 0.2  ;;  %v1582_v21 = vpack.c.bf16 %v1367_v19, %v1366_v12  ;;  %v490_v23 = vadd.f32 %v1692_v16, %v1983_v37 }
 0x107   :  { %v1333_v22 = vsel %vm749_vm1, 1.0, %v1828_v50  ;;  %v618_v24 = vadd.f32 %v1724_v17, %v1983_v37  ;;  %v481_v25 = vpop.f32.mrf.mxu0  ;;  %v609_v26 = vpop.f32.mrf.mxu1  ;;  %vm781_vm2 = vcmp.gt.f32.partialorder %v597_v20, 0.2 }
 0x108   :  { %1614 = vst [vmem:[%s2218_s3 + $0x38] sm:$0xff] %v1534_v18   ;;  %v1531_v27 = vpack.c.bf16 %v1333_v22, %v1332_v14  ;;  %v482_v28 = vadd.f32 %v1983_v37, %v481_v25  ;;  %v610_v29 = vadd.f32 %v1983_v37, %v609_v26  ;;  %1630 = vst [vmem:[%s2218_s3 + $0xb8] sm:$0xff] %v1582_v21   ;;  %v1365_v31 = vsel %vm781_vm2, 1.0, %v1828_v50 }
 0x109   :  { %vm754_vm3 = vcmp.gt.f32.partialorder %v490_v23, 0.2  ;;  %vm786_vm4 = vcmp.gt.f32.partialorder %v618_v24, 0.2  ;;  %v1693_v32 = vpop.f32.mrf.mxu0  ;;  %v1725_v33 = vpop.f32.mrf.mxu1  ;;  %v1579_v34 = vpack.c.bf16 %v1365_v31, %v1364_v30 }
 0x10a   :  { %1613 = vst [vmem:[%s2218_s3 + $0x30] sm:$0xff] %v1531_v27   ;;  %vm752_vm5 = vcmp.gt.f32.partialorder %v482_v28, 0.2  ;;  %vm784_vm6 = vcmp.gt.f32.partialorder %v610_v29, 0.2  ;;  %v493_v35 = vadd.f32 %v1693_v32, %v1983_v37  ;;  %v621_v36 = vadd.f32 %v1725_v33, %v1983_v37 }
 0x10b   :  { %v484_v38 = vpop.f32.mrf.mxu0  ;;  %v612_v39 = vpop.f32.mrf.mxu1  ;;  %1629 = vst [vmem:[%s2218_s3 + $0xb0] sm:$0xff] %v1579_v34   ;;  %v1338_v40 = vsel %vm754_vm3, 1.0, %v1828_v50  ;;  %v1370_v41 = vsel %vm786_vm4, 1.0, %v1828_v50  ;;  %v1336_v44 = vsel %vm752_vm5, 1.0, %v1828_v50  ;;  %v1368_v45 = vsel %vm784_vm6, 1.0, %v1828_v50 }
 0x10c   :  { %v485_v42 = vadd.f32 %v1983_v37, %v484_v38  ;;  %v613_v43 = vadd.f32 %v1983_v37, %v612_v39  ;;  %vm755_vm7 = vcmp.gt.f32.partialorder %v493_v35, 0.2  ;;  %vm787_vm8 = vcmp.gt.f32.partialorder %v621_v36, 0.2 }
 0x10d   :  { %v1696_v46 = vpop.f32.mrf.mxu0  ;;  %v1728_v47 = vpop.f32.mrf.mxu1  ;;  %v1339_v48 = vsel %vm755_vm7, 1.0, %v1828_v50  ;;  %v1371_v49 = vsel %vm787_vm8, 1.0, %v1828_v50 }
 0x10e   :  { %vm753_vm9 = vcmp.gt.f32.partialorder %v485_v42, 0.2  ;;  %vm785_vm10 = vcmp.gt.f32.partialorder %v613_v43, 0.2  ;;  %v1540_v51 = vpack.c.bf16 %v1339_v48, %v1338_v40  ;;  %v1588_v52 = vpack.c.bf16 %v1371_v49, %v1370_v41 }
 0x10f   :  { %v1337_v53 = vsel %vm753_vm9, 1.0, %v1828_v50  ;;  %v1369_v54 = vsel %vm785_vm10, 1.0, %v1828_v50  ;;  %v497_v55 = vpop.f32.mrf.mxu0  ;;  %v625_v56 = vpop.f32.mrf.mxu1  ;;  %v506_v59 = vadd.f32 %v1696_v46, %v1983_v37  ;;  %v634_v60 = vadd.f32 %v1728_v47, %v1983_v37 }
 0x110   :  { %v1537_v57 = vpack.c.bf16 %v1337_v53, %v1336_v44  ;;  %v1585_v58 = vpack.c.bf16 %v1369_v54, %v1368_v45  ;;  %1616 = vst [vmem:[%s2218_s3 + $0x48] sm:$0xff] %v1540_v51   ;;  %1632 = vst [vmem:[%s2218_s3 + $0xc8] sm:$0xff] %v1588_v52   ;;  %v498_v61 = vadd.f32 %v1983_v37, %v497_v55 }
 0x111   :  { %v626_v62 = vadd.f32 %v1983_v37, %v625_v56  ;;  %v1697_v63 = vpop.f32.mrf.mxu0  ;;  %v1729_v0 = vpop.f32.mrf.mxu1  ;;  %vm758_vm11 = vcmp.gt.f32.partialorder %v506_v59, 0.2  ;;  %vm790_vm12 = vcmp.gt.f32.partialorder %v634_v60, 0.2 }
 0x112   :  { %1615 = vst [vmem:[%s2218_s3 + $0x40] sm:$0xff] %v1537_v57   ;;  %1631 = vst [vmem:[%s2218_s3 + $0xc0] sm:$0xff] %v1585_v58   ;;  %v509_v1 = vadd.f32 %v1697_v63, %v1983_v37  ;;  %v637_v2 = vadd.f32 %v1729_v0, %v1983_v37  ;;  %v1342_v3 = vsel %vm758_vm11, 1.0, %v1828_v50  ;;  %v1374_v4 = vsel %vm790_vm12, 1.0, %v1828_v50 }
 0x113   :  { %vm756_vm13 = vcmp.gt.f32.partialorder %v498_v61, 0.2  ;;  %v500_v5 = vpop.f32.mrf.mxu0  ;;  %v628_v6 = vpop.f32.mrf.mxu1  ;;  %vm788_vm14 = vcmp.gt.f32.partialorder %v626_v62, 0.2 }
 0x114   :  { %vm759_vm15 = vcmp.gt.f32.partialorder %v509_v1, 0.2  ;;  %vm791_vm0 = vcmp.gt.f32.partialorder %v637_v2, 0.2  ;;  %v501_v9 = vadd.f32 %v1983_v37, %v500_v5  ;;  %v629_v10 = vadd.f32 %v1983_v37, %v628_v6 }
 0x115   :  { %v1343_v7 = vsel %vm759_vm15, 1.0, %v1828_v50  ;;  %v1375_v8 = vsel %vm791_vm0, 1.0, %v1828_v50  ;;  %v1700_v11 = vpop.f32.mrf.mxu0  ;;  %v1732_v12 = vpop.f32.mrf.mxu1  ;;  %v1340_v17 = vsel %vm756_vm13, 1.0, %v1828_v50  ;;  %v1372_v20 = vsel %vm788_vm14, 1.0, %v1828_v50 }
 0x116   :  { %v1546_v13 = vpack.c.bf16 %v1343_v7, %v1342_v3  ;;  %v1594_v14 = vpack.c.bf16 %v1375_v8, %v1374_v4  ;;  %v522_v15 = vadd.f32 %v1700_v11, %v1983_v37  ;;  %v650_v16 = vadd.f32 %v1732_v12, %v1983_v37 }
 0x117   :  { %vm757_vm1 = vcmp.gt.f32.partialorder %v501_v9, 0.2  ;;  %vm789_vm2 = vcmp.gt.f32.partialorder %v629_v10, 0.2  ;;  %v513_v18 = vpop.f32.mrf.mxu0  ;;  %v641_v19 = vpop.f32.mrf.mxu1 }
 0x118   :  { %1618 = vst [vmem:[%s2218_s3 + $0x58] sm:$0xff] %v1546_v13   ;;  %1634 = vst [vmem:[%s2218_s3 + $0xd8] sm:$0xff] %v1594_v14   ;;  %v1341_v21 = vsel %vm757_vm1, 1.0, %v1828_v50  ;;  %v1373_v22 = vsel %vm789_vm2, 1.0, %v1828_v50  ;;  %vm762_vm3 = vcmp.gt.f32.partialorder %v522_v15, 0.2  ;;  %v514_v27 = vadd.f32 %v1983_v37, %v513_v18 }
 0x119   :  { %v1543_v23 = vpack.c.bf16 %v1341_v21, %v1340_v17  ;;  %v1591_v24 = vpack.c.bf16 %v1373_v22, %v1372_v20  ;;  %vm794_vm4 = vcmp.gt.f32.partialorder %v650_v16, 0.2  ;;  %v1701_v25 = vpop.f32.mrf.mxu0  ;;  %v1733_v26 = vpop.f32.mrf.mxu1  ;;  %v642_v28 = vadd.f32 %v1983_v37, %v641_v19 }
 0x11a   :  { %v525_v29 = vadd.f32 %v1701_v25, %v1983_v37  ;;  %v653_v30 = vadd.f32 %v1733_v26, %v1983_v37  ;;  %v1346_v31 = vsel %vm762_vm3, 1.0, %v1828_v50  ;;  %v1378_v34 = vsel %vm794_vm4, 1.0, %v1828_v50 }
 0x11b   :  { %1617 = vst [vmem:[%s2218_s3 + $0x50] sm:$0xff] %v1543_v23   ;;  %1633 = vst [vmem:[%s2218_s3 + $0xd0] sm:$0xff] %v1591_v24   ;;  %v516_v32 = vpop.f32.mrf.mxu0  ;;  %v644_v33 = vpop.f32.mrf.mxu1  ;;  %vm760_vm5 = vcmp.gt.f32.partialorder %v514_v27, 0.2  ;;  %vm792_vm7 = vcmp.gt.f32.partialorder %v642_v28, 0.2 }
 0x11c   :  { %vm763_vm6 = vcmp.gt.f32.partialorder %v525_v29, 0.2  ;;  %v517_v35 = vadd.f32 %v1983_v37, %v516_v32  ;;  %v1344_v36 = vsel %vm760_vm5, 1.0, %v1828_v50  ;;  %vm795_vm8 = vcmp.gt.f32.partialorder %v653_v30, 0.2 }
 0x11d   :  { %v1347_v38 = vsel %vm763_vm6, 1.0, %v1828_v50  ;;  %v1704_v39 = vpop.f32.mrf.mxu0  ;;  %v1736_v40 = vpop.f32.mrf.mxu1  ;;  %v1379_v42 = vsel %vm795_vm8, 1.0, %v1828_v50  ;;  %v645_v43 = vadd.f32 %v1983_v37, %v644_v33  ;;  %v1376_v54 = vsel %vm792_vm7, 1.0, %v1828_v50 }
 0x11e   :  { %v1552_v41 = vpack.c.bf16 %v1347_v38, %v1346_v31  ;;  %vm761_vm9 = vcmp.gt.f32.partialorder %v517_v35, 0.2  ;;  %v1600_v44 = vpack.c.bf16 %v1379_v42, %v1378_v34  ;;  %v538_v46 = vadd.f32 %v1704_v39, %v1983_v37 }
 0x11f   :  { %v1345_v45 = vsel %vm761_vm9, 1.0, %v1828_v50  ;;  %v666_v47 = vadd.f32 %v1736_v40, %v1983_v37  ;;  %v529_v48 = vpop.f32.mrf.mxu0  ;;  %v657_v49 = vpop.f32.mrf.mxu1  ;;  %vm793_vm10 = vcmp.gt.f32.partialorder %v645_v43, 0.2 }
 0x120   :  { %1620 = vst [vmem:[%s2218_s3 + $0x68] sm:$0xff] %v1552_v41   ;;  %v1549_v51 = vpack.c.bf16 %v1345_v45, %v1344_v36  ;;  %v530_v52 = vadd.f32 %v1983_v37, %v529_v48  ;;  %v658_v53 = vadd.f32 %v1983_v37, %v657_v49  ;;  %1636 = vst [vmem:[%s2218_s3 + $0xe8] sm:$0xff] %v1600_v44   ;;  %v1377_v55 = vsel %vm793_vm10, 1.0, %v1828_v50 }
 0x121   :  { %vm766_vm11 = vcmp.gt.f32.partialorder %v538_v46, 0.2  ;;  %vm798_vm12 = vcmp.gt.f32.partialorder %v666_v47, 0.2  ;;  %v1705_v56 = vpop.f32.mrf.mxu0  ;;  %v1737_v57 = vpop.f32.mrf.mxu1  ;;  %v1597_v58 = vpack.c.bf16 %v1377_v55, %v1376_v54 }
 0x122   :  { %1619 = vst [vmem:[%s2218_s3 + $0x60] sm:$0xff] %v1549_v51   ;;  %vm764_vm13 = vcmp.gt.f32.partialorder %v530_v52, 0.2  ;;  %vm796_vm14 = vcmp.gt.f32.partialorder %v658_v53, 0.2  ;;  %v541_v59 = vadd.f32 %v1705_v56, %v1983_v37  ;;  %v669_v60 = vadd.f32 %v1737_v57, %v1983_v37 }
 0x123   :  { %v532_v61 = vpop.f32.mrf.mxu0  ;;  %v660_v62 = vpop.f32.mrf.mxu1  ;;  %1635 = vst [vmem:[%s2218_s3 + $0xe0] sm:$0xff] %v1597_v58   ;;  %v1350_v63 = vsel %vm766_vm11, 1.0, %v1828_v50  ;;  %v1382_v0 = vsel %vm798_vm12, 1.0, %v1828_v50  ;;  %v1348_v3 = vsel %vm764_vm13, 1.0, %v1828_v50  ;;  %v1380_v4 = vsel %vm796_vm14, 1.0, %v1828_v50 }
 0x124   :  { %v533_v1 = vadd.f32 %v1983_v37, %v532_v61  ;;  %v661_v2 = vadd.f32 %v1983_v37, %v660_v62  ;;  %vm767_vm15 = vcmp.gt.f32.partialorder %v541_v59, 0.2  ;;  %vm799_vm0 = vcmp.gt.f32.partialorder %v669_v60, 0.2 }
 0x125   :  { %v1351_v5 = vsel %vm767_vm15, 1.0, %v1828_v50  ;;  %v1383_v6 = vsel %vm799_vm0, 1.0, %v1828_v50 }
 0x126   :  { %vm765_vm1 = vcmp.gt.f32.partialorder %v533_v1, 0.2  ;;  %vm797_vm2 = vcmp.gt.f32.partialorder %v661_v2, 0.2  ;;  %v1558_v7 = vpack.c.bf16 %v1351_v5, %v1350_v63  ;;  %v1606_v8 = vpack.c.bf16 %v1383_v6, %v1382_v0 }
 0x127   :  { %v1349_v9 = vsel %vm765_vm1, 1.0, %v1828_v50  ;;  %v1381_v10 = vsel %vm797_vm2, 1.0, %v1828_v50 }
 0x128   :  { %v1555_v11 = vpack.c.bf16 %v1349_v9, %v1348_v3  ;;  %v1603_v37 = vpack.c.bf16 %v1381_v10, %v1380_v4  ;;  %1622 = vst [vmem:[%s2218_s3 + $0x78] sm:$0xff] %v1558_v7   ;;  %1638 = vst [vmem:[%s2218_s3 + $0xf8] sm:$0xff] %v1606_v8  }
 0x12a   :  { %1621 = vst [vmem:[%s2218_s3 + $0x70] sm:$0xff] %v1555_v11   ;;  %1637 = vst [vmem:[%s2218_s3 + $0xf0] sm:$0xff] %v1603_v37  }
 0x12b   :  { %1252 = vsyncpa [#allocation3], 1 }
 0x12c   :  { %1253 = vsyncpa [#allocation5], 1 }

// kernel: _forward_prefix.10
= control target key start
LH: loop header
LB: loop body
LE: loop exit
PB: predicated region body
PF: predicated region fallthrough
CT: control target
= control target key end

     0   :  { %vm318_vm0 = vcmask 261120   ;;  %s1216_s1 = inlined_call_operand.vmem [shape: bf16[288,128], index: 1, kind: input, shape index: {}]   ;;  %s1217_s0 = inlined_call_operand.vmem [shape: bf16[1,128,288], index: 0, kind: input, shape index: {}]   ;;  %s1218_s2 = inlined_call_operand.vmem [shape: f32[1,128], index: 2, kind: input, shape index: {}]   ;;  %s1219_s3 = inlined_call_operand.vmem [shape: bf16[1,128,128], index: 3, kind: output, shape index: {}]  }
   0x1   :  { %v926_v0 = vld [vmem:[%s1216_s1 + $0x78] sm:$0xff]   ;;  %v928_v2 = vld [vmem:[%s1216_s1 + $0x70] sm:$0xff]   ;;  %v930_v4 = vld [vmem:[%s1216_s1 + $0x68] sm:$0xff]  }
   0x2   :  { %v927_v1 = vld [vmem:[%s1216_s1 + $0x38] sm:$0xff]   ;;  %815 = vmatprep.subr.bf16.mxu0 %v926_v0  ;;  %909 = vmatprep.subr.bf16.mxu1 %v926_v0  ;;  %v929_v3 = vld [vmem:[%s1216_s1 + $0x30] sm:$0xff]   ;;  %v931_v5 = vld [vmem:[%s1216_s1 + $0x28] sm:$0xff]  }
   0x3   :  { %816 = vmatpush3.bf16.msra.mxu0 %v927_v1  ;;  %917 = vmatpush3.bf16.msra.mxu1 %v927_v1  ;;  %v932_v6 = vld [vmem:[%s1216_s1 + $0x60] sm:$0xff]   ;;  %v934_v8 = vld [vmem:[%s1216_s1 + $0x58] sm:$0xff]   ;;  %v936_v10 = vld [vmem:[%s1216_s1 + $0x50] sm:$0xff]  }
   0x4   :  { %817 = vmatprep.subr.bf16.mxu0 %v928_v2  ;;  %910 = vmatprep.subr.bf16.mxu1 %v928_v2  ;;  %v933_v7 = vld [vmem:[%s1216_s1 + $0x20] sm:$0xff]   ;;  %v935_v9 = vld [vmem:[%s1216_s1 + $0x18] sm:$0xff]   ;;  %v937_v13 = vld [vmem:[%s1216_s1 + $0x10] sm:$0xff]  }
   0x5   :  { %v944_v11 = vld [vmem:[%s1217_s0 + $0x4] ss:$12 sps:$4 sm:$0xff]   ;;  %v947_v12 = vld [vmem:[%s1217_s0 + $0x94] ss:$12 sps:$4 sm:$0xff]   ;;  %v938_v14 = vld [vmem:[%s1216_s1 + $0x48] sm:$0xff]  }
   0x6   :  { %375 = vmatprep.mubr.bf16.mxu0 %v944_v11  ;;  %423 = vmatprep.mubr.bf16.mxu1 %v947_v12  ;;  %v939_v15 = vld [vmem:[%s1216_s1 + $0x8] sm:$0xff]   ;;  %v940_v16 = vld [vmem:[%s1216_s1 + $0x40] sm:$0xff]   ;;  %v945_v20 = vld [vmem:[%s1217_s0 + $0x90] ss:$12 sps:$4 sm:$0xff]  }
   0x7   :  { %818 = vmatpush3.bf16.msra.mxu0 %v929_v3  ;;  %918 = vmatpush3.bf16.msra.mxu1 %v929_v3  ;;  %v941_v17 = vld [vmem:[%s1216_s1] sm:$0xff]   ;;  %v948_v19 = vld [vmem:[%s1216_s1 + $0x88] sm:$0xff]   ;;  %v959_v28 = vld [vmem:[%s1217_s0 + $0x30] ss:$12 sps:$4 sm:$0xff]  }
   0x8   :  { %819 = vmatprep.subr.bf16.mxu0 %v930_v4  ;;  %911 = vmatprep.subr.bf16.mxu1 %v930_v4  ;;  %v942_v18 = vld [vmem:[%s1217_s0] ss:$12 sps:$4 sm:$0xff]   ;;  %v949_v21 = vld [vmem:[%s1217_s0 + $0x1c] ss:$12 sps:$4 sm:$0xff]   ;;  %v953_v24 = vld [vmem:[%s1217_s0 + $0x18] ss:$12 sps:$4 sm:$0xff]  }
   0x9   :  { %v951_v22 = vld [vmem:[%s1217_s0 + $0xac] ss:$12 sps:$4 sm:$0xff]   ;;  %v955_v23 = vld [vmem:[%s1216_s1 + $0x80] sm:$0xff]   ;;  %v954_v25 = vld [vmem:[%s1217_s0 + $0xa8] ss:$12 sps:$4 sm:$0xff]  }
   0xa   :  { %v956_v26 = vld [vmem:[%s1217_s0 + $0x34] ss:$12 sps:$4 sm:$0xff]   ;;  %v961_v30 = vld [vmem:[%s1217_s0 + $0x4c] ss:$12 sps:$4 sm:$0xff]   ;;  %v965_v33 = vld [vmem:[%s1217_s0 + $0x50] ss:$12 sps:$4 sm:$0xff]  }
   0xb   :  { %820 = vmatpush3.bf16.msra.mxu0 %v931_v5  ;;  %919 = vmatpush3.bf16.msra.mxu1 %v931_v5  ;;  %v958_v27 = vld [vmem:[%s1217_s0 + $0x8] ss:$12 sps:$4 sm:$0xff]   ;;  %v960_v29 = vld [vmem:[%s1217_s0 + $0x20] ss:$12 sps:$4 sm:$0xff]   ;;  %v963_v31 = vld [vmem:[%s1217_s0 + $0x38] ss:$12 sps:$4 sm:$0xff]  }
   0xc   :  { %821 = vmatprep.subr.bf16.mxu0 %v932_v6  ;;  %912 = vmatprep.subr.bf16.mxu1 %v932_v6  ;;  %v964_v32 = vld [vmem:[%s1217_s0 + $0x48] ss:$12 sps:$4 sm:$0xff]   ;;  %v966_v34 = vld [vmem:[%s1217_s0 + $0x64] ss:$12 sps:$4 sm:$0xff]   ;;  %v969_v36 = vld [vmem:[%s1217_s0 + $0x60] ss:$12 sps:$4 sm:$0xff]  }
   0xd   :  { %v968_v35 = vld [vmem:[%s1217_s0 + $0x68] ss:$12 sps:$4 sm:$0xff]   ;;  %v970_v37 = vld [vmem:[%s1217_s0 + $0x80] ss:$12 sps:$4 sm:$0xff]   ;;  %v973_v39 = vld [vmem:[%s1217_s0 + $0x98] ss:$12 sps:$4 sm:$0xff]  }
   0xe   :  { %v971_v38 = vld [vmem:[%s1217_s0 + $0x7c] ss:$12 sps:$4 sm:$0xff]   ;;  %v974_v40 = vld [vmem:[%s1217_s0 + $0x78] ss:$12 sps:$4 sm:$0xff]   ;;  %v1150_v60 = vld [vmem:[%s1218_s2] ss:$0 sm:$0xff] }
   0xf   :  { %822 = vmatpush3.bf16.msra.mxu0 %v933_v7  ;;  %920 = vmatpush3.bf16.msra.mxu1 %v933_v7  ;;  %v975_v41 = vld [vmem:[%s1217_s0 + $0xb0] ss:$12 sps:$4 sm:$0xff]  }
  0x10   :  { %823 = vmatprep.subr.bf16.mxu0 %v934_v8  ;;  %913 = vmatprep.subr.bf16.mxu1 %v934_v8 }
  0x13   :  { %824 = vmatpush3.bf16.msra.mxu0 %v935_v9  ;;  %921 = vmatpush3.bf16.msra.mxu1 %v935_v9 }
  0x14   :  { %825 = vmatprep.subr.bf16.mxu0 %v936_v10  ;;  %914 = vmatprep.subr.bf16.mxu1 %v936_v10 }
  0x17   :  { %826 = vmatpush3.bf16.msra.mxu0 %v937_v13  ;;  %922 = vmatpush3.bf16.msra.mxu1 %v937_v13 }
  0x18   :  { %827 = vmatprep.subr.bf16.mxu0 %v938_v14  ;;  %915 = vmatprep.subr.bf16.mxu1 %v938_v14 }
  0x1b   :  { %828 = vmatpush3.bf16.msra.mxu0 %v939_v15  ;;  %923 = vmatpush3.bf16.msra.mxu1 %v939_v15 }
  0x1c   :  { %829 = vmatprep.subr.bf16.mxu0 %v940_v16  ;;  %916 = vmatprep.subr.bf16.mxu1 %v940_v16  ;;  %v976_v16 = vmov 0.0  }
  0x1f   :  { %830 = vmatpush3.bf16.msra.mxu0 %v941_v17  ;;  %924 = vmatpush3.bf16.msra.mxu1 %v941_v17 }
  0x20   :  { %889 = vmatprep.subr.bf16.mxu1 %v948_v19 }
  0x22   :  { %376 = vmatmul.mubr.bf16.vlgmr.msra.gmra.mxu0 %v942_v18  ;;  %424 = vmatmul.mubr.bf16.vlgmr.msra.gmra.mxu1 %v945_v20 }
  0x23   :  { %890 = vmatpush3.bf16.msra.mxu1 %v948_v19  ;;  %383 = vmatprep.mubr.bf16.mxu0 %v949_v21 }
  0x24   :  { %431 = vmatprep.mubr.bf16.mxu1 %v951_v22  ;;  %891 = vmatprep.subr.bf16.mxu1 %v955_v23 }
  0x27   :  { %892 = vmatpush3.bf16.msra.mxu1 %v955_v23 }
  0x2a   :  { %384 = vmatmul.mubr.bf16.gmra.mxu0 %v953_v24  ;;  %432 = vmatmul.mubr.bf16.gmra.mxu1 %v954_v25 }
  0x2b   :  { %391 = vmatprep.mubr.bf16.mxu0 %v956_v26  ;;  %893 = vmatprep.mubr.msk.bf16.mxu1 %vm318_vm0, %v958_v27 }
  0x32   :  { %392 = vmatmul.mubr.bf16.gmra.mxu0 %v959_v28  ;;  %894 = vmatmul.mubr.msk.bf16.vlgmr.msra.gmra.mxu1 %vm318_vm0, %v960_v29 }
  0x33   :  { %399 = vmatprep.mubr.bf16.mxu0 %v961_v30  ;;  %897 = vmatprep.mubr.msk.bf16.mxu1 %vm318_vm0, %v963_v31 }
  0x3a   :  { %400 = vmatmul.mubr.bf16.gmra.mxu0 %v964_v32  ;;  %898 = vmatmul.mubr.msk.bf16.gmra.mxu1 %vm318_vm0, %v965_v33 }
  0x3b   :  { %407 = vmatprep.mubr.bf16.mxu0 %v966_v34  ;;  %901 = vmatprep.mubr.msk.bf16.mxu1 %vm318_vm0, %v968_v35 }
  0x42   :  { %408 = vmatmul.mubr.bf16.gmra.mxu0 %v969_v36  ;;  %902 = vmatmul.mubr.msk.bf16.gmra.mxu1 %vm318_vm0, %v970_v37 }
  0x43   :  { %415 = vmatprep.mubr.bf16.mxu0 %v971_v38  ;;  %905 = vmatprep.mubr.msk.bf16.mxu1 %vm318_vm0, %v973_v39 }
  0x4a   :  { %416 = vmatmul.mubr.bf16.gmra.mxu0 %v974_v40  ;;  %906 = vmatmul.mubr.msk.bf16.gmra.mxu1 %vm318_vm0, %v975_v41 }
  0xe2   :  { %v831_v42 = vpop.f32.mrf.mxu0  ;;  %v1131_v43 = vpop.f32.mrf.mxu1 }
  0xe4   :  { %v832_v44 = vpop.f32.mrf.mxu0  ;;  %v1133_v45 = vpop.f32.mrf.mxu1 }
  0xe5   :  { %v833_v57 = vadd.f32 %v832_v44, %v831_v42 }
  0xe6   :  { %v834_v46 = vpop.f32.mrf.mxu0  ;;  %v1135_v47 = vpop.f32.mrf.mxu1 }
  0xe7   :  { %v378_v3 = vadd.f32 %v833_v57, %v1150_v60 }
  0xe8   :  { %v835_v48 = vpop.f32.mrf.mxu0  ;;  %v1137_v49 = vpop.f32.mrf.mxu1 }
  0xe9   :  { %v836_v1 = vadd.f32 %v835_v48, %v834_v46 }
  0xea   :  { %v837_v50 = vpop.f32.mrf.mxu0  ;;  %v1139_v51 = vpop.f32.mrf.mxu1 }
  0xeb   :  { %v381_v12 = vadd.f32 %v836_v1, %v1150_v60 }
  0xec   :  { %v838_v52 = vpop.f32.mrf.mxu0  ;;  %v1141_v53 = vpop.f32.mrf.mxu1 }
  0xed   :  { %v839_v54 = vadd.f32 %v838_v52, %v837_v50  ;;  %v875_v44 = vadd.f32 %v1141_v53, %v1139_v51  ;;  %v869_v51 = vadd.f32 %v1133_v45, %v1131_v43 }
  0xee   :  { %v840_v55 = vpop.f32.mrf.mxu0  ;;  %v1143_v56 = vpop.f32.mrf.mxu1 }
  0xef   :  { %v386_v62 = vadd.f32 %v839_v54, %v1150_v60 }
  0xf0   :  { %v841_v58 = vpop.f32.mrf.mxu0  ;;  %v1145_v59 = vpop.f32.mrf.mxu1 }
  0xf1   :  { %v842_v61 = vadd.f32 %v841_v58, %v840_v55 }
  0xf2   :  { %v843_v63 = vpop.f32.mrf.mxu0  ;;  %v895_v0 = vpop.f32.mrf.mxu1 }
  0xf3   :  { %v483_v2 = vadd.f32 %v895_v0, %v386_v62  ;;  %v389_v7 = vadd.f32 %v842_v61, %v1150_v60 }
  0xf4   :  { %v844_v4 = vpop.f32.mrf.mxu0  ;;  %v474_v5 = vpop.f32.mrf.mxu1 }
  0xf5   :  { %v475_v6 = vadd.f32 %v474_v5, %v378_v3  ;;  %vm555_vm1 = vcmp.gt.f32.partialorder %v483_v2, 0.2  ;;  %v845_v10 = vadd.f32 %v844_v4, %v843_v63  ;;  %v434_v2 = vadd.f32 %v875_v44, %v1150_v60 }
  0xf6   :  { %v846_v8 = vpop.f32.mrf.mxu0  ;;  %v896_v9 = vpop.f32.mrf.mxu1  ;;  %v738_v17 = vsel %vm555_vm1, 1.0, %v976_v16  ;;  %v878_v3 = vadd.f32 %v1145_v59, %v1143_v56 }
  0xf7   :  { %v486_v11 = vadd.f32 %v896_v9, %v389_v7  ;;  %vm553_vm2 = vcmp.gt.f32.partialorder %v475_v6, 0.2  ;;  %v394_v23 = vadd.f32 %v845_v10, %v1150_v60  ;;  %v872_v9 = vadd.f32 %v1137_v49, %v1135_v47 }
  0xf8   :  { %v847_v13 = vpop.f32.mrf.mxu0  ;;  %v477_v14 = vpop.f32.mrf.mxu1  ;;  %v736_v24 = vsel %vm553_vm2, 1.0, %v976_v16 }
  0xf9   :  { %vm556_vm3 = vcmp.gt.f32.partialorder %v486_v11, 0.2  ;;  %v478_v15 = vadd.f32 %v477_v14, %v381_v12  ;;  %v848_v22 = vadd.f32 %v847_v13, %v846_v8  ;;  %v426_v11 = vadd.f32 %v869_v51, %v1150_v60 }
  0xfa   :  { %v739_v18 = vsel %vm556_vm3, 1.0, %v976_v16  ;;  %v849_v19 = vpop.f32.mrf.mxu0  ;;  %v899_v20 = vpop.f32.mrf.mxu1  ;;  %v437_v13 = vadd.f32 %v878_v3, %v1150_v60 }
  0xfb   :  { %v788_v21 = vpack.c.bf16 %v739_v18, %v738_v17  ;;  %vm554_vm4 = vcmp.gt.f32.partialorder %v478_v15, 0.2  ;;  %v397_v34 = vadd.f32 %v848_v22, %v1150_v60 }
  0xfc   :  { %v737_v25 = vsel %vm554_vm4, 1.0, %v976_v16  ;;  %v850_v26 = vpop.f32.mrf.mxu0  ;;  %v490_v27 = vpop.f32.mrf.mxu1 }
  0xfd   :  { %808 = vst [vmem:[%s1219_s3 + $0x8] sm:$0xff] %v788_v21   ;;  %v785_v28 = vpack.c.bf16 %v737_v25, %v736_v24  ;;  %v851_v29 = vadd.f32 %v850_v26, %v849_v19  ;;  %v491_v30 = vadd.f32 %v490_v27, %v394_v23  ;;  %v429_v21 = vadd.f32 %v872_v9, %v1150_v60 }
  0xfe   :  { %v852_v31 = vpop.f32.mrf.mxu0  ;;  %v900_v32 = vpop.f32.mrf.mxu1 }
  0xff   :  { %786 = vst [vmem:[%s1219_s3] sm:$0xff] %v785_v28   ;;  %v402_v33 = vadd.f32 %v851_v29, %v1150_v60  ;;  %vm557_vm5 = vcmp.gt.f32.partialorder %v491_v30, 0.2 }
 0x100   :  { %v853_v35 = vpop.f32.mrf.mxu0  ;;  %v493_v36 = vpop.f32.mrf.mxu1  ;;  %v740_v46 = vsel %vm557_vm5, 1.0, %v976_v16 }
 0x101   :  { %v499_v37 = vadd.f32 %v899_v20, %v402_v33  ;;  %v854_v38 = vadd.f32 %v853_v35, %v852_v31  ;;  %v494_v39 = vadd.f32 %v493_v36, %v397_v34 }
 0x102   :  { %v855_v40 = vpop.f32.mrf.mxu0  ;;  %v903_v41 = vpop.f32.mrf.mxu1 }
 0x103   :  { %v405_v42 = vadd.f32 %v854_v38, %v1150_v60  ;;  %vm558_vm6 = vcmp.gt.f32.partialorder %v494_v39, 0.2  ;;  %vm559_vm7 = vcmp.gt.f32.partialorder %v499_v37, 0.2 }
 0x104   :  { %v741_v48 = vsel %vm558_vm6, 1.0, %v976_v16  ;;  %v856_v50 = vpop.f32.mrf.mxu0  ;;  %v506_v52 = vpop.f32.mrf.mxu1  ;;  %v742_v53 = vsel %vm559_vm7, 1.0, %v976_v16 }
 0x105   :  { %v502_v54 = vadd.f32 %v900_v32, %v405_v42  ;;  %v791_v55 = vpack.c.bf16 %v741_v48, %v740_v46  ;;  %v857_v57 = vadd.f32 %v856_v50, %v855_v40 }
 0x106   :  { %v858_v58 = vpop.f32.mrf.mxu0  ;;  %v904_v61 = vpop.f32.mrf.mxu1 }
 0x107   :  { %vm560_vm8 = vcmp.gt.f32.partialorder %v502_v54, 0.2  ;;  %809 = vst [vmem:[%s1219_s3 + $0x10] sm:$0xff] %v791_v55   ;;  %v410_v62 = vadd.f32 %v857_v57, %v1150_v60 }
 0x108   :  { %v743_v63 = vsel %vm560_vm8, 1.0, %v976_v16  ;;  %v859_v0 = vpop.f32.mrf.mxu0  ;;  %v509_v1 = vpop.f32.mrf.mxu1 }
 0x109   :  { %v794_v4 = vpack.c.bf16 %v743_v63, %v742_v53  ;;  %v507_v5 = vadd.f32 %v506_v52, %v410_v62  ;;  %v860_v6 = vadd.f32 %v859_v0, %v858_v58 }
 0x10a   :  { %v861_v7 = vpop.f32.mrf.mxu0  ;;  %v907_v8 = vpop.f32.mrf.mxu1 }
 0x10b   :  { %810 = vst [vmem:[%s1219_s3 + $0x18] sm:$0xff] %v794_v4   ;;  %v413_v43 = vadd.f32 %v860_v6, %v1150_v60  ;;  %v531_v45 = vadd.f32 %v907_v8, %v434_v2  ;;  %vm561_vm9 = vcmp.gt.f32.partialorder %v507_v5, 0.2 }
 0x10c   :  { %v862_v10 = vpop.f32.mrf.mxu0  ;;  %v522_v12 = vpop.f32.mrf.mxu1  ;;  %v744_v20 = vsel %vm561_vm9, 1.0, %v976_v16 }
 0x10d   :  { %v510_v56 = vadd.f32 %v509_v1, %v413_v43  ;;  %v863_v59 = vadd.f32 %v862_v10, %v861_v7  ;;  %v523_v14 = vadd.f32 %v522_v12, %v426_v11  ;;  %vm567_vm11 = vcmp.gt.f32.partialorder %v531_v45, 0.2 }
 0x10e   :  { %v864_v15 = vpop.f32.mrf.mxu0  ;;  %v908_v17 = vpop.f32.mrf.mxu1  ;;  %v750_v26 = vsel %vm567_vm11, 1.0, %v976_v16 }
 0x10f   :  { %vm562_vm10 = vcmp.gt.f32.partialorder %v510_v56, 0.2  ;;  %v418_v18 = vadd.f32 %v863_v59, %v1150_v60  ;;  %v534_v19 = vadd.f32 %v908_v17, %v437_v13  ;;  %vm565_vm13 = vcmp.gt.f32.partialorder %v523_v14, 0.2 }
 0x110   :  { %v745_v47 = vsel %vm562_vm10, 1.0, %v976_v16  ;;  %v865_v49 = vpop.f32.mrf.mxu0  ;;  %v525_v22 = vpop.f32.mrf.mxu1  ;;  %v748_v31 = vsel %vm565_vm13, 1.0, %v976_v16 }
 0x111   :  { %v797_v23 = vpack.c.bf16 %v745_v47, %v744_v20  ;;  %v515_v24 = vadd.f32 %v903_v41, %v418_v18  ;;  %vm568_vm12 = vcmp.gt.f32.partialorder %v534_v19, 0.2  ;;  %v866_v25 = vadd.f32 %v865_v49, %v864_v15 }
 0x112   :  { %v751_v27 = vsel %vm568_vm12, 1.0, %v976_v16  ;;  %v526_v28 = vadd.f32 %v525_v22, %v429_v21 }
 0x113   :  { %811 = vst [vmem:[%s1219_s3 + $0x20] sm:$0xff] %v797_v23   ;;  %v806_v29 = vpack.c.bf16 %v751_v27, %v750_v26  ;;  %v421_v30 = vadd.f32 %v866_v25, %v1150_v60  ;;  %vm563_vm15 = vcmp.gt.f32.partialorder %v515_v24, 0.2 }
 0x114   :  { %vm566_vm14 = vcmp.gt.f32.partialorder %v526_v28, 0.2  ;;  %v746_v35 = vsel %vm563_vm15, 1.0, %v976_v16 }
 0x115   :  { %814 = vst [vmem:[%s1219_s3 + $0x38] sm:$0xff] %v806_v29   ;;  %v518_v32 = vadd.f32 %v904_v61, %v421_v30  ;;  %v749_v33 = vsel %vm566_vm14, 1.0, %v976_v16 }
 0x116   :  { %v803_v34 = vpack.c.bf16 %v749_v33, %v748_v31 }
 0x117   :  { %vm564_vm0 = vcmp.gt.f32.partialorder %v518_v32, 0.2 }
 0x118   :  { %v747_v36 = vsel %vm564_vm0, 1.0, %v976_v16  ;;  %813 = vst [vmem:[%s1219_s3 + $0x30] sm:$0xff] %v803_v34  }
 0x119   :  { %v800_v60 = vpack.c.bf16 %v747_v36, %v746_v35 }
 0x11b   :  { %812 = vst [vmem:[%s1219_s3 + $0x28] sm:$0xff] %v800_v60  }

// kernel: _forward_prefix.11
= control target key start
LH: loop header
LB: loop body
LE: loop exit
PB: predicated region body
PF: predicated region fallthrough
CT: control target
= control target key end

     0   :  { %vm372_vm0 = vcmask 523264   ;;  %s927_s1 = inlined_call_operand.vmem [shape: bf16[576,128], index: 1, kind: input, shape index: {}]   ;;  %s928_s0 = inlined_call_operand.vmem [shape: bf16[1,32,576], index: 0, kind: input, shape index: {}]   ;;  %s929_s2 = inlined_call_operand.vmem [shape: f32[1,128], index: 2, kind: input, shape index: {}]   ;;  %s930_s3 = inlined_call_operand.vmem [shape: bf16[1,32,128], index: 3, kind: output, shape index: {}]  }
   0x1   :  { %v709_v0 = vld [vmem:[%s927_s1 + $0x78] sm:$0xff]   ;;  %v713_v4 = vld [vmem:[%s927_s1 + $0x70] sm:$0xff]   ;;  %v717_v8 = vld [vmem:[%s927_s1 + $0x68] sm:$0xff]  }
   0x2   :  { %v710_v1 = vld [vmem:[%s927_s1 + $0xf8] sm:$0xff]   ;;  %634 = vmatprep.subr.bf16.mxu0 %v709_v0  ;;  %v714_v5 = vld [vmem:[%s927_s1 + $0xf0] sm:$0xff]   ;;  %v718_v9 = vld [vmem:[%s927_s1 + $0xe8] sm:$0xff]  }
   0x3   :  { %v711_v2 = vld [vmem:[%s927_s1 + $0x38] sm:$0xff]   ;;  %662 = vmatprep.subr.bf16.mxu1 %v710_v1  ;;  %v715_v6 = vld [vmem:[%s927_s1 + $0x30] sm:$0xff]   ;;  %v719_v10 = vld [vmem:[%s927_s1 + $0x28] sm:$0xff]  }
   0x4   :  { %v712_v3 = vld [vmem:[%s927_s1 + $0xb8] sm:$0xff]   ;;  %635 = vmatpush3.bf16.msra.mxu0 %v711_v2  ;;  %v716_v7 = vld [vmem:[%s927_s1 + $0xb0] sm:$0xff]   ;;  %v720_v11 = vld [vmem:[%s927_s1 + $0xa8] sm:$0xff]  }
   0x5   :  { %663 = vmatpush3.bf16.msra.mxu1 %v712_v3  ;;  %636 = vmatprep.subr.bf16.mxu0 %v713_v4  ;;  %v721_v12 = vld [vmem:[%s927_s1 + $0x60] sm:$0xff]   ;;  %v725_v16 = vld [vmem:[%s927_s1 + $0x58] sm:$0xff]   ;;  %v729_v20 = vld [vmem:[%s927_s1 + $0x50] sm:$0xff]  }
   0x6   :  { %664 = vmatprep.subr.bf16.mxu1 %v714_v5  ;;  %v722_v13 = vld [vmem:[%s927_s1 + $0xe0] sm:$0xff]   ;;  %v726_v17 = vld [vmem:[%s927_s1 + $0xd8] sm:$0xff]   ;;  %v730_v21 = vld [vmem:[%s927_s1 + $0xd0] sm:$0xff]  }
   0x7   :  { %v723_v14 = vld [vmem:[%s927_s1 + $0x20] sm:$0xff]   ;;  %v727_v18 = vld [vmem:[%s927_s1 + $0x18] sm:$0xff]   ;;  %v731_v22 = vld [vmem:[%s927_s1 + $0x10] sm:$0xff]  }
   0x8   :  { %637 = vmatpush3.bf16.msra.mxu0 %v715_v6  ;;  %v724_v15 = vld [vmem:[%s927_s1 + $0xa0] sm:$0xff]   ;;  %v728_v19 = vld [vmem:[%s927_s1 + $0x98] sm:$0xff]   ;;  %v732_v23 = vld [vmem:[%s927_s1 + $0x90] sm:$0xff]  }
   0x9   :  { %665 = vmatpush3.bf16.msra.mxu1 %v716_v7  ;;  %638 = vmatprep.subr.bf16.mxu0 %v717_v8  ;;  %v733_v24 = vld [vmem:[%s927_s1 + $0x48] sm:$0xff]   ;;  %v737_v28 = vld [vmem:[%s927_s1 + $0x40] sm:$0xff]   ;;  %v747_v36 = vld [vmem:[%s927_s1 + $0x118] sm:$0xff]  }
   0xa   :  { %666 = vmatprep.subr.bf16.mxu1 %v718_v9  ;;  %v734_v25 = vld [vmem:[%s927_s1 + $0xc8] sm:$0xff]   ;;  %v738_v29 = vld [vmem:[%s927_s1 + $0xc0] sm:$0xff]   ;;  %v748_v37 = vld [vmem:[%s927_s1 + $0x110] sm:$0xff]  }
   0xb   :  { %v735_v26 = vld [vmem:[%s927_s1 + $0x8] sm:$0xff]   ;;  %v739_v30 = vld [vmem:[%s927_s1] sm:$0xff]  }
   0xc   :  { %639 = vmatpush3.bf16.msra.mxu0 %v719_v10  ;;  %v736_v27 = vld [vmem:[%s927_s1 + $0x88] sm:$0xff]   ;;  %v740_v31 = vld [vmem:[%s927_s1 + $0x80] sm:$0xff]  }
   0xd   :  { %667 = vmatpush3.bf16.msra.mxu1 %v720_v11  ;;  %640 = vmatprep.subr.bf16.mxu0 %v721_v12  ;;  %v741_v32 = vld [vmem:[%s928_s0] ss:$20 sps:$4 sm:$0xff]   ;;  %v743_v33 = vld [vmem:[%s928_s0 + $0x4] ss:$20 sps:$4 sm:$0xff]   ;;  %v744_v34 = vld [vmem:[%s928_s0 + $0x8] ss:$20 sps:$4 sm:$0xff]  }
   0xe   :  { %668 = vmatprep.subr.bf16.mxu1 %v722_v13  ;;  %v746_v35 = vld [vmem:[%s928_s0 + $0xc] ss:$20 sps:$4 sm:$0xff]   ;;  %411 = vmatprep.mubr.bf16.mxu0 %v743_v33  ;;  %v751_v39 = vld [vmem:[%s928_s0 + $0x34] ss:$20 sps:$4 sm:$0xff]   ;;  %v754_v42 = vld [vmem:[%s928_s0 + $0x30] ss:$20 sps:$4 sm:$0xff]  }
   0xf   :  { %460 = vmatprep.mubr.bf16.mxu1 %v746_v35  ;;  %v749_v38 = vld [vmem:[%s928_s0 + $0x2c] ss:$20 sps:$4 sm:$0xff]   ;;  %v753_v40 = vld [vmem:[%s928_s0 + $0x28] ss:$20 sps:$4 sm:$0xff]   ;;  %v757_v43 = vld [vmem:[%s928_s0 + $0x10] ss:$20 sps:$4 sm:$0xff]  }
  0x10   :  { %641 = vmatpush3.bf16.msra.mxu0 %v723_v14  ;;  %v755_v41 = vld [vmem:[%s927_s1 + $0x108] sm:$0xff]   ;;  %v756_v44 = vld [vmem:[%s927_s1 + $0x100] sm:$0xff]  }
  0x11   :  { %669 = vmatpush3.bf16.msra.mxu1 %v724_v15  ;;  %642 = vmatprep.subr.bf16.mxu0 %v725_v16  ;;  %v758_v45 = vld [vmem:[%s928_s0 + $0x38] ss:$20 sps:$4 sm:$0xff]   ;;  %v566_v58 = vld [vmem:[%s929_s2] ss:$0 sm:$0xff] }
  0x12   :  { %670 = vmatprep.subr.bf16.mxu1 %v726_v17 }
  0x14   :  { %643 = vmatpush3.bf16.msra.mxu0 %v727_v18 }
  0x15   :  { %671 = vmatpush3.bf16.msra.mxu1 %v728_v19  ;;  %644 = vmatprep.subr.bf16.mxu0 %v729_v20 }
  0x16   :  { %672 = vmatprep.subr.bf16.mxu1 %v730_v21 }
  0x18   :  { %645 = vmatpush3.bf16.msra.mxu0 %v731_v22 }
  0x19   :  { %673 = vmatpush3.bf16.msra.mxu1 %v732_v23  ;;  %646 = vmatprep.subr.bf16.mxu0 %v733_v24  ;;  %v759_v23 = vmov 0.0  }
  0x1a   :  { %674 = vmatprep.subr.bf16.mxu1 %v734_v25 }
  0x1c   :  { %647 = vmatpush3.bf16.msra.mxu0 %v735_v26 }
  0x1d   :  { %675 = vmatpush3.bf16.msra.mxu1 %v736_v27  ;;  %648 = vmatprep.subr.bf16.mxu0 %v737_v28 }
  0x1e   :  { %676 = vmatprep.subr.bf16.mxu1 %v738_v29 }
  0x20   :  { %649 = vmatpush3.bf16.msra.mxu0 %v739_v30 }
  0x21   :  { %677 = vmatpush3.bf16.msra.mxu1 %v740_v31  ;;  %696 = vmatprep.subr.bf16.mxu0 %v747_v36 }
  0x23   :  { %412 = vmatmul.mubr.bf16.vlgmr.msra.gmra.mxu0 %v741_v32 }
  0x24   :  { %461 = vmatmul.mubr.bf16.vlgmr.msra.gmra.mxu1 %v744_v34  ;;  %697 = vmatpush3.bf16.msra.mxu0 %v747_v36 }
  0x25   :  { %698 = vmatprep.subr.bf16.mxu0 %v748_v37  ;;  %419 = vmatprep.mubr.bf16.mxu0 %v749_v38 }
  0x26   :  { %468 = vmatprep.mubr.bf16.mxu1 %v751_v39 }
  0x28   :  { %699 = vmatpush3.bf16.msra.mxu0 %v748_v37 }
  0x29   :  { %700 = vmatprep.subr.bf16.mxu0 %v755_v41 }
  0x2b   :  { %420 = vmatmul.mubr.bf16.gmra.mxu0 %v753_v40 }
  0x2c   :  { %469 = vmatmul.mubr.bf16.gmra.mxu1 %v754_v42  ;;  %704 = vmatprep.mubr.msk.bf16.mxu0 %vm372_vm0, %v757_v43 }
  0x2d   :  { %701 = vmatpush3.bf16.msra.mxu0 %v755_v41 }
  0x2e   :  { %702 = vmatprep.subr.bf16.mxu0 %v756_v44 }
  0x31   :  { %703 = vmatpush3.bf16.msra.mxu0 %v756_v44 }
  0x34   :  { %705 = vmatmul.mubr.msk.bf16.vlgmr.msra.gmra.mxu0 %vm372_vm0, %v758_v45 }
  0xe3   :  { %v650_v46 = vpop.f32.mrf.mxu0 }
  0xe4   :  { %v678_v47 = vpop.f32.mrf.mxu1 }
  0xe5   :  { %v651_v48 = vpop.f32.mrf.mxu0 }
  0xe6   :  { %v679_v49 = vpop.f32.mrf.mxu1  ;;  %v652_v56 = vadd.f32 %v651_v48, %v650_v46 }
  0xe7   :  { %v653_v50 = vpop.f32.mrf.mxu0  ;;  %v680_v2 = vadd.f32 %v679_v49, %v678_v47 }
  0xe8   :  { %v681_v51 = vpop.f32.mrf.mxu1  ;;  %v414_v1 = vadd.f32 %v652_v56, %v566_v58 }
  0xe9   :  { %v654_v52 = vpop.f32.mrf.mxu0 }
  0xea   :  { %v682_v53 = vpop.f32.mrf.mxu1  ;;  %v655_v3 = vadd.f32 %v654_v52, %v653_v50  ;;  %v463_v13 = vadd.f32 %v680_v2, %v414_v1 }
  0xeb   :  { %v656_v54 = vpop.f32.mrf.mxu0  ;;  %v683_v16 = vadd.f32 %v682_v53, %v681_v51 }
  0xec   :  { %v684_v55 = vpop.f32.mrf.mxu1  ;;  %v417_v11 = vadd.f32 %v655_v3, %v566_v58 }
  0xed   :  { %v657_v57 = vpop.f32.mrf.mxu0 }
  0xee   :  { %v658_v59 = vadd.f32 %v657_v57, %v656_v54  ;;  %v685_v60 = vpop.f32.mrf.mxu1  ;;  %v466_v20 = vadd.f32 %v683_v16, %v417_v11 }
  0xef   :  { %v686_v61 = vadd.f32 %v685_v60, %v684_v55  ;;  %v659_v62 = vpop.f32.mrf.mxu0 }
  0xf0   :  { %v422_v63 = vadd.f32 %v658_v59, %v566_v58  ;;  %v687_v0 = vpop.f32.mrf.mxu1 }
  0xf1   :  { %v660_v4 = vpop.f32.mrf.mxu0 }
  0xf2   :  { %v661_v5 = vadd.f32 %v660_v4, %v659_v62  ;;  %v688_v6 = vpop.f32.mrf.mxu1  ;;  %v471_v7 = vadd.f32 %v686_v61, %v422_v63 }
  0xf3   :  { %v689_v9 = vadd.f32 %v688_v6, %v687_v0 }
  0xf4   :  { %v425_v8 = vadd.f32 %v661_v5, %v566_v58  ;;  %v706_v10 = vpop.f32.mrf.mxu0 }
  0xf5   :  { %v520_v12 = vadd.f32 %v706_v10, %v471_v7 }
  0xf6   :  { %v511_v14 = vpop.f32.mrf.mxu0  ;;  %v474_v15 = vadd.f32 %v689_v9, %v425_v8 }
  0xf7   :  { %v512_v17 = vadd.f32 %v511_v14, %v463_v13  ;;  %vm532_vm1 = vcmp.gt.f32.partialorder %v520_v12, 0.2 }
  0xf8   :  { %v707_v18 = vpop.f32.mrf.mxu0  ;;  %v617_v24 = vsel %vm532_vm1, 1.0, %v759_v23 }
  0xf9   :  { %v523_v19 = vadd.f32 %v707_v18, %v474_v15  ;;  %vm530_vm2 = vcmp.gt.f32.partialorder %v512_v17, 0.2 }
  0xfa   :  { %v514_v21 = vpop.f32.mrf.mxu0  ;;  %v615_v27 = vsel %vm530_vm2, 1.0, %v759_v23 }
  0xfb   :  { %vm533_vm3 = vcmp.gt.f32.partialorder %v523_v19, 0.2  ;;  %v515_v22 = vadd.f32 %v514_v21, %v466_v20 }
  0xfc   :  { %v618_v25 = vsel %vm533_vm3, 1.0, %v759_v23 }
  0xfd   :  { %v631_v26 = vpack.c.bf16 %v618_v25, %v617_v24  ;;  %vm531_vm4 = vcmp.gt.f32.partialorder %v515_v22, 0.2 }
  0xfe   :  { %v616_v28 = vsel %vm531_vm4, 1.0, %v759_v23 }
  0xff   :  { %633 = vst [vmem:[%s930_s3 + $0x8] sm:$0xff] %v631_v26   ;;  %v628_v29 = vpack.c.bf16 %v616_v28, %v615_v27 }
 0x101   :  { %629 = vst [vmem:[%s930_s3] sm:$0xff] %v628_v29  }

// kernel: _forward_prefix.12
= control target key start
LH: loop header
LB: loop body
LE: loop exit
PB: predicated region body
PF: predicated region fallthrough
CT: control target
= control target key end

     0   :  { %s2172_s12 = smov 0   ;;  %s2174_s13 = smov 0   ;;  %s2656_s0 = inlined_call_operand.vmem [shape: bf16[1,8,1152], index: 0, kind: input, shape index: {}]   ;;  %s2657_s1 = inlined_call_operand.vmem [shape: bf16[1152,256], index: 1, kind: input, shape index: {}]   ;;  %s2658_s2 = inlined_call_operand.vmem [shape: f32[1,256], index: 2, kind: input, shape index: {}]   ;;  %s2659_s3 = inlined_call_operand.vmem [shape: bf16[1,8,256], index: 3, kind: output, shape index: {}]  }
   0x1   :  { %s2176_s14 = smov 0   ;;  %s2178_s15 = smov 0  }
   0x2   :  { %s2180_s16 = smov 0  }
   0x3 LB: > { %s22_s17 = sadd.s32 1, %s2144_s15  ;;  %p65_p1 = scmp.ne.s32.totalorder %s2136_s13, %s2132_s12  ;;  %s2148_s16 = sphi %s2180_s16, %s13_s16   ;;  %s2144_s15 = sphi %s2178_s15, %s2663_s15   ;;  %s2140_s14 = sphi %s2176_s14, %s2662_s14   ;;  %s2136_s13 = sphi %s2174_s13, %s2661_s13   ;;  %s2132_s12 = sphi %s2172_s12, %s2660_s12  }
   0x4   : > { %p23_p0 = scmp.ge.s32.totalorder %s22_s17, 2  ;;  %p66_p2 = scmp.eq.s32.totalorder %s2148_s16, 0 }
   0x5   : > { %s58_s19 = sadd.s32 1, %s2136_s13  ;;  %p1779_p5 = scmp.ge.s32.totalorder %s2148_s16, 2 }
   0x6   : > { %s2665_s17 = smov (%p23_p0, %s22_s17), 0  ;;  %p67_p3 = por %p66_p2, %p65_p1 }
   0x7   : > { %s55_s18 = ssub.s32 %s2144_s15, %s2665_s17  ;;  %153 = sbr.rel (%p1779_p5) target bundleno = 112 (0x70), region = 20 }
   0x8   : > { %p56_p4 = scmp.eq.s32.totalorder %s55_s18, 0 }
   0xa   : > { %s2207_s20 = scalar_select %p56_p4, %s2136_s13, %s58_s19  }
   0xc   : > { %156 = sbr.rel (!%p67_p3) target bundleno = 112 (0x70), region = 24  ;;  %s158_s21 = sand.u32 (%p67_p3), 1, %s2136_s13  }
   0xd   : > { %s1780_s22 = sshll.u32 (%p67_p3), %s2144_s15, 2  ;;  %s1985_s23 = smul.u32 (%p67_p3), 576, %s158_s21 }
   0xe   : > { %s2215_s26 = scalar_lea.vmem (%p67_p3), %s2657_s1, %s1780_s22 }
   0xf   : > { %v179_v0 = vld [vmem:[%s2215_s26] sm:$0xf] (%p67_p3)  ;;  %v181_v1 = vld [vmem:[%s2215_s26 + $0x8] sm:$0xf] (%p67_p3)  ;;  %v183_v2 = vld [vmem:[%s2215_s26 + $0x10] sm:$0xf] (%p67_p3) }
  0x10   : > { %v185_v3 = vld [vmem:[%s2215_s26 + $0x18] sm:$0xf] (%p67_p3)  ;;  %v187_v4 = vld [vmem:[%s2215_s26 + $0x20] sm:$0xf] (%p67_p3)  ;;  %s2222_s27 = scalar_lea.vmem (%p67_p3), [#allocation2], %s1985_s23 }
  0x11   : > { %180 = vst [vmem:[%s2222_s27] sm:$0xf] %v179_v0  ;;  %182 = vst [vmem:[%s2222_s27 + $0x4] sm:$0xf] %v181_v1  ;;  %v189_v5 = vld [vmem:[%s2215_s26 + $0x28] sm:$0xf] }
  0x12   : > { %184 = vst [vmem:[%s2222_s27 + $0x8] sm:$0xf] %v183_v2  ;;  %186 = vst [vmem:[%s2222_s27 + $0xc] sm:$0xf] %v185_v3  ;;  %v191_v6 = vld [vmem:[%s2215_s26 + $0x30] sm:$0xf] }
  0x13   : > { %188 = vst [vmem:[%s2222_s27 + $0x10] sm:$0xf] %v187_v4  ;;  %v193_v7 = vld [vmem:[%s2215_s26 + $0x38] sm:$0xf]  ;;  %190 = vst [vmem:[%s2222_s27 + $0x14] sm:$0xf] %v189_v5 }
  0x14   : > { %192 = vst [vmem:[%s2222_s27 + $0x18] sm:$0xf] %v191_v6  ;;  %194 = vst [vmem:[%s2222_s27 + $0x1c] sm:$0xf] %v193_v7  ;;  %v195_v8 = vld [vmem:[%s2215_s26 + $0x40] sm:$0xf] }
  0x15   : > { %v197_v9 = vld [vmem:[%s2215_s26 + $0x48] sm:$0xf]  ;;  %v199_v10 = vld [vmem:[%s2215_s26 + $0x50] sm:$0xf]  ;;  %196 = vst [vmem:[%s2222_s27 + $0x20] sm:$0xf] %v195_v8 }
  0x16   : > { %198 = vst [vmem:[%s2222_s27 + $0x24] sm:$0xf] %v197_v9  ;;  %200 = vst [vmem:[%s2222_s27 + $0x28] sm:$0xf] %v199_v10  ;;  %v201_v11 = vld [vmem:[%s2215_s26 + $0x58] sm:$0xf] }
  0x17   : > { %v203_v12 = vld [vmem:[%s2215_s26 + $0x60] sm:$0xf]  ;;  %v205_v13 = vld [vmem:[%s2215_s26 + $0x68] sm:$0xf]  ;;  %202 = vst [vmem:[%s2222_s27 + $0x2c] sm:$0xf] %v201_v11 }
  0x18   : > { %204 = vst [vmem:[%s2222_s27 + $0x30] sm:$0xf] %v203_v12  ;;  %206 = vst [vmem:[%s2222_s27 + $0x34] sm:$0xf] %v205_v13  ;;  %v207_v14 = vld [vmem:[%s2215_s26 + $0x70] sm:$0xf] }
  0x19   : > { %v209_v15 = vld [vmem:[%s2215_s26 + $0x78] sm:$0xf]  ;;  %v211_v16 = vld [vmem:[%s2215_s26 + $0x80] sm:$0xf]  ;;  %208 = vst [vmem:[%s2222_s27 + $0x38] sm:$0xf] %v207_v14 }
  0x1a   : > { %210 = vst [vmem:[%s2222_s27 + $0x3c] sm:$0xf] %v209_v15  ;;  %212 = vst [vmem:[%s2222_s27 + $0x40] sm:$0xf] %v211_v16  ;;  %v213_v17 = vld [vmem:[%s2215_s26 + $0x88] sm:$0xf] }
  0x1b   : > { %v215_v18 = vld [vmem:[%s2215_s26 + $0x90] sm:$0xf]  ;;  %v217_v19 = vld [vmem:[%s2215_s26 + $0x98] sm:$0xf]  ;;  %214 = vst [vmem:[%s2222_s27 + $0x44] sm:$0xf] %v213_v17 }
  0x1c   : > { %216 = vst [vmem:[%s2222_s27 + $0x48] sm:$0xf] %v215_v18  ;;  %218 = vst [vmem:[%s2222_s27 + $0x4c] sm:$0xf] %v217_v19  ;;  %v219_v20 = vld [vmem:[%s2215_s26 + $0xa0] sm:$0xf] }
  0x1d   : > { %v221_v21 = vld [vmem:[%s2215_s26 + $0xa8] sm:$0xf]  ;;  %v223_v22 = vld [vmem:[%s2215_s26 + $0xb0] sm:$0xf]  ;;  %220 = vst [vmem:[%s2222_s27 + $0x50] sm:$0xf] %v219_v20 }
  0x1e   : > { %222 = vst [vmem:[%s2222_s27 + $0x54] sm:$0xf] %v221_v21  ;;  %224 = vst [vmem:[%s2222_s27 + $0x58] sm:$0xf] %v223_v22  ;;  %v225_v23 = vld [vmem:[%s2215_s26 + $0xb8] sm:$0xf] }
  0x1f   : > { %v227_v24 = vld [vmem:[%s2215_s26 + $0xc0] sm:$0xf]  ;;  %v229_v25 = vld [vmem:[%s2215_s26 + $0xc8] sm:$0xf]  ;;  %226 = vst [vmem:[%s2222_s27 + $0x5c] sm:$0xf] %v225_v23 }
  0x20   : > { %228 = vst [vmem:[%s2222_s27 + $0x60] sm:$0xf] %v227_v24  ;;  %230 = vst [vmem:[%s2222_s27 + $0x64] sm:$0xf] %v229_v25  ;;  %v231_v26 = vld [vmem:[%s2215_s26 + $0xd0] sm:$0xf] }
  0x21   : > { %v233_v27 = vld [vmem:[%s2215_s26 + $0xd8] sm:$0xf]  ;;  %v235_v28 = vld [vmem:[%s2215_s26 + $0xe0] sm:$0xf]  ;;  %232 = vst [vmem:[%s2222_s27 + $0x68] sm:$0xf] %v231_v26 }
  0x22   : > { %234 = vst [vmem:[%s2222_s27 + $0x6c] sm:$0xf] %v233_v27  ;;  %236 = vst [vmem:[%s2222_s27 + $0x70] sm:$0xf] %v235_v28  ;;  %v237_v29 = vld [vmem:[%s2215_s26 + $0xe8] sm:$0xf] }
  0x23   : > { %v239_v30 = vld [vmem:[%s2215_s26 + $0xf0] sm:$0xf]  ;;  %v241_v31 = vld [vmem:[%s2215_s26 + $0xf8] sm:$0xf]  ;;  %238 = vst [vmem:[%s2222_s27 + $0x74] sm:$0xf] %v237_v29 }
  0x24   : > { %240 = vst [vmem:[%s2222_s27 + $0x78] sm:$0xf] %v239_v30  ;;  %242 = vst [vmem:[%s2222_s27 + $0x7c] sm:$0xf] %v241_v31  ;;  %v243_v32 = vld [vmem:[%s2215_s26 + $0x100] sm:$0xf] }
  0x25   : > { %v245_v33 = vld [vmem:[%s2215_s26 + $0x108] sm:$0xf]  ;;  %v247_v34 = vld [vmem:[%s2215_s26 + $0x110] sm:$0xf]  ;;  %244 = vst [vmem:[%s2222_s27 + $0x80] sm:$0xf] %v243_v32 }
  0x26   : > { %246 = vst [vmem:[%s2222_s27 + $0x84] sm:$0xf] %v245_v33  ;;  %248 = vst [vmem:[%s2222_s27 + $0x88] sm:$0xf] %v247_v34  ;;  %v249_v35 = vld [vmem:[%s2215_s26 + $0x118] sm:$0xf] }
  0x27   : > { %v251_v36 = vld [vmem:[%s2215_s26 + $0x120] sm:$0xf]  ;;  %v253_v37 = vld [vmem:[%s2215_s26 + $0x128] sm:$0xf]  ;;  %250 = vst [vmem:[%s2222_s27 + $0x8c] sm:$0xf] %v249_v35 }
  0x28   : > { %252 = vst [vmem:[%s2222_s27 + $0x90] sm:$0xf] %v251_v36  ;;  %254 = vst [vmem:[%s2222_s27 + $0x94] sm:$0xf] %v253_v37  ;;  %v255_v38 = vld [vmem:[%s2215_s26 + $0x130] sm:$0xf] }
  0x29   : > { %v257_v39 = vld [vmem:[%s2215_s26 + $0x138] sm:$0xf]  ;;  %v259_v40 = vld [vmem:[%s2215_s26 + $0x140] sm:$0xf]  ;;  %256 = vst [vmem:[%s2222_s27 + $0x98] sm:$0xf] %v255_v38 }
  0x2a   : > { %258 = vst [vmem:[%s2222_s27 + $0x9c] sm:$0xf] %v257_v39  ;;  %260 = vst [vmem:[%s2222_s27 + $0xa0] sm:$0xf] %v259_v40  ;;  %v261_v41 = vld [vmem:[%s2215_s26 + $0x148] sm:$0xf] }
  0x2b   : > { %v263_v42 = vld [vmem:[%s2215_s26 + $0x150] sm:$0xf]  ;;  %v265_v43 = vld [vmem:[%s2215_s26 + $0x158] sm:$0xf]  ;;  %262 = vst [vmem:[%s2222_s27 + $0xa4] sm:$0xf] %v261_v41 }
  0x2c   : > { %264 = vst [vmem:[%s2222_s27 + $0xa8] sm:$0xf] %v263_v42  ;;  %266 = vst [vmem:[%s2222_s27 + $0xac] sm:$0xf] %v265_v43  ;;  %v267_v44 = vld [vmem:[%s2215_s26 + $0x160] sm:$0xf] }
  0x2d   : > { %v269_v45 = vld [vmem:[%s2215_s26 + $0x168] sm:$0xf]  ;;  %v271_v46 = vld [vmem:[%s2215_s26 + $0x170] sm:$0xf]  ;;  %268 = vst [vmem:[%s2222_s27 + $0xb0] sm:$0xf] %v267_v44 }
  0x2e   : > { %270 = vst [vmem:[%s2222_s27 + $0xb4] sm:$0xf] %v269_v45  ;;  %272 = vst [vmem:[%s2222_s27 + $0xb8] sm:$0xf] %v271_v46  ;;  %v273_v47 = vld [vmem:[%s2215_s26 + $0x178] sm:$0xf] }
  0x2f   : > { %v275_v48 = vld [vmem:[%s2215_s26 + $0x180] sm:$0xf]  ;;  %v277_v49 = vld [vmem:[%s2215_s26 + $0x188] sm:$0xf]  ;;  %274 = vst [vmem:[%s2222_s27 + $0xbc] sm:$0xf] %v273_v47 }
  0x30   : > { %276 = vst [vmem:[%s2222_s27 + $0xc0] sm:$0xf] %v275_v48  ;;  %278 = vst [vmem:[%s2222_s27 + $0xc4] sm:$0xf] %v277_v49  ;;  %v279_v50 = vld [vmem:[%s2215_s26 + $0x190] sm:$0xf] }
  0x31   : > { %v281_v51 = vld [vmem:[%s2215_s26 + $0x198] sm:$0xf]  ;;  %v283_v52 = vld [vmem:[%s2215_s26 + $0x1a0] sm:$0xf]  ;;  %280 = vst [vmem:[%s2222_s27 + $0xc8] sm:$0xf] %v279_v50 }
  0x32   : > { %282 = vst [vmem:[%s2222_s27 + $0xcc] sm:$0xf] %v281_v51  ;;  %284 = vst [vmem:[%s2222_s27 + $0xd0] sm:$0xf] %v283_v52  ;;  %v285_v53 = vld [vmem:[%s2215_s26 + $0x1a8] sm:$0xf] }
  0x33   : > { %v287_v54 = vld [vmem:[%s2215_s26 + $0x1b0] sm:$0xf]  ;;  %v289_v55 = vld [vmem:[%s2215_s26 + $0x1b8] sm:$0xf]  ;;  %286 = vst [vmem:[%s2222_s27 + $0xd4] sm:$0xf] %v285_v53 }
  0x34   : > { %288 = vst [vmem:[%s2222_s27 + $0xd8] sm:$0xf] %v287_v54  ;;  %290 = vst [vmem:[%s2222_s27 + $0xdc] sm:$0xf] %v289_v55  ;;  %v291_v56 = vld [vmem:[%s2215_s26 + $0x1c0] sm:$0xf] }
  0x35   : > { %v293_v57 = vld [vmem:[%s2215_s26 + $0x1c8] sm:$0xf]  ;;  %v295_v58 = vld [vmem:[%s2215_s26 + $0x1d0] sm:$0xf]  ;;  %292 = vst [vmem:[%s2222_s27 + $0xe0] sm:$0xf] %v291_v56 }
  0x36   : > { %294 = vst [vmem:[%s2222_s27 + $0xe4] sm:$0xf] %v293_v57  ;;  %296 = vst [vmem:[%s2222_s27 + $0xe8] sm:$0xf] %v295_v58  ;;  %v297_v59 = vld [vmem:[%s2215_s26 + $0x1d8] sm:$0xf] }
  0x37   : > { %v299_v60 = vld [vmem:[%s2215_s26 + $0x1e0] sm:$0xf]  ;;  %v301_v61 = vld [vmem:[%s2215_s26 + $0x1e8] sm:$0xf]  ;;  %298 = vst [vmem:[%s2222_s27 + $0xec] sm:$0xf] %v297_v59 }
  0x38   : > { %300 = vst [vmem:[%s2222_s27 + $0xf0] sm:$0xf] %v299_v60  ;;  %302 = vst [vmem:[%s2222_s27 + $0xf4] sm:$0xf] %v301_v61  ;;  %v303_v62 = vld [vmem:[%s2215_s26 + $0x1f0] sm:$0xf] }
  0x39   : > { %v305_v63 = vld [vmem:[%s2215_s26 + $0x1f8] sm:$0xf]  ;;  %v307_v0 = vld [vmem:[%s2215_s26 + $0x200] sm:$0xf]  ;;  %304 = vst [vmem:[%s2222_s27 + $0xf8] sm:$0xf] %v303_v62 }
  0x3a   : > { %306 = vst [vmem:[%s2222_s27 + $0xfc] sm:$0xf] %v305_v63  ;;  %308 = vst [vmem:[%s2222_s27 + $0x100] sm:$0xf] %v307_v0  ;;  %v309_v1 = vld [vmem:[%s2215_s26 + $0x208] sm:$0xf] }
  0x3b   : > { %v311_v2 = vld [vmem:[%s2215_s26 + $0x210] sm:$0xf]  ;;  %v313_v3 = vld [vmem:[%s2215_s26 + $0x218] sm:$0xf]  ;;  %310 = vst [vmem:[%s2222_s27 + $0x104] sm:$0xf] %v309_v1 }
  0x3c   : > { %312 = vst [vmem:[%s2222_s27 + $0x108] sm:$0xf] %v311_v2  ;;  %314 = vst [vmem:[%s2222_s27 + $0x10c] sm:$0xf] %v313_v3  ;;  %v315_v4 = vld [vmem:[%s2215_s26 + $0x220] sm:$0xf] }
  0x3d   : > { %v317_v5 = vld [vmem:[%s2215_s26 + $0x228] sm:$0xf]  ;;  %v319_v6 = vld [vmem:[%s2215_s26 + $0x230] sm:$0xf]  ;;  %316 = vst [vmem:[%s2222_s27 + $0x110] sm:$0xf] %v315_v4 }
  0x3e   : > { %318 = vst [vmem:[%s2222_s27 + $0x114] sm:$0xf] %v317_v5  ;;  %320 = vst [vmem:[%s2222_s27 + $0x118] sm:$0xf] %v319_v6  ;;  %v321_v7 = vld [vmem:[%s2215_s26 + $0x238] sm:$0xf] }
  0x3f   : > { %v323_v8 = vld [vmem:[%s2215_s26 + $0x240] sm:$0xf]  ;;  %v325_v9 = vld [vmem:[%s2215_s26 + $0x248] sm:$0xf]  ;;  %322 = vst [vmem:[%s2222_s27 + $0x11c] sm:$0xf] %v321_v7 }
  0x40   : > { %324 = vst [vmem:[%s2222_s27 + $0x120] sm:$0xf] %v323_v8  ;;  %326 = vst [vmem:[%s2222_s27 + $0x124] sm:$0xf] %v325_v9  ;;  %v327_v10 = vld [vmem:[%s2215_s26 + $0x250] sm:$0xf] }
  0x41   : > { %v329_v11 = vld [vmem:[%s2215_s26 + $0x258] sm:$0xf]  ;;  %v331_v12 = vld [vmem:[%s2215_s26 + $0x260] sm:$0xf]  ;;  %328 = vst [vmem:[%s2222_s27 + $0x128] sm:$0xf] %v327_v10 }
  0x42   : > { %330 = vst [vmem:[%s2222_s27 + $0x12c] sm:$0xf] %v329_v11  ;;  %332 = vst [vmem:[%s2222_s27 + $0x130] sm:$0xf] %v331_v12  ;;  %v333_v13 = vld [vmem:[%s2215_s26 + $0x268] sm:$0xf] }
  0x43   : > { %v335_v14 = vld [vmem:[%s2215_s26 + $0x270] sm:$0xf]  ;;  %v337_v15 = vld [vmem:[%s2215_s26 + $0x278] sm:$0xf]  ;;  %334 = vst [vmem:[%s2222_s27 + $0x134] sm:$0xf] %v333_v13 }
  0x44   : > { %336 = vst [vmem:[%s2222_s27 + $0x138] sm:$0xf] %v335_v14  ;;  %338 = vst [vmem:[%s2222_s27 + $0x13c] sm:$0xf] %v337_v15  ;;  %v339_v16 = vld [vmem:[%s2215_s26 + $0x280] sm:$0xf] }
  0x45   : > { %v341_v17 = vld [vmem:[%s2215_s26 + $0x288] sm:$0xf]  ;;  %v343_v18 = vld [vmem:[%s2215_s26 + $0x290] sm:$0xf]  ;;  %340 = vst [vmem:[%s2222_s27 + $0x140] sm:$0xf] %v339_v16 }
  0x46   : > { %342 = vst [vmem:[%s2222_s27 + $0x144] sm:$0xf] %v341_v17  ;;  %344 = vst [vmem:[%s2222_s27 + $0x148] sm:$0xf] %v343_v18  ;;  %v345_v19 = vld [vmem:[%s2215_s26 + $0x298] sm:$0xf] }
  0x47   : > { %v347_v20 = vld [vmem:[%s2215_s26 + $0x2a0] sm:$0xf]  ;;  %v349_v21 = vld [vmem:[%s2215_s26 + $0x2a8] sm:$0xf]  ;;  %346 = vst [vmem:[%s2222_s27 + $0x14c] sm:$0xf] %v345_v19 }
  0x48   : > { %348 = vst [vmem:[%s2222_s27 + $0x150] sm:$0xf] %v347_v20  ;;  %350 = vst [vmem:[%s2222_s27 + $0x154] sm:$0xf] %v349_v21  ;;  %v351_v22 = vld [vmem:[%s2215_s26 + $0x2b0] sm:$0xf] }
  0x49   : > { %v353_v23 = vld [vmem:[%s2215_s26 + $0x2b8] sm:$0xf]  ;;  %v355_v24 = vld [vmem:[%s2215_s26 + $0x2c0] sm:$0xf]  ;;  %352 = vst [vmem:[%s2222_s27 + $0x158] sm:$0xf] %v351_v22 }
  0x4a   : > { %354 = vst [vmem:[%s2222_s27 + $0x15c] sm:$0xf] %v353_v23  ;;  %356 = vst [vmem:[%s2222_s27 + $0x160] sm:$0xf] %v355_v24  ;;  %v357_v25 = vld [vmem:[%s2215_s26 + $0x2c8] sm:$0xf] }
  0x4b   : > { %v359_v26 = vld [vmem:[%s2215_s26 + $0x2d0] sm:$0xf]  ;;  %v361_v27 = vld [vmem:[%s2215_s26 + $0x2d8] sm:$0xf]  ;;  %358 = vst [vmem:[%s2222_s27 + $0x164] sm:$0xf] %v357_v25 }
  0x4c   : > { %360 = vst [vmem:[%s2222_s27 + $0x168] sm:$0xf] %v359_v26  ;;  %362 = vst [vmem:[%s2222_s27 + $0x16c] sm:$0xf] %v361_v27  ;;  %v363_v28 = vld [vmem:[%s2215_s26 + $0x2e0] sm:$0xf] }
  0x4d   : > { %v365_v29 = vld [vmem:[%s2215_s26 + $0x2e8] sm:$0xf]  ;;  %v367_v30 = vld [vmem:[%s2215_s26 + $0x2f0] sm:$0xf]  ;;  %364 = vst [vmem:[%s2222_s27 + $0x170] sm:$0xf] %v363_v28 }
  0x4e   : > { %366 = vst [vmem:[%s2222_s27 + $0x174] sm:$0xf] %v365_v29  ;;  %368 = vst [vmem:[%s2222_s27 + $0x178] sm:$0xf] %v367_v30  ;;  %v369_v31 = vld [vmem:[%s2215_s26 + $0x2f8] sm:$0xf] }
  0x4f   : > { %v371_v32 = vld [vmem:[%s2215_s26 + $0x300] sm:$0xf]  ;;  %v373_v33 = vld [vmem:[%s2215_s26 + $0x308] sm:$0xf]  ;;  %370 = vst [vmem:[%s2222_s27 + $0x17c] sm:$0xf] %v369_v31 }
  0x50   : > { %372 = vst [vmem:[%s2222_s27 + $0x180] sm:$0xf] %v371_v32  ;;  %374 = vst [vmem:[%s2222_s27 + $0x184] sm:$0xf] %v373_v33  ;;  %v375_v34 = vld [vmem:[%s2215_s26 + $0x310] sm:$0xf] }
  0x51   : > { %v377_v35 = vld [vmem:[%s2215_s26 + $0x318] sm:$0xf]  ;;  %v379_v36 = vld [vmem:[%s2215_s26 + $0x320] sm:$0xf]  ;;  %376 = vst [vmem:[%s2222_s27 + $0x188] sm:$0xf] %v375_v34 }
  0x52   : > { %378 = vst [vmem:[%s2222_s27 + $0x18c] sm:$0xf] %v377_v35  ;;  %380 = vst [vmem:[%s2222_s27 + $0x190] sm:$0xf] %v379_v36  ;;  %v381_v37 = vld [vmem:[%s2215_s26 + $0x328] sm:$0xf] }
  0x53   : > { %v383_v38 = vld [vmem:[%s2215_s26 + $0x330] sm:$0xf]  ;;  %v385_v39 = vld [vmem:[%s2215_s26 + $0x338] sm:$0xf]  ;;  %382 = vst [vmem:[%s2222_s27 + $0x194] sm:$0xf] %v381_v37 }
  0x54   : > { %384 = vst [vmem:[%s2222_s27 + $0x198] sm:$0xf] %v383_v38  ;;  %386 = vst [vmem:[%s2222_s27 + $0x19c] sm:$0xf] %v385_v39  ;;  %v387_v40 = vld [vmem:[%s2215_s26 + $0x340] sm:$0xf] }
  0x55   : > { %v389_v41 = vld [vmem:[%s2215_s26 + $0x348] sm:$0xf]  ;;  %v391_v42 = vld [vmem:[%s2215_s26 + $0x350] sm:$0xf]  ;;  %388 = vst [vmem:[%s2222_s27 + $0x1a0] sm:$0xf] %v387_v40 }
  0x56   : > { %390 = vst [vmem:[%s2222_s27 + $0x1a4] sm:$0xf] %v389_v41  ;;  %392 = vst [vmem:[%s2222_s27 + $0x1a8] sm:$0xf] %v391_v42  ;;  %v393_v43 = vld [vmem:[%s2215_s26 + $0x358] sm:$0xf] }
  0x57   : > { %v395_v44 = vld [vmem:[%s2215_s26 + $0x360] sm:$0xf]  ;;  %v397_v45 = vld [vmem:[%s2215_s26 + $0x368] sm:$0xf]  ;;  %394 = vst [vmem:[%s2222_s27 + $0x1ac] sm:$0xf] %v393_v43 }
  0x58   : > { %396 = vst [vmem:[%s2222_s27 + $0x1b0] sm:$0xf] %v395_v44  ;;  %398 = vst [vmem:[%s2222_s27 + $0x1b4] sm:$0xf] %v397_v45  ;;  %v399_v46 = vld [vmem:[%s2215_s26 + $0x370] sm:$0xf] }
  0x59   : > { %v401_v47 = vld [vmem:[%s2215_s26 + $0x378] sm:$0xf]  ;;  %v403_v48 = vld [vmem:[%s2215_s26 + $0x380] sm:$0xf]  ;;  %400 = vst [vmem:[%s2222_s27 + $0x1b8] sm:$0xf] %v399_v46 }
  0x5a   : > { %402 = vst [vmem:[%s2222_s27 + $0x1bc] sm:$0xf] %v401_v47  ;;  %404 = vst [vmem:[%s2222_s27 + $0x1c0] sm:$0xf] %v403_v48  ;;  %v405_v49 = vld [vmem:[%s2215_s26 + $0x388] sm:$0xf] }
  0x5b   : > { %v407_v50 = vld [vmem:[%s2215_s26 + $0x390] sm:$0xf]  ;;  %v409_v51 = vld [vmem:[%s2215_s26 + $0x398] sm:$0xf]  ;;  %406 = vst [vmem:[%s2222_s27 + $0x1c4] sm:$0xf] %v405_v49 }
  0x5c   : > { %408 = vst [vmem:[%s2222_s27 + $0x1c8] sm:$0xf] %v407_v50  ;;  %410 = vst [vmem:[%s2222_s27 + $0x1cc] sm:$0xf] %v409_v51  ;;  %v411_v52 = vld [vmem:[%s2215_s26 + $0x3a0] sm:$0xf] }
  0x5d   : > { %v413_v53 = vld [vmem:[%s2215_s26 + $0x3a8] sm:$0xf]  ;;  %v415_v54 = vld [vmem:[%s2215_s26 + $0x3b0] sm:$0xf]  ;;  %412 = vst [vmem:[%s2222_s27 + $0x1d0] sm:$0xf] %v411_v52 }
  0x5e   : > { %414 = vst [vmem:[%s2222_s27 + $0x1d4] sm:$0xf] %v413_v53  ;;  %416 = vst [vmem:[%s2222_s27 + $0x1d8] sm:$0xf] %v415_v54  ;;  %v417_v55 = vld [vmem:[%s2215_s26 + $0x3b8] sm:$0xf] }
  0x5f   : > { %v419_v56 = vld [vmem:[%s2215_s26 + $0x3c0] sm:$0xf]  ;;  %v421_v57 = vld [vmem:[%s2215_s26 + $0x3c8] sm:$0xf]  ;;  %418 = vst [vmem:[%s2222_s27 + $0x1dc] sm:$0xf] %v417_v55 }
  0x60   : > { %420 = vst [vmem:[%s2222_s27 + $0x1e0] sm:$0xf] %v419_v56  ;;  %422 = vst [vmem:[%s2222_s27 + $0x1e4] sm:$0xf] %v421_v57  ;;  %v423_v58 = vld [vmem:[%s2215_s26 + $0x3d0] sm:$0xf] }
  0x61   : > { %v425_v59 = vld [vmem:[%s2215_s26 + $0x3d8] sm:$0xf]  ;;  %v427_v60 = vld [vmem:[%s2215_s26 + $0x3e0] sm:$0xf]  ;;  %424 = vst [vmem:[%s2222_s27 + $0x1e8] sm:$0xf] %v423_v58 }
  0x62   : > { %426 = vst [vmem:[%s2222_s27 + $0x1ec] sm:$0xf] %v425_v59  ;;  %428 = vst [vmem:[%s2222_s27 + $0x1f0] sm:$0xf] %v427_v60  ;;  %v429_v61 = vld [vmem:[%s2215_s26 + $0x3e8] sm:$0xf] }
  0x63   : > { %v431_v62 = vld [vmem:[%s2215_s26 + $0x3f0] sm:$0xf]  ;;  %v433_v63 = vld [vmem:[%s2215_s26 + $0x3f8] sm:$0xf]  ;;  %430 = vst [vmem:[%s2222_s27 + $0x1f4] sm:$0xf] %v429_v61 }
  0x64   : > { %432 = vst [vmem:[%s2222_s27 + $0x1f8] sm:$0xf] %v431_v62  ;;  %434 = vst [vmem:[%s2222_s27 + $0x1fc] sm:$0xf] %v433_v63  ;;  %v435_v0 = vld [vmem:[%s2215_s26 + $0x400] sm:$0xf] }
  0x65   : > { %v437_v1 = vld [vmem:[%s2215_s26 + $0x408] sm:$0xf]  ;;  %v439_v2 = vld [vmem:[%s2215_s26 + $0x410] sm:$0xf]  ;;  %436 = vst [vmem:[%s2222_s27 + $0x200] sm:$0xf] %v435_v0 }
  0x66   : > { %438 = vst [vmem:[%s2222_s27 + $0x204] sm:$0xf] %v437_v1  ;;  %440 = vst [vmem:[%s2222_s27 + $0x208] sm:$0xf] %v439_v2  ;;  %v441_v3 = vld [vmem:[%s2215_s26 + $0x418] sm:$0xf] }
  0x67   : > { %v443_v4 = vld [vmem:[%s2215_s26 + $0x420] sm:$0xf]  ;;  %v445_v5 = vld [vmem:[%s2215_s26 + $0x428] sm:$0xf]  ;;  %442 = vst [vmem:[%s2222_s27 + $0x20c] sm:$0xf] %v441_v3 }
  0x68   : > { %444 = vst [vmem:[%s2222_s27 + $0x210] sm:$0xf] %v443_v4  ;;  %446 = vst [vmem:[%s2222_s27 + $0x214] sm:$0xf] %v445_v5  ;;  %v447_v6 = vld [vmem:[%s2215_s26 + $0x430] sm:$0xf] }
  0x69   : > { %v449_v7 = vld [vmem:[%s2215_s26 + $0x438] sm:$0xf]  ;;  %v451_v8 = vld [vmem:[%s2215_s26 + $0x440] sm:$0xf]  ;;  %448 = vst [vmem:[%s2222_s27 + $0x218] sm:$0xf] %v447_v6 }
  0x6a   : > { %450 = vst [vmem:[%s2222_s27 + $0x21c] sm:$0xf] %v449_v7  ;;  %452 = vst [vmem:[%s2222_s27 + $0x220] sm:$0xf] %v451_v8  ;;  %v453_v9 = vld [vmem:[%s2215_s26 + $0x448] sm:$0xf] }
  0x6b   : > { %v455_v10 = vld [vmem:[%s2215_s26 + $0x450] sm:$0xf]  ;;  %v457_v11 = vld [vmem:[%s2215_s26 + $0x458] sm:$0xf]  ;;  %454 = vst [vmem:[%s2222_s27 + $0x224] sm:$0xf] %v453_v9 }
  0x6c   : > { %456 = vst [vmem:[%s2222_s27 + $0x228] sm:$0xf] %v455_v10  ;;  %458 = vst [vmem:[%s2222_s27 + $0x22c] sm:$0xf] %v457_v11  ;;  %v459_v12 = vld [vmem:[%s2215_s26 + $0x460] sm:$0xf] }
  0x6d   : > { %v461_v13 = vld [vmem:[%s2215_s26 + $0x468] sm:$0xf]  ;;  %v463_v14 = vld [vmem:[%s2215_s26 + $0x470] sm:$0xf]  ;;  %460 = vst [vmem:[%s2222_s27 + $0x230] sm:$0xf] %v459_v12 }
  0x6e   : > { %462 = vst [vmem:[%s2222_s27 + $0x234] sm:$0xf] %v461_v13  ;;  %464 = vst [vmem:[%s2222_s27 + $0x238] sm:$0xf] %v463_v14  ;;  %v465_v15 = vld [vmem:[%s2215_s26 + $0x478] sm:$0xf] }
  0x6f   : > { %466 = vst [vmem:[%s2222_s27 + $0x23c] sm:$0xf] %v465_v15 }
  0x70 PF: > { %p1781_p6 = scmp.ge.s32.totalorder %s2148_s16, 1  ;;  %p783_p7 = scmp.lt.s32.totalorder %s2148_s16, 3 }
  0x72   : > { %p784_p8 = pnand %p1781_p6, %p783_p7 }
  0x73   : > { %s790_s28 = sand.u32 (!%p784_p8), 1, %s2132_s12   ;;  %p829_p9 = scmp.lt.s32.totalorder (!%p784_p8), %s2140_s14, 1 }
  0x74   : > { %787 = sbr.rel (%p784_p8) target bundleno = 418 (0x1a2), region = 69 }
  0x75   : > { %s1986_s6 = smul.u32 (!%p784_p8), 576, %s790_s28 }
  0x77   : > { %s2524_s7 = scalar_lea.vmem (!%p784_p8), [#allocation2], %s1986_s6 }
  0x79   : > { %v2513_v16 = vld [vmem:[%s2656_s0] sm:$0xff]  ;;  %v2518_v17 = vld [vmem:[%s2656_s0 + $0x8] sm:$0xff]  ;;  %v2029_v20 = vld [vmem:[%s2524_s7 + $0x78] sm:$0xff]   ;;  %vm2151_vm0 = vmmov 0   ;;  %s2667_s14 = smov (!%p829_p9, %s2140_s14), 1 }
  0x7a   : > { %v1785_v18 = vcombine.high %v2513_v16, %v2513_v16  ;;  %v1787_v19 = vcombine.high %v2518_v17, %v2518_v17  ;;  %v2030_v21 = vld [vmem:[%s2524_s7 + $0x38] sm:$0xff]   ;;  %1868 = vmatprep.subr.bf16.mxu0 %v2029_v20  ;;  %v2033_v24 = vld [vmem:[%s2524_s7 + $0x70] sm:$0xff]   ;;  %v2037_v28 = vld [vmem:[%s2524_s7 + $0x68] sm:$0xff]   ;;  %v1784_v53 = vcombine.low %v2513_v16, %v2513_v16  ;;  %v1786_v57 = vcombine.low %v2518_v17, %v2518_v17  ;;  %s831_s22 = scalar_lea.vmem %s2658_s2, %s2667_s14  ;;  %s1782_s23 = sshll.u32 %s2667_s14, 2 }
  0x7b   : > { %v2031_v22 = vld [vmem:[%s2524_s7 + $0xf8] sm:$0xff]   ;;  %1869 = vmatpush3.bf16.msra.mxu0 %v2030_v21  ;;  %v2034_v25 = vld [vmem:[%s2524_s7 + $0x30] sm:$0xff]   ;;  %v2038_v29 = vld [vmem:[%s2524_s7 + $0x28] sm:$0xff]   ;;  %s839_s26 = scalar_lea.vmem %s2659_s3, %s1782_s23 }
  0x7c   : > { %1493 = vmatprep.mubr.bf16.mxu0 %v1785_v18  ;;  %1533 = vmatprep.mubr.bf16.mxu1 %v1787_v19  ;;  %v2032_v23 = vld [vmem:[%s2524_s7 + $0xb8] sm:$0xff]   ;;  %v2035_v26 = vld [vmem:[%s2524_s7 + $0xf0] sm:$0xff]   ;;  %v2039_v30 = vld [vmem:[%s2524_s7 + $0xe8] sm:$0xff]  }
  0x7d   : > { %1890 = vmatprep.subr.bf16.mxu1 %v2031_v22  ;;  %1870 = vmatprep.subr.bf16.mxu0 %v2033_v24  ;;  %v2036_v27 = vld [vmem:[%s2524_s7 + $0xb0] sm:$0xff]   ;;  %v2040_v31 = vld [vmem:[%s2524_s7 + $0xa8] sm:$0xff]   ;;  %v2041_v32 = vld [vmem:[%s2524_s7 + $0x60] sm:$0xff]  }
  0x7e   : > { %1891 = vmatpush3.bf16.msra.mxu1 %v2032_v23  ;;  %v2042_v33 = vld [vmem:[%s2524_s7 + $0x20] sm:$0xff]   ;;  %v2045_v36 = vld [vmem:[%s2524_s7 + $0x58] sm:$0xff]   ;;  %v2049_v40 = vld [vmem:[%s2524_s7 + $0x50] sm:$0xff]  }
  0x7f   : > { %1871 = vmatpush3.bf16.msra.mxu0 %v2034_v25  ;;  %1892 = vmatprep.subr.bf16.mxu1 %v2035_v26  ;;  %v2043_v34 = vld [vmem:[%s2524_s7 + $0xe0] sm:$0xff]   ;;  %v2046_v37 = vld [vmem:[%s2524_s7 + $0x18] sm:$0xff]   ;;  %v2050_v41 = vld [vmem:[%s2524_s7 + $0x10] sm:$0xff]  }
  0x80   : > { %1872 = vmatprep.subr.bf16.mxu0 %v2037_v28  ;;  %v2044_v35 = vld [vmem:[%s2524_s7 + $0xa0] sm:$0xff]   ;;  %v2047_v38 = vld [vmem:[%s2524_s7 + $0xd8] sm:$0xff]   ;;  %v2051_v42 = vld [vmem:[%s2524_s7 + $0xd0] sm:$0xff]  }
  0x81   : > { %v2048_v39 = vld [vmem:[%s2524_s7 + $0x98] sm:$0xff]   ;;  %v2052_v43 = vld [vmem:[%s2524_s7 + $0x90] sm:$0xff]   ;;  %v2053_v44 = vld [vmem:[%s2524_s7 + $0x48] sm:$0xff]  }
  0x82   : > { %1893 = vmatpush3.bf16.msra.mxu1 %v2036_v27  ;;  %v2054_v45 = vld [vmem:[%s2524_s7 + $0x8] sm:$0xff]   ;;  %v2556_v47 = vld [vmem:[%s2656_s0 + $0x10] sm:$0xff]  ;;  %v2057_v49 = vld [vmem:[%s2524_s7 + $0x40] sm:$0xff]   ;;  %v2150_v27 = vmov 0.0  }
  0x83   : > { %1873 = vmatpush3.bf16.msra.mxu0 %v2038_v29  ;;  %1894 = vmatprep.subr.bf16.mxu1 %v2039_v30  ;;  %v2055_v46 = vld [vmem:[%s2524_s7 + $0xc8] sm:$0xff]   ;;  %v2563_v50 = vld [vmem:[%s2656_s0 + $0x18] sm:$0xff]  ;;  %v2058_v51 = vld [vmem:[%s2524_s7] sm:$0xff]   ;;  %v1789_v55 = vcombine.high %v2556_v47, %v2556_v47  ;;  %v1788_v25 = vcombine.low %v2556_v47, %v2556_v47 }
  0x84   : > { %1874 = vmatprep.subr.bf16.mxu0 %v2041_v32  ;;  %v2056_v48 = vld [vmem:[%s2524_s7 + $0x88] sm:$0xff]   ;;  %v2059_v52 = vld [vmem:[%s2524_s7 + $0xc0] sm:$0xff]   ;;  %v2063_v56 = vld [vmem:[%s2524_s7 + $0x178] sm:$0xff]   ;;  %v1791_v59 = vcombine.high %v2563_v50, %v2563_v50  ;;  %v1790_v28 = vcombine.low %v2563_v50, %v2563_v50 }
  0x85   : > { %v2062_v54 = vld [vmem:[%s2524_s7 + $0x80] sm:$0xff]   ;;  %v2066_v58 = vld [vmem:[%s2524_s7 + $0x138] sm:$0xff]   ;;  %v2069_v62 = vld [vmem:[%s2524_s7 + $0x170] sm:$0xff]  }
  0x86   : > { %1895 = vmatpush3.bf16.msra.mxu1 %v2040_v31  ;;  %v2067_v60 = vld [vmem:[%s2524_s7 + $0x1f8] sm:$0xff]   ;;  %v2070_v63 = vld [vmem:[%s2524_s7 + $0x130] sm:$0xff]   ;;  %v2073_v2 = vld [vmem:[%s2524_s7 + $0x168] sm:$0xff]  }
  0x87   : > { %1875 = vmatpush3.bf16.msra.mxu0 %v2042_v33  ;;  %1896 = vmatprep.subr.bf16.mxu1 %v2043_v34  ;;  %v2068_v61 = vld [vmem:[%s2524_s7 + $0x1b8] sm:$0xff]   ;;  %v2071_v0 = vld [vmem:[%s2524_s7 + $0x1f0] sm:$0xff]   ;;  %v2074_v3 = vld [vmem:[%s2524_s7 + $0x128] sm:$0xff]  }
  0x88   : > { %1876 = vmatprep.subr.bf16.mxu0 %v2045_v36  ;;  %v2072_v1 = vld [vmem:[%s2524_s7 + $0x1b0] sm:$0xff]   ;;  %v2075_v4 = vld [vmem:[%s2524_s7 + $0x1e8] sm:$0xff]   ;;  %v2077_v6 = vld [vmem:[%s2524_s7 + $0x160] sm:$0xff]  }
  0x89   : > { %v2076_v5 = vld [vmem:[%s2524_s7 + $0x1a8] sm:$0xff]   ;;  %v2078_v7 = vld [vmem:[%s2524_s7 + $0x120] sm:$0xff]   ;;  %v2081_v10 = vld [vmem:[%s2524_s7 + $0x158] sm:$0xff]  }
  0x8a   : > { %1897 = vmatpush3.bf16.msra.mxu1 %v2044_v35  ;;  %v2079_v8 = vld [vmem:[%s2524_s7 + $0x1e0] sm:$0xff]   ;;  %v2082_v11 = vld [vmem:[%s2524_s7 + $0x118] sm:$0xff]   ;;  %v2085_v14 = vld [vmem:[%s2524_s7 + $0x150] sm:$0xff]  }
  0x8b   : > { %1877 = vmatpush3.bf16.msra.mxu0 %v2046_v37  ;;  %1898 = vmatprep.subr.bf16.mxu1 %v2047_v38  ;;  %v2080_v9 = vld [vmem:[%s2524_s7 + $0x1a0] sm:$0xff]   ;;  %v2083_v12 = vld [vmem:[%s2524_s7 + $0x1d8] sm:$0xff]   ;;  %v2086_v15 = vld [vmem:[%s2524_s7 + $0x110] sm:$0xff]  }
  0x8c   : > { %1878 = vmatprep.subr.bf16.mxu0 %v2049_v40  ;;  %v2084_v13 = vld [vmem:[%s2524_s7 + $0x198] sm:$0xff]   ;;  %v2087_v16 = vld [vmem:[%s2524_s7 + $0x1d0] sm:$0xff]   ;;  %v2089_v18 = vld [vmem:[%s2524_s7 + $0x148] sm:$0xff]  }
  0x8d   : > { %v2088_v17 = vld [vmem:[%s2524_s7 + $0x190] sm:$0xff]   ;;  %v2090_v19 = vld [vmem:[%s2524_s7 + $0x108] sm:$0xff]   ;;  %v2093_v22 = vld [vmem:[%s2524_s7 + $0x140] sm:$0xff]  }
  0x8e   : > { %1899 = vmatpush3.bf16.msra.mxu1 %v2048_v39  ;;  %v2091_v20 = vld [vmem:[%s2524_s7 + $0x1c8] sm:$0xff]   ;;  %v2094_v23 = vld [vmem:[%s2524_s7 + $0x100] sm:$0xff]   ;;  %v2101_v29 = vld [vmem:[%s2524_s7 + $0x238] sm:$0xff]  }
  0x8f   : > { %1879 = vmatpush3.bf16.msra.mxu0 %v2050_v41  ;;  %1900 = vmatprep.subr.bf16.mxu1 %v2051_v42  ;;  %v2092_v21 = vld [vmem:[%s2524_s7 + $0x188] sm:$0xff]   ;;  %v2095_v24 = vld [vmem:[%s2524_s7 + $0x1c0] sm:$0xff]   ;;  %v2102_v30 = vld [vmem:[%s2524_s7 + $0x230] sm:$0xff]  }
  0x90   : > { %1880 = vmatprep.subr.bf16.mxu0 %v2053_v44  ;;  %v2098_v26 = vld [vmem:[%s2524_s7 + $0x180] sm:$0xff]   ;;  %v2103_v31 = vld [vmem:[%s2524_s7 + $0x228] sm:$0xff]   ;;  %v2105_v33 = vld [vmem:[%s2524_s7 + $0x218] sm:$0xff]  }
  0x91   : > { %v2104_v32 = vld [vmem:[%s2524_s7 + $0x220] sm:$0xff]   ;;  %v2106_v34 = vld [vmem:[%s2524_s7 + $0x210] sm:$0xff]   ;;  %v2107_v35 = vld [vmem:[%s2524_s7 + $0x208] sm:$0xff]  }
  0x92   : > { %1901 = vmatpush3.bf16.msra.mxu1 %v2052_v43  ;;  %v2108_v36 = vld [vmem:[%s2524_s7 + $0x200] sm:$0xff]  }
  0x93   : > { %1881 = vmatpush3.bf16.msra.mxu0 %v2054_v45  ;;  %1902 = vmatprep.subr.bf16.mxu1 %v2055_v46  ;;  %v2109_v37 = vld [vmem:[%s2656_s0 + $0x20] ss:$0 sps:$4 sm:$0xff]  }
  0x94   : > { %1882 = vmatprep.subr.bf16.mxu0 %v2057_v49 }
  0x96   : > { %1903 = vmatpush3.bf16.msra.mxu1 %v2056_v48 }
  0x97   : > { %1883 = vmatpush3.bf16.msra.mxu0 %v2058_v51  ;;  %1904 = vmatprep.subr.bf16.mxu1 %v2059_v52 }
  0x98   : > { %1912 = vmatprep.subr.bf16.mxu0 %v2063_v56 }
  0x9a   : > { %1905 = vmatpush3.bf16.msra.mxu1 %v2062_v54  ;;  %1494 = vmatmul.mubr.bf16.vlgmr.msra.gmra.mxu0 %v1784_v53 }
  0x9b   : > { %1913 = vmatpush3.bf16.msra.mxu0 %v2066_v58  ;;  %1573 = vmatprep.mubr.bf16.mxu0 %v1789_v55  ;;  %v1783_v55 = vld [vmem:[%s831_s22] ss:$0 sm:$0xff] }
  0x9c   : > { %1934 = vmatprep.subr.bf16.mxu1 %v2067_v60  ;;  %1914 = vmatprep.subr.bf16.mxu0 %v2069_v62 }
  0x9d   : > { %1534 = vmatmul.mubr.bf16.vlgmr.msra.gmra.mxu1 %v1786_v57 }
  0x9e   : > { %1935 = vmatpush3.bf16.msra.mxu1 %v2068_v61  ;;  %1613 = vmatprep.mubr.bf16.mxu1 %v1791_v59 }
  0x9f   : > { %1915 = vmatpush3.bf16.msra.mxu0 %v2070_v63  ;;  %1936 = vmatprep.subr.bf16.mxu1 %v2071_v0 }
  0xa0   : > { %1916 = vmatprep.subr.bf16.mxu0 %v2073_v2 }
  0xa2   : > { %1937 = vmatpush3.bf16.msra.mxu1 %v2072_v1 }
  0xa3   : > { %1917 = vmatpush3.bf16.msra.mxu0 %v2074_v3  ;;  %1938 = vmatprep.subr.bf16.mxu1 %v2075_v4 }
  0xa4   : > { %1918 = vmatprep.subr.bf16.mxu0 %v2077_v6 }
  0xa6   : > { %1939 = vmatpush3.bf16.msra.mxu1 %v2076_v5 }
  0xa7   : > { %1919 = vmatpush3.bf16.msra.mxu0 %v2078_v7  ;;  %1940 = vmatprep.subr.bf16.mxu1 %v2079_v8 }
  0xa8   : > { %1920 = vmatprep.subr.bf16.mxu0 %v2081_v10 }
  0xaa   : > { %1941 = vmatpush3.bf16.msra.mxu1 %v2080_v9 }
  0xab   : > { %1921 = vmatpush3.bf16.msra.mxu0 %v2082_v11  ;;  %1942 = vmatprep.subr.bf16.mxu1 %v2083_v12 }
  0xac   : > { %1922 = vmatprep.subr.bf16.mxu0 %v2085_v14 }
  0xae   : > { %1943 = vmatpush3.bf16.msra.mxu1 %v2084_v13 }
  0xaf   : > { %1923 = vmatpush3.bf16.msra.mxu0 %v2086_v15  ;;  %1944 = vmatprep.subr.bf16.mxu1 %v2087_v16 }
  0xb0   : > { %1924 = vmatprep.subr.bf16.mxu0 %v2089_v18 }
  0xb2   : > { %1945 = vmatpush3.bf16.msra.mxu1 %v2088_v17 }
  0xb3   : > { %1925 = vmatpush3.bf16.msra.mxu0 %v2090_v19  ;;  %1946 = vmatprep.subr.bf16.mxu1 %v2091_v20 }
  0xb4   : > { %1926 = vmatprep.subr.bf16.mxu0 %v2093_v22 }
  0xb6   : > { %1947 = vmatpush3.bf16.msra.mxu1 %v2092_v21 }
  0xb7   : > { %1927 = vmatpush3.bf16.msra.mxu0 %v2094_v23  ;;  %1948 = vmatprep.subr.bf16.mxu1 %v2095_v24 }
  0xb8   : > { %1965 = vmatprep.subr.bf16.mxu0 %v2150_v27 }
  0xba   : > { %1949 = vmatpush3.bf16.msra.mxu1 %v2098_v26  ;;  %1574 = vmatmul.mubr.bf16.vlgmr.msra.gmra.mxu0 %v1788_v25 }
  0xbb   : > { %1966 = vmatpush3.bf16.msra.mxu0 %v2101_v29  ;;  %1981 = vmatprep.mubr.msk.bf16.mxu0 %vm2151_vm0, %v2150_v27 }
  0xbc   : > { %1967 = vmatprep.subr.bf16.mxu0 %v2150_v27 }
  0xbd   : > { %1614 = vmatmul.mubr.bf16.vlgmr.msra.gmra.mxu1 %v1790_v28 }
  0xbf   : > { %1968 = vmatpush3.bf16.msra.mxu0 %v2102_v30 }
  0xc0   : > { %1969 = vmatprep.subr.bf16.mxu0 %v2150_v27 }
  0xc3   : > { %1970 = vmatpush3.bf16.msra.mxu0 %v2103_v31 }
  0xc4   : > { %1971 = vmatprep.subr.bf16.mxu0 %v2150_v27 }
  0xc7   : > { %1972 = vmatpush3.bf16.msra.mxu0 %v2104_v32 }
  0xc8   : > { %1973 = vmatprep.subr.bf16.mxu0 %v2150_v27 }
  0xcb   : > { %1974 = vmatpush3.bf16.msra.mxu0 %v2105_v33 }
  0xcc   : > { %1975 = vmatprep.subr.bf16.mxu0 %v2150_v27 }
  0xcf   : > { %1976 = vmatpush3.bf16.msra.mxu0 %v2106_v34 }
  0xd0   : > { %1977 = vmatprep.subr.bf16.mxu0 %v2150_v27 }
  0xd3   : > { %1978 = vmatpush3.bf16.msra.mxu0 %v2107_v35 }
  0xd4   : > { %1979 = vmatprep.subr.bf16.mxu0 %v2150_v27 }
  0xd7   : > { %1980 = vmatpush3.bf16.msra.mxu0 %v2108_v36 }
  0xda   : > { %1982 = vmatmul.mubr.bf16.vlgmr.msra.gmra.mxu0 %v2109_v37 }
 0x15a   : > { %v1884_v38 = vpop.f32.mrf.mxu0 }
 0x15c   : > { %v1885_v39 = vpop.f32.mrf.mxu0 }
 0x15d   : > { %v1906_v40 = vpop.f32.mrf.mxu1  ;;  %v1886_v54 = vadd.f32 %v1885_v39, %v1884_v38 }
 0x15e   : > { %v1887_v41 = vpop.f32.mrf.mxu0 }
 0x15f   : > { %v1907_v42 = vpop.f32.mrf.mxu1  ;;  %v1496_v56 = vadd.f32 %v1886_v54, %v1783_v55 }
 0x160   : > { %v1888_v43 = vpop.f32.mrf.mxu0  ;;  %v1908_v57 = vadd.f32 %v1907_v42, %v1906_v40 }
 0x161   : > { %v1909_v44 = vpop.f32.mrf.mxu1 }
 0x162   : > { %v1536_v59 = vadd.f32 %v1908_v57, %v1496_v56 }
 0x163   : > { %v1910_v45 = vpop.f32.mrf.mxu1 }
 0x17a   : > { %v1928_v46 = vpop.f32.mrf.mxu0 }
 0x17c   : > { %v1929_v47 = vpop.f32.mrf.mxu0 }
 0x17d   : > { %v1950_v48 = vpop.f32.mrf.mxu1  ;;  %v1930_v58 = vadd.f32 %v1929_v47, %v1928_v46 }
 0x17e   : > { %v1931_v49 = vpop.f32.mrf.mxu0 }
 0x17f   : > { %v1951_v50 = vpop.f32.mrf.mxu1  ;;  %v1576_v60 = vadd.f32 %v1930_v58, %v1536_v59 }
 0x180   : > { %v1932_v51 = vpop.f32.mrf.mxu0  ;;  %v1952_v61 = vadd.f32 %v1951_v50, %v1950_v48 }
 0x181   : > { %v1953_v52 = vpop.f32.mrf.mxu1 }
 0x182   : > { %v1616_v62 = vadd.f32 %v1952_v61, %v1576_v60 }
 0x183   : > { %v1954_v53 = vpop.f32.mrf.mxu1 }
 0x19a   : > { %v1655_v63 = vpop.f32.mrf.mxu0 }
 0x19b   : > { %v1656_v0 = vadd.f32 %v1655_v63, %v1616_v62 }
 0x19c   : > { %v1983_v1 = vpop.f32.mrf.mxu0 }
 0x19d   : > { %vm1662_vm1 = vcmp.gt.f32.partialorder %v1656_v0, 0.2 }
 0x19e   : > { %v1865_v2 = vsel %vm1662_vm1, 1.0, %v2150_v27  ;;  %v1658_v3 = vpop.f32.mrf.mxu0 }
 0x19f   : > { %v1665_v4 = vpack.c.bf16 %v1865_v2, %v1865_v2 }
 0x1a0   : > { %v1984_v5 = vpop.f32.mrf.mxu0 }
 0x1a1   : > { %1666 = vst [vmem:[%s839_s26] sm:$0xf] %v1665_v4 }
 0x1a2 PF: > { %s13_s16 = sadd.s32 1, %s2148_s16   ;;  %s2660_s12 = smov %s2136_s13 }
 0x1a3   : > { %p10_p10 = scmp.ge.s32.totalorder %s13_s16, 4   ;;  %s2661_s13 = smov %s2207_s20 }
 0x1a4   : > { %s2662_s14 = smov %s2144_s15  ;;  %s2663_s15 = smov %s2665_s17 }
 0x1a5   :  { %12 = sbr.rel (!%p10_p10) target bundleno = 3 (0x3), region = 114 }

// kernel: _forward_prefix.13
= control target key start
LH: loop header
LB: loop body
LE: loop exit
PB: predicated region body
PF: predicated region fallthrough
CT: control target
= control target key end

     0   :  { %s3153_s1 = inlined_call_operand.vmem [shape: bf16[2304,128], index: 1, kind: input, shape index: {}]   ;;  %s3154_s0 = inlined_call_operand.vmem [shape: bf16[1,32,2304], index: 0, kind: input, shape index: {}]   ;;  %s3155_s2 = inlined_call_operand.vmem [shape: f32[1,128], index: 2, kind: input, shape index: {}]   ;;  %s3156_s3 = inlined_call_operand.vmem [shape: bf16[1,32,128], index: 3, kind: output, shape index: {}]  }
   0x1   :  { %v2340_v0 = vld [vmem:[%s3153_s1 + $0x78] sm:$0xff]   ;;  %v2344_v4 = vld [vmem:[%s3153_s1 + $0x70] sm:$0xff]   ;;  %v2348_v8 = vld [vmem:[%s3153_s1 + $0x68] sm:$0xff]  }
   0x2   :  { %v2341_v1 = vld [vmem:[%s3153_s1 + $0xf8] sm:$0xff]   ;;  %2071 = vmatprep.subr.bf16.mxu0 %v2340_v0  ;;  %v2345_v5 = vld [vmem:[%s3153_s1 + $0xf0] sm:$0xff]   ;;  %v2349_v9 = vld [vmem:[%s3153_s1 + $0xe8] sm:$0xff]  }
   0x3   :  { %v2342_v2 = vld [vmem:[%s3153_s1 + $0x38] sm:$0xff]   ;;  %2099 = vmatprep.subr.bf16.mxu1 %v2341_v1  ;;  %v2346_v6 = vld [vmem:[%s3153_s1 + $0x30] sm:$0xff]   ;;  %v2350_v10 = vld [vmem:[%s3153_s1 + $0x28] sm:$0xff]  }
   0x4   :  { %v2343_v3 = vld [vmem:[%s3153_s1 + $0xb8] sm:$0xff]   ;;  %2072 = vmatpush3.bf16.msra.mxu0 %v2342_v2  ;;  %v2347_v7 = vld [vmem:[%s3153_s1 + $0xb0] sm:$0xff]   ;;  %v2351_v11 = vld [vmem:[%s3153_s1 + $0xa8] sm:$0xff]  }
   0x5   :  { %2100 = vmatpush3.bf16.msra.mxu1 %v2343_v3  ;;  %2073 = vmatprep.subr.bf16.mxu0 %v2344_v4  ;;  %v2352_v12 = vld [vmem:[%s3153_s1 + $0x60] sm:$0xff]   ;;  %v2356_v16 = vld [vmem:[%s3153_s1 + $0x58] sm:$0xff]   ;;  %v2360_v20 = vld [vmem:[%s3153_s1 + $0x50] sm:$0xff]  }
   0x6   :  { %2101 = vmatprep.subr.bf16.mxu1 %v2345_v5  ;;  %v2353_v13 = vld [vmem:[%s3153_s1 + $0xe0] sm:$0xff]   ;;  %v2357_v17 = vld [vmem:[%s3153_s1 + $0xd8] sm:$0xff]   ;;  %v2361_v21 = vld [vmem:[%s3153_s1 + $0xd0] sm:$0xff]  }
   0x7   :  { %v2354_v14 = vld [vmem:[%s3153_s1 + $0x20] sm:$0xff]   ;;  %v2358_v18 = vld [vmem:[%s3153_s1 + $0x18] sm:$0xff]   ;;  %v2362_v22 = vld [vmem:[%s3153_s1 + $0x10] sm:$0xff]  }
   0x8   :  { %2074 = vmatpush3.bf16.msra.mxu0 %v2346_v6  ;;  %v2355_v15 = vld [vmem:[%s3153_s1 + $0xa0] sm:$0xff]   ;;  %v2359_v19 = vld [vmem:[%s3153_s1 + $0x98] sm:$0xff]   ;;  %v2363_v23 = vld [vmem:[%s3153_s1 + $0x90] sm:$0xff]  }
   0x9   :  { %2102 = vmatpush3.bf16.msra.mxu1 %v2347_v7  ;;  %2075 = vmatprep.subr.bf16.mxu0 %v2348_v8  ;;  %v2364_v24 = vld [vmem:[%s3153_s1 + $0x48] sm:$0xff]   ;;  %v2368_v28 = vld [vmem:[%s3153_s1 + $0x40] sm:$0xff]   ;;  %v2378_v36 = vld [vmem:[%s3153_s1 + $0x178] sm:$0xff]  }
   0xa   :  { %2103 = vmatprep.subr.bf16.mxu1 %v2349_v9  ;;  %v2365_v25 = vld [vmem:[%s3153_s1 + $0xc8] sm:$0xff]   ;;  %v2369_v29 = vld [vmem:[%s3153_s1 + $0xc0] sm:$0xff]   ;;  %v2379_v37 = vld [vmem:[%s3153_s1 + $0x1f8] sm:$0xff]  }
   0xb   :  { %v2366_v26 = vld [vmem:[%s3153_s1 + $0x8] sm:$0xff]   ;;  %v2370_v30 = vld [vmem:[%s3153_s1] sm:$0xff]   ;;  %v2380_v38 = vld [vmem:[%s3153_s1 + $0x138] sm:$0xff]  }
   0xc   :  { %2076 = vmatpush3.bf16.msra.mxu0 %v2350_v10  ;;  %v2367_v27 = vld [vmem:[%s3153_s1 + $0x88] sm:$0xff]   ;;  %v2371_v31 = vld [vmem:[%s3153_s1 + $0x80] sm:$0xff]   ;;  %v2381_v39 = vld [vmem:[%s3153_s1 + $0x1b8] sm:$0xff]  }
   0xd   :  { %2104 = vmatpush3.bf16.msra.mxu1 %v2351_v11  ;;  %2077 = vmatprep.subr.bf16.mxu0 %v2352_v12  ;;  %v2372_v32 = vld [vmem:[%s3154_s0] ss:$72 sps:$4 sm:$0xff]   ;;  %v2374_v33 = vld [vmem:[%s3154_s0 + $0x4] ss:$72 sps:$4 sm:$0xff]   ;;  %v2382_v40 = vld [vmem:[%s3153_s1 + $0x170] sm:$0xff]  }
   0xe   :  { %2105 = vmatprep.subr.bf16.mxu1 %v2353_v13  ;;  %v2375_v34 = vld [vmem:[%s3154_s0 + $0x8] ss:$72 sps:$4 sm:$0xff]   ;;  %v2377_v35 = vld [vmem:[%s3154_s0 + $0xc] ss:$72 sps:$4 sm:$0xff]   ;;  %1422 = vmatprep.mubr.bf16.mxu0 %v2374_v33  ;;  %v2390_v48 = vld [vmem:[%s3153_s1 + $0x160] sm:$0xff]  }
   0xf   :  { %1471 = vmatprep.mubr.bf16.mxu1 %v2377_v35  ;;  %v2383_v41 = vld [vmem:[%s3153_s1 + $0x1f0] sm:$0xff]   ;;  %v2386_v44 = vld [vmem:[%s3153_s1 + $0x168] sm:$0xff]   ;;  %v2391_v49 = vld [vmem:[%s3153_s1 + $0x1e0] sm:$0xff]  }
  0x10   :  { %2078 = vmatpush3.bf16.msra.mxu0 %v2354_v14  ;;  %v2384_v42 = vld [vmem:[%s3153_s1 + $0x130] sm:$0xff]   ;;  %v2387_v45 = vld [vmem:[%s3153_s1 + $0x1e8] sm:$0xff]   ;;  %v2392_v50 = vld [vmem:[%s3153_s1 + $0x120] sm:$0xff]  }
  0x11   :  { %2106 = vmatpush3.bf16.msra.mxu1 %v2355_v15  ;;  %2079 = vmatprep.subr.bf16.mxu0 %v2356_v16  ;;  %v2385_v43 = vld [vmem:[%s3153_s1 + $0x1b0] sm:$0xff]   ;;  %v2388_v46 = vld [vmem:[%s3153_s1 + $0x128] sm:$0xff]   ;;  %v2393_v51 = vld [vmem:[%s3153_s1 + $0x1a0] sm:$0xff]  }
  0x12   :  { %2107 = vmatprep.subr.bf16.mxu1 %v2357_v17  ;;  %v2389_v47 = vld [vmem:[%s3153_s1 + $0x1a8] sm:$0xff]   ;;  %v2394_v52 = vld [vmem:[%s3154_s0 + $0x94] ss:$72 sps:$4 sm:$0xff]   ;;  %v2398_v55 = vld [vmem:[%s3154_s0 + $0x90] ss:$72 sps:$4 sm:$0xff]  }
  0x13   :  { %v2396_v53 = vld [vmem:[%s3153_s1 + $0x158] sm:$0xff]   ;;  %v2404_v60 = vld [vmem:[%s3153_s1 + $0x150] sm:$0xff]   ;;  %v2408_v0 = vld [vmem:[%s3153_s1 + $0x148] sm:$0xff]  }
  0x14   :  { %2080 = vmatpush3.bf16.msra.mxu0 %v2358_v18  ;;  %v2397_v54 = vld [vmem:[%s3153_s1 + $0x1d8] sm:$0xff]   ;;  %v2405_v61 = vld [vmem:[%s3153_s1 + $0x1d0] sm:$0xff]   ;;  %v2409_v1 = vld [vmem:[%s3153_s1 + $0x1c8] sm:$0xff]  }
  0x15   :  { %2108 = vmatpush3.bf16.msra.mxu1 %v2359_v19  ;;  %2081 = vmatprep.subr.bf16.mxu0 %v2360_v20  ;;  %v2399_v56 = vld [vmem:[%s3153_s1 + $0x118] sm:$0xff]   ;;  %v2406_v62 = vld [vmem:[%s3153_s1 + $0x110] sm:$0xff]   ;;  %v2410_v2 = vld [vmem:[%s3153_s1 + $0x108] sm:$0xff]  }
  0x16   :  { %2109 = vmatprep.subr.bf16.mxu1 %v2361_v21  ;;  %v2400_v57 = vld [vmem:[%s3153_s1 + $0x198] sm:$0xff]   ;;  %v2407_v63 = vld [vmem:[%s3153_s1 + $0x190] sm:$0xff]   ;;  %v2411_v3 = vld [vmem:[%s3153_s1 + $0x188] sm:$0xff]  }
  0x17   :  { %v2401_v58 = vld [vmem:[%s3154_s0 + $0x9c] ss:$72 sps:$4 sm:$0xff]   ;;  %v2403_v59 = vld [vmem:[%s3154_s0 + $0x98] ss:$72 sps:$4 sm:$0xff]   ;;  %v2426_v16 = vld [vmem:[%s3153_s1 + $0x270] sm:$0xff]  }
  0x18   :  { %2082 = vmatpush3.bf16.msra.mxu0 %v2362_v22  ;;  %v2412_v4 = vld [vmem:[%s3153_s1 + $0x140] sm:$0xff]   ;;  %v2416_v8 = vld [vmem:[%s3154_s0 + $0x10] ss:$72 sps:$4 sm:$0xff]   ;;  %v2418_v9 = vld [vmem:[%s3154_s0 + $0x14] ss:$72 sps:$4 sm:$0xff]  }
  0x19   :  { %2110 = vmatpush3.bf16.msra.mxu1 %v2363_v23  ;;  %2083 = vmatprep.subr.bf16.mxu0 %v2364_v24  ;;  %v2413_v5 = vld [vmem:[%s3153_s1 + $0x1c0] sm:$0xff]   ;;  %v2422_v12 = vld [vmem:[%s3153_s1 + $0x278] sm:$0xff]   ;;  %v2427_v17 = vld [vmem:[%s3153_s1 + $0x2f0] sm:$0xff]  }
  0x1a   :  { %2111 = vmatprep.subr.bf16.mxu1 %v2365_v25  ;;  %v2414_v6 = vld [vmem:[%s3153_s1 + $0x100] sm:$0xff]   ;;  %v2423_v13 = vld [vmem:[%s3153_s1 + $0x2f8] sm:$0xff]   ;;  %v2428_v18 = vld [vmem:[%s3153_s1 + $0x230] sm:$0xff]  }
  0x1b   :  { %v2415_v7 = vld [vmem:[%s3153_s1 + $0x180] sm:$0xff]   ;;  %v2424_v14 = vld [vmem:[%s3153_s1 + $0x238] sm:$0xff]   ;;  %v2429_v19 = vld [vmem:[%s3153_s1 + $0x2b0] sm:$0xff]  }
  0x1c   :  { %2084 = vmatpush3.bf16.msra.mxu0 %v2366_v26  ;;  %v2419_v10 = vld [vmem:[%s3154_s0 + $0x18] ss:$72 sps:$4 sm:$0xff]   ;;  %v2421_v11 = vld [vmem:[%s3154_s0 + $0x1c] ss:$72 sps:$4 sm:$0xff]   ;;  %v2433_v22 = vld [vmem:[%s3153_s1 + $0x268] sm:$0xff]  }
  0x1d   :  { %2112 = vmatpush3.bf16.msra.mxu1 %v2367_v27  ;;  %2085 = vmatprep.subr.bf16.mxu0 %v2368_v28  ;;  %v2425_v15 = vld [vmem:[%s3153_s1 + $0x2b8] sm:$0xff]   ;;  %v2430_v20 = vld [vmem:[%s3154_s0 + $0xa4] ss:$72 sps:$4 sm:$0xff]   ;;  %v2432_v21 = vld [vmem:[%s3154_s0 + $0xa0] ss:$72 sps:$4 sm:$0xff]  }
  0x1e   :  { %2113 = vmatprep.subr.bf16.mxu1 %v2369_v29  ;;  %v2434_v23 = vld [vmem:[%s3153_s1 + $0x2e8] sm:$0xff]   ;;  %v2440_v28 = vld [vmem:[%s3153_s1 + $0x260] sm:$0xff]   ;;  %v2445_v33 = vld [vmem:[%s3153_s1 + $0x2d8] sm:$0xff]  }
  0x1f   :  { %v2435_v24 = vld [vmem:[%s3154_s0 + $0xac] ss:$72 sps:$4 sm:$0xff]   ;;  %v2439_v27 = vld [vmem:[%s3154_s0 + $0xa8] ss:$72 sps:$4 sm:$0xff]   ;;  %v2441_v29 = vld [vmem:[%s3153_s1 + $0x2e0] sm:$0xff]  }
  0x20   :  { %2086 = vmatpush3.bf16.msra.mxu0 %v2370_v30  ;;  %v2437_v25 = vld [vmem:[%s3153_s1 + $0x228] sm:$0xff]   ;;  %v2442_v30 = vld [vmem:[%s3153_s1 + $0x220] sm:$0xff]   ;;  %v2447_v35 = vld [vmem:[%s3153_s1 + $0x298] sm:$0xff]  }
  0x21   :  { %2114 = vmatpush3.bf16.msra.mxu1 %v2371_v31  ;;  %2127 = vmatprep.subr.bf16.mxu0 %v2378_v36  ;;  %v2438_v26 = vld [vmem:[%s3153_s1 + $0x2a8] sm:$0xff]   ;;  %v2443_v31 = vld [vmem:[%s3153_s1 + $0x2a0] sm:$0xff]   ;;  %v2448_v36 = vld [vmem:[%s3153_s1 + $0x250] sm:$0xff]  }
  0x22   :  { %2155 = vmatprep.subr.bf16.mxu1 %v2379_v37  ;;  %v2449_v37 = vld [vmem:[%s3153_s1 + $0x2d0] sm:$0xff]  }
  0x23   :  { %1423 = vmatmul.mubr.bf16.vlgmr.msra.gmra.mxu0 %v2372_v32  ;;  %v2444_v32 = vld [vmem:[%s3153_s1 + $0x258] sm:$0xff]  }
  0x24   :  { %1472 = vmatmul.mubr.bf16.vlgmr.msra.gmra.mxu1 %v2375_v34  ;;  %2128 = vmatpush3.bf16.msra.mxu0 %v2380_v38  ;;  %v2446_v34 = vld [vmem:[%s3153_s1 + $0x218] sm:$0xff]   ;;  %v2450_v38 = vld [vmem:[%s3153_s1 + $0x210] sm:$0xff]  }
  0x25   :  { %2156 = vmatpush3.bf16.msra.mxu1 %v2381_v39  ;;  %2129 = vmatprep.subr.bf16.mxu0 %v2382_v40  ;;  %v2451_v39 = vld [vmem:[%s3153_s1 + $0x290] sm:$0xff]   ;;  %v2452_v40 = vld [vmem:[%s3153_s1 + $0x248] sm:$0xff]  }
  0x26   :  { %2157 = vmatprep.subr.bf16.mxu1 %v2383_v41  ;;  %1430 = vmatprep.mubr.bf16.mxu0 %v2394_v52  ;;  %v2453_v41 = vld [vmem:[%s3153_s1 + $0x2c8] sm:$0xff]   ;;  %v2466_v52 = vld [vmem:[%s3153_s1 + $0x378] sm:$0xff]  }
  0x27   :  { %1479 = vmatprep.mubr.bf16.mxu1 %v2401_v58  ;;  %v2472_v58 = vld [vmem:[%s3153_s1 + $0x330] sm:$0xff]  }
  0x28   :  { %2130 = vmatpush3.bf16.msra.mxu0 %v2384_v42  ;;  %v2454_v42 = vld [vmem:[%s3153_s1 + $0x208] sm:$0xff]  }
  0x29   :  { %2158 = vmatpush3.bf16.msra.mxu1 %v2385_v43  ;;  %2131 = vmatprep.subr.bf16.mxu0 %v2386_v44  ;;  %v2455_v43 = vld [vmem:[%s3153_s1 + $0x288] sm:$0xff]   ;;  %v2456_v44 = vld [vmem:[%s3153_s1 + $0x240] sm:$0xff]  }
  0x2a   :  { %2159 = vmatprep.subr.bf16.mxu1 %v2387_v45  ;;  %v2457_v45 = vld [vmem:[%s3153_s1 + $0x2c0] sm:$0xff]  }
  0x2b   :  { %1431 = vmatmul.mubr.bf16.gmra.mxu0 %v2398_v55  ;;  %v2469_v55 = vld [vmem:[%s3153_s1 + $0x3b8] sm:$0xff]  }
  0x2c   :  { %2132 = vmatpush3.bf16.msra.mxu0 %v2388_v46  ;;  %1480 = vmatmul.mubr.bf16.gmra.mxu1 %v2403_v59  ;;  %v2458_v46 = vld [vmem:[%s3153_s1 + $0x200] sm:$0xff]   ;;  %v2473_v59 = vld [vmem:[%s3153_s1 + $0x3b0] sm:$0xff]  }
  0x2d   :  { %2160 = vmatpush3.bf16.msra.mxu1 %v2389_v47  ;;  %2133 = vmatprep.subr.bf16.mxu0 %v2390_v48  ;;  %v2459_v47 = vld [vmem:[%s3153_s1 + $0x280] sm:$0xff]  }
  0x2e   :  { %2161 = vmatprep.subr.bf16.mxu1 %v2391_v49  ;;  %1520 = vmatprep.mubr.bf16.mxu0 %v2418_v9  ;;  %v2460_v48 = vld [vmem:[%s3154_s0 + $0x20] ss:$72 sps:$4 sm:$0xff]   ;;  %v2462_v49 = vld [vmem:[%s3154_s0 + $0x24] ss:$72 sps:$4 sm:$0xff]   ;;  %v2489_v9 = vld [vmem:[%s3153_s1 + $0x3d8] sm:$0xff]  }
  0x2f   :  { %1569 = vmatprep.mubr.bf16.mxu1 %v2421_v11  ;;  %v2491_v11 = vld [vmem:[%s3153_s1 + $0x398] sm:$0xff]  }
  0x30   :  { %2134 = vmatpush3.bf16.msra.mxu0 %v2392_v50  ;;  %v2463_v50 = vld [vmem:[%s3154_s0 + $0x28] ss:$72 sps:$4 sm:$0xff]  }
  0x31   :  { %2162 = vmatpush3.bf16.msra.mxu1 %v2393_v51  ;;  %2135 = vmatprep.subr.bf16.mxu0 %v2396_v53  ;;  %v2465_v51 = vld [vmem:[%s3154_s0 + $0x2c] ss:$72 sps:$4 sm:$0xff]   ;;  %v2467_v53 = vld [vmem:[%s3153_s1 + $0x3f8] sm:$0xff]  }
  0x32   :  { %2163 = vmatprep.subr.bf16.mxu1 %v2397_v54  ;;  %v2468_v54 = vld [vmem:[%s3153_s1 + $0x338] sm:$0xff]  }
  0x34   :  { %2136 = vmatpush3.bf16.msra.mxu0 %v2399_v56  ;;  %v2470_v56 = vld [vmem:[%s3153_s1 + $0x370] sm:$0xff]  }
  0x35   :  { %2164 = vmatpush3.bf16.msra.mxu1 %v2400_v57  ;;  %2137 = vmatprep.subr.bf16.mxu0 %v2404_v60  ;;  %v2471_v57 = vld [vmem:[%s3153_s1 + $0x3f0] sm:$0xff]  }
  0x36   :  { %2165 = vmatprep.subr.bf16.mxu1 %v2405_v61  ;;  %v2474_v60 = vld [vmem:[%s3154_s0 + $0xb4] ss:$72 sps:$4 sm:$0xff]   ;;  %v2476_v61 = vld [vmem:[%s3154_s0 + $0xb0] ss:$72 sps:$4 sm:$0xff]  }
  0x38   :  { %2138 = vmatpush3.bf16.msra.mxu0 %v2406_v62  ;;  %v2477_v62 = vld [vmem:[%s3153_s1 + $0x368] sm:$0xff]  }
  0x39   :  { %2166 = vmatpush3.bf16.msra.mxu1 %v2407_v63  ;;  %2139 = vmatprep.subr.bf16.mxu0 %v2408_v0  ;;  %v2478_v63 = vld [vmem:[%s3153_s1 + $0x3e8] sm:$0xff]   ;;  %v2479_v0 = vld [vmem:[%s3154_s0 + $0xbc] ss:$72 sps:$4 sm:$0xff]  }
  0x3a   :  { %2167 = vmatprep.subr.bf16.mxu1 %v2409_v1  ;;  %v2481_v1 = vld [vmem:[%s3153_s1 + $0x328] sm:$0xff]  }
  0x3c   :  { %2140 = vmatpush3.bf16.msra.mxu0 %v2410_v2  ;;  %v2482_v2 = vld [vmem:[%s3153_s1 + $0x3a8] sm:$0xff]  }
  0x3d   :  { %2168 = vmatpush3.bf16.msra.mxu1 %v2411_v3  ;;  %2141 = vmatprep.subr.bf16.mxu0 %v2412_v4  ;;  %v2483_v3 = vld [vmem:[%s3154_s0 + $0xb8] ss:$72 sps:$4 sm:$0xff]  }
  0x3e   :  { %2169 = vmatprep.subr.bf16.mxu1 %v2413_v5  ;;  %v2484_v4 = vld [vmem:[%s3153_s1 + $0x360] sm:$0xff]  }
  0x3f   :  { %v2485_v5 = vld [vmem:[%s3153_s1 + $0x3e0] sm:$0xff]  }
  0x40   :  { %2142 = vmatpush3.bf16.msra.mxu0 %v2414_v6  ;;  %v2486_v6 = vld [vmem:[%s3153_s1 + $0x320] sm:$0xff]  }
  0x41   :  { %2170 = vmatpush3.bf16.msra.mxu1 %v2415_v7  ;;  %2183 = vmatprep.subr.bf16.mxu0 %v2422_v12  ;;  %v2487_v7 = vld [vmem:[%s3153_s1 + $0x3a0] sm:$0xff]   ;;  %v2492_v12 = vld [vmem:[%s3153_s1 + $0x350] sm:$0xff]  }
  0x42   :  { %2211 = vmatprep.subr.bf16.mxu1 %v2423_v13  ;;  %v2493_v13 = vld [vmem:[%s3153_s1 + $0x3d0] sm:$0xff]  }
  0x43   :  { %1521 = vmatmul.mubr.bf16.vlgmr.msra.gmra.mxu0 %v2416_v8  ;;  %v2488_v8 = vld [vmem:[%s3153_s1 + $0x358] sm:$0xff]  }
  0x44   :  { %1570 = vmatmul.mubr.bf16.vlgmr.msra.gmra.mxu1 %v2419_v10  ;;  %2184 = vmatpush3.bf16.msra.mxu0 %v2424_v14  ;;  %v2490_v10 = vld [vmem:[%s3153_s1 + $0x318] sm:$0xff]   ;;  %v2494_v14 = vld [vmem:[%s3153_s1 + $0x310] sm:$0xff]  }
  0x45   :  { %2212 = vmatpush3.bf16.msra.mxu1 %v2425_v15  ;;  %2185 = vmatprep.subr.bf16.mxu0 %v2426_v16  ;;  %v2495_v15 = vld [vmem:[%s3153_s1 + $0x390] sm:$0xff]   ;;  %v2496_v16 = vld [vmem:[%s3153_s1 + $0x348] sm:$0xff]  }
  0x46   :  { %2213 = vmatprep.subr.bf16.mxu1 %v2427_v17  ;;  %1528 = vmatprep.mubr.bf16.mxu0 %v2430_v20  ;;  %v2497_v17 = vld [vmem:[%s3153_s1 + $0x3c8] sm:$0xff]   ;;  %v2500_v20 = vld [vmem:[%s3153_s1 + $0x340] sm:$0xff]  }
  0x47   :  { %1577 = vmatprep.mubr.bf16.mxu1 %v2435_v24  ;;  %v2504_v24 = vld [vmem:[%s3154_s0 + $0x30] ss:$72 sps:$4 sm:$0xff]  }
  0x48   :  { %2186 = vmatpush3.bf16.msra.mxu0 %v2428_v18  ;;  %v2498_v18 = vld [vmem:[%s3153_s1 + $0x308] sm:$0xff]  }
  0x49   :  { %2214 = vmatpush3.bf16.msra.mxu1 %v2429_v19  ;;  %2187 = vmatprep.subr.bf16.mxu0 %v2433_v22  ;;  %v2499_v19 = vld [vmem:[%s3153_s1 + $0x388] sm:$0xff]   ;;  %v2502_v22 = vld [vmem:[%s3153_s1 + $0x300] sm:$0xff]  }
  0x4a   :  { %2215 = vmatprep.subr.bf16.mxu1 %v2434_v23  ;;  %v2503_v23 = vld [vmem:[%s3153_s1 + $0x380] sm:$0xff]  }
  0x4b   :  { %1529 = vmatmul.mubr.bf16.gmra.mxu0 %v2432_v21  ;;  %v2501_v21 = vld [vmem:[%s3153_s1 + $0x3c0] sm:$0xff]  }
  0x4c   :  { %2188 = vmatpush3.bf16.msra.mxu0 %v2437_v25  ;;  %1578 = vmatmul.mubr.bf16.gmra.mxu1 %v2439_v27  ;;  %v2506_v25 = vld [vmem:[%s3154_s0 + $0x34] ss:$72 sps:$4 sm:$0xff]  }
  0x4d   :  { %2216 = vmatpush3.bf16.msra.mxu1 %v2438_v26  ;;  %2189 = vmatprep.subr.bf16.mxu0 %v2440_v28  ;;  %v2507_v26 = vld [vmem:[%s3154_s0 + $0x38] ss:$72 sps:$4 sm:$0xff]   ;;  %v2509_v27 = vld [vmem:[%s3154_s0 + $0x3c] ss:$72 sps:$4 sm:$0xff]  }
  0x4e   :  { %2217 = vmatprep.subr.bf16.mxu1 %v2441_v29  ;;  %1618 = vmatprep.mubr.bf16.mxu0 %v2462_v49  ;;  %v2510_v28 = vld [vmem:[%s3153_s1 + $0x478] sm:$0xff]   ;;  %v2531_v49 = vld [vmem:[%s3153_s1 + $0x400] sm:$0xff]  }
  0x4f   :  { %1667 = vmatprep.mubr.bf16.mxu1 %v2465_v51  ;;  %v2511_v29 = vld [vmem:[%s3153_s1 + $0x438] sm:$0xff]  }
  0x50   :  { %2190 = vmatpush3.bf16.msra.mxu0 %v2442_v30  ;;  %v2512_v30 = vld [vmem:[%s3153_s1 + $0x470] sm:$0xff]  }
  0x51   :  { %2218 = vmatpush3.bf16.msra.mxu1 %v2443_v31  ;;  %2191 = vmatprep.subr.bf16.mxu0 %v2444_v32  ;;  %v2513_v31 = vld [vmem:[%s3153_s1 + $0x430] sm:$0xff]   ;;  %v2514_v32 = vld [vmem:[%s3154_s0 + $0xc4] ss:$72 sps:$4 sm:$0xff]  }
  0x52   :  { %2219 = vmatprep.subr.bf16.mxu1 %v2445_v33  ;;  %v2516_v33 = vld [vmem:[%s3154_s0 + $0xc0] ss:$72 sps:$4 sm:$0xff]   ;;  %v2535_v51 = vld [vmem:[%s3154_s0 + $0xd0] ss:$72 sps:$4 sm:$0xff]  }
  0x54   :  { %2192 = vmatpush3.bf16.msra.mxu0 %v2446_v34  ;;  %v2517_v34 = vld [vmem:[%s3153_s1 + $0x468] sm:$0xff]  }
  0x55   :  { %2220 = vmatpush3.bf16.msra.mxu1 %v2447_v35  ;;  %2193 = vmatprep.subr.bf16.mxu0 %v2448_v36  ;;  %v2518_v35 = vld [vmem:[%s3154_s0 + $0xcc] ss:$72 sps:$4 sm:$0xff]  }
  0x56   :  { %2221 = vmatprep.subr.bf16.mxu1 %v2449_v37  ;;  %v2520_v36 = vld [vmem:[%s3153_s1 + $0x428] sm:$0xff]  }
  0x57   :  { %v2521_v37 = vld [vmem:[%s3154_s0 + $0xc8] ss:$72 sps:$4 sm:$0xff]  }
  0x58   :  { %2194 = vmatpush3.bf16.msra.mxu0 %v2450_v38  ;;  %v2522_v38 = vld [vmem:[%s3153_s1 + $0x460] sm:$0xff]  }
  0x59   :  { %2222 = vmatpush3.bf16.msra.mxu1 %v2451_v39  ;;  %2195 = vmatprep.subr.bf16.mxu0 %v2452_v40  ;;  %v2523_v39 = vld [vmem:[%s3153_s1 + $0x420] sm:$0xff]   ;;  %v2524_v40 = vld [vmem:[%s3153_s1 + $0x458] sm:$0xff]  }
  0x5a   :  { %2223 = vmatprep.subr.bf16.mxu1 %v2453_v41  ;;  %v2525_v41 = vld [vmem:[%s3153_s1 + $0x418] sm:$0xff]  }
  0x5c   :  { %2196 = vmatpush3.bf16.msra.mxu0 %v2454_v42  ;;  %v2526_v42 = vld [vmem:[%s3153_s1 + $0x450] sm:$0xff]  }
  0x5d   :  { %2224 = vmatpush3.bf16.msra.mxu1 %v2455_v43  ;;  %2197 = vmatprep.subr.bf16.mxu0 %v2456_v44  ;;  %v2527_v43 = vld [vmem:[%s3153_s1 + $0x410] sm:$0xff]   ;;  %v2534_v44 = vld [vmem:[%s3154_s0 + $0x44] ss:$72 sps:$4 sm:$0xff]  }
  0x5e   :  { %2225 = vmatprep.subr.bf16.mxu1 %v2457_v45  ;;  %v2528_v45 = vld [vmem:[%s3153_s1 + $0x448] sm:$0xff]  }
  0x60   :  { %2198 = vmatpush3.bf16.msra.mxu0 %v2458_v46  ;;  %v2537_v46 = vld [vmem:[%s3154_s0 + $0xd4] ss:$72 sps:$4 sm:$0xff]  }
  0x61   :  { %2226 = vmatpush3.bf16.msra.mxu1 %v2459_v47  ;;  %2239 = vmatprep.subr.bf16.mxu0 %v2466_v52  ;;  %v2529_v47 = vld [vmem:[%s3153_s1 + $0x408] sm:$0xff]  }
  0x62   :  { %2267 = vmatprep.subr.bf16.mxu1 %v2467_v53 }
  0x63   :  { %1619 = vmatmul.mubr.bf16.vlgmr.msra.gmra.mxu0 %v2460_v48  ;;  %v2530_v48 = vld [vmem:[%s3153_s1 + $0x440] sm:$0xff]  }
  0x64   :  { %1668 = vmatmul.mubr.bf16.vlgmr.msra.gmra.mxu1 %v2463_v50  ;;  %2240 = vmatpush3.bf16.msra.mxu0 %v2468_v54  ;;  %v2532_v50 = vld [vmem:[%s3154_s0 + $0x40] ss:$72 sps:$4 sm:$0xff]  }
  0x65   :  { %2268 = vmatpush3.bf16.msra.mxu1 %v2469_v55  ;;  %2241 = vmatprep.subr.bf16.mxu0 %v2470_v56 }
  0x66   :  { %2269 = vmatprep.subr.bf16.mxu1 %v2471_v57  ;;  %1626 = vmatprep.mubr.bf16.mxu0 %v2474_v60 }
  0x67   :  { %1675 = vmatprep.mubr.bf16.mxu1 %v2479_v0 }
  0x68   :  { %2242 = vmatpush3.bf16.msra.mxu0 %v2472_v58 }
  0x69   :  { %2270 = vmatpush3.bf16.msra.mxu1 %v2473_v59  ;;  %2243 = vmatprep.subr.bf16.mxu0 %v2477_v62 }
  0x6a   :  { %2271 = vmatprep.subr.bf16.mxu1 %v2478_v63 }
  0x6b   :  { %1627 = vmatmul.mubr.bf16.gmra.mxu0 %v2476_v61 }
  0x6c   :  { %2244 = vmatpush3.bf16.msra.mxu0 %v2481_v1  ;;  %1676 = vmatmul.mubr.bf16.gmra.mxu1 %v2483_v3 }
  0x6d   :  { %2272 = vmatpush3.bf16.msra.mxu1 %v2482_v2  ;;  %2245 = vmatprep.subr.bf16.mxu0 %v2484_v4 }
  0x6e   :  { %2273 = vmatprep.subr.bf16.mxu1 %v2485_v5  ;;  %1716 = vmatprep.mubr.bf16.mxu0 %v2506_v25 }
  0x6f   :  { %1765 = vmatprep.mubr.bf16.mxu1 %v2509_v27 }
  0x70   :  { %2246 = vmatpush3.bf16.msra.mxu0 %v2486_v6 }
  0x71   :  { %2274 = vmatpush3.bf16.msra.mxu1 %v2487_v7  ;;  %2247 = vmatprep.subr.bf16.mxu0 %v2488_v8 }
  0x72   :  { %2275 = vmatprep.subr.bf16.mxu1 %v2489_v9 }
  0x74   :  { %2248 = vmatpush3.bf16.msra.mxu0 %v2490_v10 }
  0x75   :  { %2276 = vmatpush3.bf16.msra.mxu1 %v2491_v11  ;;  %2249 = vmatprep.subr.bf16.mxu0 %v2492_v12 }
  0x76   :  { %2277 = vmatprep.subr.bf16.mxu1 %v2493_v13 }
  0x78   :  { %2250 = vmatpush3.bf16.msra.mxu0 %v2494_v14 }
  0x79   :  { %2278 = vmatpush3.bf16.msra.mxu1 %v2495_v15  ;;  %2251 = vmatprep.subr.bf16.mxu0 %v2496_v16 }
  0x7a   :  { %2279 = vmatprep.subr.bf16.mxu1 %v2497_v17 }
  0x7c   :  { %2252 = vmatpush3.bf16.msra.mxu0 %v2498_v18 }
  0x7d   :  { %2280 = vmatpush3.bf16.msra.mxu1 %v2499_v19  ;;  %2253 = vmatprep.subr.bf16.mxu0 %v2500_v20 }
  0x7e   :  { %2281 = vmatprep.subr.bf16.mxu1 %v2501_v21 }
  0x80   :  { %2254 = vmatpush3.bf16.msra.mxu0 %v2502_v22 }
  0x81   :  { %2282 = vmatpush3.bf16.msra.mxu1 %v2503_v23  ;;  %2295 = vmatprep.subr.bf16.mxu0 %v2510_v28 }
  0x82   :  { %2323 = vmatprep.subr.bf16.mxu1 %v2510_v28 }
  0x83   :  { %1717 = vmatmul.mubr.bf16.vlgmr.msra.gmra.mxu0 %v2504_v24 }
  0x84   :  { %1766 = vmatmul.mubr.bf16.vlgmr.msra.gmra.mxu1 %v2507_v26  ;;  %2296 = vmatpush3.bf16.msra.mxu0 %v2511_v29 }
  0x85   :  { %2331 = vmatpush3.bf16.msra.mxu1 %v2511_v29  ;;  %2297 = vmatprep.subr.bf16.mxu0 %v2512_v30 }
  0x86   :  { %2324 = vmatprep.subr.bf16.mxu1 %v2512_v30  ;;  %1724 = vmatprep.mubr.bf16.mxu0 %v2514_v32 }
  0x87   :  { %1773 = vmatprep.mubr.bf16.mxu1 %v2518_v35 }
  0x88   :  { %2298 = vmatpush3.bf16.msra.mxu0 %v2513_v31 }
  0x89   :  { %2332 = vmatpush3.bf16.msra.mxu1 %v2513_v31  ;;  %2299 = vmatprep.subr.bf16.mxu0 %v2517_v34 }
  0x8a   :  { %2325 = vmatprep.subr.bf16.mxu1 %v2517_v34 }
  0x8b   :  { %1725 = vmatmul.mubr.bf16.gmra.mxu0 %v2516_v33 }
  0x8c   :  { %2300 = vmatpush3.bf16.msra.mxu0 %v2520_v36  ;;  %1774 = vmatmul.mubr.bf16.gmra.mxu1 %v2521_v37 }
  0x8d   :  { %2333 = vmatpush3.bf16.msra.mxu1 %v2520_v36  ;;  %2301 = vmatprep.subr.bf16.mxu0 %v2522_v38 }
  0x8e   :  { %2326 = vmatprep.subr.bf16.mxu1 %v2522_v38  ;;  %1814 = vmatprep.mubr.bf16.mxu0 %v2534_v44 }
  0x8f   :  { %1822 = vmatprep.mubr.bf16.mxu1 %v2537_v46 }
  0x90   :  { %2302 = vmatpush3.bf16.msra.mxu0 %v2523_v39 }
  0x91   :  { %2334 = vmatpush3.bf16.msra.mxu1 %v2523_v39  ;;  %2303 = vmatprep.subr.bf16.mxu0 %v2524_v40 }
  0x92   :  { %2327 = vmatprep.subr.bf16.mxu1 %v2524_v40 }
  0x94   :  { %2304 = vmatpush3.bf16.msra.mxu0 %v2525_v41 }
  0x95   :  { %2335 = vmatpush3.bf16.msra.mxu1 %v2525_v41  ;;  %2305 = vmatprep.subr.bf16.mxu0 %v2526_v42 }
  0x96   :  { %2328 = vmatprep.subr.bf16.mxu1 %v2526_v42  ;;  %v1871_v42 = vld [vmem:[%s3155_s2] ss:$0 sm:$0xff] }
  0x98   :  { %2306 = vmatpush3.bf16.msra.mxu0 %v2527_v43 }
  0x99   :  { %2336 = vmatpush3.bf16.msra.mxu1 %v2527_v43  ;;  %2307 = vmatprep.subr.bf16.mxu0 %v2528_v45 }
  0x9a   :  { %2329 = vmatprep.subr.bf16.mxu1 %v2528_v45 }
  0x9c   :  { %2308 = vmatpush3.bf16.msra.mxu0 %v2529_v47 }
  0x9d   :  { %2337 = vmatpush3.bf16.msra.mxu1 %v2529_v47  ;;  %2309 = vmatprep.subr.bf16.mxu0 %v2530_v48 }
  0x9e   :  { %2330 = vmatprep.subr.bf16.mxu1 %v2530_v48 }
  0xa0   :  { %2310 = vmatpush3.bf16.msra.mxu0 %v2531_v49 }
  0xa1   :  { %2338 = vmatpush3.bf16.msra.mxu1 %v2531_v49 }
  0xa3   :  { %1815 = vmatmul.mubr.bf16.vlgmr.msra.gmra.mxu0 %v2532_v50 }
  0xa4   :  { %1823 = vmatmul.mubr.bf16.vlgmr.msra.gmra.mxu1 %v2535_v51 }
  0xe3   :  { %v2087_v52 = vpop.f32.mrf.mxu0 }
  0xe4   :  { %v2115_v54 = vpop.f32.mrf.mxu1 }
  0xe5   :  { %v2088_v53 = vpop.f32.mrf.mxu0 }
  0xe6   :  { %v2116_v56 = vpop.f32.mrf.mxu1  ;;  %v2089_v39 = vadd.f32 %v2088_v53, %v2087_v52 }
  0xe7   :  { %v2090_v55 = vpop.f32.mrf.mxu0  ;;  %v2117_v51 = vadd.f32 %v2116_v56, %v2115_v54 }
  0xe8   :  { %v3099_v59 = vpop.f32.mrf.mxu1  ;;  %v1425_v44 = vadd.f32 %v2089_v39, %v1871_v42 }
  0xe9   :  { %v2091_v57 = vpop.f32.mrf.mxu0 }
  0xea   :  { %v3101_v61 = vpop.f32.mrf.mxu1  ;;  %v2092_v45 = vadd.f32 %v2091_v57, %v2090_v55  ;;  %v1474_v52 = vadd.f32 %v2117_v51, %v1425_v44 }
  0xeb   :  { %v2093_v58 = vpop.f32.mrf.mxu0  ;;  %v2120_v55 = vadd.f32 %v3101_v61, %v3099_v59 }
  0xec   :  { %v2121_v62 = vpop.f32.mrf.mxu1  ;;  %v1428_v53 = vadd.f32 %v2092_v45, %v1871_v42 }
  0xed   :  { %v2094_v60 = vpop.f32.mrf.mxu0 }
  0xee   :  { %v2122_v0 = vpop.f32.mrf.mxu1  ;;  %v2095_v43 = vadd.f32 %v2094_v60, %v2093_v58  ;;  %v1477_v54 = vadd.f32 %v2120_v55, %v1428_v53 }
  0xef   :  { %v2096_v63 = vpop.f32.mrf.mxu0  ;;  %v2123_v49 = vadd.f32 %v2122_v0, %v2121_v62 }
  0xf0   :  { %v2124_v3 = vpop.f32.mrf.mxu1  ;;  %v1433_v48 = vadd.f32 %v2095_v43, %v1871_v42 }
  0xf1   :  { %v2097_v1 = vpop.f32.mrf.mxu0 }
  0xf2   :  { %v2125_v5 = vpop.f32.mrf.mxu1  ;;  %v2098_v50 = vadd.f32 %v2097_v1, %v2096_v63 }
 0x103   :  { %v2143_v2 = vpop.f32.mrf.mxu0 }
 0x104   :  { %v3103_v6 = vpop.f32.mrf.mxu1 }
 0x105   :  { %v2144_v4 = vpop.f32.mrf.mxu0 }
 0x106   :  { %v2172_v8 = vpop.f32.mrf.mxu1 }
 0x107   :  { %v2146_v7 = vpop.f32.mrf.mxu0  ;;  %v2173_v56 = vadd.f32 %v2172_v8, %v3103_v6 }
 0x108   :  { %v3105_v10 = vpop.f32.mrf.mxu1 }
 0x109   :  { %v2147_v9 = vpop.f32.mrf.mxu0 }
 0x10a   :  { %v3107_v12 = vpop.f32.mrf.mxu1  ;;  %v2148_v58 = vadd.f32 %v2147_v9, %v2146_v7 }
 0x10b   :  { %v2149_v11 = vpop.f32.mrf.mxu0  ;;  %v2176_v59 = vadd.f32 %v3107_v12, %v3105_v10 }
 0x10c   :  { %v2177_v14 = vpop.f32.mrf.mxu1 }
 0x10d   :  { %v2150_v13 = vpop.f32.mrf.mxu0 }
 0x10e   :  { %v2178_v16 = vpop.f32.mrf.mxu1 }
 0x10f   :  { %v2152_v15 = vpop.f32.mrf.mxu0  ;;  %v2179_v62 = vadd.f32 %v2178_v16, %v2177_v14 }
 0x110   :  { %v2180_v18 = vpop.f32.mrf.mxu1 }
 0x111   :  { %v2153_v17 = vpop.f32.mrf.mxu0 }
 0x112   :  { %v2181_v20 = vpop.f32.mrf.mxu1  ;;  %v2154_v63 = vadd.f32 %v2153_v17, %v2152_v15 }
 0x113   :  { %v2182_v43 = vadd.f32 %v2181_v20, %v2180_v18 }
 0x123   :  { %v2199_v19 = vpop.f32.mrf.mxu0 }
 0x124   :  { %v3109_v22 = vpop.f32.mrf.mxu1 }
 0x125   :  { %v2200_v21 = vpop.f32.mrf.mxu0 }
 0x126   :  { %v3111_v24 = vpop.f32.mrf.mxu1  ;;  %v2201_v0 = vadd.f32 %v2200_v21, %v2199_v19 }
 0x127   :  { %v2202_v23 = vpop.f32.mrf.mxu0  ;;  %3157 = vst [vmem:[#allocation2_spill] sm:$0xff] %v3111_v24  ;;  %v2126_v24 = vadd.f32 %v2125_v5, %v2124_v3 }
 0x128   :  { %v3113_v26 = vpop.f32.mrf.mxu1 }
 0x129   :  { %v2203_v25 = vpop.f32.mrf.mxu0  ;;  %3158 = vst [vmem:[#allocation3_spill] sm:$0xff] %v3113_v26 }
 0x12a   :  { %v3115_v28 = vpop.f32.mrf.mxu1  ;;  %v2204_v7 = vadd.f32 %v2203_v25, %v2202_v23 }
 0x12b   :  { %v2205_v27 = vpop.f32.mrf.mxu0  ;;  %3159 = vst [vmem:[#allocation4_spill] sm:$0xff] %v3115_v28  ;;  %v2151_v28 = vadd.f32 %v2150_v13, %v2149_v11  ;;  %v1526_v13 = vadd.f32 %v2148_v58, %v1477_v54 }
 0x12c   :  { %v2233_v30 = vpop.f32.mrf.mxu1 }
 0x12d   :  { %v2206_v29 = vpop.f32.mrf.mxu0  ;;  %v1575_v6 = vadd.f32 %v2176_v59, %v1526_v13 }
 0x12e   :  { %v2234_v32 = vpop.f32.mrf.mxu1  ;;  %v3164_v8 = vld [vmem:[#allocation2_spill] sm:$0xff] }
 0x12f   :  { %v2208_v31 = vpop.f32.mrf.mxu0  ;;  %v2235_v15 = vadd.f32 %v2234_v32, %v2233_v30  ;;  %v2229_v17 = vadd.f32 %v3164_v8, %v3109_v22 }
 0x130   :  { %v3117_v34 = vpop.f32.mrf.mxu1  ;;  %v3167_v25 = vld [vmem:[#allocation3_spill] sm:$0xff] }
 0x131   :  { %v2209_v33 = vpop.f32.mrf.mxu0  ;;  %3160 = vst [vmem:[#allocation5_spill] sm:$0xff] %v3117_v34  ;;  %v1436_v34 = vadd.f32 %v2098_v50, %v1871_v42 }
 0x132   :  { %v3119_v36 = vpop.f32.mrf.mxu1  ;;  %v2210_v16 = vadd.f32 %v2209_v33, %v2208_v31 }
 0x133   :  { %3161 = vst [vmem:[#allocation6_spill] sm:$0xff] %v3119_v36  ;;  %v1482_v36 = vadd.f32 %v2123_v49, %v1433_v48 }
 0x135   :  { %v1531_v39 = vadd.f32 %v2151_v28, %v1482_v36  ;;  %v3168_v36 = vld [vmem:[#allocation4_spill] sm:$0xff] }
 0x136   :  { %v2232_v30 = vadd.f32 %v3168_v36, %v3167_v25 }
 0x137   :  { %v1580_v3 = vadd.f32 %v2179_v62, %v1531_v39 }
 0x138   :  { %v3165_v10 = vld [vmem:[#allocation5_spill] sm:$0xff] }
 0x13a   :  { %v3166_v12 = vld [vmem:[#allocation6_spill] sm:$0xff] }
 0x13b   :  { %v2238_v23 = vadd.f32 %v3166_v12, %v3165_v10 }
 0x143   :  { %v2255_v35 = vpop.f32.mrf.mxu0 }
 0x144   :  { %v3121_v37 = vpop.f32.mrf.mxu1 }
 0x145   :  { %3162 = vst [vmem:[#allocation7_spill] sm:$0xff] %v3121_v37  ;;  %v2256_v38 = vpop.f32.mrf.mxu0  ;;  %v2145_v37 = vadd.f32 %v2144_v4, %v2143_v2  ;;  %v1485_v2 = vadd.f32 %v2126_v24, %v1436_v34  ;;  %v2207_v4 = vadd.f32 %v2206_v29, %v2205_v27  ;;  %v1624_v29 = vadd.f32 %v2204_v7, %v1575_v6 }
 0x146   :  { %v3123_v40 = vpop.f32.mrf.mxu1  ;;  %v2257_v19 = vadd.f32 %v2256_v38, %v2255_v35 }
 0x147   :  { %3163 = vst [vmem:[#allocation8_spill] sm:$0xff] %v3123_v40  ;;  %v2258_v41 = vpop.f32.mrf.mxu0  ;;  %v1523_v57 = vadd.f32 %v2145_v37, %v1474_v52  ;;  %v1534_v5 = vadd.f32 %v2154_v63, %v1485_v2  ;;  %v1629_v14 = vadd.f32 %v2207_v4, %v1580_v3  ;;  %v1673_v44 = vadd.f32 %v2232_v30, %v1624_v29 }
 0x148   :  { %v3128_v46 = vpop.f32.mrf.mxu1 }
 0x149   :  { %v2259_v47 = vpop.f32.mrf.mxu0  ;;  %v1572_v11 = vadd.f32 %v2173_v56, %v1523_v57  ;;  %v1583_v24 = vadd.f32 %v2182_v43, %v1534_v5  ;;  %v1678_v20 = vadd.f32 %v2235_v15, %v1629_v14  ;;  %v2538_v5 = vmov 0.0  }
 0x14a   :  { %v3130_v40 = vpop.f32.mrf.mxu1  ;;  %v2260_v32 = vadd.f32 %v2259_v47, %v2258_v41 }
 0x14b   :  { %v2261_v26 = vpop.f32.mrf.mxu0  ;;  %v1621_v61 = vadd.f32 %v2201_v0, %v1572_v11  ;;  %v1632_v34 = vadd.f32 %v2210_v16, %v1583_v24 }
 0x14c   :  { %v2289_v60 = vpop.f32.mrf.mxu1  ;;  %v1722_v53 = vadd.f32 %v2260_v32, %v1673_v44 }
 0x14d   :  { %v2262_v1 = vpop.f32.mrf.mxu0  ;;  %v1670_v28 = vadd.f32 %v2229_v17, %v1621_v61  ;;  %v1681_v50 = vadd.f32 %v2238_v23, %v1632_v34 }
 0x14e   :  { %v2290_v42 = vpop.f32.mrf.mxu1  ;;  %v2263_v27 = vadd.f32 %v2262_v1, %v2261_v26  ;;  %v3169_v26 = vld [vmem:[#allocation7_spill] sm:$0xff]  ;;  %v3170_v45 = vld [vmem:[#allocation8_spill] sm:$0xff] }
 0x14f   :  { %v2264_v9 = vpop.f32.mrf.mxu0  ;;  %v1719_v31 = vadd.f32 %v2257_v19, %v1670_v28  ;;  %v2291_v22 = vadd.f32 %v2290_v42, %v2289_v60  ;;  %v2285_v48 = vadd.f32 %v3170_v45, %v3169_v26  ;;  %v2288_v60 = vadd.f32 %v3130_v40, %v3128_v46 }
 0x150   :  { %v2292_v21 = vpop.f32.mrf.mxu1  ;;  %v1727_v37 = vadd.f32 %v2263_v27, %v1678_v20 }
 0x151   :  { %v2265_v18 = vpop.f32.mrf.mxu0  ;;  %v1768_v52 = vadd.f32 %v2285_v48, %v1719_v31  ;;  %v1771_v1 = vadd.f32 %v2288_v60, %v1722_v53 }
 0x152   :  { %v2293_v33 = vpop.f32.mrf.mxu1  ;;  %v2266_v35 = vadd.f32 %v2265_v18, %v2264_v9  ;;  %v1776_v58 = vadd.f32 %v2291_v22, %v1727_v37 }
 0x153   :  { %v2294_v62 = vadd.f32 %v2293_v33, %v2292_v21 }
 0x154   :  { %v1730_v39 = vadd.f32 %v2266_v35, %v1681_v50 }
 0x156   :  { %v1779_v11 = vadd.f32 %v2294_v62, %v1730_v39 }
 0x163   :  { %v2311_v38 = vpop.f32.mrf.mxu0 }
 0x164   :  { %v2317_v49 = vpop.f32.mrf.mxu1 }
 0x165   :  { %v2312_v51 = vpop.f32.mrf.mxu0 }
 0x166   :  { %v2313_v55 = vadd.f32 %v2312_v51, %v2311_v38  ;;  %v2318_v57 = vpop.f32.mrf.mxu1 }
 0x167   :  { %v2319_v41 = vadd.f32 %v2318_v57, %v2317_v49  ;;  %v2314_v47 = vpop.f32.mrf.mxu0 }
 0x168   :  { %v1817_v63 = vadd.f32 %v2313_v55, %v1768_v52  ;;  %v2320_v54 = vpop.f32.mrf.mxu1 }
 0x169   :  { %v1825_v56 = vadd.f32 %v2319_v41, %v1776_v58  ;;  %v2315_v0 = vpop.f32.mrf.mxu0 }
 0x16a   :  { %v2316_v2 = vadd.f32 %v2315_v0, %v2314_v47  ;;  %v2321_v4 = vpop.f32.mrf.mxu1  ;;  %vm1835_vm0 = vcmp.gt.f32.partialorder %v1817_v63, 0.2 }
 0x16b   :  { %v2322_v13 = vadd.f32 %v2321_v4, %v2320_v54  ;;  %vm1837_vm1 = vcmp.gt.f32.partialorder %v1825_v56, 0.2  ;;  %v2052_v43 = vsel %vm1835_vm0, 1.0, %v2538_v5 }
 0x16c   :  { %v1820_v42 = vadd.f32 %v2316_v2, %v1771_v1  ;;  %v2054_v61 = vsel %vm1837_vm1, 1.0, %v2538_v5 }
 0x16d   :  { %v1828_v3 = vadd.f32 %v2322_v13, %v1779_v11 }
 0x16e   :  { %vm1836_vm2 = vcmp.gt.f32.partialorder %v1820_v42, 0.2 }
 0x16f   :  { %v2053_v59 = vsel %vm1836_vm2, 1.0, %v2538_v5  ;;  %vm1838_vm3 = vcmp.gt.f32.partialorder %v1828_v3, 0.2 }
 0x170   :  { %v2065_v40 = vpack.c.bf16 %v2053_v59, %v2052_v43  ;;  %v2055_v46 = vsel %vm1838_vm3, 1.0, %v2538_v5 }
 0x171   :  { %v2068_v7 = vpack.c.bf16 %v2055_v46, %v2054_v61 }
 0x172   :  { %2066 = vst [vmem:[%s3156_s3] sm:$0xff] %v2065_v40  }
 0x173   :  { %2070 = vst [vmem:[%s3156_s3 + $0x8] sm:$0xff] %v2068_v7  }

// kernel: _forward_prefix.14
= control target key start
LH: loop header
LB: loop body
LE: loop exit
PB: predicated region body
PF: predicated region fallthrough
CT: control target
= control target key end

     0   :  { %s3006_s1 = inlined_call_operand.vmem [shape: bf16[1152,128], index: 1, kind: input, shape index: {}]   ;;  %s3007_s0 = inlined_call_operand.vmem [shape: bf16[1,128,1152], index: 0, kind: input, shape index: {}]   ;;  %s3008_s2 = inlined_call_operand.vmem [shape: f32[1,128], index: 2, kind: input, shape index: {}]   ;;  %s3009_s3 = inlined_call_operand.vmem [shape: bf16[1,128,128], index: 3, kind: output, shape index: {}]  }
   0x1   :  { %v2224_v0 = vld [vmem:[%s3006_s1 + $0x78] sm:$0xff]   ;;  %v2228_v4 = vld [vmem:[%s3006_s1 + $0x70] sm:$0xff]   ;;  %v2232_v8 = vld [vmem:[%s3006_s1 + $0x68] sm:$0xff]  }
   0x2   :  { %v2225_v1 = vld [vmem:[%s3006_s1 + $0xf8] sm:$0xff]   ;;  %1903 = vmatprep.subr.bf16.mxu0 %v2224_v0  ;;  %v2229_v5 = vld [vmem:[%s3006_s1 + $0xf0] sm:$0xff]   ;;  %v2233_v9 = vld [vmem:[%s3006_s1 + $0xe8] sm:$0xff]  }
   0x3   :  { %v2226_v2 = vld [vmem:[%s3006_s1 + $0x38] sm:$0xff]   ;;  %1967 = vmatprep.subr.bf16.mxu1 %v2225_v1  ;;  %v2230_v6 = vld [vmem:[%s3006_s1 + $0x30] sm:$0xff]   ;;  %v2234_v10 = vld [vmem:[%s3006_s1 + $0x28] sm:$0xff]  }
   0x4   :  { %v2227_v3 = vld [vmem:[%s3006_s1 + $0xb8] sm:$0xff]   ;;  %1904 = vmatpush3.bf16.msra.mxu0 %v2226_v2  ;;  %v2231_v7 = vld [vmem:[%s3006_s1 + $0xb0] sm:$0xff]   ;;  %v2235_v11 = vld [vmem:[%s3006_s1 + $0xa8] sm:$0xff]  }
   0x5   :  { %1968 = vmatpush3.bf16.msra.mxu1 %v2227_v3  ;;  %1905 = vmatprep.subr.bf16.mxu0 %v2228_v4  ;;  %v2236_v12 = vld [vmem:[%s3006_s1 + $0x60] sm:$0xff]   ;;  %v2240_v16 = vld [vmem:[%s3006_s1 + $0x58] sm:$0xff]   ;;  %v2244_v20 = vld [vmem:[%s3006_s1 + $0x50] sm:$0xff]  }
   0x6   :  { %1969 = vmatprep.subr.bf16.mxu1 %v2229_v5  ;;  %v2237_v13 = vld [vmem:[%s3006_s1 + $0xe0] sm:$0xff]   ;;  %v2241_v17 = vld [vmem:[%s3006_s1 + $0xd8] sm:$0xff]   ;;  %v2245_v21 = vld [vmem:[%s3006_s1 + $0xd0] sm:$0xff]  }
   0x7   :  { %v2238_v14 = vld [vmem:[%s3006_s1 + $0x20] sm:$0xff]   ;;  %v2242_v18 = vld [vmem:[%s3006_s1 + $0x18] sm:$0xff]   ;;  %v2246_v22 = vld [vmem:[%s3006_s1 + $0x10] sm:$0xff]  }
   0x8   :  { %1906 = vmatpush3.bf16.msra.mxu0 %v2230_v6  ;;  %v2239_v15 = vld [vmem:[%s3006_s1 + $0xa0] sm:$0xff]   ;;  %v2243_v19 = vld [vmem:[%s3006_s1 + $0x98] sm:$0xff]   ;;  %v2247_v23 = vld [vmem:[%s3006_s1 + $0x90] sm:$0xff]  }
   0x9   :  { %1970 = vmatpush3.bf16.msra.mxu1 %v2231_v7  ;;  %1907 = vmatprep.subr.bf16.mxu0 %v2232_v8  ;;  %v2248_v24 = vld [vmem:[%s3006_s1 + $0x48] sm:$0xff]   ;;  %v2252_v28 = vld [vmem:[%s3006_s1 + $0x40] sm:$0xff]   ;;  %v2262_v36 = vld [vmem:[%s3006_s1 + $0x178] sm:$0xff]  }
   0xa   :  { %1971 = vmatprep.subr.bf16.mxu1 %v2233_v9  ;;  %v2249_v25 = vld [vmem:[%s3006_s1 + $0xc8] sm:$0xff]   ;;  %v2253_v29 = vld [vmem:[%s3006_s1 + $0xc0] sm:$0xff]   ;;  %v2263_v37 = vld [vmem:[%s3006_s1 + $0x1f8] sm:$0xff]  }
   0xb   :  { %v2250_v26 = vld [vmem:[%s3006_s1 + $0x8] sm:$0xff]   ;;  %v2254_v30 = vld [vmem:[%s3006_s1] sm:$0xff]   ;;  %v2264_v38 = vld [vmem:[%s3006_s1 + $0x138] sm:$0xff]  }
   0xc   :  { %1908 = vmatpush3.bf16.msra.mxu0 %v2234_v10  ;;  %v2251_v27 = vld [vmem:[%s3006_s1 + $0x88] sm:$0xff]   ;;  %v2255_v31 = vld [vmem:[%s3006_s1 + $0x80] sm:$0xff]   ;;  %v2265_v39 = vld [vmem:[%s3006_s1 + $0x1b8] sm:$0xff]  }
   0xd   :  { %1972 = vmatpush3.bf16.msra.mxu1 %v2235_v11  ;;  %1909 = vmatprep.subr.bf16.mxu0 %v2236_v12  ;;  %v2256_v32 = vld [vmem:[%s3007_s0] ss:$36 sps:$4 sm:$0xff]   ;;  %v2259_v34 = vld [vmem:[%s3007_s0 + $0x8] ss:$36 sps:$4 sm:$0xff]   ;;  %v2268_v41 = vld [vmem:[%s3007_s0 + $0x54] ss:$36 sps:$4 sm:$0xff]  }
   0xe   :  { %1973 = vmatprep.subr.bf16.mxu1 %v2237_v13  ;;  %v2258_v33 = vld [vmem:[%s3007_s0 + $0x4] ss:$36 sps:$4 sm:$0xff]   ;;  %v2261_v35 = vld [vmem:[%s3007_s0 + $0xc] ss:$36 sps:$4 sm:$0xff]   ;;  %v2276_v48 = vld [vmem:[%s3007_s0 + $0x94] ss:$36 sps:$4 sm:$0xff]  }
   0xf   :  { %1078 = vmatprep.mubr.bf16.mxu0 %v2258_v33  ;;  %1175 = vmatprep.mubr.bf16.mxu1 %v2261_v35  ;;  %v2266_v40 = vld [vmem:[%s3007_s0 + $0x4c] ss:$36 sps:$4 sm:$0xff]   ;;  %v2278_v49 = vld [vmem:[%s3007_s0 + $0x9c] ss:$36 sps:$4 sm:$0xff]   ;;  %v2288_v57 = vld [vmem:[%s3007_s0 + $0xe4] ss:$36 sps:$4 sm:$0xff]  }
  0x10   :  { %1910 = vmatpush3.bf16.msra.mxu0 %v2238_v14  ;;  %v2270_v42 = vld [vmem:[%s3007_s0 + $0x48] ss:$36 sps:$4 sm:$0xff]   ;;  %v2271_v43 = vld [vmem:[%s3007_s0 + $0x50] ss:$36 sps:$4 sm:$0xff]   ;;  %v2281_v51 = vld [vmem:[%s3007_s0 + $0x98] ss:$36 sps:$4 sm:$0xff]  }
  0x11   :  { %1974 = vmatpush3.bf16.msra.mxu1 %v2239_v15  ;;  %1911 = vmatprep.subr.bf16.mxu0 %v2240_v16  ;;  %v2272_v44 = vld [vmem:[%s3006_s1 + $0x170] sm:$0xff]   ;;  %v2282_v52 = vld [vmem:[%s3006_s1 + $0x168] sm:$0xff]   ;;  %v2286_v56 = vld [vmem:[%s3007_s0 + $0xdc] ss:$36 sps:$4 sm:$0xff]  }
  0x12   :  { %1975 = vmatprep.subr.bf16.mxu1 %v2241_v17  ;;  %v2273_v45 = vld [vmem:[%s3006_s1 + $0x1f0] sm:$0xff]   ;;  %v2283_v53 = vld [vmem:[%s3006_s1 + $0x1e8] sm:$0xff]   ;;  %v2290_v58 = vld [vmem:[%s3007_s0 + $0xd8] ss:$36 sps:$4 sm:$0xff]  }
  0x13   :  { %v2274_v46 = vld [vmem:[%s3006_s1 + $0x130] sm:$0xff]   ;;  %v2284_v54 = vld [vmem:[%s3006_s1 + $0x128] sm:$0xff]   ;;  %v2291_v59 = vld [vmem:[%s3007_s0 + $0xe0] ss:$36 sps:$4 sm:$0xff]  }
  0x14   :  { %1912 = vmatpush3.bf16.msra.mxu0 %v2242_v18  ;;  %v2275_v47 = vld [vmem:[%s3006_s1 + $0x1b0] sm:$0xff]   ;;  %v2285_v55 = vld [vmem:[%s3006_s1 + $0x1a8] sm:$0xff]   ;;  %v2292_v60 = vld [vmem:[%s3006_s1 + $0x160] sm:$0xff]  }
  0x15   :  { %1976 = vmatpush3.bf16.msra.mxu1 %v2243_v19  ;;  %1913 = vmatprep.subr.bf16.mxu0 %v2244_v20  ;;  %v2280_v50 = vld [vmem:[%s3007_s0 + $0x90] ss:$36 sps:$4 sm:$0xff]   ;;  %v2293_v61 = vld [vmem:[%s3006_s1 + $0x1e0] sm:$0xff]   ;;  %v2302_v3 = vld [vmem:[%s3006_s1 + $0x158] sm:$0xff]  }
  0x16   :  { %1977 = vmatprep.subr.bf16.mxu1 %v2245_v21  ;;  %v2294_v62 = vld [vmem:[%s3006_s1 + $0x120] sm:$0xff]   ;;  %v2298_v1 = vld [vmem:[%s3007_s0 + $0x12c] ss:$36 sps:$4 sm:$0xff]   ;;  %v2303_v5 = vld [vmem:[%s3006_s1 + $0x1d8] sm:$0xff]  }
  0x17   :  { %v2295_v63 = vld [vmem:[%s3006_s1 + $0x1a0] sm:$0xff]   ;;  %v2301_v4 = vld [vmem:[%s3007_s0 + $0x128] ss:$36 sps:$4 sm:$0xff]   ;;  %v2304_v6 = vld [vmem:[%s3006_s1 + $0x118] sm:$0xff]  }
  0x18   :  { %1914 = vmatpush3.bf16.msra.mxu0 %v2246_v22  ;;  %v2296_v0 = vld [vmem:[%s3007_s0 + $0x124] ss:$36 sps:$4 sm:$0xff]   ;;  %v2305_v7 = vld [vmem:[%s3006_s1 + $0x198] sm:$0xff]   ;;  %v2306_v8 = vld [vmem:[%s3007_s0 + $0x16c] ss:$36 sps:$4 sm:$0xff]  }
  0x19   :  { %1978 = vmatpush3.bf16.msra.mxu1 %v2247_v23  ;;  %1915 = vmatprep.subr.bf16.mxu0 %v2248_v24  ;;  %v2300_v2 = vld [vmem:[%s3007_s0 + $0x120] ss:$36 sps:$4 sm:$0xff]   ;;  %v2308_v9 = vld [vmem:[%s3007_s0 + $0x174] ss:$36 sps:$4 sm:$0xff]   ;;  %v2310_v12 = vld [vmem:[%s3007_s0 + $0x168] ss:$36 sps:$4 sm:$0xff]  }
  0x1a   :  { %1979 = vmatprep.subr.bf16.mxu1 %v2249_v25  ;;  %v2312_v10 = vld [vmem:[%s3006_s1 + $0x150] sm:$0xff]   ;;  %v2318_v17 = vld [vmem:[%s3007_s0 + $0x1bc] ss:$36 sps:$4 sm:$0xff]   ;;  %v2322_v18 = vld [vmem:[%s3006_s1 + $0x148] sm:$0xff]  }
  0x1b   :  { %v2313_v11 = vld [vmem:[%s3006_s1 + $0x1d0] sm:$0xff]   ;;  %v2323_v19 = vld [vmem:[%s3006_s1 + $0x1c8] sm:$0xff]   ;;  %v2321_v23 = vld [vmem:[%s3007_s0 + $0x1b8] ss:$36 sps:$4 sm:$0xff]  }
  0x1c   :  { %1916 = vmatpush3.bf16.msra.mxu0 %v2250_v26  ;;  %v2314_v13 = vld [vmem:[%s3006_s1 + $0x110] sm:$0xff]   ;;  %v2324_v20 = vld [vmem:[%s3006_s1 + $0x108] sm:$0xff]   ;;  %v2326_v24 = vld [vmem:[%s3007_s0 + $0x1fc] ss:$36 sps:$4 sm:$0xff]  }
  0x1d   :  { %1980 = vmatpush3.bf16.msra.mxu1 %v2251_v27  ;;  %1917 = vmatprep.subr.bf16.mxu0 %v2252_v28  ;;  %v2315_v14 = vld [vmem:[%s3006_s1 + $0x190] sm:$0xff]   ;;  %v2325_v21 = vld [vmem:[%s3006_s1 + $0x188] sm:$0xff]   ;;  %v2332_v26 = vld [vmem:[%s3006_s1 + $0x140] sm:$0xff]  }
  0x1e   :  { %1981 = vmatprep.subr.bf16.mxu1 %v2253_v29  ;;  %v2311_v15 = vld [vmem:[%s3007_s0 + $0x170] ss:$36 sps:$4 sm:$0xff]   ;;  %v2328_v25 = vld [vmem:[%s3007_s0 + $0x204] ss:$36 sps:$4 sm:$0xff]  }
  0x1f   :  { %v2316_v16 = vld [vmem:[%s3007_s0 + $0x1b4] ss:$36 sps:$4 sm:$0xff]   ;;  %v2333_v27 = vld [vmem:[%s3006_s1 + $0x1c0] sm:$0xff]  }
  0x20   :  { %1918 = vmatpush3.bf16.msra.mxu0 %v2254_v30  ;;  %v2320_v22 = vld [vmem:[%s3007_s0 + $0x1b0] ss:$36 sps:$4 sm:$0xff]   ;;  %v2334_v28 = vld [vmem:[%s3006_s1 + $0x100] sm:$0xff]   ;;  %v2330_v30 = vld [vmem:[%s3007_s0 + $0x1f8] ss:$36 sps:$4 sm:$0xff]  }
  0x21   :  { %1982 = vmatpush3.bf16.msra.mxu1 %v2255_v31  ;;  %2031 = vmatprep.subr.bf16.mxu0 %v2262_v36  ;;  %v2335_v29 = vld [vmem:[%s3006_s1 + $0x180] sm:$0xff]   ;;  %v2338_v33 = vld [vmem:[%s3007_s0 + $0x14] ss:$36 sps:$4 sm:$0xff]  }
  0x22   :  { %2095 = vmatprep.subr.bf16.mxu1 %v2263_v37  ;;  %v2331_v31 = vld [vmem:[%s3007_s0 + $0x200] ss:$36 sps:$4 sm:$0xff]   ;;  %v2336_v35 = vld [vmem:[%s3007_s0 + $0x10] ss:$36 sps:$4 sm:$0xff]   ;;  %v2339_v36 = vld [vmem:[%s3007_s0 + $0x18] ss:$36 sps:$4 sm:$0xff]  }
  0x23   :  { %1079 = vmatmul.mubr.bf16.vlgmr.msra.gmra.mxu0 %v2256_v32  ;;  %v2342_v32 = vld [vmem:[%s3006_s1 + $0x238] sm:$0xff]  }
  0x24   :  { %1176 = vmatmul.mubr.bf16.vlgmr.msra.gmra.mxu1 %v2259_v34  ;;  %2032 = vmatpush3.bf16.msra.mxu0 %v2264_v38  ;;  %v2341_v34 = vld [vmem:[%s3007_s0 + $0x1c] ss:$36 sps:$4 sm:$0xff]   ;;  %v2345_v38 = vld [vmem:[%s3007_s0 + $0x64] ss:$36 sps:$4 sm:$0xff]  }
  0x25   :  { %2096 = vmatpush3.bf16.msra.mxu1 %v2265_v39  ;;  %1086 = vmatprep.mubr.bf16.mxu0 %v2266_v40  ;;  %v2343_v37 = vld [vmem:[%s3007_s0 + $0x5c] ss:$36 sps:$4 sm:$0xff]   ;;  %v2349_v39 = vld [vmem:[%s3006_s1 + $0x230] sm:$0xff]   ;;  %v2356_v40 = vld [vmem:[%s3006_s1 + $0x228] sm:$0xff]  }
  0x26   :  { %1183 = vmatprep.mubr.bf16.mxu1 %v2268_v41  ;;  %2033 = vmatprep.subr.bf16.mxu0 %v2272_v44  ;;  %v2347_v41 = vld [vmem:[%s3007_s0 + $0x58] ss:$36 sps:$4 sm:$0xff]   ;;  %v2352_v44 = vld [vmem:[%s3007_s0 + $0xac] ss:$36 sps:$4 sm:$0xff]  }
  0x27   :  { %2097 = vmatprep.subr.bf16.mxu1 %v2273_v45  ;;  %v2363_v45 = vld [vmem:[%s3006_s1 + $0x220] sm:$0xff]  }
  0x28   :  { %2034 = vmatpush3.bf16.msra.mxu0 %v2274_v46  ;;  %v2370_v46 = vld [vmem:[%s3006_s1 + $0x218] sm:$0xff]  }
  0x29   :  { %2098 = vmatpush3.bf16.msra.mxu1 %v2275_v47  ;;  %2035 = vmatprep.subr.bf16.mxu0 %v2282_v52  ;;  %v2354_v47 = vld [vmem:[%s3007_s0 + $0xa0] ss:$36 sps:$4 sm:$0xff]   ;;  %v2361_v52 = vld [vmem:[%s3007_s0 + $0xe8] ss:$36 sps:$4 sm:$0xff]  }
  0x2a   :  { %2099 = vmatprep.subr.bf16.mxu1 %v2283_v53  ;;  %v2384_v53 = vld [vmem:[%s3006_s1 + $0x208] sm:$0xff]  }
  0x2b   :  { %1087 = vmatmul.mubr.bf16.gmra.mxu0 %v2270_v42  ;;  %v2348_v42 = vld [vmem:[%s3007_s0 + $0x60] ss:$36 sps:$4 sm:$0xff]  }
  0x2c   :  { %1184 = vmatmul.mubr.bf16.gmra.mxu1 %v2271_v43  ;;  %1094 = vmatprep.mubr.bf16.mxu0 %v2276_v48  ;;  %v2350_v43 = vld [vmem:[%s3007_s0 + $0xa4] ss:$36 sps:$4 sm:$0xff]  }
  0x2d   :  { %1191 = vmatprep.mubr.bf16.mxu1 %v2278_v49  ;;  %2036 = vmatpush3.bf16.msra.mxu0 %v2284_v54  ;;  %v2355_v48 = vld [vmem:[%s3007_s0 + $0xa8] ss:$36 sps:$4 sm:$0xff]   ;;  %v2362_v54 = vld [vmem:[%s3007_s0 + $0xf0] ss:$36 sps:$4 sm:$0xff]  }
  0x2e   :  { %2100 = vmatpush3.bf16.msra.mxu1 %v2285_v55  ;;  %2037 = vmatprep.subr.bf16.mxu0 %v2292_v60  ;;  %v2357_v49 = vld [vmem:[%s3007_s0 + $0xec] ss:$36 sps:$4 sm:$0xff]   ;;  %v2364_v55 = vld [vmem:[%s3007_s0 + $0x134] ss:$36 sps:$4 sm:$0xff]   ;;  %v2371_v60 = vld [vmem:[%s3007_s0 + $0x17c] ss:$36 sps:$4 sm:$0xff]  }
  0x2f   :  { %2101 = vmatprep.subr.bf16.mxu1 %v2293_v61  ;;  %v2373_v61 = vld [vmem:[%s3007_s0 + $0x184] ss:$36 sps:$4 sm:$0xff]  }
  0x31   :  { %2038 = vmatpush3.bf16.msra.mxu0 %v2294_v62  ;;  %v2375_v62 = vld [vmem:[%s3007_s0 + $0x178] ss:$36 sps:$4 sm:$0xff]  }
  0x32   :  { %2102 = vmatpush3.bf16.msra.mxu1 %v2295_v63  ;;  %2039 = vmatprep.subr.bf16.mxu0 %v2302_v3  ;;  %v2376_v63 = vld [vmem:[%s3007_s0 + $0x180] ss:$36 sps:$4 sm:$0xff]   ;;  %v2383_v3 = vld [vmem:[%s3007_s0 + $0x1c8] ss:$36 sps:$4 sm:$0xff]  }
  0x33   :  { %1095 = vmatmul.mubr.bf16.gmra.mxu0 %v2280_v50  ;;  %2103 = vmatprep.subr.bf16.mxu1 %v2303_v5  ;;  %v2359_v50 = vld [vmem:[%s3007_s0 + $0xf4] ss:$36 sps:$4 sm:$0xff]  }
  0x34   :  { %1192 = vmatmul.mubr.bf16.gmra.mxu1 %v2281_v51  ;;  %1102 = vmatprep.mubr.bf16.mxu0 %v2286_v56  ;;  %v2377_v51 = vld [vmem:[%s3006_s1 + $0x210] sm:$0xff]   ;;  %v2366_v56 = vld [vmem:[%s3007_s0 + $0x13c] ss:$36 sps:$4 sm:$0xff]  }
  0x35   :  { %1199 = vmatprep.mubr.bf16.mxu1 %v2288_v57  ;;  %2040 = vmatpush3.bf16.msra.mxu0 %v2304_v6  ;;  %v2391_v57 = vld [vmem:[%s3006_s1 + $0x200] sm:$0xff]   ;;  %v2387_v5 = vld [vmem:[%s3007_s0 + $0x214] ss:$36 sps:$4 sm:$0xff]   ;;  %v2389_v6 = vld [vmem:[%s3007_s0 + $0x208] ss:$36 sps:$4 sm:$0xff]  }
  0x36   :  { %2104 = vmatpush3.bf16.msra.mxu1 %v2305_v7  ;;  %2041 = vmatprep.subr.bf16.mxu0 %v2312_v10  ;;  %v2390_v7 = vld [vmem:[%s3007_s0 + $0x210] ss:$36 sps:$4 sm:$0xff]   ;;  %v2394_v10 = vld [vmem:[%s3007_s0 + $0x68] ss:$36 sps:$4 sm:$0xff]  }
  0x37   :  { %2105 = vmatprep.subr.bf16.mxu1 %v2313_v11  ;;  %v2395_v11 = vld [vmem:[%s3007_s0 + $0x188] ss:$36 sps:$4 sm:$0xff]  }
  0x39   :  { %2042 = vmatpush3.bf16.msra.mxu0 %v2314_v13  ;;  %v2397_v13 = vld [vmem:[%s3007_s0 + $0x1d0] ss:$36 sps:$4 sm:$0xff]  }
  0x3a   :  { %2106 = vmatpush3.bf16.msra.mxu1 %v2315_v14  ;;  %2043 = vmatprep.subr.bf16.mxu0 %v2322_v18  ;;  %v2398_v14 = vld [vmem:[%s3007_s0 + $0xf8] ss:$36 sps:$4 sm:$0xff]   ;;  %v2856_v18 = vld [vmem:[%s3008_s2] ss:$0 sm:$0xff] }
  0x3b   :  { %1103 = vmatmul.mubr.bf16.gmra.mxu0 %v2290_v58  ;;  %2107 = vmatprep.subr.bf16.mxu1 %v2323_v19  ;;  %v2368_v58 = vld [vmem:[%s3007_s0 + $0x130] ss:$36 sps:$4 sm:$0xff]  }
  0x3c   :  { %1200 = vmatmul.mubr.bf16.gmra.mxu1 %v2291_v59  ;;  %1110 = vmatprep.mubr.bf16.mxu0 %v2296_v0  ;;  %v2369_v59 = vld [vmem:[%s3007_s0 + $0x138] ss:$36 sps:$4 sm:$0xff]   ;;  %v2378_v0 = vld [vmem:[%s3007_s0 + $0x1c4] ss:$36 sps:$4 sm:$0xff]  }
  0x3d   :  { %1207 = vmatprep.mubr.bf16.mxu1 %v2298_v1  ;;  %2044 = vmatpush3.bf16.msra.mxu0 %v2324_v20  ;;  %v2380_v1 = vld [vmem:[%s3007_s0 + $0x1cc] ss:$36 sps:$4 sm:$0xff]  }
  0x3e   :  { %2108 = vmatpush3.bf16.msra.mxu1 %v2325_v21  ;;  %2045 = vmatprep.subr.bf16.mxu0 %v2332_v26 }
  0x3f   :  { %2109 = vmatprep.subr.bf16.mxu1 %v2333_v27 }
  0x41   :  { %2046 = vmatpush3.bf16.msra.mxu0 %v2334_v28 }
  0x42   :  { %2110 = vmatpush3.bf16.msra.mxu1 %v2335_v29  ;;  %2175 = vmatprep.subr.bf16.mxu0 %v2342_v32 }
  0x43   :  { %1111 = vmatmul.mubr.bf16.gmra.mxu0 %v2300_v2  ;;  %2207 = vmatprep.subr.bf16.mxu1 %v2342_v32  ;;  %v2382_v2 = vld [vmem:[%s3007_s0 + $0x1c0] ss:$36 sps:$4 sm:$0xff]  }
  0x44   :  { %1208 = vmatmul.mubr.bf16.gmra.mxu1 %v2301_v4  ;;  %1118 = vmatprep.mubr.bf16.mxu0 %v2306_v8  ;;  %v2385_v4 = vld [vmem:[%s3007_s0 + $0x20c] ss:$36 sps:$4 sm:$0xff]   ;;  %v2392_v8 = vld [vmem:[%s3007_s0 + $0x20] ss:$36 sps:$4 sm:$0xff]  }
  0x45   :  { %1215 = vmatprep.mubr.bf16.mxu1 %v2308_v9  ;;  %v2393_v9 = vld [vmem:[%s3007_s0 + $0x140] ss:$36 sps:$4 sm:$0xff]  }
  0x4b   :  { %1119 = vmatmul.mubr.bf16.gmra.mxu0 %v2310_v12  ;;  %v2396_v12 = vld [vmem:[%s3007_s0 + $0xb0] ss:$36 sps:$4 sm:$0xff]  }
  0x4c   :  { %1216 = vmatmul.mubr.bf16.gmra.mxu1 %v2311_v15  ;;  %1126 = vmatprep.mubr.bf16.mxu0 %v2316_v16  ;;  %v2399_v15 = vld [vmem:[%s3007_s0 + $0x218] ss:$36 sps:$4 sm:$0xff]  }
  0x4d   :  { %1223 = vmatprep.mubr.bf16.mxu1 %v2318_v17 }
  0x53   :  { %1127 = vmatmul.mubr.bf16.gmra.mxu0 %v2320_v22 }
  0x54   :  { %1224 = vmatmul.mubr.bf16.gmra.mxu1 %v2321_v23  ;;  %1134 = vmatprep.mubr.bf16.mxu0 %v2326_v24 }
  0x55   :  { %1231 = vmatprep.mubr.bf16.mxu1 %v2328_v25 }
  0x5b   :  { %1135 = vmatmul.mubr.bf16.gmra.mxu0 %v2330_v30 }
  0x5c   :  { %1232 = vmatmul.mubr.bf16.gmra.mxu1 %v2331_v31  ;;  %1272 = vmatprep.mubr.bf16.mxu0 %v2338_v33 }
  0x5d   :  { %1369 = vmatprep.mubr.bf16.mxu1 %v2341_v34 }
  0x63   :  { %1273 = vmatmul.mubr.bf16.vlgmr.msra.gmra.mxu0 %v2336_v35 }
  0x64   :  { %1370 = vmatmul.mubr.bf16.vlgmr.msra.gmra.mxu1 %v2339_v36  ;;  %2176 = vmatpush3.bf16.msra.mxu0 %v2342_v32 }
  0x65   :  { %2215 = vmatpush3.bf16.msra.mxu1 %v2342_v32  ;;  %1280 = vmatprep.mubr.bf16.mxu0 %v2343_v37 }
  0x66   :  { %1377 = vmatprep.mubr.bf16.mxu1 %v2345_v38  ;;  %2177 = vmatprep.subr.bf16.mxu0 %v2349_v39 }
  0x67   :  { %2208 = vmatprep.subr.bf16.mxu1 %v2349_v39 }
  0x68   :  { %2178 = vmatpush3.bf16.msra.mxu0 %v2349_v39 }
  0x69   :  { %2216 = vmatpush3.bf16.msra.mxu1 %v2349_v39  ;;  %2179 = vmatprep.subr.bf16.mxu0 %v2356_v40 }
  0x6a   :  { %2209 = vmatprep.subr.bf16.mxu1 %v2356_v40 }
  0x6b   :  { %1281 = vmatmul.mubr.bf16.gmra.mxu0 %v2347_v41 }
  0x6c   :  { %1378 = vmatmul.mubr.bf16.gmra.mxu1 %v2348_v42  ;;  %1288 = vmatprep.mubr.bf16.mxu0 %v2350_v43 }
  0x6d   :  { %1385 = vmatprep.mubr.bf16.mxu1 %v2352_v44  ;;  %2180 = vmatpush3.bf16.msra.mxu0 %v2356_v40 }
  0x6e   :  { %2217 = vmatpush3.bf16.msra.mxu1 %v2356_v40  ;;  %2181 = vmatprep.subr.bf16.mxu0 %v2363_v45 }
  0x6f   :  { %2210 = vmatprep.subr.bf16.mxu1 %v2363_v45 }
  0x71   :  { %2182 = vmatpush3.bf16.msra.mxu0 %v2363_v45 }
  0x72   :  { %2218 = vmatpush3.bf16.msra.mxu1 %v2363_v45  ;;  %2183 = vmatprep.subr.bf16.mxu0 %v2370_v46 }
  0x73   :  { %1289 = vmatmul.mubr.bf16.gmra.mxu0 %v2354_v47  ;;  %2211 = vmatprep.subr.bf16.mxu1 %v2370_v46 }
  0x74   :  { %1386 = vmatmul.mubr.bf16.gmra.mxu1 %v2355_v48  ;;  %1296 = vmatprep.mubr.bf16.mxu0 %v2357_v49 }
  0x75   :  { %1393 = vmatprep.mubr.bf16.mxu1 %v2359_v50  ;;  %2184 = vmatpush3.bf16.msra.mxu0 %v2370_v46 }
  0x76   :  { %2219 = vmatpush3.bf16.msra.mxu1 %v2370_v46  ;;  %2185 = vmatprep.subr.bf16.mxu0 %v2377_v51 }
  0x77   :  { %2212 = vmatprep.subr.bf16.mxu1 %v2377_v51 }
  0x79   :  { %2186 = vmatpush3.bf16.msra.mxu0 %v2377_v51 }
  0x7a   :  { %2220 = vmatpush3.bf16.msra.mxu1 %v2377_v51  ;;  %2187 = vmatprep.subr.bf16.mxu0 %v2384_v53 }
  0x7b   :  { %1297 = vmatmul.mubr.bf16.gmra.mxu0 %v2361_v52  ;;  %2213 = vmatprep.subr.bf16.mxu1 %v2384_v53 }
  0x7c   :  { %1394 = vmatmul.mubr.bf16.gmra.mxu1 %v2362_v54  ;;  %1304 = vmatprep.mubr.bf16.mxu0 %v2364_v55 }
  0x7d   :  { %1401 = vmatprep.mubr.bf16.mxu1 %v2366_v56  ;;  %2188 = vmatpush3.bf16.msra.mxu0 %v2384_v53 }
  0x7e   :  { %2221 = vmatpush3.bf16.msra.mxu1 %v2384_v53  ;;  %2189 = vmatprep.subr.bf16.mxu0 %v2391_v57 }
  0x7f   :  { %2214 = vmatprep.subr.bf16.mxu1 %v2391_v57 }
  0x81   :  { %2190 = vmatpush3.bf16.msra.mxu0 %v2391_v57 }
  0x82   :  { %2222 = vmatpush3.bf16.msra.mxu1 %v2391_v57 }
  0x83   :  { %1305 = vmatmul.mubr.bf16.gmra.mxu0 %v2368_v58 }
  0x84   :  { %1402 = vmatmul.mubr.bf16.gmra.mxu1 %v2369_v59  ;;  %1312 = vmatprep.mubr.bf16.mxu0 %v2371_v60 }
  0x85   :  { %1409 = vmatprep.mubr.bf16.mxu1 %v2373_v61 }
  0x8b   :  { %1313 = vmatmul.mubr.bf16.gmra.mxu0 %v2375_v62 }
  0x8c   :  { %1410 = vmatmul.mubr.bf16.gmra.mxu1 %v2376_v63  ;;  %1320 = vmatprep.mubr.bf16.mxu0 %v2378_v0 }
  0x8d   :  { %1417 = vmatprep.mubr.bf16.mxu1 %v2380_v1 }
  0x93   :  { %1321 = vmatmul.mubr.bf16.gmra.mxu0 %v2382_v2 }
  0x94   :  { %1418 = vmatmul.mubr.bf16.gmra.mxu1 %v2383_v3  ;;  %1328 = vmatprep.mubr.bf16.mxu0 %v2385_v4 }
  0x95   :  { %1425 = vmatprep.mubr.bf16.mxu1 %v2387_v5 }
  0x9b   :  { %1329 = vmatmul.mubr.bf16.gmra.mxu0 %v2389_v6 }
  0x9c   :  { %1426 = vmatmul.mubr.bf16.gmra.mxu1 %v2390_v7  ;;  %2191 = vmatprep.mubr.bf16.mxu0 %v2392_v8 }
  0x9d   :  { %2199 = vmatprep.mubr.bf16.mxu1 %v2393_v9 }
  0xa3   :  { %2192 = vmatmul.mubr.bf16.vlgmr.msra.gmra.mxu0 %v2394_v10 }
  0xa4   :  { %2200 = vmatmul.mubr.bf16.vlgmr.msra.gmra.mxu1 %v2395_v11  ;;  %2195 = vmatprep.mubr.bf16.mxu0 %v2396_v12 }
  0xa5   :  { %2203 = vmatprep.mubr.bf16.mxu1 %v2397_v13 }
  0xab   :  { %2196 = vmatmul.mubr.bf16.gmra.mxu0 %v2398_v14 }
  0xac   :  { %2204 = vmatmul.mubr.bf16.gmra.mxu1 %v2399_v15 }
  0xe3   :  { %v1919_v16 = vpop.f32.mrf.mxu0 }
  0xe4   :  { %v1983_v17 = vpop.f32.mrf.mxu1 }
  0xe5   :  { %v1920_v19 = vpop.f32.mrf.mxu0 }
  0xe6   :  { %v1921_v20 = vadd.f32 %v1920_v19, %v1919_v16  ;;  %v1984_v21 = vpop.f32.mrf.mxu1 }
  0xe7   :  { %v1985_v22 = vadd.f32 %v1984_v21, %v1983_v17  ;;  %v1922_v23 = vpop.f32.mrf.mxu0 }
  0xe8   :  { %v1081_v24 = vadd.f32 %v1921_v20, %v2856_v18  ;;  %v1986_v25 = vpop.f32.mrf.mxu1 }
  0xe9   :  { %v1923_v26 = vpop.f32.mrf.mxu0 }
  0xea   :  { %v2859_v27 = vadd.f32 %v1985_v22, %v1081_v24  ;;  %v1924_v28 = vadd.f32 %v1923_v26, %v1922_v23  ;;  %v1987_v29 = vpop.f32.mrf.mxu1 }
  0xeb   :  { %v1988_v30 = vadd.f32 %v1987_v29, %v1986_v25  ;;  %v1925_v31 = vpop.f32.mrf.mxu0 }
  0xec   :  { %v1084_v32 = vadd.f32 %v1924_v28, %v2856_v18  ;;  %v1989_v33 = vpop.f32.mrf.mxu1 }
  0xed   :  { %v1926_v34 = vpop.f32.mrf.mxu0 }
  0xee   :  { %v2862_v35 = vadd.f32 %v1988_v30, %v1084_v32  ;;  %v1927_v36 = vadd.f32 %v1926_v34, %v1925_v31  ;;  %v1990_v37 = vpop.f32.mrf.mxu1 }
  0xef   :  { %v1991_v38 = vadd.f32 %v1990_v37, %v1989_v33  ;;  %v1928_v39 = vpop.f32.mrf.mxu0 }
  0xf0   :  { %v1089_v40 = vadd.f32 %v1927_v36, %v2856_v18  ;;  %v1992_v41 = vpop.f32.mrf.mxu1 }
  0xf1   :  { %v1929_v42 = vpop.f32.mrf.mxu0 }
  0xf2   :  { %v2865_v43 = vadd.f32 %v1991_v38, %v1089_v40  ;;  %v1930_v44 = vadd.f32 %v1929_v42, %v1928_v39  ;;  %v1993_v45 = vpop.f32.mrf.mxu1 }
  0xf3   :  { %v1994_v46 = vadd.f32 %v1993_v45, %v1992_v41  ;;  %v1931_v47 = vpop.f32.mrf.mxu0 }
  0xf4   :  { %v1092_v48 = vadd.f32 %v1930_v44, %v2856_v18  ;;  %v1995_v49 = vpop.f32.mrf.mxu1 }
  0xf5   :  { %v1932_v50 = vpop.f32.mrf.mxu0 }
  0xf6   :  { %v2868_v51 = vadd.f32 %v1994_v46, %v1092_v48  ;;  %v1933_v52 = vadd.f32 %v1932_v50, %v1931_v47  ;;  %v1996_v53 = vpop.f32.mrf.mxu1 }
  0xf7   :  { %v1997_v54 = vadd.f32 %v1996_v53, %v1995_v49  ;;  %v1934_v55 = vpop.f32.mrf.mxu0 }
  0xf8   :  { %v1097_v56 = vadd.f32 %v1933_v52, %v2856_v18  ;;  %v1998_v57 = vpop.f32.mrf.mxu1 }
  0xf9   :  { %v1935_v58 = vpop.f32.mrf.mxu0 }
  0xfa   :  { %v2871_v59 = vadd.f32 %v1997_v54, %v1097_v56  ;;  %v1936_v60 = vadd.f32 %v1935_v58, %v1934_v55  ;;  %v1999_v61 = vpop.f32.mrf.mxu1 }
  0xfb   :  { %v2000_v62 = vadd.f32 %v1999_v61, %v1998_v57  ;;  %v1937_v63 = vpop.f32.mrf.mxu0 }
  0xfc   :  { %v1100_v0 = vadd.f32 %v1936_v60, %v2856_v18  ;;  %v2001_v1 = vpop.f32.mrf.mxu1 }
  0xfd   :  { %v1938_v2 = vpop.f32.mrf.mxu0 }
  0xfe   :  { %v2874_v3 = vadd.f32 %v2000_v62, %v1100_v0  ;;  %v1939_v4 = vadd.f32 %v1938_v2, %v1937_v63  ;;  %v2002_v5 = vpop.f32.mrf.mxu1 }
  0xff   :  { %v2003_v6 = vadd.f32 %v2002_v5, %v2001_v1  ;;  %v1940_v7 = vpop.f32.mrf.mxu0 }
 0x100   :  { %3010 = vst [vmem:[#allocation2_spill] sm:$0xff] %v2874_v3  ;;  %v1105_v8 = vadd.f32 %v1939_v4, %v2856_v18  ;;  %v2004_v9 = vpop.f32.mrf.mxu1 }
 0x101   :  { %v1941_v10 = vpop.f32.mrf.mxu0 }
 0x102   :  { %v2877_v11 = vadd.f32 %v2003_v6, %v1105_v8  ;;  %v1942_v12 = vadd.f32 %v1941_v10, %v1940_v7  ;;  %v2005_v13 = vpop.f32.mrf.mxu1 }
 0x103   :  { %v2006_v14 = vadd.f32 %v2005_v13, %v2004_v9  ;;  %v1943_v15 = vpop.f32.mrf.mxu0 }
 0x104   :  { %v1108_v16 = vadd.f32 %v1942_v12, %v2856_v18  ;;  %v2007_v17 = vpop.f32.mrf.mxu1 }
 0x105   :  { %v1944_v19 = vpop.f32.mrf.mxu0 }
 0x106   :  { %v2880_v20 = vadd.f32 %v2006_v14, %v1108_v16  ;;  %v1945_v21 = vadd.f32 %v1944_v19, %v1943_v15  ;;  %v2008_v22 = vpop.f32.mrf.mxu1 }
 0x107   :  { %v2009_v23 = vadd.f32 %v2008_v22, %v2007_v17  ;;  %v1946_v24 = vpop.f32.mrf.mxu0 }
 0x108   :  { %v1113_v25 = vadd.f32 %v1945_v21, %v2856_v18  ;;  %v2010_v26 = vpop.f32.mrf.mxu1 }
 0x109   :  { %v1947_v28 = vpop.f32.mrf.mxu0 }
 0x10a   :  { %v2883_v29 = vadd.f32 %v2009_v23, %v1113_v25  ;;  %v1948_v30 = vadd.f32 %v1947_v28, %v1946_v24  ;;  %v2011_v31 = vpop.f32.mrf.mxu1 }
 0x10b   :  { %v2012_v32 = vadd.f32 %v2011_v31, %v2010_v26  ;;  %v1949_v33 = vpop.f32.mrf.mxu0 }
 0x10c   :  { %v1116_v34 = vadd.f32 %v1948_v30, %v2856_v18  ;;  %v2013_v36 = vpop.f32.mrf.mxu1 }
 0x10d   :  { %v1950_v37 = vpop.f32.mrf.mxu0 }
 0x10e   :  { %v2886_v38 = vadd.f32 %v2012_v32, %v1116_v34  ;;  %v1951_v39 = vadd.f32 %v1950_v37, %v1949_v33  ;;  %v2014_v40 = vpop.f32.mrf.mxu1 }
 0x10f   :  { %v2015_v41 = vadd.f32 %v2014_v40, %v2013_v36  ;;  %v1952_v42 = vpop.f32.mrf.mxu0 }
 0x110   :  { %3011 = vst [vmem:[#allocation3_spill] sm:$0xff] %v2886_v38  ;;  %v1121_v44 = vadd.f32 %v1951_v39, %v2856_v18  ;;  %v2016_v45 = vpop.f32.mrf.mxu1 }
 0x111   :  { %v1953_v46 = vpop.f32.mrf.mxu0 }
 0x112   :  { %v2889_v47 = vadd.f32 %v2015_v41, %v1121_v44  ;;  %v1954_v48 = vadd.f32 %v1953_v46, %v1952_v42  ;;  %v2017_v49 = vpop.f32.mrf.mxu1 }
 0x113   :  { %v2018_v50 = vadd.f32 %v2017_v49, %v2016_v45  ;;  %v1955_v52 = vpop.f32.mrf.mxu0 }
 0x114   :  { %v1124_v53 = vadd.f32 %v1954_v48, %v2856_v18  ;;  %v2019_v54 = vpop.f32.mrf.mxu1 }
 0x115   :  { %v1956_v55 = vpop.f32.mrf.mxu0 }
 0x116   :  { %v2892_v56 = vadd.f32 %v2018_v50, %v1124_v53  ;;  %v1957_v57 = vadd.f32 %v1956_v55, %v1955_v52  ;;  %v2020_v58 = vpop.f32.mrf.mxu1 }
 0x117   :  { %v2021_v60 = vadd.f32 %v2020_v58, %v2019_v54  ;;  %v1958_v61 = vpop.f32.mrf.mxu0 }
 0x118   :  { %3012 = vst [vmem:[#allocation4_spill] sm:$0xff] %v2892_v56  ;;  %v1129_v62 = vadd.f32 %v1957_v57, %v2856_v18  ;;  %v2022_v63 = vpop.f32.mrf.mxu1 }
 0x119   :  { %v1959_v0 = vpop.f32.mrf.mxu0 }
 0x11a   :  { %v2895_v1 = vadd.f32 %v2021_v60, %v1129_v62  ;;  %v1960_v2 = vadd.f32 %v1959_v0, %v1958_v61  ;;  %v2023_v4 = vpop.f32.mrf.mxu1 }
 0x11b   :  { %v2024_v5 = vadd.f32 %v2023_v4, %v2022_v63  ;;  %v1961_v6 = vpop.f32.mrf.mxu0 }
 0x11c   :  { %3013 = vst [vmem:[#allocation5_spill] sm:$0xff] %v2895_v1  ;;  %v1132_v7 = vadd.f32 %v1960_v2, %v2856_v18  ;;  %v2025_v8 = vpop.f32.mrf.mxu1 }
 0x11d   :  { %v1962_v9 = vpop.f32.mrf.mxu0 }
 0x11e   :  { %v2898_v10 = vadd.f32 %v2024_v5, %v1132_v7  ;;  %v1963_v12 = vadd.f32 %v1962_v9, %v1961_v6  ;;  %v2026_v13 = vpop.f32.mrf.mxu1 }
 0x11f   :  { %v2027_v14 = vadd.f32 %v2026_v13, %v2025_v8  ;;  %v1964_v15 = vpop.f32.mrf.mxu0 }
 0x120   :  { %3014 = vst [vmem:[#allocation6_spill] sm:$0xff] %v2898_v10  ;;  %v1137_v16 = vadd.f32 %v1963_v12, %v2856_v18  ;;  %v2028_v17 = vpop.f32.mrf.mxu1 }
 0x121   :  { %v1965_v19 = vpop.f32.mrf.mxu0 }
 0x122   :  { %v2901_v21 = vadd.f32 %v2027_v14, %v1137_v16  ;;  %v1966_v22 = vadd.f32 %v1965_v19, %v1964_v15  ;;  %v2029_v23 = vpop.f32.mrf.mxu1 }
 0x123   :  { %v2030_v24 = vadd.f32 %v2029_v23, %v2028_v17  ;;  %v2047_v25 = vpop.f32.mrf.mxu0 }
 0x124   :  { %3015 = vst [vmem:[#allocation7_spill] sm:$0xff] %v2901_v21  ;;  %v1140_v26 = vadd.f32 %v1966_v22, %v2856_v18  ;;  %v2111_v28 = vpop.f32.mrf.mxu1 }
 0x125   :  { %v2048_v30 = vpop.f32.mrf.mxu0 }
 0x126   :  { %v2904_v31 = vadd.f32 %v2030_v24, %v1140_v26  ;;  %v2049_v32 = vadd.f32 %v2048_v30, %v2047_v25  ;;  %v2112_v33 = vpop.f32.mrf.mxu1 }
 0x127   :  { %v2050_v34 = vpop.f32.mrf.mxu0  ;;  %v2113_v37 = vadd.f32 %v2112_v33, %v2111_v28 }
 0x128   :  { %3016 = vst [vmem:[#allocation8_spill] sm:$0xff] %v2904_v31  ;;  %v1275_v36 = vadd.f32 %v2049_v32, %v2859_v27  ;;  %v2114_v39 = vpop.f32.mrf.mxu1 }
 0x129   :  { %v2051_v40 = vpop.f32.mrf.mxu0 }
 0x12a   :  { %v2115_v41 = vpop.f32.mrf.mxu1  ;;  %v2907_v42 = vadd.f32 %v2113_v37, %v1275_v36  ;;  %v2052_v33 = vadd.f32 %v2051_v40, %v2050_v34 }
 0x12b   :  { %v2053_v44 = vpop.f32.mrf.mxu0 }
 0x12c   :  { %3017 = vst [vmem:[#allocation9_spill] sm:$0xff] %v2907_v42  ;;  %v2117_v45 = vpop.f32.mrf.mxu1  ;;  %v1278_v1 = vadd.f32 %v2052_v33, %v2862_v35 }
 0x12d   :  { %v2054_v46 = vpop.f32.mrf.mxu0 }
 0x12e   :  { %v2118_v48 = vpop.f32.mrf.mxu1  ;;  %v2055_v37 = vadd.f32 %v2054_v46, %v2053_v44 }
 0x12f   :  { %v2056_v18 = vpop.f32.mrf.mxu0  ;;  %v2119_v34 = vadd.f32 %v2118_v48, %v2117_v45 }
 0x130   :  { %v2120_v49 = vpop.f32.mrf.mxu1  ;;  %v1283_v56 = vadd.f32 %v2055_v37, %v2865_v43 }
 0x131   :  { %v2057_v50 = vpop.f32.mrf.mxu0 }
 0x132   :  { %v2121_v52 = vpop.f32.mrf.mxu1  ;;  %v2058_v42 = vadd.f32 %v2057_v50, %v2056_v18  ;;  %v1380_v37 = vadd.f32 %v2119_v34, %v1283_v56 }
 0x133   :  { %v2059_v53 = vpop.f32.mrf.mxu0 }
 0x134   :  { %v2123_v54 = vpop.f32.mrf.mxu1  ;;  %v1286_v40 = vadd.f32 %v2058_v42, %v2868_v51 }
 0x135   :  { %v2060_v55 = vpop.f32.mrf.mxu0 }
 0x136   :  { %v2124_v57 = vpop.f32.mrf.mxu1 }
 0x137   :  { %v2062_v58 = vpop.f32.mrf.mxu0 }
 0x138   :  { %v2909_v27 = vpop.f32.mrf.mxu1 }
 0x139   :  { %3018 = vst [vmem:[#allocation10_spill] sm:$0xff] %v2909_v27  ;;  %v2063_v60 = vpop.f32.mrf.mxu0 }
 0x13a   :  { %v2911_v61 = vpop.f32.mrf.mxu1 }
 0x13b   :  { %3019 = vst [vmem:[#allocation11_spill] sm:$0xff] %v2911_v61  ;;  %v2065_v62 = vpop.f32.mrf.mxu0 }
 0x13c   :  { %v2913_v63 = vpop.f32.mrf.mxu1 }
 0x13d   :  { %v2066_v0 = vpop.f32.mrf.mxu0 }
 0x13e   :  { %v2130_v2 = vpop.f32.mrf.mxu1  ;;  %v2067_v38 = vadd.f32 %v2066_v0, %v2065_v62 }
 0x13f   :  { %v2068_v4 = vpop.f32.mrf.mxu0 }
 0x140   :  { %v2132_v5 = vpop.f32.mrf.mxu1 }
 0x141   :  { %v2069_v6 = vpop.f32.mrf.mxu0 }
 0x142   :  { %v2133_v7 = vpop.f32.mrf.mxu1  ;;  %v2070_v61 = vadd.f32 %v2069_v6, %v2068_v4  ;;  %v3028_v6 = vld [vmem:[#allocation4_spill] sm:$0xff] }
 0x143   :  { %v2071_v8 = vpop.f32.mrf.mxu0 }
 0x144   :  { %v2135_v9 = vpop.f32.mrf.mxu1  ;;  %v1302_v45 = vadd.f32 %v2070_v61, %v2880_v20 }
 0x145   :  { %v2072_v12 = vpop.f32.mrf.mxu0 }
 0x146   :  { %v2136_v13 = vpop.f32.mrf.mxu1  ;;  %v2073_v44 = vadd.f32 %v2072_v12, %v2071_v8 }
 0x147   :  { %v2074_v14 = vpop.f32.mrf.mxu0  ;;  %v2137_v20 = vadd.f32 %v2136_v13, %v2135_v9 }
 0x148   :  { %v2915_v15 = vpop.f32.mrf.mxu1  ;;  %v1307_v42 = vadd.f32 %v2073_v44, %v2883_v29 }
 0x149   :  { %3020 = vst [vmem:[#allocation12_spill] sm:$0xff] %v2915_v15  ;;  %v2075_v16 = vpop.f32.mrf.mxu0 }
 0x14a   :  { %v2917_v17 = vpop.f32.mrf.mxu1  ;;  %v2076_v33 = vadd.f32 %v2075_v16, %v2074_v14  ;;  %v3031_v16 = vld [vmem:[#allocation5_spill] sm:$0xff]  ;;  %v1404_v13 = vadd.f32 %v2137_v20, %v1307_v42 }
 0x14b   :  { %3021 = vst [vmem:[#allocation13_spill] sm:$0xff] %v2917_v17  ;;  %v2077_v19 = vpop.f32.mrf.mxu0  ;;  %v2061_v17 = vadd.f32 %v2060_v55, %v2059_v53  ;;  %v2122_v53 = vadd.f32 %v2121_v52, %v2120_v49  ;;  %v2125_v55 = vadd.f32 %v2124_v57, %v2123_v54  ;;  %v2131_v49 = vadd.f32 %v2130_v2, %v2913_v63 }
 0x14c   :  { %v2141_v22 = vpop.f32.mrf.mxu1  ;;  %v2134_v52 = vadd.f32 %v2133_v7, %v2132_v5 }
 0x14d   :  { %v2078_v23 = vpop.f32.mrf.mxu0  ;;  %v1291_v18 = vadd.f32 %v2061_v17, %v2871_v59 }
 0x14e   :  { %v2142_v24 = vpop.f32.mrf.mxu1  ;;  %v2079_v46 = vadd.f32 %v2078_v23, %v2077_v19  ;;  %v2947_v5 = vadd.f32 %v2134_v52, %v1302_v45 }
 0x14f   :  { %v2080_v25 = vpop.f32.mrf.mxu0  ;;  %v2936_v56 = vadd.f32 %v2125_v55, %v1291_v18  ;;  %v2143_v29 = vadd.f32 %v2142_v24, %v2141_v22  ;;  %v3035_v55 = vld [vmem:[#allocation9_spill] sm:$0xff] }
 0x150   :  { %v2919_v26 = vpop.f32.mrf.mxu1  ;;  %v1315_v62 = vadd.f32 %v2079_v46, %v2889_v47  ;;  %v3027_v47 = vld [vmem:[#allocation2_spill] sm:$0xff]  ;;  %v3029_v7 = vld [vmem:[#allocation12_spill] sm:$0xff] }
 0x151   :  { %3022 = vst [vmem:[#allocation14_spill] sm:$0xff] %v2919_v26  ;;  %v2081_v28 = vpop.f32.mrf.mxu0  ;;  %v2116_v26 = vadd.f32 %v2115_v41, %v2114_v39  ;;  %v2064_v39 = vadd.f32 %v2063_v60, %v2062_v58  ;;  %v1299_v41 = vadd.f32 %v2067_v38, %v2877_v11  ;;  %v3024_v58 = vld [vmem:[#allocation10_spill] sm:$0xff]  ;;  %v3025_v11 = vld [vmem:[#allocation11_spill] sm:$0xff] }
 0x152   :  { %v2145_v30 = vpop.f32.mrf.mxu1  ;;  %v2082_v48 = vadd.f32 %v2081_v28, %v2080_v25  ;;  %v2940_v38 = vadd.f32 %v3025_v11, %v3024_v58  ;;  %v3026_v60 = vld [vmem:[#allocation3_spill] sm:$0xff]  ;;  %v3030_v12 = vld [vmem:[#allocation13_spill] sm:$0xff]  ;;  %v1412_v9 = vadd.f32 %v2143_v29, %v1315_v62  ;;  %v3037_v62 = vld [vmem:[#allocation8_spill] sm:$0xff] }
 0x153   :  { %v2083_v32 = vpop.f32.mrf.mxu0  ;;  %v2929_v35 = vadd.f32 %v2116_v26, %v1278_v1  ;;  %v1383_v1 = vadd.f32 %v2122_v53, %v1286_v40  ;;  %v1310_v61 = vadd.f32 %v2076_v33, %v3026_v60  ;;  %v1396_v2 = vadd.f32 %v2131_v49, %v1299_v41  ;;  %v3033_v25 = vld [vmem:[#allocation7_spill] sm:$0xff] }
 0x154   :  { %v2921_v36 = vpop.f32.mrf.mxu1  ;;  %v1318_v8 = vadd.f32 %v2082_v48, %v3028_v6  ;;  %v2140_v14 = vadd.f32 %v3030_v12, %v3029_v7 }
 0x155   :  { %3023 = vst [vmem:[#allocation15_spill] sm:$0xff] %v2921_v36  ;;  %v2084_v31 = vpop.f32.mrf.mxu0 }
 0x156   :  { %v2148_v10 = vpop.f32.mrf.mxu1  ;;  %v2085_v59 = vadd.f32 %v2084_v31, %v2083_v32  ;;  %v2944_v31 = vadd.f32 %v2064_v39, %v3027_v47  ;;  %v1407_v18 = vadd.f32 %v2140_v14, %v1310_v61 }
 0x157   :  { %v2086_v21 = vpop.f32.mrf.mxu0 }
 0x158   :  { %v2924_v15 = vpop.f32.mrf.mxu1  ;;  %v1323_v17 = vadd.f32 %v2085_v59, %v3031_v16  ;;  %v3032_v23 = vld [vmem:[#allocation14_spill] sm:$0xff] }
 0x159   :  { %v2087_v3 = vpop.f32.mrf.mxu0  ;;  %v2146_v22 = vadd.f32 %v2145_v30, %v3032_v23 }
 0x15a   :  { %v2151_v27 = vpop.f32.mrf.mxu1  ;;  %v2088_v24 = vadd.f32 %v2087_v3, %v2086_v21 }
 0x15b   :  { %v2089_v36 = vpop.f32.mrf.mxu0  ;;  %v1415_v39 = vadd.f32 %v2146_v22, %v1318_v8  ;;  %v2152_v41 = vadd.f32 %v2151_v27, %v2924_v15 }
 0x15c   :  { %v2153_v50 = vpop.f32.mrf.mxu1 }
 0x15d   :  { %v2090_v43 = vpop.f32.mrf.mxu0 }
 0x15e   :  { %v2154_v51 = vpop.f32.mrf.mxu1  ;;  %v2091_v54 = vadd.f32 %v2090_v43, %v2089_v36  ;;  %v3034_v36 = vld [vmem:[#allocation15_spill] sm:$0xff] }
 0x15f   :  { %v2092_v0 = vpop.f32.mrf.mxu0  ;;  %v2149_v34 = vadd.f32 %v2148_v10, %v3034_v36  ;;  %v2155_v53 = vadd.f32 %v2154_v51, %v2153_v50  ;;  %v2400_v51 = vmov 0.0  }
 0x160   :  { %v2156_v57 = vpop.f32.mrf.mxu1  ;;  %v1331_v26 = vadd.f32 %v2091_v54, %v3033_v25 }
 0x161   :  { %v2093_v4 = vpop.f32.mrf.mxu0  ;;  %v1420_v30 = vadd.f32 %v2149_v34, %v1323_v17 }
 0x162   :  { %v2157_v63 = vpop.f32.mrf.mxu1  ;;  %v2094_v40 = vadd.f32 %v2093_v4, %v2092_v0  ;;  %v1428_v42 = vadd.f32 %v2155_v53, %v1331_v26 }
 0x163   :  { %v2193_v19 = vpop.f32.mrf.mxu0  ;;  %v2158_v50 = vadd.f32 %v2157_v63, %v2156_v57 }
 0x164   :  { %v1477_v28 = vadd.f32 %v2193_v19, %v1380_v37  ;;  %v2201_v32 = vpop.f32.mrf.mxu1  ;;  %v3036_v37 = vld [vmem:[#allocation6_spill] sm:$0xff]  ;;  %v1334_v59 = vadd.f32 %v2094_v40, %v3037_v62 }
 0x165   :  { %v1509_v44 = vadd.f32 %v2201_v32, %v1412_v9  ;;  %v1468_v46 = vpop.f32.mrf.mxu0  ;;  %v1326_v45 = vadd.f32 %v2088_v24, %v3036_v37 }
 0x166   :  { %vm1549_vm0 = vcmp.gt.f32.partialorder %v1477_v28, 0.2  ;;  %v1469_v33 = vadd.f32 %v1468_v46, %v3035_v55  ;;  %v1500_v43 = vpop.f32.mrf.mxu1  ;;  %v1431_v19 = vadd.f32 %v2158_v50, %v1334_v59 }
 0x167   :  { %vm1557_vm1 = vcmp.gt.f32.partialorder %v1509_v44, 0.2  ;;  %v1501_v3 = vadd.f32 %v1500_v43, %v1404_v13  ;;  %v2194_v21 = vpop.f32.mrf.mxu0  ;;  %v1826_v0 = vsel %vm1549_vm0, 1.0, %v2400_v51  ;;  %v1423_v24 = vadd.f32 %v2152_v41, %v1326_v45 }
 0x168   :  { %vm1547_vm2 = vcmp.gt.f32.partialorder %v1469_v33, 0.2  ;;  %v1480_v10 = vadd.f32 %v2194_v21, %v1383_v1  ;;  %v2202_v48 = vpop.f32.mrf.mxu1  ;;  %v1834_v27 = vsel %vm1557_vm1, 1.0, %v2400_v51 }
 0x169   :  { %v1512_v49 = vadd.f32 %v2202_v48, %v1415_v39  ;;  %v1471_v52 = vpop.f32.mrf.mxu0  ;;  %v1824_v15 = vsel %vm1547_vm2, 1.0, %v2400_v51  ;;  %vm1555_vm4 = vcmp.gt.f32.partialorder %v1501_v3, 0.2 }
 0x16a   :  { %vm1550_vm3 = vcmp.gt.f32.partialorder %v1480_v10, 0.2  ;;  %v1472_v54 = vadd.f32 %v1471_v52, %v2929_v35  ;;  %v1503_v58 = vpop.f32.mrf.mxu1  ;;  %v1832_v35 = vsel %vm1555_vm4, 1.0, %v2400_v51 }
 0x16b   :  { %v1827_v1 = vsel %vm1550_vm3, 1.0, %v2400_v51  ;;  %vm1558_vm5 = vcmp.gt.f32.partialorder %v1512_v49, 0.2  ;;  %v1504_v11 = vadd.f32 %v1503_v58, %v1407_v18  ;;  %v2197_v57 = vpop.f32.mrf.mxu0 }
 0x16c   :  { %v1876_v20 = vpack.c.bf16 %v1827_v1, %v1826_v0  ;;  %v1835_v60 = vsel %vm1558_vm5, 1.0, %v2400_v51  ;;  %vm1548_vm6 = vcmp.gt.f32.partialorder %v1472_v54, 0.2  ;;  %v1493_v61 = vadd.f32 %v2197_v57, %v1396_v2  ;;  %v2205_v29 = vpop.f32.mrf.mxu1 }
 0x16d   :  { %v1888_v4 = vpack.c.bf16 %v1835_v60, %v1834_v27  ;;  %v1825_v47 = vsel %vm1548_vm6, 1.0, %v2400_v51  ;;  %vm1556_vm7 = vcmp.gt.f32.partialorder %v1504_v11, 0.2  ;;  %v1525_v6 = vadd.f32 %v2205_v29, %v1428_v42  ;;  %v1484_v8 = vpop.f32.mrf.mxu0 }
 0x16e   :  { %1896 = vst [vmem:[%s3009_s3 + $0x8] sm:$0xff] %v1876_v20   ;;  %v1873_v63 = vpack.c.bf16 %v1825_v47, %v1824_v15  ;;  %v1833_v7 = vsel %vm1556_vm7, 1.0, %v2400_v51  ;;  %v1485_v12 = vadd.f32 %v1484_v8, %v2936_v56  ;;  %v1516_v2 = vpop.f32.mrf.mxu1  ;;  %vm1553_vm8 = vcmp.gt.f32.partialorder %v1493_v61, 0.2 }
 0x16f   :  { %1900 = vst [vmem:[%s3009_s3 + $0x28] sm:$0xff] %v1888_v4   ;;  %v1885_v14 = vpack.c.bf16 %v1833_v7, %v1832_v35  ;;  %v1517_v16 = vadd.f32 %v1516_v2, %v1420_v30  ;;  %v2198_v17 = vpop.f32.mrf.mxu0  ;;  %v1391_v56 = vadd.f32 %v2940_v38, %v2944_v31  ;;  %vm1561_vm9 = vcmp.gt.f32.partialorder %v1525_v6, 0.2 }
 0x170   :  { %1874 = vst [vmem:[%s3009_s3] sm:$0xff] %v1873_v63   ;;  %v1496_v9 = vadd.f32 %v2198_v17, %v2947_v5  ;;  %v2206_v13 = vpop.f32.mrf.mxu1  ;;  %v1830_v25 = vsel %vm1553_vm8, 1.0, %v2400_v51  ;;  %vm1551_vm10 = vcmp.gt.f32.partialorder %v1485_v12, 0.2  ;;  %v1838_v38 = vsel %vm1561_vm9, 1.0, %v2400_v51 }
 0x171   :  { %1899 = vst [vmem:[%s3009_s3 + $0x20] sm:$0xff] %v1885_v14   ;;  %v1528_v23 = vadd.f32 %v2206_v13, %v1431_v19  ;;  %v1487_v22 = vpop.f32.mrf.mxu0  ;;  %vm1559_vm12 = vcmp.gt.f32.partialorder %v1517_v16, 0.2  ;;  %v1828_v34 = vsel %vm1551_vm10, 1.0, %v2400_v51 }
 0x172   :  { %vm1554_vm11 = vcmp.gt.f32.partialorder %v1496_v9, 0.2  ;;  %v1488_v26 = vadd.f32 %v1487_v22, %v1391_v56  ;;  %v1519_v28 = vpop.f32.mrf.mxu1  ;;  %v1836_v46 = vsel %vm1559_vm12, 1.0, %v2400_v51 }
 0x173   :  { %v1831_v5 = vsel %vm1554_vm11, 1.0, %v2400_v51  ;;  %vm1562_vm13 = vcmp.gt.f32.partialorder %v1528_v23, 0.2  ;;  %v1520_v32 = vadd.f32 %v1519_v28, %v1423_v24 }
 0x174   :  { %v1882_v31 = vpack.c.bf16 %v1831_v5, %v1830_v25  ;;  %v1839_v36 = vsel %vm1562_vm13, 1.0, %v2400_v51  ;;  %vm1552_vm14 = vcmp.gt.f32.partialorder %v1488_v26, 0.2 }
 0x175   :  { %v1894_v40 = vpack.c.bf16 %v1839_v36, %v1838_v38  ;;  %v1829_v44 = vsel %vm1552_vm14, 1.0, %v2400_v51  ;;  %vm1560_vm15 = vcmp.gt.f32.partialorder %v1520_v32, 0.2 }
 0x176   :  { %1898 = vst [vmem:[%s3009_s3 + $0x18] sm:$0xff] %v1882_v31   ;;  %v1879_v18 = vpack.c.bf16 %v1829_v44, %v1828_v34  ;;  %v1837_v53 = vsel %vm1560_vm15, 1.0, %v2400_v51 }
 0x177   :  { %1902 = vst [vmem:[%s3009_s3 + $0x38] sm:$0xff] %v1894_v40   ;;  %v1891_v55 = vpack.c.bf16 %v1837_v53, %v1836_v46 }
 0x178   :  { %1897 = vst [vmem:[%s3009_s3 + $0x10] sm:$0xff] %v1879_v18  }
 0x179   :  { %1901 = vst [vmem:[%s3009_s3 + $0x30] sm:$0xff] %v1891_v55  }

// kernel: _forward_prefix.15
= control target key start
LH: loop header
LB: loop body
LE: loop exit
PB: predicated region body
PF: predicated region fallthrough
CT: control target
= control target key end

     0   :  { %v3797_v0 = vmov 0   ;;  %vm1302_vm0 = vcmask 523264   ;;  %s5081_s1 = inlined_call_operand.vmem [shape: bf16[576,128], index: 1, kind: input, shape index: {}]   ;;  %s5082_s0 = inlined_call_operand.vmem [shape: bf16[1,512,576], index: 0, kind: input, shape index: {}]   ;;  %s5083_s2 = inlined_call_operand.vmem [shape: f32[1,128], index: 2, kind: input, shape index: {}]   ;;  %s5084_s3 = inlined_call_operand.vmem [shape: bf16[1,512,128], index: 3, kind: output, shape index: {}]  }
   0x1   :  { %1399 = vmatprep.subr.bf16.mxu0 %v3797_v0  ;;  %3502 = vmatprep.subr.bf16.mxu1 %v3797_v0  ;;  %v3536_v1 = vld [vmem:[%s5081_s1 + $0x38] sm:$0xff]   ;;  %v3537_v2 = vld [vmem:[%s5081_s1 + $0x30] sm:$0xff]   ;;  %v3538_v3 = vld [vmem:[%s5081_s1 + $0x28] sm:$0xff]  }
   0x2   :  { %1400 = vmatpush1.bf16.msra.mxu0 %v3536_v1  ;;  %3518 = vmatpush1.bf16.msra.mxu1 %v3536_v1  ;;  %v3539_v4 = vld [vmem:[%s5081_s1 + $0x20] sm:$0xff]   ;;  %v3540_v5 = vld [vmem:[%s5081_s1 + $0x18] sm:$0xff]   ;;  %v3541_v7 = vld [vmem:[%s5081_s1 + $0x10] sm:$0xff]  }
   0x3   :  { %1401 = vmatprep.subr.bf16.mxu0 %v3797_v0  ;;  %3503 = vmatprep.subr.bf16.mxu1 %v3797_v0  ;;  %v3554_v6 = vld [vmem:[%s5082_s0 + $0x4] ss:$20 sps:$4 sm:$0xff]   ;;  %v3542_v9 = vld [vmem:[%s5081_s1 + $0x8] sm:$0xff]   ;;  %v3545_v12 = vld [vmem:[%s5081_s1 + $0x70] sm:$0xff]  }
   0x4   :  { %v3557_v8 = vld [vmem:[%s5082_s0 + $0x3c4] ss:$20 sps:$4 sm:$0xff]   ;;  %1431 = vmatprep.mubr.bf16.mxu0 %v3554_v6  ;;  %v3546_v13 = vld [vmem:[%s5081_s1 + $0x68] sm:$0xff]   ;;  %v3549_v16 = vld [vmem:[%s5081_s1 + $0x50] sm:$0xff]  }
   0x5   :  { %1623 = vmatprep.mubr.bf16.mxu1 %v3557_v8  ;;  %v3543_v10 = vld [vmem:[%s5081_s1] sm:$0xff]   ;;  %v3544_v11 = vld [vmem:[%s5081_s1 + $0x78] sm:$0xff]   ;;  %v3550_v17 = vld [vmem:[%s5081_s1 + $0x48] sm:$0xff]  }
   0x6   :  { %1402 = vmatpush1.bf16.msra.mxu0 %v3537_v2  ;;  %3519 = vmatpush1.bf16.msra.mxu1 %v3537_v2  ;;  %v3547_v14 = vld [vmem:[%s5081_s1 + $0x60] sm:$0xff]   ;;  %v3548_v15 = vld [vmem:[%s5081_s1 + $0x58] sm:$0xff]   ;;  %v3607_v25 = vld [vmem:[%s5081_s1 + $0x110] sm:$0xff]  }
   0x7   :  { %1403 = vmatprep.subr.bf16.mxu0 %v3797_v0  ;;  %3504 = vmatprep.subr.bf16.mxu1 %v3797_v0  ;;  %v3551_v18 = vld [vmem:[%s5081_s1 + $0x40] sm:$0xff]   ;;  %v3558_v19 = vld [vmem:[%s5081_s1 + $0x118] sm:$0xff]   ;;  %v3560_v26 = vld [vmem:[%s5081_s1 + $0xb0] sm:$0xff]  }
   0x8   :  { %v3552_v20 = vld [vmem:[%s5082_s0] ss:$20 sps:$4 sm:$0xff]   ;;  %v3559_v22 = vld [vmem:[%s5081_s1 + $0xb8] sm:$0xff]   ;;  %v3567_v29 = vld [vmem:[%s5081_s1 + $0xa8] sm:$0xff]  }
   0x9   :  { %v3555_v21 = vld [vmem:[%s5082_s0 + $0x3c0] ss:$20 sps:$4 sm:$0xff]   ;;  %v3565_v27 = vld [vmem:[%s5082_s0 + $0x28] ss:$20 sps:$4 sm:$0xff]   ;;  %v3573_v34 = vld [vmem:[%s5082_s0 + $0x50] ss:$20 sps:$4 sm:$0xff]  }
   0xa   :  { %1404 = vmatpush1.bf16.msra.mxu0 %v3538_v3  ;;  %3520 = vmatpush1.bf16.msra.mxu1 %v3538_v3  ;;  %v3561_v23 = vld [vmem:[%s5082_s0 + $0x2c] ss:$20 sps:$4 sm:$0xff]   ;;  %v3566_v28 = vld [vmem:[%s5082_s0 + $0x3e8] ss:$20 sps:$4 sm:$0xff]   ;;  %v3574_v35 = vld [vmem:[%s5082_s0 + $0x410] ss:$20 sps:$4 sm:$0xff]  }
   0xb   :  { %1405 = vmatprep.subr.bf16.mxu0 %v3797_v0  ;;  %3505 = vmatprep.subr.bf16.mxu1 %v3797_v0  ;;  %v3563_v24 = vld [vmem:[%s5082_s0 + $0x3ec] ss:$20 sps:$4 sm:$0xff]   ;;  %v3569_v31 = vld [vmem:[%s5082_s0 + $0x54] ss:$20 sps:$4 sm:$0xff]   ;;  %v3575_v36 = vld [vmem:[%s5081_s1 + $0x98] sm:$0xff]  }
   0xc   :  { %v3648_v30 = vld [vmem:[%s5081_s1 + $0x108] sm:$0xff]   ;;  %v3568_v33 = vld [vmem:[%s5081_s1 + $0xa0] sm:$0xff]   ;;  %v3577_v37 = vld [vmem:[%s5082_s0 + $0x7c] ss:$20 sps:$4 sm:$0xff]  }
   0xd   :  { %v3571_v32 = vld [vmem:[%s5082_s0 + $0x414] ss:$20 sps:$4 sm:$0xff]   ;;  %v3579_v38 = vld [vmem:[%s5082_s0 + $0x43c] ss:$20 sps:$4 sm:$0xff]   ;;  %v3581_v40 = vld [vmem:[%s5082_s0 + $0x78] ss:$20 sps:$4 sm:$0xff]  }
   0xe   :  { %1406 = vmatpush1.bf16.msra.mxu0 %v3539_v4  ;;  %3521 = vmatpush1.bf16.msra.mxu1 %v3539_v4  ;;  %v3576_v39 = vld [vmem:[%s5081_s1 + $0x90] sm:$0xff]   ;;  %v3582_v41 = vld [vmem:[%s5082_s0 + $0x438] ss:$20 sps:$4 sm:$0xff]   ;;  %v3685_v44 = vld [vmem:[%s5081_s1 + $0x100] sm:$0xff]  }
   0xf   :  { %1407 = vmatprep.subr.bf16.mxu0 %v3797_v0  ;;  %3506 = vmatprep.subr.bf16.mxu1 %v3797_v0  ;;  %v3583_v42 = vld [vmem:[%s5081_s1 + $0x88] sm:$0xff]   ;;  %v3585_v43 = vld [vmem:[%s5082_s0 + $0xa4] ss:$20 sps:$4 sm:$0xff]   ;;  %v3589_v47 = vld [vmem:[%s5082_s0 + $0xa0] ss:$20 sps:$4 sm:$0xff]  }
  0x10   :  { %v3587_v45 = vld [vmem:[%s5082_s0 + $0x464] ss:$20 sps:$4 sm:$0xff]   ;;  %v3590_v48 = vld [vmem:[%s5082_s0 + $0x460] ss:$20 sps:$4 sm:$0xff]   ;;  %v3597_v53 = vld [vmem:[%s5082_s0 + $0xc8] ss:$20 sps:$4 sm:$0xff]  }
  0x11   :  { %v3584_v46 = vld [vmem:[%s5081_s1 + $0x80] sm:$0xff]   ;;  %v3591_v49 = vld [vmem:[%s5081_s1 + $0xf8] sm:$0xff]   ;;  %v3592_v52 = vld [vmem:[%s5081_s1 + $0xf0] sm:$0xff]  }
  0x12   :  { %1408 = vmatpush1.bf16.msra.mxu0 %v3540_v5  ;;  %3522 = vmatpush1.bf16.msra.mxu1 %v3540_v5  ;;  %v3593_v50 = vld [vmem:[%s5082_s0 + $0xcc] ss:$20 sps:$4 sm:$0xff]   ;;  %v3598_v54 = vld [vmem:[%s5082_s0 + $0x488] ss:$20 sps:$4 sm:$0xff]   ;;  %v3605_v59 = vld [vmem:[%s5082_s0 + $0xf0] ss:$20 sps:$4 sm:$0xff]  }
  0x13   :  { %1409 = vmatprep.subr.bf16.mxu0 %v3797_v0  ;;  %3507 = vmatprep.subr.bf16.mxu1 %v3797_v0  ;;  %v3595_v51 = vld [vmem:[%s5082_s0 + $0x48c] ss:$20 sps:$4 sm:$0xff]   ;;  %v3601_v56 = vld [vmem:[%s5082_s0 + $0xf4] ss:$20 sps:$4 sm:$0xff]   ;;  %v3606_v60 = vld [vmem:[%s5082_s0 + $0x4b0] ss:$20 sps:$4 sm:$0xff]  }
  0x14   :  { %v3599_v55 = vld [vmem:[%s5081_s1 + $0xe8] sm:$0xff]   ;;  %v3600_v58 = vld [vmem:[%s5081_s1 + $0xe0] sm:$0xff]   ;;  %v3608_v61 = vld [vmem:[%s5081_s1 + $0xd8] sm:$0xff]  }
  0x15   :  { %v3603_v57 = vld [vmem:[%s5082_s0 + $0x4b4] ss:$20 sps:$4 sm:$0xff]   ;;  %v3610_v62 = vld [vmem:[%s5082_s0 + $0x11c] ss:$20 sps:$4 sm:$0xff]   ;;  %v3614_v2 = vld [vmem:[%s5082_s0 + $0x118] ss:$20 sps:$4 sm:$0xff]  }
  0x16   :  { %1410 = vmatpush1.bf16.msra.mxu0 %v3541_v7  ;;  %3523 = vmatpush1.bf16.msra.mxu1 %v3541_v7  ;;  %v3612_v63 = vld [vmem:[%s5082_s0 + $0x4dc] ss:$20 sps:$4 sm:$0xff]   ;;  %v3615_v3 = vld [vmem:[%s5082_s0 + $0x4d8] ss:$20 sps:$4 sm:$0xff]   ;;  %v3617_v7 = vld [vmem:[%s5081_s1 + $0xc0] sm:$0xff]  }
  0x17   :  { %1411 = vmatprep.subr.bf16.mxu0 %v3797_v0  ;;  %3508 = vmatprep.subr.bf16.mxu1 %v3797_v0  ;;  %v3609_v1 = vld [vmem:[%s5081_s1 + $0xd0] sm:$0xff]   ;;  %v3616_v4 = vld [vmem:[%s5081_s1 + $0xc8] sm:$0xff]   ;;  %v3618_v5 = vld [vmem:[%s5082_s0 + $0x144] ss:$20 sps:$4 sm:$0xff]  }
  0x18   :  { %v3622_v6 = vld [vmem:[%s5082_s0 + $0xc] ss:$20 sps:$4 sm:$0xff]   ;;  %v3620_v8 = vld [vmem:[%s5082_s0 + $0x8] ss:$20 sps:$4 sm:$0xff]  }
  0x1a   :  { %1412 = vmatpush1.bf16.msra.mxu0 %v3542_v9  ;;  %3524 = vmatpush1.bf16.msra.mxu1 %v3542_v9  ;;  %v3623_v9 = vld [vmem:[%s5082_s0 + $0x140] ss:$20 sps:$4 sm:$0xff]  }
  0x1b   :  { %1413 = vmatprep.subr.bf16.mxu0 %v3797_v0  ;;  %3509 = vmatprep.subr.bf16.mxu1 %v3797_v0 }
  0x1e   :  { %1414 = vmatpush1.bf16.msra.mxu0 %v3543_v10  ;;  %3525 = vmatpush1.bf16.msra.mxu1 %v3543_v10  ;;  %v3624_v10 = vld [vmem:[%s5082_s0 + $0x16c] ss:$20 sps:$4 sm:$0xff]  }
  0x1f   :  { %1415 = vmatprep.subr.bf16.mxu0 %v3797_v0  ;;  %3510 = vmatprep.subr.bf16.mxu1 %v3797_v0 }
  0x22   :  { %1416 = vmatpush2.bf16.msra.mxu0 %v3544_v11  ;;  %3526 = vmatpush2.bf16.msra.mxu1 %v3544_v11  ;;  %v3626_v11 = vld [vmem:[%s5082_s0 + $0x34] ss:$20 sps:$4 sm:$0xff]  }
  0x23   :  { %1417 = vmatprep.subr.bf16.mxu0 %v3797_v0  ;;  %3511 = vmatprep.subr.bf16.mxu1 %v3797_v0 }
  0x26   :  { %1418 = vmatpush2.bf16.msra.mxu0 %v3545_v12  ;;  %3527 = vmatpush2.bf16.msra.mxu1 %v3545_v12  ;;  %v3629_v12 = vld [vmem:[%s5082_s0 + $0x30] ss:$20 sps:$4 sm:$0xff]  }
  0x27   :  { %1419 = vmatprep.subr.bf16.mxu0 %v3797_v0  ;;  %3512 = vmatprep.subr.bf16.mxu1 %v3797_v0 }
  0x2a   :  { %1420 = vmatpush2.bf16.msra.mxu0 %v3546_v13  ;;  %3528 = vmatpush2.bf16.msra.mxu1 %v3546_v13  ;;  %v3630_v13 = vld [vmem:[%s5082_s0 + $0x194] ss:$20 sps:$4 sm:$0xff]  }
  0x2b   :  { %1421 = vmatprep.subr.bf16.mxu0 %v3797_v0  ;;  %3513 = vmatprep.subr.bf16.mxu1 %v3797_v0 }
  0x2e   :  { %1422 = vmatpush2.bf16.msra.mxu0 %v3547_v14  ;;  %3529 = vmatpush2.bf16.msra.mxu1 %v3547_v14  ;;  %v3632_v14 = vld [vmem:[%s5082_s0 + $0x5c] ss:$20 sps:$4 sm:$0xff]  }
  0x2f   :  { %1423 = vmatprep.subr.bf16.mxu0 %v3797_v0  ;;  %3514 = vmatprep.subr.bf16.mxu1 %v3797_v0 }
  0x32   :  { %1424 = vmatpush2.bf16.msra.mxu0 %v3548_v15  ;;  %3530 = vmatpush2.bf16.msra.mxu1 %v3548_v15  ;;  %v3634_v15 = vld [vmem:[%s5082_s0 + $0x190] ss:$20 sps:$4 sm:$0xff]  }
  0x33   :  { %1425 = vmatprep.subr.bf16.mxu0 %v3797_v0  ;;  %3515 = vmatprep.subr.bf16.mxu1 %v3797_v0 }
  0x36   :  { %1426 = vmatpush2.bf16.msra.mxu0 %v3549_v16  ;;  %3531 = vmatpush2.bf16.msra.mxu1 %v3549_v16  ;;  %v3635_v16 = vld [vmem:[%s5082_s0 + $0x58] ss:$20 sps:$4 sm:$0xff]  }
  0x37   :  { %1427 = vmatprep.subr.bf16.mxu0 %v3797_v0  ;;  %3516 = vmatprep.subr.bf16.mxu1 %v3797_v0 }
  0x3a   :  { %1428 = vmatpush2.bf16.msra.mxu0 %v3550_v17  ;;  %3532 = vmatpush2.bf16.msra.mxu1 %v3550_v17  ;;  %v3636_v17 = vld [vmem:[%s5082_s0 + $0x1bc] ss:$20 sps:$4 sm:$0xff]  }
  0x3b   :  { %1429 = vmatprep.subr.bf16.mxu0 %v3797_v0  ;;  %3517 = vmatprep.subr.bf16.mxu1 %v3797_v0 }
  0x3e   :  { %1430 = vmatpush2.bf16.msra.mxu0 %v3551_v18  ;;  %3533 = vmatpush2.bf16.msra.mxu1 %v3551_v18  ;;  %v3638_v18 = vld [vmem:[%s5082_s0 + $0x84] ss:$20 sps:$4 sm:$0xff]  }
  0x3f   :  { %1688 = vmatprep.subr.bf16.mxu1 %v3797_v0  ;;  %3430 = vmatprep.subr.bf16.mxu0 %v3558_v19 }
  0x41   :  { %1432 = vmatmul.mubr.bf16.vlgmr.msra.gmra.mxu0 %v3552_v20  ;;  %1624 = vmatmul.mubr.bf16.vlgmr.msra.gmra.mxu1 %v3555_v21  ;;  %v3641_v20 = vld [vmem:[%s5082_s0 + $0x80] ss:$20 sps:$4 sm:$0xff]   ;;  %v3642_v21 = vld [vmem:[%s5082_s0 + $0x1e4] ss:$20 sps:$4 sm:$0xff]  }
  0x42   :  { %1689 = vmatpush1.bf16.msra.mxu1 %v3559_v22  ;;  %3431 = vmatpush3.bf16.msra.mxu0 %v3558_v19  ;;  %v3640_v19 = vld [vmem:[%s5082_s0 + $0x1b8] ss:$20 sps:$4 sm:$0xff]  }
  0x43   :  { %1690 = vmatprep.subr.bf16.mxu1 %v3797_v0  ;;  %1439 = vmatprep.mubr.bf16.mxu0 %v3561_v23  ;;  %v3644_v22 = vld [vmem:[%s5082_s0 + $0xac] ss:$20 sps:$4 sm:$0xff]  }
  0x44   :  { %1631 = vmatprep.mubr.bf16.mxu1 %v3563_v24  ;;  %3432 = vmatprep.subr.bf16.mxu0 %v3607_v25  ;;  %v3646_v23 = vld [vmem:[%s5082_s0 + $0x1e0] ss:$20 sps:$4 sm:$0xff]   ;;  %v3647_v24 = vld [vmem:[%s5082_s0 + $0xa8] ss:$20 sps:$4 sm:$0xff]  }
  0x46   :  { %1691 = vmatpush1.bf16.msra.mxu1 %v3560_v26  ;;  %3433 = vmatpush3.bf16.msra.mxu0 %v3607_v25  ;;  %v3649_v25 = vld [vmem:[%s5082_s0 + $0x20c] ss:$20 sps:$4 sm:$0xff]   ;;  %v3651_v26 = vld [vmem:[%s5082_s0 + $0xd4] ss:$20 sps:$4 sm:$0xff]  }
  0x47   :  { %1692 = vmatprep.subr.bf16.mxu1 %v3797_v0  ;;  %3434 = vmatprep.subr.bf16.mxu0 %v3648_v30 }
  0x49   :  { %1440 = vmatmul.mubr.bf16.gmra.mxu0 %v3565_v27  ;;  %1632 = vmatmul.mubr.bf16.gmra.mxu1 %v3566_v28  ;;  %v3653_v27 = vld [vmem:[%s5082_s0 + $0x208] ss:$20 sps:$4 sm:$0xff]   ;;  %v3654_v28 = vld [vmem:[%s5082_s0 + $0xd0] ss:$20 sps:$4 sm:$0xff]  }
  0x4a   :  { %1693 = vmatpush1.bf16.msra.mxu1 %v3567_v29  ;;  %1447 = vmatprep.mubr.bf16.mxu0 %v3569_v31  ;;  %v3655_v29 = vld [vmem:[%s5082_s0 + $0x234] ss:$20 sps:$4 sm:$0xff]   ;;  %v3659_v31 = vld [vmem:[%s5082_s0 + $0x230] ss:$20 sps:$4 sm:$0xff]  }
  0x4b   :  { %1694 = vmatprep.subr.bf16.mxu1 %v3797_v0  ;;  %1639 = vmatprep.mubr.bf16.mxu1 %v3571_v32  ;;  %v3660_v32 = vld [vmem:[%s5082_s0 + $0xf8] ss:$20 sps:$4 sm:$0xff]  }
  0x4c   :  { %3435 = vmatpush3.bf16.msra.mxu0 %v3648_v30  ;;  %v3657_v30 = vld [vmem:[%s5082_s0 + $0xfc] ss:$20 sps:$4 sm:$0xff]  }
  0x4d   :  { %3436 = vmatprep.subr.bf16.mxu0 %v3685_v44 }
  0x4e   :  { %1695 = vmatpush1.bf16.msra.mxu1 %v3568_v33  ;;  %v3661_v33 = vld [vmem:[%s5082_s0 + $0x25c] ss:$20 sps:$4 sm:$0xff]  }
  0x4f   :  { %1696 = vmatprep.subr.bf16.mxu1 %v3797_v0 }
  0x50   :  { %3437 = vmatpush3.bf16.msra.mxu0 %v3685_v44  ;;  %v3678_v44 = vld [vmem:[%s5082_s0 + $0x170] ss:$20 sps:$4 sm:$0xff]  }
  0x51   :  { %1448 = vmatmul.mubr.bf16.gmra.mxu0 %v3573_v34  ;;  %1640 = vmatmul.mubr.bf16.gmra.mxu1 %v3574_v35  ;;  %v3663_v34 = vld [vmem:[%s5082_s0 + $0x124] ss:$20 sps:$4 sm:$0xff]  }
  0x52   :  { %1697 = vmatpush1.bf16.msra.mxu1 %v3575_v36  ;;  %1455 = vmatprep.mubr.bf16.mxu0 %v3577_v37  ;;  %v3665_v35 = vld [vmem:[%s5082_s0 + $0x258] ss:$20 sps:$4 sm:$0xff]   ;;  %v3666_v36 = vld [vmem:[%s5082_s0 + $0x120] ss:$20 sps:$4 sm:$0xff]  }
  0x53   :  { %1698 = vmatprep.subr.bf16.mxu1 %v3797_v0  ;;  %1647 = vmatprep.mubr.bf16.mxu1 %v3579_v38  ;;  %v3667_v37 = vld [vmem:[%s5082_s0 + $0x284] ss:$20 sps:$4 sm:$0xff]   ;;  %v3669_v38 = vld [vmem:[%s5082_s0 + $0x14c] ss:$20 sps:$4 sm:$0xff]  }
  0x56   :  { %1699 = vmatpush1.bf16.msra.mxu1 %v3576_v39  ;;  %v3671_v39 = vld [vmem:[%s5082_s0 + $0x280] ss:$20 sps:$4 sm:$0xff]  }
  0x57   :  { %1700 = vmatprep.subr.bf16.mxu1 %v3797_v0 }
  0x59   :  { %1456 = vmatmul.mubr.bf16.gmra.mxu0 %v3581_v40  ;;  %1648 = vmatmul.mubr.bf16.gmra.mxu1 %v3582_v41  ;;  %v3672_v40 = vld [vmem:[%s5082_s0 + $0x148] ss:$20 sps:$4 sm:$0xff]   ;;  %v3673_v41 = vld [vmem:[%s5082_s0 + $0x2ac] ss:$20 sps:$4 sm:$0xff]  }
  0x5a   :  { %1701 = vmatpush1.bf16.msra.mxu1 %v3583_v42  ;;  %1463 = vmatprep.mubr.bf16.mxu0 %v3585_v43  ;;  %v3675_v42 = vld [vmem:[%s5082_s0 + $0x174] ss:$20 sps:$4 sm:$0xff]  }
  0x5b   :  { %1702 = vmatprep.subr.bf16.mxu1 %v3797_v0  ;;  %1655 = vmatprep.mubr.bf16.mxu1 %v3587_v45  ;;  %v3677_v43 = vld [vmem:[%s5082_s0 + $0x2a8] ss:$20 sps:$4 sm:$0xff]  }
  0x5c   :  { %v3679_v45 = vld [vmem:[%s5082_s0 + $0x2d4] ss:$20 sps:$4 sm:$0xff]  }
  0x5e   :  { %1703 = vmatpush1.bf16.msra.mxu1 %v3584_v46  ;;  %v3681_v46 = vld [vmem:[%s5082_s0 + $0x19c] ss:$20 sps:$4 sm:$0xff]  }
  0x5f   :  { %1704 = vmatprep.subr.bf16.mxu1 %v3797_v0 }
  0x61   :  { %1464 = vmatmul.mubr.bf16.gmra.mxu0 %v3589_v47  ;;  %1656 = vmatmul.mubr.bf16.gmra.mxu1 %v3590_v48  ;;  %v3683_v47 = vld [vmem:[%s5082_s0 + $0x2d0] ss:$20 sps:$4 sm:$0xff]   ;;  %v3684_v48 = vld [vmem:[%s5082_s0 + $0x198] ss:$20 sps:$4 sm:$0xff]  }
  0x62   :  { %1705 = vmatpush2.bf16.msra.mxu1 %v3591_v49  ;;  %1471 = vmatprep.mubr.bf16.mxu0 %v3593_v50  ;;  %v3686_v49 = vld [vmem:[%s5082_s0 + $0x2fc] ss:$20 sps:$4 sm:$0xff]   ;;  %v3688_v50 = vld [vmem:[%s5082_s0 + $0x1c4] ss:$20 sps:$4 sm:$0xff]  }
  0x63   :  { %1706 = vmatprep.subr.bf16.mxu1 %v3797_v0  ;;  %1663 = vmatprep.mubr.bf16.mxu1 %v3595_v51  ;;  %v3690_v51 = vld [vmem:[%s5082_s0 + $0x2f8] ss:$20 sps:$4 sm:$0xff]  }
  0x66   :  { %1707 = vmatpush2.bf16.msra.mxu1 %v3592_v52  ;;  %v3691_v52 = vld [vmem:[%s5082_s0 + $0x1c0] ss:$20 sps:$4 sm:$0xff]  }
  0x67   :  { %1708 = vmatprep.subr.bf16.mxu1 %v3797_v0 }
  0x69   :  { %1472 = vmatmul.mubr.bf16.gmra.mxu0 %v3597_v53  ;;  %1664 = vmatmul.mubr.bf16.gmra.mxu1 %v3598_v54  ;;  %v3692_v53 = vld [vmem:[%s5082_s0 + $0x324] ss:$20 sps:$4 sm:$0xff]   ;;  %v3694_v54 = vld [vmem:[%s5082_s0 + $0x1ec] ss:$20 sps:$4 sm:$0xff]  }
  0x6a   :  { %1709 = vmatpush2.bf16.msra.mxu1 %v3599_v55  ;;  %1479 = vmatprep.mubr.bf16.mxu0 %v3601_v56  ;;  %v3696_v55 = vld [vmem:[%s5082_s0 + $0x320] ss:$20 sps:$4 sm:$0xff]   ;;  %v3697_v56 = vld [vmem:[%s5082_s0 + $0x1e8] ss:$20 sps:$4 sm:$0xff]  }
  0x6b   :  { %1710 = vmatprep.subr.bf16.mxu1 %v3797_v0  ;;  %1671 = vmatprep.mubr.bf16.mxu1 %v3603_v57  ;;  %v3698_v57 = vld [vmem:[%s5082_s0 + $0x34c] ss:$20 sps:$4 sm:$0xff]  }
  0x6e   :  { %1711 = vmatpush2.bf16.msra.mxu1 %v3600_v58  ;;  %v3700_v58 = vld [vmem:[%s5082_s0 + $0x214] ss:$20 sps:$4 sm:$0xff]  }
  0x6f   :  { %1712 = vmatprep.subr.bf16.mxu1 %v3797_v0 }
  0x71   :  { %1480 = vmatmul.mubr.bf16.gmra.mxu0 %v3605_v59  ;;  %1672 = vmatmul.mubr.bf16.gmra.mxu1 %v3606_v60  ;;  %v3702_v59 = vld [vmem:[%s5082_s0 + $0x348] ss:$20 sps:$4 sm:$0xff]   ;;  %v3703_v60 = vld [vmem:[%s5082_s0 + $0x210] ss:$20 sps:$4 sm:$0xff]  }
  0x72   :  { %1713 = vmatpush2.bf16.msra.mxu1 %v3608_v61  ;;  %1487 = vmatprep.mubr.bf16.mxu0 %v3610_v62  ;;  %v3704_v61 = vld [vmem:[%s5082_s0 + $0x374] ss:$20 sps:$4 sm:$0xff]   ;;  %v3706_v62 = vld [vmem:[%s5082_s0 + $0x23c] ss:$20 sps:$4 sm:$0xff]  }
  0x73   :  { %1714 = vmatprep.subr.bf16.mxu1 %v3797_v0  ;;  %1679 = vmatprep.mubr.bf16.mxu1 %v3612_v63  ;;  %v3708_v63 = vld [vmem:[%s5082_s0 + $0x370] ss:$20 sps:$4 sm:$0xff]  }
  0x76   :  { %1715 = vmatpush2.bf16.msra.mxu1 %v3609_v1  ;;  %v3709_v1 = vld [vmem:[%s5082_s0 + $0x238] ss:$20 sps:$4 sm:$0xff]  }
  0x77   :  { %1716 = vmatprep.subr.bf16.mxu1 %v3797_v0 }
  0x79   :  { %1488 = vmatmul.mubr.bf16.gmra.mxu0 %v3614_v2  ;;  %1680 = vmatmul.mubr.bf16.gmra.mxu1 %v3615_v3  ;;  %v3710_v2 = vld [vmem:[%s5082_s0 + $0x39c] ss:$20 sps:$4 sm:$0xff]   ;;  %v3712_v3 = vld [vmem:[%s5082_s0 + $0x264] ss:$20 sps:$4 sm:$0xff]  }
  0x7a   :  { %1717 = vmatpush2.bf16.msra.mxu1 %v3616_v4  ;;  %1495 = vmatprep.mubr.bf16.mxu0 %v3618_v5  ;;  %v3714_v4 = vld [vmem:[%s5082_s0 + $0x398] ss:$20 sps:$4 sm:$0xff]   ;;  %v3715_v5 = vld [vmem:[%s5082_s0 + $0x260] ss:$20 sps:$4 sm:$0xff]  }
  0x7b   :  { %1718 = vmatprep.subr.bf16.mxu1 %v3797_v0  ;;  %1720 = vmatprep.mubr.bf16.mxu1 %v3622_v6  ;;  %v3628_v0 = vld [vmem:[%s5082_s0 + $0x168] ss:$20 sps:$4 sm:$0xff]   ;;  %v3716_v6 = vld [vmem:[%s5082_s0 + $0x28c] ss:$20 sps:$4 sm:$0xff]  }
  0x7e   :  { %1719 = vmatpush2.bf16.msra.mxu1 %v3617_v7  ;;  %v3718_v7 = vld [vmem:[%s5082_s0 + $0x10] ss:$20 sps:$4 sm:$0xff]  }
  0x81   :  { %1496 = vmatmul.mubr.bf16.gmra.mxu0 %v3623_v9  ;;  %1721 = vmatmul.mubr.bf16.vlgmr.msra.gmra.mxu1 %v3620_v8  ;;  %v3719_v8 = vld [vmem:[%s5082_s0 + $0x288] ss:$20 sps:$4 sm:$0xff]   ;;  %v3720_v9 = vld [vmem:[%s5082_s0 + $0x38] ss:$20 sps:$4 sm:$0xff]  }
  0x82   :  { %1503 = vmatprep.mubr.bf16.mxu0 %v3624_v10  ;;  %1728 = vmatprep.mubr.bf16.mxu1 %v3626_v11  ;;  %v3721_v10 = vld [vmem:[%s5082_s0 + $0x2b4] ss:$20 sps:$4 sm:$0xff]  }
  0x83   :  { %v3723_v11 = vld [vmem:[%s5082_s0 + $0x60] ss:$20 sps:$4 sm:$0xff]  }
  0x89   :  { %1504 = vmatmul.mubr.bf16.gmra.mxu0 %v3628_v0  ;;  %1729 = vmatmul.mubr.bf16.gmra.mxu1 %v3629_v12 }
  0x8a   :  { %1511 = vmatprep.mubr.bf16.mxu0 %v3630_v13  ;;  %1736 = vmatprep.mubr.bf16.mxu1 %v3632_v14 }
  0x91   :  { %1512 = vmatmul.mubr.bf16.gmra.mxu0 %v3634_v15  ;;  %1737 = vmatmul.mubr.bf16.gmra.mxu1 %v3635_v16 }
  0x92   :  { %1519 = vmatprep.mubr.bf16.mxu0 %v3636_v17  ;;  %1744 = vmatprep.mubr.bf16.mxu1 %v3638_v18  ;;  %v3724_v17 = vld [vmem:[%s5082_s0 + $0x2b0] ss:$20 sps:$4 sm:$0xff]   ;;  %v3725_v18 = vld [vmem:[%s5082_s0 + $0x88] ss:$20 sps:$4 sm:$0xff]  }
  0x99   :  { %1520 = vmatmul.mubr.bf16.gmra.mxu0 %v3640_v19  ;;  %1745 = vmatmul.mubr.bf16.gmra.mxu1 %v3641_v20  ;;  %v3726_v19 = vld [vmem:[%s5082_s0 + $0x2dc] ss:$20 sps:$4 sm:$0xff]  }
  0x9a   :  { %1527 = vmatprep.mubr.bf16.mxu0 %v3642_v21  ;;  %1752 = vmatprep.mubr.bf16.mxu1 %v3644_v22  ;;  %v3728_v20 = vld [vmem:[%s5082_s0 + $0xb0] ss:$20 sps:$4 sm:$0xff]  }
  0xa1   :  { %1528 = vmatmul.mubr.bf16.gmra.mxu0 %v3646_v23  ;;  %1753 = vmatmul.mubr.bf16.gmra.mxu1 %v3647_v24 }
  0xa2   :  { %1535 = vmatprep.mubr.bf16.mxu0 %v3649_v25  ;;  %1760 = vmatprep.mubr.bf16.mxu1 %v3651_v26 }
  0xa9   :  { %1536 = vmatmul.mubr.bf16.gmra.mxu0 %v3653_v27  ;;  %1761 = vmatmul.mubr.bf16.gmra.mxu1 %v3654_v28 }
  0xaa   :  { %1543 = vmatprep.mubr.bf16.mxu0 %v3655_v29  ;;  %1768 = vmatprep.mubr.bf16.mxu1 %v3657_v30  ;;  %v3729_v29 = vld [vmem:[%s5082_s0 + $0x2d8] ss:$20 sps:$4 sm:$0xff]  }
  0xab   :  { %v3730_v30 = vld [vmem:[%s5082_s0 + $0xd8] ss:$20 sps:$4 sm:$0xff]  }
  0xb1   :  { %1544 = vmatmul.mubr.bf16.gmra.mxu0 %v3659_v31  ;;  %1769 = vmatmul.mubr.bf16.gmra.mxu1 %v3660_v32  ;;  %v3731_v31 = vld [vmem:[%s5082_s0 + $0x304] ss:$20 sps:$4 sm:$0xff]   ;;  %v3733_v32 = vld [vmem:[%s5082_s0 + $0x100] ss:$20 sps:$4 sm:$0xff]  }
  0xb2   :  { %1551 = vmatprep.mubr.bf16.mxu0 %v3661_v33  ;;  %1776 = vmatprep.mubr.bf16.mxu1 %v3663_v34 }
  0xb9   :  { %1552 = vmatmul.mubr.bf16.gmra.mxu0 %v3665_v35  ;;  %1777 = vmatmul.mubr.bf16.gmra.mxu1 %v3666_v36 }
  0xba   :  { %1559 = vmatprep.mubr.bf16.mxu0 %v3667_v37  ;;  %1784 = vmatprep.mubr.bf16.mxu1 %v3669_v38 }
  0xc1   :  { %1560 = vmatmul.mubr.bf16.gmra.mxu0 %v3671_v39  ;;  %1785 = vmatmul.mubr.bf16.gmra.mxu1 %v3672_v40 }
  0xc2   :  { %1567 = vmatprep.mubr.bf16.mxu0 %v3673_v41  ;;  %1792 = vmatprep.mubr.bf16.mxu1 %v3675_v42  ;;  %v3734_v41 = vld [vmem:[%s5082_s0 + $0x300] ss:$20 sps:$4 sm:$0xff]   ;;  %v3735_v42 = vld [vmem:[%s5082_s0 + $0x128] ss:$20 sps:$4 sm:$0xff]  }
  0xc9   :  { %1568 = vmatmul.mubr.bf16.gmra.mxu0 %v3677_v43  ;;  %1793 = vmatmul.mubr.bf16.gmra.mxu1 %v3678_v44  ;;  %v3738_v43 = vld [vmem:[%s5082_s0 + $0x32c] ss:$20 sps:$4 sm:$0xff]   ;;  %v3739_v44 = vld [vmem:[%s5082_s0 + $0x150] ss:$20 sps:$4 sm:$0xff]  }
  0xca   :  { %1575 = vmatprep.mubr.bf16.mxu0 %v3679_v45  ;;  %1800 = vmatprep.mubr.bf16.mxu1 %v3681_v46 }
  0xd1   :  { %1576 = vmatmul.mubr.bf16.gmra.mxu0 %v3683_v47  ;;  %1801 = vmatmul.mubr.bf16.gmra.mxu1 %v3684_v48 }
  0xd2   :  { %1583 = vmatprep.mubr.bf16.mxu0 %v3686_v49  ;;  %1808 = vmatprep.mubr.bf16.mxu1 %v3688_v50 }
  0xd9   :  { %1584 = vmatmul.mubr.bf16.gmra.mxu0 %v3690_v51  ;;  %1809 = vmatmul.mubr.bf16.gmra.mxu1 %v3691_v52 }
  0xda   :  { %1591 = vmatprep.mubr.bf16.mxu0 %v3692_v53  ;;  %1816 = vmatprep.mubr.bf16.mxu1 %v3694_v54  ;;  %v3736_v53 = vld [vmem:[%s5082_s0 + $0x328] ss:$20 sps:$4 sm:$0xff]   ;;  %v3740_v54 = vld [vmem:[%s5082_s0 + $0x178] ss:$20 sps:$4 sm:$0xff]  }
  0xe1   :  { %1592 = vmatmul.mubr.bf16.gmra.mxu0 %v3696_v55  ;;  %1817 = vmatmul.mubr.bf16.gmra.mxu1 %v3697_v56  ;;  %v3743_v55 = vld [vmem:[%s5082_s0 + $0x354] ss:$20 sps:$4 sm:$0xff]  }
  0xe2   :  { %1599 = vmatprep.mubr.bf16.mxu0 %v3698_v57  ;;  %1824 = vmatprep.mubr.bf16.mxu1 %v3700_v58  ;;  %v3744_v56 = vld [vmem:[%s5082_s0 + $0x1a0] ss:$20 sps:$4 sm:$0xff]  }
  0xe9   :  { %1600 = vmatmul.mubr.bf16.gmra.mxu0 %v3702_v59  ;;  %1825 = vmatmul.mubr.bf16.gmra.mxu1 %v3703_v60 }
  0xea   :  { %1607 = vmatprep.mubr.bf16.mxu0 %v3704_v61  ;;  %1832 = vmatprep.mubr.bf16.mxu1 %v3706_v62 }
  0xf1   :  { %1608 = vmatmul.mubr.bf16.gmra.mxu0 %v3708_v63  ;;  %1833 = vmatmul.mubr.bf16.gmra.mxu1 %v3709_v1 }
  0xf2   :  { %1615 = vmatprep.mubr.bf16.mxu0 %v3710_v2  ;;  %1840 = vmatprep.mubr.bf16.mxu1 %v3712_v3  ;;  %v3741_v2 = vld [vmem:[%s5082_s0 + $0x350] ss:$20 sps:$4 sm:$0xff]   ;;  %v3745_v3 = vld [vmem:[%s5082_s0 + $0x1c8] ss:$20 sps:$4 sm:$0xff]  }
  0xf9   :  { %1616 = vmatmul.mubr.bf16.gmra.mxu0 %v3714_v4  ;;  %1841 = vmatmul.mubr.bf16.gmra.mxu1 %v3715_v5  ;;  %v3748_v4 = vld [vmem:[%s5082_s0 + $0x37c] ss:$20 sps:$4 sm:$0xff]  }
  0xfa   :  { %1848 = vmatprep.mubr.bf16.mxu1 %v3716_v6  ;;  %3438 = vmatprep.mubr.msk.bf16.mxu0 %vm1302_vm0, %v3718_v7  ;;  %v3749_v5 = vld [vmem:[%s5082_s0 + $0x1f0] ss:$20 sps:$4 sm:$0xff]  }
 0x101   :  { %v4282_v0 = vpop.f32.mrf.mxu0  ;;  %v4284_v12 = vpop.f32.mrf.mxu1  ;;  %1849 = vmatmul.mubr.bf16.gmra.mxu1 %v3719_v8  ;;  %3439 = vmatmul.mubr.msk.bf16.vlgmr.msra.gmra.mxu0 %vm1302_vm0, %v3720_v9 }
 0x102   :  { %5085 = vst [vmem:[#allocation2_spill] sm:$0xff] %v4284_v12  ;;  %1856 = vmatprep.mubr.bf16.mxu1 %v3721_v10  ;;  %3442 = vmatprep.mubr.msk.bf16.mxu0 %vm1302_vm0, %v3723_v11 }
 0x103   :  { %v1435_v13 = vpop.f32.mrf.mxu0  ;;  %v1627_v14 = vpop.f32.mrf.mxu1 }
 0x105   :  { %v4288_v15 = vpop.f32.mrf.mxu0  ;;  %v4290_v16 = vpop.f32.mrf.mxu1 }
 0x106   :  { %5086 = vst [vmem:[#allocation3_spill] sm:$0xff] %v4290_v16 }
 0x107   :  { %v1438_v21 = vpop.f32.mrf.mxu0  ;;  %v1630_v22 = vpop.f32.mrf.mxu1 }
 0x109   :  { %v4304_v23 = vpop.f32.mrf.mxu0  ;;  %v4306_v24 = vpop.f32.mrf.mxu1  ;;  %1857 = vmatmul.mubr.bf16.gmra.mxu1 %v3724_v17  ;;  %3443 = vmatmul.mubr.msk.bf16.gmra.mxu0 %vm1302_vm0, %v3725_v18  ;;  %v3746_v17 = vld [vmem:[%s5082_s0 + $0x378] ss:$20 sps:$4 sm:$0xff]  }
 0x10a   :  { %5087 = vst [vmem:[#allocation4_spill] sm:$0xff] %v4306_v24  ;;  %1864 = vmatprep.mubr.bf16.mxu1 %v3726_v19  ;;  %3446 = vmatprep.mubr.msk.bf16.mxu0 %vm1302_vm0, %v3728_v20  ;;  %v3750_v18 = vld [vmem:[%s5082_s0 + $0x218] ss:$20 sps:$4 sm:$0xff]   ;;  %v3754_v20 = vld [vmem:[%s5082_s0 + $0x240] ss:$20 sps:$4 sm:$0xff]  }
 0x10b   :  { %v1443_v25 = vpop.f32.mrf.mxu0  ;;  %v1635_v26 = vpop.f32.mrf.mxu1  ;;  %v3753_v19 = vld [vmem:[%s5082_s0 + $0x3a4] ss:$20 sps:$4 sm:$0xff]  }
 0x10d   :  { %v4310_v27 = vpop.f32.mrf.mxu0  ;;  %v4312_v28 = vpop.f32.mrf.mxu1 }
 0x10e   :  { %5088 = vst [vmem:[#allocation5_spill] sm:$0xff] %v4312_v28 }
 0x10f   :  { %v1446_v33 = vpop.f32.mrf.mxu0  ;;  %v1638_v34 = vpop.f32.mrf.mxu1 }
 0x110   :  { %v3751_v33 = vld [vmem:[%s5082_s0 + $0x3a0] ss:$20 sps:$4 sm:$0xff]   ;;  %v3755_v34 = vld [vmem:[%s5082_s0 + $0x268] ss:$20 sps:$4 sm:$0xff]  }
 0x111   :  { %v4326_v35 = vpop.f32.mrf.mxu0  ;;  %v4328_v36 = vpop.f32.mrf.mxu1  ;;  %1865 = vmatmul.mubr.bf16.gmra.mxu1 %v3729_v29  ;;  %3447 = vmatmul.mubr.msk.bf16.gmra.mxu0 %vm1302_vm0, %v3730_v30 }
 0x112   :  { %5089 = vst [vmem:[#allocation6_spill] sm:$0xff] %v4328_v36  ;;  %1872 = vmatprep.mubr.bf16.mxu1 %v3731_v31  ;;  %3450 = vmatprep.mubr.msk.bf16.mxu0 %vm1302_vm0, %v3733_v32 }
 0x113   :  { %v1451_v37 = vpop.f32.mrf.mxu0  ;;  %v1643_v38 = vpop.f32.mrf.mxu1 }
 0x114   :  { %v3758_v37 = vld [vmem:[%s5082_s0 + $0x3cc] ss:$20 sps:$4 sm:$0xff]   ;;  %v3759_v38 = vld [vmem:[%s5082_s0 + $0x290] ss:$20 sps:$4 sm:$0xff]  }
 0x115   :  { %v4332_v39 = vpop.f32.mrf.mxu0  ;;  %v4334_v40 = vpop.f32.mrf.mxu1 }
 0x116   :  { %5090 = vst [vmem:[#allocation7_spill] sm:$0xff] %v4334_v40 }
 0x117   :  { %v1454_v45 = vpop.f32.mrf.mxu0  ;;  %v1646_v46 = vpop.f32.mrf.mxu1 }
 0x119   :  { %v4348_v47 = vpop.f32.mrf.mxu0  ;;  %v4350_v48 = vpop.f32.mrf.mxu1  ;;  %1873 = vmatmul.mubr.bf16.gmra.mxu1 %v3734_v41  ;;  %3451 = vmatmul.mubr.msk.bf16.gmra.mxu0 %vm1302_vm0, %v3735_v42 }
 0x11a   :  { %5091 = vst [vmem:[#allocation8_spill] sm:$0xff] %v4350_v48  ;;  %1880 = vmatprep.mubr.bf16.mxu1 %v3738_v43  ;;  %3454 = vmatprep.mubr.msk.bf16.mxu0 %vm1302_vm0, %v3739_v44 }
 0x11b   :  { %v1459_v49 = vpop.f32.mrf.mxu0  ;;  %v1651_v50 = vpop.f32.mrf.mxu1 }
 0x11c   :  { %v4445_v49 = vld [vmem:[%s5083_s2] ss:$0 sm:$0xff] }
 0x11d   :  { %v4354_v51 = vpop.f32.mrf.mxu0  ;;  %v4356_v52 = vpop.f32.mrf.mxu1 }
 0x11e   :  { %5092 = vst [vmem:[#allocation9_spill] sm:$0xff] %v4356_v52 }
 0x11f   :  { %v1462_v57 = vpop.f32.mrf.mxu0  ;;  %v1654_v58 = vpop.f32.mrf.mxu1 }
 0x120   :  { %v3764_v57 = vld [vmem:[%s5082_s0 + $0x2e0] ss:$20 sps:$4 sm:$0xff]  }
 0x121   :  { %v4370_v59 = vpop.f32.mrf.mxu0  ;;  %v4372_v60 = vpop.f32.mrf.mxu1  ;;  %1881 = vmatmul.mubr.bf16.gmra.mxu1 %v3736_v53  ;;  %3455 = vmatmul.mubr.msk.bf16.gmra.mxu0 %vm1302_vm0, %v3740_v54  ;;  %v3756_v54 = vld [vmem:[%s5082_s0 + $0x3c8] ss:$20 sps:$4 sm:$0xff]  }
 0x122   :  { %5093 = vst [vmem:[#allocation10_spill] sm:$0xff] %v4372_v60  ;;  %1888 = vmatprep.mubr.bf16.mxu1 %v3743_v55  ;;  %3458 = vmatprep.mubr.msk.bf16.mxu0 %vm1302_vm0, %v3744_v56  ;;  %v3760_v55 = vld [vmem:[%s5082_s0 + $0x2b8] ss:$20 sps:$4 sm:$0xff]   ;;  %v3763_v56 = vld [vmem:[%s5082_s0 + $0x3f4] ss:$20 sps:$4 sm:$0xff]  }
 0x123   :  { %v1467_v61 = vpop.f32.mrf.mxu0  ;;  %v1659_v62 = vpop.f32.mrf.mxu1 }
 0x124   :  { %v1434_v62 = vadd.f32 %v4445_v49, %v4282_v0  ;;  %v3761_v0 = vld [vmem:[%s5082_s0 + $0x3f0] ss:$20 sps:$4 sm:$0xff]  }
 0x125   :  { %v4376_v63 = vpop.f32.mrf.mxu0  ;;  %v4378_v1 = vpop.f32.mrf.mxu1 }
 0x126   :  { %5094 = vst [vmem:[#allocation11_spill] sm:$0xff] %v4378_v1 }
 0x127   :  { %v1470_v6 = vpop.f32.mrf.mxu0  ;;  %v1662_v7 = vpop.f32.mrf.mxu1 }
 0x128   :  { %v1437_v7 = vadd.f32 %v4445_v49, %v4288_v15  ;;  %v3769_v15 = vld [vmem:[%s5082_s0 + $0x330] ss:$20 sps:$4 sm:$0xff]  }
 0x129   :  { %v4392_v8 = vpop.f32.mrf.mxu0  ;;  %v4394_v9 = vpop.f32.mrf.mxu1  ;;  %1889 = vmatmul.mubr.bf16.gmra.mxu1 %v3741_v2  ;;  %3459 = vmatmul.mubr.msk.bf16.gmra.mxu0 %vm1302_vm0, %v3745_v3 }
 0x12a   :  { %5095 = vst [vmem:[#allocation12_spill] sm:$0xff] %v4394_v9  ;;  %1896 = vmatprep.mubr.bf16.mxu1 %v3748_v4  ;;  %3462 = vmatprep.mubr.msk.bf16.mxu0 %vm1302_vm0, %v3749_v5 }
 0x12b   :  { %v1475_v10 = vpop.f32.mrf.mxu0  ;;  %v1667_v11 = vpop.f32.mrf.mxu1 }
 0x12d   :  { %v4398_v13 = vpop.f32.mrf.mxu0  ;;  %v4400_v14 = vpop.f32.mrf.mxu1 }
 0x12e   :  { %5096 = vst [vmem:[#allocation13_spill] sm:$0xff] %v4400_v14 }
 0x12f   :  { %v1478_v21 = vpop.f32.mrf.mxu0  ;;  %v1670_v22 = vpop.f32.mrf.mxu1 }
 0x130   :  { %v1442_v22 = vadd.f32 %v4445_v49, %v4304_v23  ;;  %v3766_v23 = vld [vmem:[%s5082_s0 + $0x418] ss:$20 sps:$4 sm:$0xff]  }
 0x131   :  { %v4414_v25 = vpop.f32.mrf.mxu0  ;;  %v4416_v26 = vpop.f32.mrf.mxu1  ;;  %1897 = vmatmul.mubr.bf16.gmra.mxu1 %v3746_v17  ;;  %3463 = vmatmul.mubr.msk.bf16.gmra.mxu0 %vm1302_vm0, %v3750_v18  ;;  %v3765_v17 = vld [vmem:[%s5082_s0 + $0x308] ss:$20 sps:$4 sm:$0xff]  }
 0x132   :  { %5097 = vst [vmem:[#allocation14_spill] sm:$0xff] %v4416_v26  ;;  %1904 = vmatprep.mubr.bf16.mxu1 %v3753_v19  ;;  %3466 = vmatprep.mubr.msk.bf16.mxu0 %vm1302_vm0, %v3754_v20  ;;  %v3768_v19 = vld [vmem:[%s5082_s0 + $0x41c] ss:$20 sps:$4 sm:$0xff]  }
 0x133   :  { %v1483_v29 = vpop.f32.mrf.mxu0  ;;  %v1675_v30 = vpop.f32.mrf.mxu1 }
 0x135   :  { %v4420_v31 = vpop.f32.mrf.mxu0  ;;  %v4422_v32 = vpop.f32.mrf.mxu1 }
 0x136   :  { %5098 = vst [vmem:[#allocation15_spill] sm:$0xff] %v4422_v32 }
 0x137   :  { %v1486_v41 = vpop.f32.mrf.mxu0  ;;  %v1678_v42 = vpop.f32.mrf.mxu1 }
 0x139   :  { %v4436_v43 = vpop.f32.mrf.mxu0  ;;  %v4438_v44 = vpop.f32.mrf.mxu1  ;;  %1905 = vmatmul.mubr.bf16.gmra.mxu1 %v3751_v33  ;;  %3467 = vmatmul.mubr.msk.bf16.gmra.mxu0 %vm1302_vm0, %v3755_v34 }
 0x13a   :  { %5099 = vst [vmem:[#allocation16_spill] sm:$0xff] %v4438_v44  ;;  %1912 = vmatprep.mubr.bf16.mxu1 %v3758_v37  ;;  %3470 = vmatprep.mubr.msk.bf16.mxu0 %vm1302_vm0, %v3759_v38  ;;  %v1445_v38 = vadd.f32 %v4445_v49, %v4310_v27  ;;  %v3774_v27 = vld [vmem:[%s5082_s0 + $0x380] ss:$20 sps:$4 sm:$0xff]  }
 0x13b   :  { %v1491_v45 = vpop.f32.mrf.mxu0  ;;  %v1683_v46 = vpop.f32.mrf.mxu1 }
 0x13c   :  { %v3770_v45 = vld [vmem:[%s5082_s0 + $0x358] ss:$20 sps:$4 sm:$0xff]  }
 0x13d   :  { %v4447_v50 = vpop.f32.mrf.mxu0  ;;  %v4449_v53 = vpop.f32.mrf.mxu1 }
 0x13e   :  { %5100 = vst [vmem:[#allocation17_spill] sm:$0xff] %v4449_v53 }
 0x13f   :  { %v1494_v58 = vpop.f32.mrf.mxu0  ;;  %v1686_v61 = vpop.f32.mrf.mxu1 }
 0x141   :  { %v4465_v2 = vpop.f32.mrf.mxu0  ;;  %v1722_v3 = vpop.f32.mrf.mxu1  ;;  %1913 = vmatmul.mubr.bf16.gmra.mxu1 %v3756_v54  ;;  %3471 = vmatmul.mubr.msk.bf16.gmra.mxu0 %vm1302_vm0, %v3760_v55  ;;  %v3773_v54 = vld [vmem:[%s5082_s0 + $0x444] ss:$20 sps:$4 sm:$0xff]  }
 0x142   :  { %v4468_v4 = vadd.f32 %v1722_v3, %v1434_v62  ;;  %1920 = vmatprep.mubr.bf16.mxu1 %v3763_v56  ;;  %3474 = vmatprep.mubr.msk.bf16.mxu0 %vm1302_vm0, %v3764_v57  ;;  %v1450_v57 = vadd.f32 %v4445_v49, %v4326_v35  ;;  %v3771_v35 = vld [vmem:[%s5082_s0 + $0x440] ss:$20 sps:$4 sm:$0xff]  }
 0x143   :  { %v1499_v5 = vpop.f32.mrf.mxu0  ;;  %v1724_v6 = vpop.f32.mrf.mxu1 }
 0x144   :  { %v1453_v6 = vadd.f32 %v4445_v49, %v4332_v39  ;;  %v3779_v39 = vld [vmem:[%s5082_s0 + $0x3d0] ss:$20 sps:$4 sm:$0xff]  }
 0x145   :  { %v4473_v10 = vpop.f32.mrf.mxu0  ;;  %v1725_v11 = vpop.f32.mrf.mxu1 }
 0x146   :  { %v4481_v18 = vadd.f32 %v1725_v11, %v1437_v7 }
 0x147   :  { %v1502_v20 = vpop.f32.mrf.mxu0  ;;  %v1727_v21 = vpop.f32.mrf.mxu1 }
 0x148   :  { %v1458_v21 = vadd.f32 %v4445_v49, %v4348_v47  ;;  %v3776_v47 = vld [vmem:[%s5082_s0 + $0x468] ss:$20 sps:$4 sm:$0xff]  }
 0x149   :  { %v4491_v29 = vpop.f32.mrf.mxu0  ;;  %v1730_v30 = vpop.f32.mrf.mxu1  ;;  %1921 = vmatmul.mubr.bf16.gmra.mxu1 %v3761_v0  ;;  %3475 = vmatmul.mubr.msk.bf16.gmra.mxu0 %vm1302_vm0, %v3765_v17  ;;  %v3775_v0 = vld [vmem:[%s5082_s0 + $0x3a8] ss:$20 sps:$4 sm:$0xff]  }
 0x14a   :  { %v4494_v33 = vadd.f32 %v1730_v30, %v1442_v22  ;;  %1928 = vmatprep.mubr.bf16.mxu1 %v3768_v19  ;;  %3478 = vmatprep.mubr.msk.bf16.mxu0 %vm1302_vm0, %v3769_v15  ;;  %v3778_v19 = vld [vmem:[%s5082_s0 + $0x46c] ss:$20 sps:$4 sm:$0xff]  }
 0x14b   :  { %v1507_v34 = vpop.f32.mrf.mxu0  ;;  %v1732_v37 = vpop.f32.mrf.mxu1 }
 0x14d   :  { %v4499_v41 = vpop.f32.mrf.mxu0  ;;  %v1733_v42 = vpop.f32.mrf.mxu1 }
 0x14e   :  { %v4507_v46 = vadd.f32 %v1733_v42, %v1445_v38  ;;  %v1461_v42 = vadd.f32 %v4445_v49, %v4354_v51  ;;  %v3784_v51 = vld [vmem:[%s5082_s0 + $0x420] ss:$20 sps:$4 sm:$0xff]  }
 0x14f   :  { %v1510_v55 = vpop.f32.mrf.mxu0  ;;  %v1735_v56 = vpop.f32.mrf.mxu1 }
 0x150   :  { %v3783_v55 = vld [vmem:[%s5082_s0 + $0x494] ss:$20 sps:$4 sm:$0xff]  }
 0x151   :  { %v4517_v58 = vpop.f32.mrf.mxu0  ;;  %v1738_v61 = vpop.f32.mrf.mxu1  ;;  %1929 = vmatmul.mubr.bf16.gmra.mxu1 %v3766_v23  ;;  %3479 = vmatmul.mubr.msk.bf16.gmra.mxu0 %vm1302_vm0, %v3770_v45 }
 0x152   :  { %v4520_v62 = vadd.f32 %v1738_v61, %v1450_v57  ;;  %1936 = vmatprep.mubr.bf16.mxu1 %v3773_v54  ;;  %3482 = vmatprep.mubr.msk.bf16.mxu0 %vm1302_vm0, %v3774_v27  ;;  %v3780_v54 = vld [vmem:[%s5082_s0 + $0x3f8] ss:$20 sps:$4 sm:$0xff]   ;;  %v1466_v61 = vadd.f32 %v4445_v49, %v4370_v59  ;;  %v3781_v59 = vld [vmem:[%s5082_s0 + $0x490] ss:$20 sps:$4 sm:$0xff]  }
 0x153   :  { %v1515_v3 = vpop.f32.mrf.mxu0  ;;  %v1740_v5 = vpop.f32.mrf.mxu1 }
 0x155   :  { %v4525_v7 = vpop.f32.mrf.mxu0  ;;  %v1741_v11 = vpop.f32.mrf.mxu1 }
 0x156   :  { %v4533_v17 = vadd.f32 %v1741_v11, %v1453_v6 }
 0x157   :  { %v1518_v15 = vpop.f32.mrf.mxu0  ;;  %v1743_v20 = vpop.f32.mrf.mxu1 }
 0x158   :  { %v3785_v15 = vld [vmem:[%s5082_s0 + $0x448] ss:$20 sps:$4 sm:$0xff]  }
 0x159   :  { %v4543_v22 = vpop.f32.mrf.mxu0  ;;  %v1746_v30 = vpop.f32.mrf.mxu1  ;;  %1937 = vmatmul.mubr.bf16.gmra.mxu1 %v3771_v35  ;;  %3483 = vmatmul.mubr.msk.bf16.gmra.mxu0 %vm1302_vm0, %v3775_v0  ;;  %v1469_v0 = vadd.f32 %v4445_v49, %v4376_v63  ;;  %v3789_v63 = vld [vmem:[%s5082_s0 + $0x470] ss:$20 sps:$4 sm:$0xff]  }
 0x15a   :  { %v4546_v34 = vadd.f32 %v1746_v30, %v1458_v21  ;;  %1944 = vmatprep.mubr.bf16.mxu1 %v3778_v19  ;;  %3486 = vmatprep.mubr.msk.bf16.mxu0 %vm1302_vm0, %v3779_v39  ;;  %v3788_v21 = vld [vmem:[%s5082_s0 + $0x4bc] ss:$20 sps:$4 sm:$0xff]  }
 0x15b   :  { %v1523_v37 = vpop.f32.mrf.mxu0  ;;  %v1748_v38 = vpop.f32.mrf.mxu1 }
 0x15c   :  { %v1474_v38 = vadd.f32 %v4445_v49, %v4392_v8  ;;  %v3786_v8 = vld [vmem:[%s5082_s0 + $0x4b8] ss:$20 sps:$4 sm:$0xff]  }
 0x15d   :  { %v4551_v23 = vpop.f32.mrf.mxu0  ;;  %v1749_v45 = vpop.f32.mrf.mxu1 }
 0x15e   :  { %v4559_v27 = vadd.f32 %v1749_v45, %v1461_v42 }
 0x15f   :  { %v1526_v56 = vpop.f32.mrf.mxu0  ;;  %v1751_v57 = vpop.f32.mrf.mxu1 }
 0x161   :  { %v4569_v3 = vpop.f32.mrf.mxu0  ;;  %v1754_v5 = vpop.f32.mrf.mxu1  ;;  %1945 = vmatmul.mubr.bf16.gmra.mxu1 %v3776_v47  ;;  %3487 = vmatmul.mubr.msk.bf16.gmra.mxu0 %vm1302_vm0, %v3780_v54 }
 0x162   :  { %v4572_v6 = vadd.f32 %v1754_v5, %v1466_v61  ;;  %1952 = vmatprep.mubr.bf16.mxu1 %v3783_v55  ;;  %3490 = vmatprep.mubr.msk.bf16.mxu0 %vm1302_vm0, %v3784_v51  ;;  %v1477_v51 = vadd.f32 %v4445_v49, %v4398_v13  ;;  %v3790_v61 = vld [vmem:[%s5082_s0 + $0x498] ss:$20 sps:$4 sm:$0xff]   ;;  %v3794_v13 = vld [vmem:[%s5082_s0 + $0x4c0] ss:$20 sps:$4 sm:$0xff]  }
 0x163   :  { %v1531_v11 = vpop.f32.mrf.mxu0  ;;  %v1756_v35 = vpop.f32.mrf.mxu1 }
 0x164   :  { %v3793_v11 = vld [vmem:[%s5082_s0 + $0x4e4] ss:$20 sps:$4 sm:$0xff]  }
 0x165   :  { %v4577_v19 = vpop.f32.mrf.mxu0  ;;  %v1757_v39 = vpop.f32.mrf.mxu1 }
 0x166   :  { %v4585_v20 = vadd.f32 %v1757_v39, %v1469_v0  ;;  %v1482_v39 = vadd.f32 %v4445_v49, %v4414_v25  ;;  %v3791_v25 = vld [vmem:[%s5082_s0 + $0x4e0] ss:$20 sps:$4 sm:$0xff]  }
 0x167   :  { %v1534_v30 = vpop.f32.mrf.mxu0  ;;  %v1759_v37 = vpop.f32.mrf.mxu1 }
 0x168   :  { %v1485_v37 = vadd.f32 %v4445_v49, %v4420_v31 }
 0x169   :  { %v4595_v42 = vpop.f32.mrf.mxu0  ;;  %v1762_v45 = vpop.f32.mrf.mxu1  ;;  %1953 = vmatmul.mubr.bf16.gmra.mxu1 %v3781_v59  ;;  %3491 = vmatmul.mubr.msk.bf16.gmra.mxu0 %vm1302_vm0, %v3785_v15 }
 0x16a   :  { %v4598_v47 = vadd.f32 %v1762_v45, %v1474_v38  ;;  %1960 = vmatprep.mubr.bf16.mxu1 %v3788_v21  ;;  %3494 = vmatprep.mubr.msk.bf16.mxu0 %vm1302_vm0, %v3789_v63 }
 0x16b   :  { %v1539_v54 = vpop.f32.mrf.mxu0  ;;  %v1764_v55 = vpop.f32.mrf.mxu1 }
 0x16c   :  { %v3795_v54 = vld [vmem:[%s5082_s0 + $0x4e8] ss:$20 sps:$4 sm:$0xff]  }
 0x16d   :  { %v4603_v56 = vpop.f32.mrf.mxu0  ;;  %v1765_v57 = vpop.f32.mrf.mxu1 }
 0x16e   :  { %v4611_v5 = vadd.f32 %v1765_v57, %v1477_v51 }
 0x16f   :  { %v1542_v35 = vpop.f32.mrf.mxu0  ;;  %v1767_v0 = vpop.f32.mrf.mxu1 }
 0x170   :  { %v1493_v0 = vadd.f32 %v4445_v49, %v4447_v50  ;;  %v1501_v50 = vadd.f32 %v4445_v49, %v4473_v10  ;;  %v1509_v10 = vadd.f32 %v4445_v49, %v4499_v41  ;;  %v1517_v41 = vadd.f32 %v4445_v49, %v4525_v7 }
 0x171   :  { %v4621_v59 = vpop.f32.mrf.mxu0  ;;  %v1770_v15 = vpop.f32.mrf.mxu1  ;;  %1961 = vmatmul.mubr.bf16.gmra.mxu1 %v3786_v8  ;;  %3495 = vmatmul.mubr.msk.bf16.gmra.mxu0 %vm1302_vm0, %v3790_v61  ;;  %v1490_v8 = vadd.f32 %v4445_v49, %v4436_v43  ;;  %v1525_v7 = vadd.f32 %v4445_v49, %v4551_v23  ;;  %v1533_v23 = vadd.f32 %v4445_v49, %v4577_v19 }
 0x172   :  { %v4624_v21 = vadd.f32 %v1770_v15, %v1482_v39  ;;  %1968 = vmatprep.mubr.bf16.mxu1 %v3793_v11  ;;  %3498 = vmatprep.mubr.msk.bf16.mxu0 %vm1302_vm0, %v3794_v13  ;;  %v1541_v19 = vadd.f32 %v4445_v49, %v4603_v56 }
 0x173   :  { %v1547_v63 = vpop.f32.mrf.mxu0  ;;  %v1772_v30 = vpop.f32.mrf.mxu1 }
 0x175   :  { %v4629_v38 = vpop.f32.mrf.mxu0  ;;  %v1773_v45 = vpop.f32.mrf.mxu1 }
 0x176   :  { %v4637_v55 = vadd.f32 %v1773_v45, %v1485_v37  ;;  %v1498_v37 = vadd.f32 %v4445_v49, %v4465_v2  ;;  %v1506_v2 = vadd.f32 %v4445_v49, %v4491_v29  ;;  %v1514_v29 = vadd.f32 %v4445_v49, %v4517_v58 }
 0x177   :  { %v1550_v51 = vpop.f32.mrf.mxu0  ;;  %v1775_v57 = vpop.f32.mrf.mxu1  ;;  %v1522_v58 = vadd.f32 %v4445_v49, %v4543_v22  ;;  %v1530_v22 = vadd.f32 %v4445_v49, %v4569_v3  ;;  %v1538_v3 = vadd.f32 %v4445_v49, %v4595_v42  ;;  %v1546_v42 = vadd.f32 %v4445_v49, %v4621_v59 }
 0x178   :  { %v1549_v56 = vadd.f32 %v4445_v49, %v4629_v38 }
 0x179   :  { %v4641_v61 = vpop.f32.mrf.mxu0  ;;  %v1778_v31 = vpop.f32.mrf.mxu1  ;;  %1969 = vmatmul.mubr.bf16.gmra.mxu1 %v3791_v25  ;;  %3499 = vmatmul.mubr.msk.bf16.gmra.mxu0 %vm1302_vm0, %v3795_v54 }
 0x17a   :  { %v4644_v11 = vadd.f32 %v1778_v31, %v1490_v8  ;;  %v1554_v59 = vadd.f32 %v4445_v49, %v4641_v61 }
 0x17b   :  { %v1555_v13 = vpop.f32.mrf.mxu0  ;;  %v1780_v35 = vpop.f32.mrf.mxu1 }
 0x17d   :  { %v4648_v39 = vpop.f32.mrf.mxu0  ;;  %v1781_v15 = vpop.f32.mrf.mxu1 }
 0x17e   :  { %v4650_v63 = vadd.f32 %v1781_v15, %v1493_v0 }
 0x17f   :  { %v1558_v30 = vpop.f32.mrf.mxu0  ;;  %v1783_v43 = vpop.f32.mrf.mxu1 }
 0x181   :  { %v4654_v45 = vpop.f32.mrf.mxu0  ;;  %v1786_v25 = vpop.f32.mrf.mxu1 }
 0x182   :  { %v4656_v54 = vadd.f32 %v1786_v25, %v1498_v37 }
 0x183   :  { %v1563_v51 = vpop.f32.mrf.mxu0  ;;  %v1788_v57 = vpop.f32.mrf.mxu1 }
 0x185   :  { %v4660_v8 = vpop.f32.mrf.mxu0  ;;  %v1789_v31 = vpop.f32.mrf.mxu1 }
 0x186   :  { %v4662_v13 = vadd.f32 %v1789_v31, %v1501_v50 }
 0x187   :  { %v1566_v35 = vpop.f32.mrf.mxu0  ;;  %v1791_v0 = vpop.f32.mrf.mxu1 }
 0x189   :  { %v4666_v15 = vpop.f32.mrf.mxu0  ;;  %v1794_v30 = vpop.f32.mrf.mxu1 }
 0x18a   :  { %v4668_v43 = vadd.f32 %v1794_v30, %v1506_v2 }
 0x18b   :  { %v1571_v37 = vpop.f32.mrf.mxu0  ;;  %v1796_v25 = vpop.f32.mrf.mxu1 }
 0x18d   :  { %v4672_v51 = vpop.f32.mrf.mxu0  ;;  %v1797_v57 = vpop.f32.mrf.mxu1 }
 0x18e   :  { %v4674_v50 = vadd.f32 %v1797_v57, %v1509_v10 }
 0x18f   :  { %v1574_v31 = vpop.f32.mrf.mxu0  ;;  %v1799_v35 = vpop.f32.mrf.mxu1 }
 0x191   :  { %v4678_v0 = vpop.f32.mrf.mxu0  ;;  %v1802_v53 = vpop.f32.mrf.mxu1 }
 0x192   :  { %v4680_v2 = vadd.f32 %v1802_v53, %v1514_v29 }
 0x193   :  { %v1579_v30 = vpop.f32.mrf.mxu0  ;;  %v1804_v37 = vpop.f32.mrf.mxu1 }
 0x195   :  { %v4684_v25 = vpop.f32.mrf.mxu0  ;;  %v1805_v32 = vpop.f32.mrf.mxu1 }
 0x196   :  { %v4686_v10 = vadd.f32 %v1805_v32, %v1517_v41 }
 0x197   :  { %v1582_v57 = vpop.f32.mrf.mxu0  ;;  %v1807_v31 = vpop.f32.mrf.mxu1 }
 0x199   :  { %v4690_v35 = vpop.f32.mrf.mxu0  ;;  %v1810_v44 = vpop.f32.mrf.mxu1 }
 0x19a   :  { %v4692_v53 = vadd.f32 %v1810_v44, %v1522_v58 }
 0x19b   :  { %v1587_v29 = vpop.f32.mrf.mxu0  ;;  %v1812_v30 = vpop.f32.mrf.mxu1 }
 0x19d   :  { %v4696_v37 = vpop.f32.mrf.mxu0  ;;  %v1813_v26 = vpop.f32.mrf.mxu1 }
 0x19e   :  { %v4698_v32 = vadd.f32 %v1813_v26, %v1525_v7 }
 0x19f   :  { %v1590_v41 = vpop.f32.mrf.mxu0  ;;  %v1815_v57 = vpop.f32.mrf.mxu1 }
 0x1a1   :  { %v4702_v31 = vpop.f32.mrf.mxu0  ;;  %v1818_v1 = vpop.f32.mrf.mxu1 }
 0x1a2   :  { %v4704_v44 = vadd.f32 %v1818_v1, %v1530_v22 }
 0x1a3   :  { %v1595_v58 = vpop.f32.mrf.mxu0  ;;  %v1820_v29 = vpop.f32.mrf.mxu1 }
 0x1a5   :  { %v4708_v30 = vpop.f32.mrf.mxu0  ;;  %v1821_v14 = vpop.f32.mrf.mxu1 }
 0x1a6   :  { %v4710_v26 = vadd.f32 %v1821_v14, %v1533_v23 }
 0x1a7   :  { %v1598_v7 = vpop.f32.mrf.mxu0  ;;  %v1823_v41 = vpop.f32.mrf.mxu1 }
 0x1a9   :  { %v4714_v57 = vpop.f32.mrf.mxu0  ;;  %v1826_v60 = vpop.f32.mrf.mxu1 }
 0x1aa   :  { %v4716_v1 = vadd.f32 %v1826_v60, %v1538_v3 }
 0x1ab   :  { %v1603_v22 = vpop.f32.mrf.mxu0  ;;  %v1828_v58 = vpop.f32.mrf.mxu1 }
 0x1ad   :  { %v4720_v29 = vpop.f32.mrf.mxu0  ;;  %v1829_v9 = vpop.f32.mrf.mxu1 }
 0x1ae   :  { %v4722_v14 = vadd.f32 %v1829_v9, %v1541_v19 }
 0x1af   :  { %v1606_v23 = vpop.f32.mrf.mxu0  ;;  %v1831_v7 = vpop.f32.mrf.mxu1 }
 0x1b1   :  { %v4726_v41 = vpop.f32.mrf.mxu0  ;;  %v1834_v40 = vpop.f32.mrf.mxu1 }
 0x1b2   :  { %v4728_v60 = vadd.f32 %v1834_v40, %v1546_v42 }
 0x1b3   :  { %v1611_v3 = vpop.f32.mrf.mxu0  ;;  %v1836_v22 = vpop.f32.mrf.mxu1 }
 0x1b5   :  { %v4732_v58 = vpop.f32.mrf.mxu0  ;;  %v1837_v52 = vpop.f32.mrf.mxu1 }
 0x1b6   :  { %v4734_v9 = vadd.f32 %v1837_v52, %v1549_v56  ;;  %v1562_v52 = vadd.f32 %v4445_v49, %v4654_v45 }
 0x1b7   :  { %v1614_v19 = vpop.f32.mrf.mxu0  ;;  %v1839_v23 = vpop.f32.mrf.mxu1 }
 0x1b9   :  { %v4738_v7 = vpop.f32.mrf.mxu0  ;;  %v1842_v36 = vpop.f32.mrf.mxu1 }
 0x1ba   :  { %v4740_v40 = vadd.f32 %v1842_v36, %v1554_v59  ;;  %v1565_v59 = vadd.f32 %v4445_v49, %v4660_v8 }
 0x1bb   :  { %v1619_v42 = vpop.f32.mrf.mxu0  ;;  %v1844_v3 = vpop.f32.mrf.mxu1 }
 0x1bd   :  { %v4742_v22 = vpop.f32.mrf.mxu0  ;;  %v4744_v38 = vpop.f32.mrf.mxu1 }
 0x1bf   :  { %v1622_v48 = vpop.f32.mrf.mxu0  ;;  %v1847_v16 = vpop.f32.mrf.mxu1 }
 0x1c1   :  { %v1850_v56 = vpop.f32.mrf.mxu1  ;;  %v3440_v19 = vpop.f32.mrf.mxu0 }
 0x1c2   :  { %v4748_v23 = vadd.f32 %v1850_v56, %v1562_v52  ;;  %v2020_v61 = vadd.f32 %v3440_v19, %v4494_v33 }
 0x1c3   :  { %v1852_v28 = vpop.f32.mrf.mxu1  ;;  %v2011_v36 = vpop.f32.mrf.mxu0 }
 0x1c4   :  { %v2012_v42 = vadd.f32 %v2011_v36, %v4468_v4  ;;  %vm2332_vm1 = vcmp.gt.f32.partialorder %v2020_v61, 0.2  ;;  %v3798_v28 = vmov 0.0  }
 0x1c5   :  { %v1853_v3 = vpop.f32.mrf.mxu1  ;;  %v3441_v12 = vpop.f32.mrf.mxu0  ;;  %v3077_v52 = vsel %vm2332_vm1, 1.0, %v3798_v28 }
 0x1c6   :  { %v4754_v16 = vadd.f32 %v1853_v3, %v1565_v59  ;;  %v2023_v48 = vadd.f32 %v3441_v12, %v4507_v46  ;;  %vm2330_vm2 = vcmp.gt.f32.partialorder %v2012_v42, 0.2 }
 0x1c7   :  { %v1855_v45 = vpop.f32.mrf.mxu1  ;;  %v2014_v24 = vpop.f32.mrf.mxu0  ;;  %v3075_v12 = vsel %vm2330_vm2, 1.0, %v3798_v28 }
 0x1c8   :  { %vm2333_vm3 = vcmp.gt.f32.partialorder %v2023_v48, 0.2  ;;  %v2015_v33 = vadd.f32 %v2014_v24, %v4481_v18 }
 0x1c9   :  { %v3078_v8 = vsel %vm2333_vm3, 1.0, %v3798_v28  ;;  %v4760_v56 = vpop.f32.mrf.mxu1  ;;  %v3444_v4 = vpop.f32.mrf.mxu0 }
 0x1ca   :  { %v3271_v19 = vpack.c.bf16 %v3078_v8, %v3077_v52  ;;  %vm2331_vm4 = vcmp.gt.f32.partialorder %v2015_v33, 0.2  ;;  %v2036_v61 = vadd.f32 %v3444_v4, %v4546_v34 }
 0x1cb   :  { %v3076_v46 = vsel %vm2331_vm4, 1.0, %v3798_v28  ;;  %v1860_v36 = vpop.f32.mrf.mxu1  ;;  %v2027_v59 = vpop.f32.mrf.mxu0 }
 0x1cc   :  { %3363 = vst [vmem:[%s5084_s3 + $0x8] sm:$0xff] %v3271_v19   ;;  %v3268_v24 = vpack.c.bf16 %v3076_v46, %v3075_v12  ;;  %v2028_v18 = vadd.f32 %v2027_v59, %v4520_v62  ;;  %vm2336_vm5 = vcmp.gt.f32.partialorder %v2036_v61, 0.2 }
 0x1cd   :  { %v4769_v42 = vpop.f32.mrf.mxu1  ;;  %v3445_v3 = vpop.f32.mrf.mxu0  ;;  %v3081_v52 = vsel %vm2336_vm5, 1.0, %v3798_v28 }
 0x1ce   :  { %3269 = vst [vmem:[%s5084_s3] sm:$0xff] %v3268_v24   ;;  %v2039_v34 = vadd.f32 %v3445_v3, %v4559_v27  ;;  %vm2334_vm6 = vcmp.gt.f32.partialorder %v2028_v18, 0.2 }
 0x1cf   :  { %v1863_v48 = vpop.f32.mrf.mxu1  ;;  %v2030_v45 = vpop.f32.mrf.mxu0  ;;  %v3079_v61 = vsel %vm2334_vm6, 1.0, %v3798_v28 }
 0x1d0   :  { %vm2337_vm7 = vcmp.gt.f32.partialorder %v2039_v34, 0.2  ;;  %v2031_v33 = vadd.f32 %v2030_v45, %v4533_v17 }
 0x1d1   :  { %v3082_v62 = vsel %vm2337_vm7, 1.0, %v3798_v28  ;;  %v4778_v8 = vpop.f32.mrf.mxu1  ;;  %v3448_v4 = vpop.f32.mrf.mxu0 }
 0x1d2   :  { %v3277_v19 = vpack.c.bf16 %v3082_v62, %v3081_v52  ;;  %vm2335_vm8 = vcmp.gt.f32.partialorder %v2031_v33, 0.2  ;;  %v2052_v12 = vadd.f32 %v3448_v4, %v4598_v47 }
 0x1d3   :  { %v3080_v27 = vsel %vm2335_vm8, 1.0, %v3798_v28  ;;  %v1868_v46 = vpop.f32.mrf.mxu1  ;;  %v2043_v36 = vpop.f32.mrf.mxu0 }
 0x1d4   :  { %3365 = vst [vmem:[%s5084_s3 + $0x18] sm:$0xff] %v3277_v19   ;;  %v3274_v17 = vpack.c.bf16 %v3080_v27, %v3079_v61  ;;  %v2044_v59 = vadd.f32 %v2043_v36, %v4572_v6  ;;  %vm2340_vm9 = vcmp.gt.f32.partialorder %v2052_v12, 0.2 }
 0x1d5   :  { %v4787_v24 = vpop.f32.mrf.mxu1  ;;  %v3449_v18 = vpop.f32.mrf.mxu0  ;;  %v3085_v45 = vsel %vm2340_vm9, 1.0, %v3798_v28 }
 0x1d6   :  { %3364 = vst [vmem:[%s5084_s3 + $0x10] sm:$0xff] %v3274_v17   ;;  %v2055_v47 = vadd.f32 %v3449_v18, %v4611_v5  ;;  %vm2338_vm10 = vcmp.gt.f32.partialorder %v2044_v59, 0.2 }
 0x1d7   :  { %v1871_v3 = vpop.f32.mrf.mxu1  ;;  %v2046_v34 = vpop.f32.mrf.mxu0  ;;  %v3083_v19 = vsel %vm2338_vm10, 1.0, %v3798_v28 }
 0x1d8   :  { %vm2341_vm11 = vcmp.gt.f32.partialorder %v2055_v47, 0.2  ;;  %v2047_v48 = vadd.f32 %v2046_v34, %v4585_v20 }
 0x1d9   :  { %v3086_v6 = vsel %vm2341_vm11, 1.0, %v3798_v28  ;;  %v4796_v33 = vpop.f32.mrf.mxu1  ;;  %v3452_v52 = vpop.f32.mrf.mxu0 }
 0x1da   :  { %v3283_v62 = vpack.c.bf16 %v3086_v6, %v3085_v45  ;;  %vm2339_vm12 = vcmp.gt.f32.partialorder %v2047_v48, 0.2  ;;  %v2068_v4 = vadd.f32 %v3452_v52, %v4644_v11 }
 0x1db   :  { %v3084_v5 = vsel %vm2339_vm12, 1.0, %v3798_v28  ;;  %v1876_v12 = vpop.f32.mrf.mxu1  ;;  %v2059_v61 = vpop.f32.mrf.mxu0 }
 0x1dc   :  { %3367 = vst [vmem:[%s5084_s3 + $0x28] sm:$0xff] %v3283_v62   ;;  %v3280_v20 = vpack.c.bf16 %v3084_v5, %v3083_v19  ;;  %v2060_v27 = vadd.f32 %v2059_v61, %v4624_v21  ;;  %vm2344_vm13 = vcmp.gt.f32.partialorder %v2068_v4, 0.2 }
 0x1dd   :  { %v4805_v46 = vpop.f32.mrf.mxu1  ;;  %v3453_v36 = vpop.f32.mrf.mxu0  ;;  %v3089_v47 = vsel %vm2344_vm13, 1.0, %v3798_v28 }
 0x1de   :  { %3366 = vst [vmem:[%s5084_s3 + $0x20] sm:$0xff] %v3280_v20   ;;  %v2071_v11 = vadd.f32 %v3453_v36, %v4650_v63  ;;  %vm2342_vm14 = vcmp.gt.f32.partialorder %v2060_v27, 0.2 }
 0x1df   :  { %v1879_v17 = vpop.f32.mrf.mxu1  ;;  %v2062_v59 = vpop.f32.mrf.mxu0  ;;  %v3087_v6 = vsel %vm2342_vm14, 1.0, %v3798_v28 }
 0x1e0   :  { %vm2345_vm15 = vcmp.gt.f32.partialorder %v2071_v11, 0.2  ;;  %v2063_v18 = vadd.f32 %v2062_v59, %v4637_v55 }
 0x1e1   :  { %v3090_v21 = vsel %vm2345_vm15, 1.0, %v3798_v28  ;;  %v4814_v3 = vpop.f32.mrf.mxu1  ;;  %v3456_v34 = vpop.f32.mrf.mxu0 }
 0x1e2   :  { %v3289_v48 = vpack.c.bf16 %v3090_v21, %v3089_v47  ;;  %vm2343_vm0 = vcmp.gt.f32.partialorder %v2063_v18, 0.2  ;;  %v2084_v45 = vadd.f32 %v3456_v34, %v4668_v43 }
 0x1e3   :  { %v3088_v63 = vsel %vm2343_vm0, 1.0, %v3798_v28  ;;  %v1884_v52 = vpop.f32.mrf.mxu1  ;;  %v2075_v62 = vpop.f32.mrf.mxu0 }
 0x1e4   :  { %3369 = vst [vmem:[%s5084_s3 + $0x38] sm:$0xff] %v3289_v48   ;;  %v3286_v55 = vpack.c.bf16 %v3088_v63, %v3087_v6  ;;  %v2076_v4 = vadd.f32 %v2075_v62, %v4656_v54  ;;  %vm2348_vm1 = vcmp.gt.f32.partialorder %v2084_v45, 0.2 }
 0x1e5   :  { %v4823_v19 = vpop.f32.mrf.mxu1  ;;  %v3457_v5 = vpop.f32.mrf.mxu0  ;;  %v3093_v27 = vsel %vm2348_vm1, 1.0, %v3798_v28 }
 0x1e6   :  { %3368 = vst [vmem:[%s5084_s3 + $0x30] sm:$0xff] %v3286_v55   ;;  %v2087_v43 = vadd.f32 %v3457_v5, %v4674_v50  ;;  %vm2346_vm2 = vcmp.gt.f32.partialorder %v2076_v4, 0.2 }
 0x1e7   :  { %v1887_v12 = vpop.f32.mrf.mxu1  ;;  %v2078_v61 = vpop.f32.mrf.mxu0  ;;  %v3091_v18 = vsel %vm2346_vm2, 1.0, %v3798_v28 }
 0x1e8   :  { %vm2349_vm3 = vcmp.gt.f32.partialorder %v2087_v43, 0.2  ;;  %v2079_v20 = vadd.f32 %v2078_v61, %v4662_v13 }
 0x1e9   :  { %v3094_v54 = vsel %vm2349_vm3, 1.0, %v3798_v28  ;;  %v4832_v36 = vpop.f32.mrf.mxu1  ;;  %v3460_v11 = vpop.f32.mrf.mxu0 }
 0x1ea   :  { %v3295_v17 = vpack.c.bf16 %v3094_v54, %v3093_v27  ;;  %vm2347_vm4 = vcmp.gt.f32.partialorder %v2079_v20, 0.2  ;;  %v2100_v59 = vadd.f32 %v3460_v11, %v4692_v53 }
 0x1eb   :  { %v3092_v50 = vsel %vm2347_vm4, 1.0, %v3798_v28  ;;  %v1892_v47 = vpop.f32.mrf.mxu1  ;;  %v2091_v21 = vpop.f32.mrf.mxu0 }
 0x1ec   :  { %3371 = vst [vmem:[%s5084_s3 + $0x48] sm:$0xff] %v3295_v17   ;;  %v3292_v13 = vpack.c.bf16 %v3092_v50, %v3091_v18  ;;  %v2092_v34 = vadd.f32 %v2091_v21, %v4680_v2  ;;  %vm2352_vm5 = vcmp.gt.f32.partialorder %v2100_v59, 0.2 }
 0x1ed   :  { %v4841_v48 = vpop.f32.mrf.mxu1  ;;  %v3461_v45 = vpop.f32.mrf.mxu0  ;;  %v3097_v62 = vsel %vm2352_vm5, 1.0, %v3798_v28 }
 0x1ee   :  { %3370 = vst [vmem:[%s5084_s3 + $0x40] sm:$0xff] %v3292_v13   ;;  %v2103_v53 = vadd.f32 %v3461_v45, %v4698_v32  ;;  %vm2350_vm6 = vcmp.gt.f32.partialorder %v2092_v34, 0.2  ;;  %v1557_v13 = vadd.f32 %v4445_v49, %v4648_v39 }
 0x1ef   :  { %v1895_v6 = vpop.f32.mrf.mxu1  ;;  %v2094_v63 = vpop.f32.mrf.mxu0  ;;  %v3095_v12 = vsel %vm2350_vm6, 1.0, %v3798_v28 }
 0x1f0   :  { %vm2353_vm7 = vcmp.gt.f32.partialorder %v2103_v53, 0.2  ;;  %v2095_v52 = vadd.f32 %v2094_v63, %v4686_v10  ;;  %v1846_v63 = vadd.f32 %v4744_v38, %v1557_v13 }
 0x1f1   :  { %v3098_v2 = vsel %vm2353_vm7, 1.0, %v3798_v28  ;;  %v4850_v55 = vpop.f32.mrf.mxu1  ;;  %v3464_v4 = vpop.f32.mrf.mxu0 }
 0x1f2   :  { %v3301_v5 = vpack.c.bf16 %v3098_v2, %v3097_v62  ;;  %vm2351_vm8 = vcmp.gt.f32.partialorder %v2095_v52, 0.2  ;;  %v2116_v43 = vadd.f32 %v3464_v4, %v4716_v1 }
 0x1f3   :  { %v3096_v32 = vsel %vm2351_vm8, 1.0, %v3798_v28  ;;  %v1900_v61 = vpop.f32.mrf.mxu1  ;;  %v2107_v20 = vpop.f32.mrf.mxu0 }
 0x1f4   :  { %3373 = vst [vmem:[%s5084_s3 + $0x58] sm:$0xff] %v3301_v5   ;;  %v3298_v10 = vpack.c.bf16 %v3096_v32, %v3095_v12  ;;  %v2108_v27 = vadd.f32 %v2107_v20, %v4704_v44  ;;  %vm2356_vm9 = vcmp.gt.f32.partialorder %v2116_v43, 0.2  ;;  %v1573_v20 = vadd.f32 %v4445_v49, %v4672_v51 }
 0x1f5   :  { %v4859_v54 = vpop.f32.mrf.mxu1  ;;  %v3465_v11 = vpop.f32.mrf.mxu0  ;;  %v3101_v50 = vsel %vm2356_vm9, 1.0, %v3798_v28 }
 0x1f6   :  { %3372 = vst [vmem:[%s5084_s3 + $0x50] sm:$0xff] %v3298_v10   ;;  %v2119_v1 = vadd.f32 %v3465_v11, %v4722_v14  ;;  %vm2354_vm10 = vcmp.gt.f32.partialorder %v2108_v27, 0.2 }
 0x1f7   :  { %v1903_v17 = vpop.f32.mrf.mxu1  ;;  %v2110_v59 = vpop.f32.mrf.mxu0  ;;  %v3099_v45 = vsel %vm2354_vm10, 1.0, %v3798_v28 }
 0x1f8   :  { %vm2357_vm11 = vcmp.gt.f32.partialorder %v2119_v1, 0.2  ;;  %v2111_v18 = vadd.f32 %v2110_v59, %v4710_v26 }
 0x1f9   :  { %v3102_v44 = vsel %vm2357_vm11, 1.0, %v3798_v28  ;;  %v4868_v47 = vpop.f32.mrf.mxu1  ;;  %v3468_v21 = vpop.f32.mrf.mxu0 }
 0x1fa   :  { %v3307_v34 = vpack.c.bf16 %v3102_v44, %v3101_v50  ;;  %vm2355_vm12 = vcmp.gt.f32.partialorder %v2111_v18, 0.2  ;;  %v2132_v14 = vadd.f32 %v3468_v21, %v4740_v40  ;;  %v1570_v40 = vadd.f32 %v4445_v49, %v4666_v15 }
 0x1fb   :  { %v3100_v53 = vsel %vm2355_vm12, 1.0, %v3798_v28  ;;  %v1908_v6 = vpop.f32.mrf.mxu1  ;;  %v2123_v26 = vpop.f32.mrf.mxu0  ;;  %v1586_v44 = vadd.f32 %v4445_v49, %v4690_v35  ;;  %v1589_v35 = vadd.f32 %v4445_v49, %v4696_v37  ;;  %v1581_v37 = vadd.f32 %v4445_v49, %v4684_v25 }
 0x1fc   :  { %3375 = vst [vmem:[%s5084_s3 + $0x68] sm:$0xff] %v3307_v34   ;;  %v3304_v52 = vpack.c.bf16 %v3100_v53, %v3099_v45  ;;  %v2124_v62 = vadd.f32 %v2123_v26, %v4728_v60  ;;  %vm2360_vm13 = vcmp.gt.f32.partialorder %v2132_v14, 0.2  ;;  %v1859_v43 = vadd.f32 %v4760_v56, %v1570_v40 }
 0x1fd   :  { %v4880_v39 = vpop.f32.mrf.mxu1  ;;  %v3469_v2 = vpop.f32.mrf.mxu0  ;;  %v3105_v12 = vsel %vm2360_vm13, 1.0, %v3798_v28  ;;  %v1875_v14 = vadd.f32 %v4796_v33, %v1586_v44  ;;  %v1878_v40 = vadd.f32 %v4805_v46, %v1589_v35  ;;  %v1594_v46 = vadd.f32 %v4445_v49, %v4702_v31 }
 0x1fe   :  { %3374 = vst [vmem:[%s5084_s3 + $0x60] sm:$0xff] %v3304_v52   ;;  %v2135_v4 = vadd.f32 %v3469_v2, %v1846_v63  ;;  %vm2358_vm14 = vcmp.gt.f32.partialorder %v2124_v62, 0.2 }
 0x1ff   :  { %v1911_v38 = vpop.f32.mrf.mxu1  ;;  %v2126_v5 = vpop.f32.mrf.mxu0  ;;  %v3103_v11 = vsel %vm2358_vm14, 1.0, %v3798_v28 }
 0x200   :  { %vm2361_vm15 = vcmp.gt.f32.partialorder %v2135_v4, 0.2  ;;  %v2127_v60 = vadd.f32 %v2126_v5, %v4734_v9  ;;  %v1862_v9 = vadd.f32 %v4769_v42, %v1573_v20  ;;  %v1578_v42 = vadd.f32 %v4445_v49, %v4678_v0 }
 0x201   :  { %v3106_v32 = vsel %vm2361_vm15, 1.0, %v3798_v28  ;;  %v4891_v61 = vpop.f32.mrf.mxu1  ;;  %v3472_v15 = vpop.f32.mrf.mxu0 }
 0x202   :  { %v3313_v10 = vpack.c.bf16 %v3106_v32, %v3105_v12  ;;  %vm2359_vm0 = vcmp.gt.f32.partialorder %v2127_v60, 0.2  ;;  %v2148_v27 = vadd.f32 %v3472_v15, %v1859_v43  ;;  %v1867_v0 = vadd.f32 %v4778_v8, %v1578_v42 }
 0x203   :  { %v3104_v56 = vsel %vm2359_vm0, 1.0, %v3798_v28  ;;  %v1916_v1 = vpop.f32.mrf.mxu1  ;;  %v2139_v17 = vpop.f32.mrf.mxu0  ;;  %v1602_v43 = vadd.f32 %v4445_v49, %v4714_v57  ;;  %v1870_v60 = vadd.f32 %v4787_v24, %v1581_v37  ;;  %v1605_v57 = vadd.f32 %v4445_v49, %v4720_v29  ;;  %v4951_v49 = vld [vmem:[%s5083_s2] ss:$0 sm:$0xff] }
 0x204   :  { %3377 = vst [vmem:[%s5084_s3 + $0x78] sm:$0xff] %v3313_v10   ;;  %v3310_v59 = vpack.c.bf16 %v3104_v56, %v3103_v11  ;;  %v2140_v18 = vadd.f32 %v2139_v17, %v4748_v23  ;;  %vm2364_vm1 = vcmp.gt.f32.partialorder %v2148_v27, 0.2  ;;  %v1883_v56 = vadd.f32 %v4814_v3, %v1594_v46 }
 0x205   :  { %v4902_v50 = vpop.f32.mrf.mxu1  ;;  %v3473_v51 = vpop.f32.mrf.mxu0  ;;  %v3109_v45 = vsel %vm2364_vm1, 1.0, %v3798_v28  ;;  %v1891_v15 = vadd.f32 %v4832_v36, %v1602_v43  ;;  %v1597_v29 = vadd.f32 %v4951_v49, %v4708_v30  ;;  %v1618_v42 = vadd.f32 %v4951_v49, %v4738_v7 }
 0x206   :  { %3376 = vst [vmem:[%s5084_s3 + $0x70] sm:$0xff] %v3310_v59   ;;  %v2151_v21 = vadd.f32 %v3473_v51, %v1862_v9  ;;  %vm2362_vm2 = vcmp.gt.f32.partialorder %v2140_v18, 0.2  ;;  %v1894_v18 = vadd.f32 %v4841_v48, %v1605_v57  ;;  %v1610_v48 = vadd.f32 %v4951_v49, %v4726_v41 }
 0x207   :  { %v1919_v13 = vpop.f32.mrf.mxu1  ;;  %v2142_v34 = vpop.f32.mrf.mxu0  ;;  %v3107_v33 = vsel %vm2362_vm2, 1.0, %v3798_v28  ;;  %v1621_v7 = vadd.f32 %v4951_v49, %v4742_v22  ;;  %v1613_v22 = vadd.f32 %v4951_v49, %v4732_v58 }
 0x208   :  { %vm2365_vm3 = vcmp.gt.f32.partialorder %v2151_v21, 0.2  ;;  %v2143_v23 = vadd.f32 %v2142_v34, %v4754_v16  ;;  %v1886_v13 = vadd.f32 %v4823_v19, %v1597_v29 }
 0x209   :  { %v3110_v53 = vsel %vm2365_vm3, 1.0, %v3798_v28  ;;  %v4917_v6 = vpop.f32.mrf.mxu1  ;;  %v3476_v26 = vpop.f32.mrf.mxu0 }
 0x20a   :  { %v3319_v63 = vpack.c.bf16 %v3110_v53, %v3109_v45  ;;  %vm2363_vm4 = vcmp.gt.f32.partialorder %v2143_v23, 0.2  ;;  %v2164_v52 = vadd.f32 %v3476_v26, %v1875_v14  ;;  %v1907_v23 = vadd.f32 %v4868_v47, %v1618_v42 }
 0x20b   :  { %v3108_v62 = vsel %vm2363_vm4, 1.0, %v3798_v28  ;;  %v1924_v16 = vpop.f32.mrf.mxu1  ;;  %v2155_v2 = vpop.f32.mrf.mxu0 }
 0x20c   :  { %3379 = vst [vmem:[%s5084_s3 + $0x88] sm:$0xff] %v3319_v63   ;;  %v3316_v4 = vpack.c.bf16 %v3108_v62, %v3107_v33  ;;  %v2156_v8 = vadd.f32 %v2155_v2, %v1867_v0  ;;  %vm2368_vm5 = vcmp.gt.f32.partialorder %v2164_v52, 0.2  ;;  %v1899_v0 = vadd.f32 %v4850_v55, %v1610_v48 }
 0x20d   :  { %v4928_v38 = vpop.f32.mrf.mxu1  ;;  %v3477_v5 = vpop.f32.mrf.mxu0  ;;  %v3113_v24 = vsel %vm2368_vm5, 1.0, %v3798_v28  ;;  %v1910_v16 = vadd.f32 %v4880_v39, %v1621_v7  ;;  %v5102_v39 = vld [vmem:[#allocation2_spill] sm:$0xff] }
 0x20e   :  { %3378 = vst [vmem:[%s5084_s3 + $0x80] sm:$0xff] %v3316_v4   ;;  %v2167_v25 = vadd.f32 %v3477_v5, %v1878_v40  ;;  %vm2366_vm6 = vcmp.gt.f32.partialorder %v2156_v8, 0.2  ;;  %v5101_v4 = vld [vmem:[#allocation4_spill] sm:$0xff]  ;;  %v1902_v5 = vadd.f32 %v4859_v54, %v1613_v22  ;;  %v1626_v43 = vadd.f32 %v4951_v49, %v5102_v39 }
 0x20f   :  { %v1927_v12 = vpop.f32.mrf.mxu1  ;;  %v2158_v32 = vpop.f32.mrf.mxu0  ;;  %v3111_v36 = vsel %vm2366_vm6, 1.0, %v3798_v28  ;;  %v1634_v8 = vadd.f32 %v4951_v49, %v5101_v4  ;;  %v5109_v4 = vld [vmem:[#allocation12_spill] sm:$0xff] }
 0x210   :  { %vm2369_vm7 = vcmp.gt.f32.partialorder %v2167_v25, 0.2  ;;  %v2159_v20 = vadd.f32 %v2158_v32, %v1870_v60  ;;  %v5103_v32 = vld [vmem:[#allocation5_spill] sm:$0xff] }
 0x211   :  { %v3114_v10 = vsel %vm2369_vm7, 1.0, %v3798_v28  ;;  %v4943_v27 = vpop.f32.mrf.mxu1  ;;  %v3480_v11 = vpop.f32.mrf.mxu0  ;;  %v1923_v46 = vadd.f32 %v4917_v6, %v1634_v8  ;;  %v1666_v8 = vadd.f32 %v4951_v49, %v5109_v4 }
 0x212   :  { %v3325_v31 = vpack.c.bf16 %v3114_v10, %v3113_v24  ;;  %vm2367_vm8 = vcmp.gt.f32.partialorder %v2159_v20, 0.2  ;;  %v2180_v1 = vadd.f32 %v3480_v11, %v1891_v15  ;;  %v1637_v15 = vadd.f32 %v4951_v49, %v5103_v32 }
 0x213   :  { %v3112_v17 = vsel %vm2367_vm8, 1.0, %v3798_v28  ;;  %v1932_v9 = vpop.f32.mrf.mxu1  ;;  %v2171_v59 = vpop.f32.mrf.mxu0  ;;  %v1915_v10 = vadd.f32 %v4891_v61, %v1626_v43 }
 0x214   :  { %3381 = vst [vmem:[%s5084_s3 + $0x98] sm:$0xff] %v3325_v31   ;;  %v3322_v3 = vpack.c.bf16 %v3112_v17, %v3111_v36  ;;  %v2172_v51 = vadd.f32 %v2171_v59, %v1883_v56  ;;  %vm2372_vm9 = vcmp.gt.f32.partialorder %v2180_v1, 0.2  ;;  %v5104_v17 = vld [vmem:[#allocation3_spill] sm:$0xff]  ;;  %v1926_v59 = vadd.f32 %v4928_v38, %v1637_v15 }
 0x215   :  { %v4959_v44 = vpop.f32.mrf.mxu1  ;;  %v3481_v21 = vpop.f32.mrf.mxu0  ;;  %v3117_v19 = vsel %vm2372_vm9, 1.0, %v3798_v28  ;;  %v1629_v9 = vadd.f32 %v4951_v49, %v5104_v17 }
 0x216   :  { %3380 = vst [vmem:[%s5084_s3 + $0x90] sm:$0xff] %v3322_v3   ;;  %v2183_v30 = vadd.f32 %v3481_v21, %v1894_v18  ;;  %vm2370_vm10 = vcmp.gt.f32.partialorder %v2172_v51, 0.2  ;;  %v5105_v51 = vld [vmem:[#allocation8_spill] sm:$0xff] }
 0x217   :  { %v1935_v34 = vpop.f32.mrf.mxu1  ;;  %v2174_v14 = vpop.f32.mrf.mxu0  ;;  %v3115_v52 = vsel %vm2370_vm10, 1.0, %v3798_v28  ;;  %v1650_v21 = vadd.f32 %v4951_v49, %v5105_v51  ;;  %v1918_v42 = vadd.f32 %v4902_v50, %v1629_v9 }
 0x218   :  { %vm2373_vm11 = vcmp.gt.f32.partialorder %v2183_v30, 0.2  ;;  %v2175_v35 = vadd.f32 %v2174_v14, %v1886_v13  ;;  %v5106_v13 = vld [vmem:[#allocation6_spill] sm:$0xff] }
 0x219   :  { %v3118_v45 = vsel %vm2373_vm11, 1.0, %v3798_v28  ;;  %v1938_v53 = vpop.f32.mrf.mxu1  ;;  %v3484_v26 = vpop.f32.mrf.mxu0  ;;  %v1642_v30 = vadd.f32 %v4951_v49, %v5106_v13 }
 0x21a   :  { %v3331_v63 = vpack.c.bf16 %v3118_v45, %v3117_v19  ;;  %vm2371_vm12 = vcmp.gt.f32.partialorder %v2175_v35, 0.2  ;;  %v2196_v41 = vadd.f32 %v3484_v26, %v1907_v23  ;;  %v1939_v14 = vadd.f32 %v1938_v53, %v1650_v21  ;;  %v5107_v35 = vld [vmem:[#allocation9_spill] sm:$0xff]  ;;  %v5113_v21 = vld [vmem:[#allocation14_spill] sm:$0xff] }
 0x21b   :  { %v3116_v47 = vsel %vm2371_vm12, 1.0, %v3798_v28  ;;  %v1940_v33 = vpop.f32.mrf.mxu1  ;;  %v2187_v62 = vpop.f32.mrf.mxu0  ;;  %v1653_v7 = vadd.f32 %v4951_v49, %v5107_v35 }
 0x21c   :  { %3383 = vst [vmem:[%s5084_s3 + $0xa8] sm:$0xff] %v3331_v63   ;;  %v3328_v2 = vpack.c.bf16 %v3116_v47, %v3115_v52  ;;  %v2188_v55 = vadd.f32 %v2187_v62, %v1899_v0  ;;  %vm2376_vm13 = vcmp.gt.f32.partialorder %v2196_v41, 0.2  ;;  %v1931_v0 = vadd.f32 %v4943_v27, %v1642_v30  ;;  %v5108_v62 = vld [vmem:[#allocation7_spill] sm:$0xff]  ;;  %v5114_v30 = vld [vmem:[#allocation16_spill] sm:$0xff] }
 0x21d   :  { %v1941_v37 = vpop.f32.mrf.mxu1  ;;  %v3485_v40 = vpop.f32.mrf.mxu0  ;;  %v3121_v54 = vsel %vm2376_vm13, 1.0, %v3798_v28  ;;  %v1645_v22 = vadd.f32 %v4951_v49, %v5108_v62 }
 0x21e   :  { %3382 = vst [vmem:[%s5084_s3 + $0xa0] sm:$0xff] %v3328_v2   ;;  %v2199_v58 = vadd.f32 %v3485_v40, %v1910_v16  ;;  %vm2374_vm14 = vcmp.gt.f32.partialorder %v2188_v55, 0.2  ;;  %v1942_v16 = vadd.f32 %v1941_v37, %v1653_v7  ;;  %v5110_v37 = vld [vmem:[#allocation10_spill] sm:$0xff] }
 0x21f   :  { %v1943_v60 = vpop.f32.mrf.mxu1  ;;  %v2190_v25 = vpop.f32.mrf.mxu0  ;;  %v3119_v6 = vsel %vm2374_vm14, 1.0, %v3798_v28  ;;  %v1658_v39 = vadd.f32 %v4951_v49, %v5110_v37 }
 0x220   :  { %vm2377_vm15 = vcmp.gt.f32.partialorder %v2199_v58, 0.2  ;;  %v2191_v12 = vadd.f32 %v2190_v25, %v1902_v5  ;;  %v1934_v5 = vadd.f32 %v4959_v44, %v1645_v22 }
 0x221   :  { %v3122_v20 = vsel %vm2377_vm15, 1.0, %v3798_v28  ;;  %v4996_v57 = vpop.f32.mrf.mxu1  ;;  %v3488_v24 = vpop.f32.mrf.mxu0 }
 0x222   :  { %v3337_v11 = vpack.c.bf16 %v3122_v20, %v3121_v54  ;;  %vm2375_vm0 = vcmp.gt.f32.partialorder %v2191_v12, 0.2  ;;  %v2212_v56 = vadd.f32 %v3488_v24, %v1923_v46  ;;  %v5111_v12 = vld [vmem:[#allocation13_spill] sm:$0xff]  ;;  %v1947_v24 = vadd.f32 %v4996_v57, %v1658_v39 }
 0x223   :  { %v3120_v31 = vsel %vm2375_vm0, 1.0, %v3798_v28  ;;  %v1948_v1 = vpop.f32.mrf.mxu1  ;;  %v2203_v36 = vpop.f32.mrf.mxu0  ;;  %v1669_v32 = vadd.f32 %v4951_v49, %v5111_v12 }
 0x224   :  { %3385 = vst [vmem:[%s5084_s3 + $0xb8] sm:$0xff] %v3337_v11   ;;  %v3334_v29 = vpack.c.bf16 %v3120_v31, %v3119_v6  ;;  %v2204_v61 = vadd.f32 %v2203_v36, %v1915_v10  ;;  %vm2380_vm1 = vcmp.gt.f32.partialorder %v2212_v56, 0.2  ;;  %v5112_v36 = vld [vmem:[#allocation11_spill] sm:$0xff] }
 0x225   :  { %v5007_v18 = vpop.f32.mrf.mxu1  ;;  %v3489_v3 = vpop.f32.mrf.mxu0  ;;  %v3125_v50 = vsel %vm2380_vm1, 1.0, %v3798_v28  ;;  %v1661_v17 = vadd.f32 %v4951_v49, %v5112_v36 }
 0x226   :  { %3384 = vst [vmem:[%s5084_s3 + $0xb0] sm:$0xff] %v3334_v29   ;;  %v2215_v38 = vadd.f32 %v3489_v3, %v1926_v59  ;;  %vm2378_vm2 = vcmp.gt.f32.partialorder %v2204_v61, 0.2 }
 0x227   :  { %v1951_v48 = vpop.f32.mrf.mxu1  ;;  %v2206_v34 = vpop.f32.mrf.mxu0  ;;  %v3123_v52 = vsel %vm2378_vm2, 1.0, %v3798_v28  ;;  %v1950_v3 = vadd.f32 %v5007_v18, %v1661_v17 }
 0x228   :  { %vm2381_vm3 = vcmp.gt.f32.partialorder %v2215_v38, 0.2  ;;  %v2207_v23 = vadd.f32 %v2206_v34, %v1918_v42  ;;  %v1674_v42 = vadd.f32 %v4951_v49, %v5113_v21  ;;  %v1682_v48 = vadd.f32 %v4951_v49, %v5114_v30 }
 0x229   :  { %v3126_v19 = vsel %vm2381_vm3, 1.0, %v3798_v28  ;;  %v1954_v45 = vpop.f32.mrf.mxu1  ;;  %v3492_v26 = vpop.f32.mrf.mxu0 }
 0x22a   :  { %v3343_v63 = vpack.c.bf16 %v3126_v19, %v3125_v50  ;;  %vm2379_vm4 = vcmp.gt.f32.partialorder %v2207_v23, 0.2  ;;  %v2228_v41 = vadd.f32 %v3492_v26, %v1939_v14  ;;  %v1955_v25 = vadd.f32 %v1954_v45, %v1666_v8  ;;  %v5115_v45 = vld [vmem:[#allocation15_spill] sm:$0xff] }
 0x22b   :  { %v3124_v53 = vsel %vm2379_vm4, 1.0, %v3798_v28  ;;  %v1956_v47 = vpop.f32.mrf.mxu1  ;;  %v2219_v33 = vpop.f32.mrf.mxu0  ;;  %v1677_v26 = vadd.f32 %v4951_v49, %v5115_v45 }
 0x22c   :  { %3387 = vst [vmem:[%s5084_s3 + $0xc8] sm:$0xff] %v3343_v63   ;;  %v3340_v2 = vpack.c.bf16 %v3124_v53, %v3123_v52  ;;  %v2220_v55 = vadd.f32 %v2219_v33, %v1931_v0  ;;  %vm2384_vm5 = vcmp.gt.f32.partialorder %v2228_v41, 0.2  ;;  %v5116_v53 = vld [vmem:[#allocation17_spill] sm:$0xff] }
 0x22d   :  { %v1957_v27 = vpop.f32.mrf.mxu1  ;;  %v3493_v40 = vpop.f32.mrf.mxu0  ;;  %v3129_v44 = vsel %vm2384_vm5, 1.0, %v3798_v28  ;;  %v1685_v47 = vadd.f32 %v4951_v49, %v5116_v53 }
 0x22e   :  { %3386 = vst [vmem:[%s5084_s3 + $0xc0] sm:$0xff] %v3340_v2   ;;  %v2231_v58 = vadd.f32 %v3493_v40, %v1942_v16  ;;  %vm2382_vm6 = vcmp.gt.f32.partialorder %v2220_v55, 0.2  ;;  %v1958_v9 = vadd.f32 %v1957_v27, %v1669_v32 }
 0x22f   :  { %v1959_v43 = vpop.f32.mrf.mxu1  ;;  %v2222_v60 = vpop.f32.mrf.mxu0  ;;  %v3127_v56 = vsel %vm2382_vm6, 1.0, %v3798_v28 }
 0x230   :  { %vm2385_vm7 = vcmp.gt.f32.partialorder %v2231_v58, 0.2  ;;  %v2223_v46 = vadd.f32 %v2222_v60, %v1934_v5 }
 0x231   :  { %v3130_v15 = vsel %vm2385_vm7, 1.0, %v3798_v28  ;;  %v1962_v54 = vpop.f32.mrf.mxu1  ;;  %v3496_v20 = vpop.f32.mrf.mxu0 }
 0x232   :  { %v3349_v10 = vpack.c.bf16 %v3130_v15, %v3129_v44  ;;  %vm2383_vm8 = vcmp.gt.f32.partialorder %v2223_v46, 0.2  ;;  %v2244_v11 = vadd.f32 %v3496_v20, %v1955_v25  ;;  %v1963_v7 = vadd.f32 %v1962_v54, %v1674_v42 }
 0x233   :  { %v3128_v6 = vsel %vm2383_vm8, 1.0, %v3798_v28  ;;  %v1964_v31 = vpop.f32.mrf.mxu1  ;;  %v2235_v1 = vpop.f32.mrf.mxu0 }
 0x234   :  { %3389 = vst [vmem:[%s5084_s3 + $0xd8] sm:$0xff] %v3349_v10   ;;  %v3346_v59 = vpack.c.bf16 %v3128_v6, %v3127_v56  ;;  %v2236_v29 = vadd.f32 %v2235_v1, %v1947_v24  ;;  %vm2388_vm9 = vcmp.gt.f32.partialorder %v2244_v11, 0.2 }
 0x235   :  { %v1965_v57 = vpop.f32.mrf.mxu1  ;;  %v3497_v61 = vpop.f32.mrf.mxu0  ;;  %v3133_v14 = vsel %vm2388_vm9, 1.0, %v3798_v28 }
 0x236   :  { %3388 = vst [vmem:[%s5084_s3 + $0xd0] sm:$0xff] %v3346_v59   ;;  %v2247_v51 = vadd.f32 %v3497_v61, %v1958_v9  ;;  %vm2386_vm10 = vcmp.gt.f32.partialorder %v2236_v29, 0.2  ;;  %v1966_v55 = vadd.f32 %v1965_v57, %v1677_v26 }
 0x237   :  { %v1967_v38 = vpop.f32.mrf.mxu1  ;;  %v2238_v13 = vpop.f32.mrf.mxu0  ;;  %v3131_v0 = vsel %vm2386_vm10, 1.0, %v3798_v28 }
 0x238   :  { %vm2389_vm11 = vcmp.gt.f32.partialorder %v2247_v51, 0.2  ;;  %v2239_v34 = vadd.f32 %v2238_v13, %v1950_v3 }
 0x239   :  { %v3134_v18 = vsel %vm2389_vm11, 1.0, %v3798_v28  ;;  %v1970_v23 = vpop.f32.mrf.mxu1  ;;  %v3500_v35 = vpop.f32.mrf.mxu0 }
 0x23a   :  { %v3355_v50 = vpack.c.bf16 %v3134_v18, %v3133_v14  ;;  %vm2387_vm12 = vcmp.gt.f32.partialorder %v2239_v34, 0.2  ;;  %v1971_v19 = vadd.f32 %v1970_v23, %v1682_v48 }
 0x23b   :  { %v3132_v63 = vsel %vm2387_vm12, 1.0, %v3798_v28  ;;  %v1972_v41 = vpop.f32.mrf.mxu1  ;;  %v2251_v52 = vpop.f32.mrf.mxu0 }
 0x23c   :  { %3391 = vst [vmem:[%s5084_s3 + $0xe8] sm:$0xff] %v3355_v50   ;;  %v3352_v33 = vpack.c.bf16 %v3132_v63, %v3131_v0  ;;  %v2260_v62 = vadd.f32 %v3500_v35, %v1971_v19  ;;  %v2252_v22 = vadd.f32 %v2251_v52, %v1963_v7 }
 0x23d   :  { %v1973_v16 = vpop.f32.mrf.mxu1  ;;  %v3501_v2 = vpop.f32.mrf.mxu0 }
 0x23e   :  { %3390 = vst [vmem:[%s5084_s3 + $0xe0] sm:$0xff] %v3352_v33   ;;  %v1974_v27 = vadd.f32 %v1973_v16, %v1685_v47  ;;  %vm2392_vm13 = vcmp.gt.f32.partialorder %v2260_v62, 0.2  ;;  %vm2390_vm14 = vcmp.gt.f32.partialorder %v2252_v22, 0.2 }
 0x23f   :  { %v1975_v40 = vpop.f32.mrf.mxu1  ;;  %v2254_v4 = vpop.f32.mrf.mxu0  ;;  %v3137_v5 = vsel %vm2392_vm13, 1.0, %v3798_v28  ;;  %v3135_v58 = vsel %vm2390_vm14, 1.0, %v3798_v28 }
 0x240   :  { %v2263_v49 = vadd.f32 %v3501_v2, %v1974_v27  ;;  %v2255_v8 = vadd.f32 %v2254_v4, %v1966_v55 }
 0x242   :  { %vm2393_vm15 = vcmp.gt.f32.partialorder %v2263_v49, 0.2  ;;  %vm2391_vm0 = vcmp.gt.f32.partialorder %v2255_v8, 0.2 }
 0x243   :  { %v3138_v37 = vsel %vm2393_vm15, 1.0, %v3798_v28  ;;  %v3136_v39 = vsel %vm2391_vm0, 1.0, %v3798_v28 }
 0x244   :  { %v3361_v43 = vpack.c.bf16 %v3138_v37, %v3137_v5  ;;  %v3358_v60 = vpack.c.bf16 %v3136_v39, %v3135_v58 }
 0x246   :  { %3393 = vst [vmem:[%s5084_s3 + $0xf8] sm:$0xff] %v3361_v43   ;;  %3392 = vst [vmem:[%s5084_s3 + $0xf0] sm:$0xff] %v3358_v60  }

// kernel: _forward_prefix.16
= control target key start
LH: loop header
LB: loop body
LE: loop exit
PB: predicated region body
PF: predicated region fallthrough
CT: control target
= control target key end

     0   :  { %s3173_s12 = smov 0   ;;  %s3175_s13 = smov 0   ;;  %s3716_s0 = inlined_call_operand.vmem [shape: bf16[1,2048,288], index: 0, kind: input, shape index: {}]   ;;  %s3717_s1 = inlined_call_operand.vmem [shape: bf16[288,128], index: 1, kind: input, shape index: {}]   ;;  %s3718_s2 = inlined_call_operand.vmem [shape: f32[1,128], index: 2, kind: input, shape index: {}]   ;;  %s3719_s3 = inlined_call_operand.vmem [shape: bf16[1,2048,128], index: 3, kind: output, shape index: {}]  }
   0x1   :  { %s3177_s14 = smov 0  }
   0x2 LB: > { %s25_s15 = sadd.s32 1, %s3145_s13  ;;  %p2347_p0 = scmp.ge.s32.totalorder %s3149_s14, 1  ;;  %s3149_s14 = sphi %s3177_s14, %s13_s14   ;;  %s3145_s13 = sphi %s3175_s13, %s3721_s13   ;;  %s3141_s12 = sphi %s3173_s12, %s3720_s12  }
   0x3   : > { %p27_p1 = scmp.ge.s32.totalorder %s25_s15, 4  ;;  %p170_p2 = scmp.lt.s32.totalorder %s3149_s14, 5 }
   0x5   : > { %s3723_s15 = smov (%p27_p1, %s25_s15), 0  ;;  %p171_p3 = pnand %p2347_p0, %p170_p2 }
   0x6   : > { %s2348_s18 = sshll.u32 (!%p171_p3), %s3141_s12, 6 }
   0x7   : > { %174 = sbr.rel (%p171_p3) target bundleno = 467 (0x1d3), region = 32  ;;  %p206_p4 = scmp.lt.s32.totalorder (!%p171_p3), %s2348_s18, 255 }
   0xc   : > { %v2981_v0 = vld [vmem:[%s3717_s1 + $0x38] sm:$0xff]   ;;  %v3151_v1 = vmov 0   ;;  %v2982_v2 = vld [vmem:[%s3717_s1 + $0x30] sm:$0xff]   ;;  %v2983_v3 = vld [vmem:[%s3717_s1 + $0x28] sm:$0xff]   ;;  %s3725_s18 = smov (!%p206_p4, %s2348_s18), 255  ;;  %vm988_vm0 = vcmask 261120  }
   0xd   : > { %1085 = vmatprep.subr.bf16.mxu0 %v3151_v1  ;;  %2922 = vmatprep.subr.bf16.mxu1 %v3151_v1  ;;  %v2984_v4 = vld [vmem:[%s3717_s1 + $0x20] sm:$0xff]   ;;  %s2954_s25 = smul.u32 12, %s3725_s18  ;;  %v2985_v5 = vld [vmem:[%s3717_s1 + $0x18] sm:$0xff]   ;;  %v2986_v7 = vld [vmem:[%s3717_s1 + $0x10] sm:$0xff]   ;;  %s2351_s9 = sshll.u32 %s3725_s18, 2 }
   0xe   : > { %1086 = vmatpush1.bf16.msra.mxu0 %v2981_v0  ;;  %2938 = vmatpush1.bf16.msra.mxu1 %v2981_v0  ;;  %v2987_v9 = vld [vmem:[%s3717_s1 + $0x8] sm:$0xff]   ;;  %v2988_v10 = vld [vmem:[%s3717_s1] sm:$0xff]   ;;  %v2989_v11 = vld [vmem:[%s3717_s1 + $0x78] sm:$0xff]   ;;  %s3492_s12 = scalar_lea.vmem %s3719_s3, %s2351_s9 }
   0xf   : > { %1087 = vmatprep.subr.bf16.mxu0 %v3151_v1  ;;  %2923 = vmatprep.subr.bf16.mxu1 %v3151_v1  ;;  %s3220_s30 = scalar_lea.vmem %s3716_s0, %s2954_s25  ;;  %v2990_v12 = vld [vmem:[%s3717_s1 + $0x70] sm:$0xff]   ;;  %v2991_v13 = vld [vmem:[%s3717_s1 + $0x68] sm:$0xff]   ;;  %v2992_v14 = vld [vmem:[%s3717_s1 + $0x60] sm:$0xff]  }
  0x10   : > { %v2999_v6 = vld [vmem:[%s3220_s30 + $0x4] ss:$12 sps:$4 sm:$0xff]   ;;  %v2993_v15 = vld [vmem:[%s3717_s1 + $0x58] sm:$0xff]   ;;  %v2995_v17 = vld [vmem:[%s3717_s1 + $0x48] sm:$0xff]  }
  0x11   : > { %v3002_v8 = vld [vmem:[%s3220_s30 + $0x244] ss:$12 sps:$4 sm:$0xff]   ;;  %1117 = vmatprep.mubr.bf16.mxu0 %v2999_v6  ;;  %v3003_v19 = vld [vmem:[%s3717_s1 + $0x88] sm:$0xff]   ;;  %v3010_v27 = vld [vmem:[%s3220_s30 + $0x34] ss:$12 sps:$4 sm:$0xff]  }
  0x12   : > { %1088 = vmatpush1.bf16.msra.mxu0 %v2982_v2  ;;  %2939 = vmatpush1.bf16.msra.mxu1 %v2982_v2  ;;  %v2994_v16 = vld [vmem:[%s3717_s1 + $0x50] sm:$0xff]   ;;  %v2996_v18 = vld [vmem:[%s3717_s1 + $0x40] sm:$0xff]   ;;  %v3004_v22 = vld [vmem:[%s3220_s30 + $0x1c] ss:$12 sps:$4 sm:$0xff]  }
  0x13   : > { %1089 = vmatprep.subr.bf16.mxu0 %v3151_v1  ;;  %2924 = vmatprep.subr.bf16.mxu1 %v3151_v1  ;;  %v2997_v20 = vld [vmem:[%s3220_s30] ss:$12 sps:$4 sm:$0xff]   ;;  %v3006_v23 = vld [vmem:[%s3220_s30 + $0x25c] ss:$12 sps:$4 sm:$0xff]   ;;  %v3008_v25 = vld [vmem:[%s3220_s30 + $0x18] ss:$12 sps:$4 sm:$0xff]  }
  0x14   : > { %1309 = vmatprep.mubr.bf16.mxu1 %v3002_v8  ;;  %v3000_v21 = vld [vmem:[%s3220_s30 + $0x240] ss:$12 sps:$4 sm:$0xff]   ;;  %v3009_v26 = vld [vmem:[%s3220_s30 + $0x258] ss:$12 sps:$4 sm:$0xff]   ;;  %v3014_v29 = vld [vmem:[%s3220_s30 + $0x30] ss:$12 sps:$4 sm:$0xff]  }
  0x15   : > { %v3028_v24 = vld [vmem:[%s3717_s1 + $0x80] sm:$0xff]   ;;  %v3015_v30 = vld [vmem:[%s3220_s30 + $0x270] ss:$12 sps:$4 sm:$0xff]   ;;  %v3016_v31 = vld [vmem:[%s3220_s30 + $0x4c] ss:$12 sps:$4 sm:$0xff]  }
  0x16   : > { %1090 = vmatpush1.bf16.msra.mxu0 %v2983_v3  ;;  %2940 = vmatpush1.bf16.msra.mxu1 %v2983_v3  ;;  %v3012_v28 = vld [vmem:[%s3220_s30 + $0x274] ss:$12 sps:$4 sm:$0xff]   ;;  %v3018_v32 = vld [vmem:[%s3220_s30 + $0x28c] ss:$12 sps:$4 sm:$0xff]   ;;  %v3022_v35 = vld [vmem:[%s3220_s30 + $0x64] ss:$12 sps:$4 sm:$0xff]  }
  0x17   : > { %1091 = vmatprep.subr.bf16.mxu0 %v3151_v1  ;;  %2925 = vmatprep.subr.bf16.mxu1 %v3151_v1  ;;  %v3020_v33 = vld [vmem:[%s3220_s30 + $0x48] ss:$12 sps:$4 sm:$0xff]   ;;  %v3024_v36 = vld [vmem:[%s3220_s30 + $0x2a4] ss:$12 sps:$4 sm:$0xff]   ;;  %v3026_v37 = vld [vmem:[%s3220_s30 + $0x60] ss:$12 sps:$4 sm:$0xff]  }
  0x18   : > { %v3021_v34 = vld [vmem:[%s3220_s30 + $0x288] ss:$12 sps:$4 sm:$0xff]   ;;  %v3027_v38 = vld [vmem:[%s3220_s30 + $0x2a0] ss:$12 sps:$4 sm:$0xff]   ;;  %v3033_v41 = vld [vmem:[%s3220_s30 + $0x78] ss:$12 sps:$4 sm:$0xff]  }
  0x19   : > { %v3029_v39 = vld [vmem:[%s3220_s30 + $0x7c] ss:$12 sps:$4 sm:$0xff]   ;;  %v3034_v42 = vld [vmem:[%s3220_s30 + $0x2b8] ss:$12 sps:$4 sm:$0xff]   ;;  %v3035_v43 = vld [vmem:[%s3220_s30 + $0x94] ss:$12 sps:$4 sm:$0xff]  }
  0x1a   : > { %1092 = vmatpush1.bf16.msra.mxu0 %v2984_v4  ;;  %2941 = vmatpush1.bf16.msra.mxu1 %v2984_v4  ;;  %v3031_v40 = vld [vmem:[%s3220_s30 + $0x2bc] ss:$12 sps:$4 sm:$0xff]   ;;  %v3037_v44 = vld [vmem:[%s3220_s30 + $0x2d4] ss:$12 sps:$4 sm:$0xff]   ;;  %v3041_v47 = vld [vmem:[%s3220_s30 + $0xac] ss:$12 sps:$4 sm:$0xff]  }
  0x1b   : > { %1093 = vmatprep.subr.bf16.mxu0 %v3151_v1  ;;  %2926 = vmatprep.subr.bf16.mxu1 %v3151_v1  ;;  %v3039_v45 = vld [vmem:[%s3220_s30 + $0x90] ss:$12 sps:$4 sm:$0xff]   ;;  %v3043_v48 = vld [vmem:[%s3220_s30 + $0x2ec] ss:$12 sps:$4 sm:$0xff]   ;;  %v3045_v49 = vld [vmem:[%s3220_s30 + $0xa8] ss:$12 sps:$4 sm:$0xff]  }
  0x1c   : > { %v3040_v46 = vld [vmem:[%s3220_s30 + $0x2d0] ss:$12 sps:$4 sm:$0xff]   ;;  %v3046_v50 = vld [vmem:[%s3220_s30 + $0x2e8] ss:$12 sps:$4 sm:$0xff]   ;;  %v3050_v53 = vld [vmem:[%s3220_s30 + $0xc0] ss:$12 sps:$4 sm:$0xff]  }
  0x1d   : > { %v3047_v51 = vld [vmem:[%s3220_s30 + $0xc4] ss:$12 sps:$4 sm:$0xff]   ;;  %v3049_v52 = vld [vmem:[%s3220_s30 + $0x8] ss:$12 sps:$4 sm:$0xff]   ;;  %v3051_v54 = vld [vmem:[%s3220_s30 + $0x20] ss:$12 sps:$4 sm:$0xff]  }
  0x1e   : > { %1094 = vmatpush1.bf16.msra.mxu0 %v2985_v5  ;;  %2942 = vmatpush1.bf16.msra.mxu1 %v2985_v5  ;;  %v3052_v55 = vld [vmem:[%s3220_s30 + $0xdc] ss:$12 sps:$4 sm:$0xff]   ;;  %v3054_v56 = vld [vmem:[%s3220_s30 + $0x38] ss:$12 sps:$4 sm:$0xff]   ;;  %v3057_v59 = vld [vmem:[%s3220_s30 + $0xf4] ss:$12 sps:$4 sm:$0xff]  }
  0x1f   : > { %1095 = vmatprep.subr.bf16.mxu0 %v3151_v1  ;;  %2927 = vmatprep.subr.bf16.mxu1 %v3151_v1  ;;  %v3055_v57 = vld [vmem:[%s3220_s30 + $0xd8] ss:$12 sps:$4 sm:$0xff]   ;;  %v3056_v58 = vld [vmem:[%s3220_s30 + $0x50] ss:$12 sps:$4 sm:$0xff]   ;;  %v3059_v60 = vld [vmem:[%s3220_s30 + $0x68] ss:$12 sps:$4 sm:$0xff]  }
  0x20   : > { %v3060_v61 = vld [vmem:[%s3220_s30 + $0xf0] ss:$12 sps:$4 sm:$0xff]   ;;  %v3061_v62 = vld [vmem:[%s3220_s30 + $0x80] ss:$12 sps:$4 sm:$0xff]   ;;  %v3064_v0 = vld [vmem:[%s3220_s30 + $0x98] ss:$12 sps:$4 sm:$0xff]  }
  0x21   : > { %v3062_v63 = vld [vmem:[%s3220_s30 + $0x10c] ss:$12 sps:$4 sm:$0xff]   ;;  %v3066_v2 = vld [vmem:[%s3220_s30 + $0xb0] ss:$12 sps:$4 sm:$0xff]   ;;  %v3069_v4 = vld [vmem:[%s3220_s30 + $0xc8] ss:$12 sps:$4 sm:$0xff]  }
  0x22   : > { %1096 = vmatpush1.bf16.msra.mxu0 %v2986_v7  ;;  %2943 = vmatpush1.bf16.msra.mxu1 %v2986_v7  ;;  %v3067_v3 = vld [vmem:[%s3220_s30 + $0x124] ss:$12 sps:$4 sm:$0xff]   ;;  %v3070_v5 = vld [vmem:[%s3220_s30 + $0x120] ss:$12 sps:$4 sm:$0xff]   ;;  %v3072_v7 = vld [vmem:[%s3220_s30 + $0x13c] ss:$12 sps:$4 sm:$0xff]  }
  0x23   : > { %1097 = vmatprep.subr.bf16.mxu0 %v3151_v1  ;;  %2928 = vmatprep.subr.bf16.mxu1 %v3151_v1  ;;  %v3071_v6 = vld [vmem:[%s3220_s30 + $0xe0] ss:$12 sps:$4 sm:$0xff]   ;;  %v3074_v8 = vld [vmem:[%s3220_s30 + $0xf8] ss:$12 sps:$4 sm:$0xff]  }
  0x26   : > { %1098 = vmatpush1.bf16.msra.mxu0 %v2987_v9  ;;  %2944 = vmatpush1.bf16.msra.mxu1 %v2987_v9  ;;  %v3075_v9 = vld [vmem:[%s3220_s30 + $0x138] ss:$12 sps:$4 sm:$0xff]  }
  0x27   : > { %1099 = vmatprep.subr.bf16.mxu0 %v3151_v1  ;;  %2929 = vmatprep.subr.bf16.mxu1 %v3151_v1 }
  0x2a   : > { %1100 = vmatpush1.bf16.msra.mxu0 %v2988_v10  ;;  %2945 = vmatpush1.bf16.msra.mxu1 %v2988_v10  ;;  %v3076_v10 = vld [vmem:[%s3220_s30 + $0x110] ss:$12 sps:$4 sm:$0xff]  }
  0x2b   : > { %1101 = vmatprep.subr.bf16.mxu0 %v3151_v1  ;;  %2930 = vmatprep.subr.bf16.mxu1 %v3151_v1 }
  0x2e   : > { %1102 = vmatpush2.bf16.msra.mxu0 %v2989_v11  ;;  %2946 = vmatpush2.bf16.msra.mxu1 %v2989_v11  ;;  %v3077_v11 = vld [vmem:[%s3220_s30 + $0x154] ss:$12 sps:$4 sm:$0xff]  }
  0x2f   : > { %1103 = vmatprep.subr.bf16.mxu0 %v3151_v1  ;;  %2931 = vmatprep.subr.bf16.mxu1 %v3151_v1 }
  0x32   : > { %1104 = vmatpush2.bf16.msra.mxu0 %v2990_v12  ;;  %2947 = vmatpush2.bf16.msra.mxu1 %v2990_v12  ;;  %v3079_v12 = vld [vmem:[%s3220_s30 + $0x128] ss:$12 sps:$4 sm:$0xff]  }
  0x33   : > { %1105 = vmatprep.subr.bf16.mxu0 %v3151_v1  ;;  %2932 = vmatprep.subr.bf16.mxu1 %v3151_v1 }
  0x36   : > { %1106 = vmatpush2.bf16.msra.mxu0 %v2991_v13  ;;  %2948 = vmatpush2.bf16.msra.mxu1 %v2991_v13  ;;  %v3080_v13 = vld [vmem:[%s3220_s30 + $0x150] ss:$12 sps:$4 sm:$0xff]  }
  0x37   : > { %1107 = vmatprep.subr.bf16.mxu0 %v3151_v1  ;;  %2933 = vmatprep.subr.bf16.mxu1 %v3151_v1 }
  0x3a   : > { %1108 = vmatpush2.bf16.msra.mxu0 %v2992_v14  ;;  %2949 = vmatpush2.bf16.msra.mxu1 %v2992_v14  ;;  %v3081_v14 = vld [vmem:[%s3220_s30 + $0x140] ss:$12 sps:$4 sm:$0xff]  }
  0x3b   : > { %1109 = vmatprep.subr.bf16.mxu0 %v3151_v1  ;;  %2934 = vmatprep.subr.bf16.mxu1 %v3151_v1 }
  0x3e   : > { %1110 = vmatpush2.bf16.msra.mxu0 %v2993_v15  ;;  %2950 = vmatpush2.bf16.msra.mxu1 %v2993_v15  ;;  %v3082_v15 = vld [vmem:[%s3220_s30 + $0x16c] ss:$12 sps:$4 sm:$0xff]  }
  0x3f   : > { %1111 = vmatprep.subr.bf16.mxu0 %v3151_v1  ;;  %2935 = vmatprep.subr.bf16.mxu1 %v3151_v1 }
  0x42   : > { %1112 = vmatpush2.bf16.msra.mxu0 %v2994_v16  ;;  %2951 = vmatpush2.bf16.msra.mxu1 %v2994_v16  ;;  %v3084_v16 = vld [vmem:[%s3220_s30 + $0x158] ss:$12 sps:$4 sm:$0xff]  }
  0x43   : > { %1113 = vmatprep.subr.bf16.mxu0 %v3151_v1  ;;  %2936 = vmatprep.subr.bf16.mxu1 %v3151_v1 }
  0x46   : > { %1114 = vmatpush2.bf16.msra.mxu0 %v2995_v17  ;;  %2952 = vmatpush2.bf16.msra.mxu1 %v2995_v17  ;;  %v3085_v17 = vld [vmem:[%s3220_s30 + $0x168] ss:$12 sps:$4 sm:$0xff]  }
  0x47   : > { %1115 = vmatprep.subr.bf16.mxu0 %v3151_v1  ;;  %2937 = vmatprep.subr.bf16.mxu1 %v3151_v1  ;;  %v3065_v1 = vld [vmem:[%s3220_s30 + $0x108] ss:$12 sps:$4 sm:$0xff]  }
  0x4a   : > { %1116 = vmatpush2.bf16.msra.mxu0 %v2996_v18  ;;  %2953 = vmatpush2.bf16.msra.mxu1 %v2996_v18  ;;  %v3086_v18 = vld [vmem:[%s3220_s30 + $0x170] ss:$12 sps:$4 sm:$0xff]  }
  0x4b   : > { %2854 = vmatprep.subr.bf16.mxu1 %v3003_v19 }
  0x4d   : > { %1118 = vmatmul.mubr.bf16.vlgmr.msra.gmra.mxu0 %v2997_v20  ;;  %1310 = vmatmul.mubr.bf16.vlgmr.msra.gmra.mxu1 %v3000_v21  ;;  %v3089_v20 = vld [vmem:[%s3220_s30 + $0x188] ss:$12 sps:$4 sm:$0xff]   ;;  %v3090_v21 = vld [vmem:[%s3220_s30 + $0x180] ss:$12 sps:$4 sm:$0xff]  }
  0x4e   : > { %2855 = vmatpush3.bf16.msra.mxu1 %v3003_v19  ;;  %1125 = vmatprep.mubr.bf16.mxu0 %v3004_v22  ;;  %v3087_v19 = vld [vmem:[%s3220_s30 + $0x184] ss:$12 sps:$4 sm:$0xff]   ;;  %v3091_v22 = vld [vmem:[%s3220_s30 + $0x1a0] ss:$12 sps:$4 sm:$0xff]  }
  0x4f   : > { %1317 = vmatprep.mubr.bf16.mxu1 %v3006_v23  ;;  %2856 = vmatprep.subr.bf16.mxu1 %v3028_v24  ;;  %v3092_v23 = vld [vmem:[%s3220_s30 + $0x19c] ss:$12 sps:$4 sm:$0xff]  }
  0x52   : > { %2857 = vmatpush3.bf16.msra.mxu1 %v3028_v24  ;;  %v3094_v24 = vld [vmem:[%s3220_s30 + $0x1b8] ss:$12 sps:$4 sm:$0xff]  }
  0x55   : > { %1126 = vmatmul.mubr.bf16.gmra.mxu0 %v3008_v25  ;;  %1318 = vmatmul.mubr.bf16.gmra.mxu1 %v3009_v26  ;;  %v3095_v25 = vld [vmem:[%s3220_s30 + $0x198] ss:$12 sps:$4 sm:$0xff]   ;;  %v3096_v26 = vld [vmem:[%s3220_s30 + $0x1d0] ss:$12 sps:$4 sm:$0xff]  }
  0x56   : > { %1133 = vmatprep.mubr.bf16.mxu0 %v3010_v27  ;;  %1325 = vmatprep.mubr.bf16.mxu1 %v3012_v28  ;;  %v3097_v27 = vld [vmem:[%s3220_s30 + $0x1b4] ss:$12 sps:$4 sm:$0xff]  }
  0x57   : > { %v3099_v28 = vld [vmem:[%s3220_s30 + $0x1e8] ss:$12 sps:$4 sm:$0xff]  }
  0x5d   : > { %1134 = vmatmul.mubr.bf16.gmra.mxu0 %v3014_v29  ;;  %1326 = vmatmul.mubr.bf16.gmra.mxu1 %v3015_v30  ;;  %v3100_v29 = vld [vmem:[%s3220_s30 + $0x1b0] ss:$12 sps:$4 sm:$0xff]   ;;  %v3101_v30 = vld [vmem:[%s3220_s30 + $0x200] ss:$12 sps:$4 sm:$0xff]  }
  0x5e   : > { %1141 = vmatprep.mubr.bf16.mxu0 %v3016_v31  ;;  %1333 = vmatprep.mubr.bf16.mxu1 %v3018_v32  ;;  %v3102_v31 = vld [vmem:[%s3220_s30 + $0x1cc] ss:$12 sps:$4 sm:$0xff]  }
  0x5f   : > { %v3104_v32 = vld [vmem:[%s3220_s30 + $0x218] ss:$12 sps:$4 sm:$0xff]  }
  0x65   : > { %1142 = vmatmul.mubr.bf16.gmra.mxu0 %v3020_v33  ;;  %1334 = vmatmul.mubr.bf16.gmra.mxu1 %v3021_v34  ;;  %v3105_v33 = vld [vmem:[%s3220_s30 + $0x1c8] ss:$12 sps:$4 sm:$0xff]   ;;  %v3106_v34 = vld [vmem:[%s3220_s30 + $0x230] ss:$12 sps:$4 sm:$0xff]  }
  0x66   : > { %1149 = vmatprep.mubr.bf16.mxu0 %v3022_v35  ;;  %1341 = vmatprep.mubr.bf16.mxu1 %v3024_v36  ;;  %v3107_v35 = vld [vmem:[%s3220_s30 + $0x1e4] ss:$12 sps:$4 sm:$0xff]   ;;  %v3109_v36 = vld [vmem:[%s3220_s30 + $0x248] ss:$12 sps:$4 sm:$0xff]  }
  0x6d   : > { %1150 = vmatmul.mubr.bf16.gmra.mxu0 %v3026_v37  ;;  %1342 = vmatmul.mubr.bf16.gmra.mxu1 %v3027_v38  ;;  %v3110_v37 = vld [vmem:[%s3220_s30 + $0x1e0] ss:$12 sps:$4 sm:$0xff]  }
  0x6e   : > { %1157 = vmatprep.mubr.bf16.mxu0 %v3029_v39  ;;  %1349 = vmatprep.mubr.bf16.mxu1 %v3031_v40  ;;  %v3111_v38 = vld [vmem:[%s3220_s30 + $0x260] ss:$12 sps:$4 sm:$0xff]   ;;  %v3112_v39 = vld [vmem:[%s3220_s30 + $0x1fc] ss:$12 sps:$4 sm:$0xff]   ;;  %v3114_v40 = vld [vmem:[%s3220_s30 + $0x278] ss:$12 sps:$4 sm:$0xff]  }
  0x75   : > { %1158 = vmatmul.mubr.bf16.gmra.mxu0 %v3033_v41  ;;  %1350 = vmatmul.mubr.bf16.gmra.mxu1 %v3034_v42  ;;  %v3115_v41 = vld [vmem:[%s3220_s30 + $0x1f8] ss:$12 sps:$4 sm:$0xff]   ;;  %v3116_v42 = vld [vmem:[%s3220_s30 + $0x290] ss:$12 sps:$4 sm:$0xff]  }
  0x76   : > { %1165 = vmatprep.mubr.bf16.mxu0 %v3035_v43  ;;  %1357 = vmatprep.mubr.bf16.mxu1 %v3037_v44  ;;  %v3117_v43 = vld [vmem:[%s3220_s30 + $0x214] ss:$12 sps:$4 sm:$0xff]  }
  0x77   : > { %v3119_v44 = vld [vmem:[%s3220_s30 + $0x2a8] ss:$12 sps:$4 sm:$0xff]  }
  0x7d   : > { %1166 = vmatmul.mubr.bf16.gmra.mxu0 %v3039_v45  ;;  %1358 = vmatmul.mubr.bf16.gmra.mxu1 %v3040_v46  ;;  %v3120_v45 = vld [vmem:[%s3220_s30 + $0x210] ss:$12 sps:$4 sm:$0xff]   ;;  %v3121_v46 = vld [vmem:[%s3220_s30 + $0x2c0] ss:$12 sps:$4 sm:$0xff]  }
  0x7e   : > { %1173 = vmatprep.mubr.bf16.mxu0 %v3041_v47  ;;  %1365 = vmatprep.mubr.bf16.mxu1 %v3043_v48  ;;  %v3122_v47 = vld [vmem:[%s3220_s30 + $0x22c] ss:$12 sps:$4 sm:$0xff]  }
  0x7f   : > { %v3124_v48 = vld [vmem:[%s3220_s30 + $0x2d8] ss:$12 sps:$4 sm:$0xff]  }
  0x85   : > { %1174 = vmatmul.mubr.bf16.gmra.mxu0 %v3045_v49  ;;  %1366 = vmatmul.mubr.bf16.gmra.mxu1 %v3046_v50  ;;  %v3125_v49 = vld [vmem:[%s3220_s30 + $0x228] ss:$12 sps:$4 sm:$0xff]   ;;  %v3126_v50 = vld [vmem:[%s3220_s30 + $0x2f0] ss:$12 sps:$4 sm:$0xff]  }
  0x86   : > { %1181 = vmatprep.mubr.bf16.mxu0 %v3047_v51  ;;  %2858 = vmatprep.mubr.msk.bf16.mxu1 %vm988_vm0, %v3049_v52 }
  0x8d   : > { %1182 = vmatmul.mubr.bf16.gmra.mxu0 %v3050_v53  ;;  %2859 = vmatmul.mubr.msk.bf16.vlgmr.msra.gmra.mxu1 %vm988_vm0, %v3051_v54 }
  0x8e   : > { %1189 = vmatprep.mubr.bf16.mxu0 %v3052_v55  ;;  %2862 = vmatprep.mubr.msk.bf16.mxu1 %vm988_vm0, %v3054_v56 }
  0x95   : > { %1190 = vmatmul.mubr.bf16.gmra.mxu0 %v3055_v57  ;;  %2863 = vmatmul.mubr.msk.bf16.gmra.mxu1 %vm988_vm0, %v3056_v58 }
  0x96   : > { %1197 = vmatprep.mubr.bf16.mxu0 %v3057_v59  ;;  %2866 = vmatprep.mubr.msk.bf16.mxu1 %vm988_vm0, %v3059_v60 }
  0x9d   : > { %1198 = vmatmul.mubr.bf16.gmra.mxu0 %v3060_v61  ;;  %2867 = vmatmul.mubr.msk.bf16.gmra.mxu1 %vm988_vm0, %v3061_v62 }
  0x9e   : > { %1205 = vmatprep.mubr.bf16.mxu0 %v3062_v63  ;;  %2870 = vmatprep.mubr.msk.bf16.mxu1 %vm988_vm0, %v3064_v0 }
  0xa5   : > { %1206 = vmatmul.mubr.bf16.gmra.mxu0 %v3065_v1  ;;  %2871 = vmatmul.mubr.msk.bf16.gmra.mxu1 %vm988_vm0, %v3066_v2 }
  0xa6   : > { %1213 = vmatprep.mubr.bf16.mxu0 %v3067_v3  ;;  %2874 = vmatprep.mubr.msk.bf16.mxu1 %vm988_vm0, %v3069_v4 }
  0xad   : > { %1214 = vmatmul.mubr.bf16.gmra.mxu0 %v3070_v5  ;;  %2875 = vmatmul.mubr.msk.bf16.gmra.mxu1 %vm988_vm0, %v3071_v6 }
  0xae   : > { %1221 = vmatprep.mubr.bf16.mxu0 %v3072_v7  ;;  %2878 = vmatprep.mubr.msk.bf16.mxu1 %vm988_vm0, %v3074_v8 }
  0xb5   : > { %1222 = vmatmul.mubr.bf16.gmra.mxu0 %v3075_v9  ;;  %2879 = vmatmul.mubr.msk.bf16.gmra.mxu1 %vm988_vm0, %v3076_v10 }
  0xb6   : > { %1229 = vmatprep.mubr.bf16.mxu0 %v3077_v11  ;;  %2882 = vmatprep.mubr.msk.bf16.mxu1 %vm988_vm0, %v3079_v12 }
  0xbd   : > { %1230 = vmatmul.mubr.bf16.gmra.mxu0 %v3080_v13  ;;  %2883 = vmatmul.mubr.msk.bf16.gmra.mxu1 %vm988_vm0, %v3081_v14 }
  0xbe   : > { %1237 = vmatprep.mubr.bf16.mxu0 %v3082_v15  ;;  %2886 = vmatprep.mubr.msk.bf16.mxu1 %vm988_vm0, %v3084_v16 }
  0xc5   : > { %1238 = vmatmul.mubr.bf16.gmra.mxu0 %v3085_v17  ;;  %2887 = vmatmul.mubr.msk.bf16.gmra.mxu1 %vm988_vm0, %v3086_v18 }
  0xc6   : > { %1245 = vmatprep.mubr.bf16.mxu0 %v3087_v19  ;;  %2890 = vmatprep.mubr.msk.bf16.mxu1 %vm988_vm0, %v3089_v20 }
  0xcd   : > { %1246 = vmatmul.mubr.bf16.gmra.mxu0 %v3090_v21  ;;  %2891 = vmatmul.mubr.msk.bf16.gmra.mxu1 %vm988_vm0, %v3091_v22 }
  0xce   : > { %1253 = vmatprep.mubr.bf16.mxu0 %v3092_v23  ;;  %2894 = vmatprep.mubr.msk.bf16.mxu1 %vm988_vm0, %v3094_v24 }
  0xd5   : > { %1254 = vmatmul.mubr.bf16.gmra.mxu0 %v3095_v25  ;;  %2895 = vmatmul.mubr.msk.bf16.gmra.mxu1 %vm988_vm0, %v3096_v26 }
  0xd6   : > { %1261 = vmatprep.mubr.bf16.mxu0 %v3097_v27  ;;  %2898 = vmatprep.mubr.msk.bf16.mxu1 %vm988_vm0, %v3099_v28 }
  0xdd   : > { %1262 = vmatmul.mubr.bf16.gmra.mxu0 %v3100_v29  ;;  %2899 = vmatmul.mubr.msk.bf16.gmra.mxu1 %vm988_vm0, %v3101_v30 }
  0xde   : > { %1269 = vmatprep.mubr.bf16.mxu0 %v3102_v31  ;;  %2902 = vmatprep.mubr.msk.bf16.mxu1 %vm988_vm0, %v3104_v32 }
  0xe5   : > { %1270 = vmatmul.mubr.bf16.gmra.mxu0 %v3105_v33  ;;  %2903 = vmatmul.mubr.msk.bf16.gmra.mxu1 %vm988_vm0, %v3106_v34 }
  0xe6   : > { %1277 = vmatprep.mubr.bf16.mxu0 %v3107_v35  ;;  %2906 = vmatprep.mubr.msk.bf16.mxu1 %vm988_vm0, %v3109_v36 }
  0xed   : > { %1278 = vmatmul.mubr.bf16.gmra.mxu0 %v3110_v37  ;;  %2907 = vmatmul.mubr.msk.bf16.gmra.mxu1 %vm988_vm0, %v3111_v38 }
  0xee   : > { %1285 = vmatprep.mubr.bf16.mxu0 %v3112_v39  ;;  %2910 = vmatprep.mubr.msk.bf16.mxu1 %vm988_vm0, %v3114_v40 }
  0xf5   : > { %1286 = vmatmul.mubr.bf16.gmra.mxu0 %v3115_v41  ;;  %2911 = vmatmul.mubr.msk.bf16.gmra.mxu1 %vm988_vm0, %v3116_v42 }
  0xf6   : > { %1293 = vmatprep.mubr.bf16.mxu0 %v3117_v43  ;;  %2914 = vmatprep.mubr.msk.bf16.mxu1 %vm988_vm0, %v3119_v44 }
  0xfd   : > { %1294 = vmatmul.mubr.bf16.gmra.mxu0 %v3120_v45  ;;  %2915 = vmatmul.mubr.msk.bf16.gmra.mxu1 %vm988_vm0, %v3121_v46 }
  0xfe   : > { %1301 = vmatprep.mubr.bf16.mxu0 %v3122_v47  ;;  %2918 = vmatprep.mubr.msk.bf16.mxu1 %vm988_vm0, %v3124_v48 }
 0x105   : > { %1302 = vmatmul.mubr.bf16.gmra.mxu0 %v3125_v49  ;;  %2919 = vmatmul.mubr.msk.bf16.gmra.mxu1 %vm988_vm0, %v3126_v50  ;;  %v3474_v49 = vld [vmem:[%s3718_s2] ss:$0 sm:$0xff] }
 0x10d   : > { %v3413_v51 = vpop.f32.mrf.mxu0  ;;  %v3415_v52 = vpop.f32.mrf.mxu1 }
 0x10f   : > { %v1121_v53 = vpop.f32.mrf.mxu0  ;;  %v1313_v54 = vpop.f32.mrf.mxu1 }
 0x111   : > { %v3417_v55 = vpop.f32.mrf.mxu0  ;;  %v3419_v56 = vpop.f32.mrf.mxu1 }
 0x113   : > { %v1124_v57 = vpop.f32.mrf.mxu0  ;;  %v1316_v58 = vpop.f32.mrf.mxu1 }
 0x115   : > { %v1127_v59 = vpop.f32.mrf.mxu0  ;;  %v3421_v60 = vpop.f32.mrf.mxu1 }
 0x116   : > { %v1128_v54 = vadd.f32 %v3474_v49, %v1127_v59 }
 0x117   : > { %v1129_v61 = vpop.f32.mrf.mxu0  ;;  %v1321_v62 = vpop.f32.mrf.mxu1 }
 0x118   : > { %v1120_v61 = vadd.f32 %v3474_v49, %v3413_v51 }
 0x119   : > { %v1130_v63 = vpop.f32.mrf.mxu0  ;;  %v3423_v0 = vpop.f32.mrf.mxu1 }
 0x11b   : > { %v1132_v1 = vpop.f32.mrf.mxu0  ;;  %v1324_v2 = vpop.f32.mrf.mxu1 }
 0x11d   : > { %v3425_v3 = vpop.f32.mrf.mxu0  ;;  %v3427_v4 = vpop.f32.mrf.mxu1 }
 0x11f   : > { %v1137_v5 = vpop.f32.mrf.mxu0  ;;  %v1329_v6 = vpop.f32.mrf.mxu1 }
 0x120   : > { %v1131_v5 = vadd.f32 %v3474_v49, %v1130_v63 }
 0x121   : > { %v3429_v7 = vpop.f32.mrf.mxu0  ;;  %v3431_v8 = vpop.f32.mrf.mxu1 }
 0x123   : > { %v1140_v9 = vpop.f32.mrf.mxu0  ;;  %v1332_v10 = vpop.f32.mrf.mxu1 }
 0x125   : > { %v1143_v11 = vpop.f32.mrf.mxu0  ;;  %v3433_v12 = vpop.f32.mrf.mxu1 }
 0x127   : > { %v1145_v13 = vpop.f32.mrf.mxu0  ;;  %v1337_v14 = vpop.f32.mrf.mxu1 }
 0x128   : > { %v1123_v13 = vadd.f32 %v3474_v49, %v3417_v55 }
 0x129   : > { %v3435_v15 = vpop.f32.mrf.mxu0  ;;  %v3437_v16 = vpop.f32.mrf.mxu1 }
 0x12b   : > { %v1148_v17 = vpop.f32.mrf.mxu0  ;;  %v1340_v18 = vpop.f32.mrf.mxu1 }
 0x12c   : > { %v1144_v18 = vadd.f32 %v3474_v49, %v1143_v11  ;;  %v1136_v11 = vadd.f32 %v3474_v49, %v3425_v3  ;;  %v1139_v3 = vadd.f32 %v3474_v49, %v3429_v7 }
 0x12d   : > { %v3439_v19 = vpop.f32.mrf.mxu0  ;;  %v3441_v20 = vpop.f32.mrf.mxu1 }
 0x12e   : > { %v1152_v7 = vadd.f32 %v3474_v49, %v3439_v19 }
 0x12f   : > { %v1153_v21 = vpop.f32.mrf.mxu0  ;;  %v1345_v22 = vpop.f32.mrf.mxu1 }
 0x130   : > { %v3152_v21 = vmov 0.0  }
 0x131   : > { %v3443_v23 = vpop.f32.mrf.mxu0  ;;  %v3445_v24 = vpop.f32.mrf.mxu1 }
 0x132   : > { %v1155_v19 = vadd.f32 %v3474_v49, %v3443_v23 }
 0x133   : > { %v1156_v25 = vpop.f32.mrf.mxu0  ;;  %v1348_v26 = vpop.f32.mrf.mxu1 }
 0x135   : > { %v3447_v27 = vpop.f32.mrf.mxu0  ;;  %v3449_v28 = vpop.f32.mrf.mxu1 }
 0x137   : > { %v1161_v29 = vpop.f32.mrf.mxu0  ;;  %v1353_v30 = vpop.f32.mrf.mxu1 }
 0x139   : > { %v3451_v31 = vpop.f32.mrf.mxu0  ;;  %v3453_v32 = vpop.f32.mrf.mxu1 }
 0x13b   : > { %v1164_v33 = vpop.f32.mrf.mxu0  ;;  %v1356_v34 = vpop.f32.mrf.mxu1 }
 0x13d   : > { %v3455_v35 = vpop.f32.mrf.mxu0  ;;  %v3457_v36 = vpop.f32.mrf.mxu1 }
 0x13e   : > { %v1168_v23 = vadd.f32 %v3474_v49, %v3455_v35 }
 0x13f   : > { %v1169_v37 = vpop.f32.mrf.mxu0  ;;  %v1361_v38 = vpop.f32.mrf.mxu1 }
 0x140   : > { %v1147_v38 = vadd.f32 %v3474_v49, %v3435_v15 }
 0x141   : > { %v3459_v39 = vpop.f32.mrf.mxu0  ;;  %v3461_v40 = vpop.f32.mrf.mxu1 }
 0x142   : > { %v1171_v35 = vadd.f32 %v3474_v49, %v3459_v39 }
 0x143   : > { %v1172_v41 = vpop.f32.mrf.mxu0  ;;  %v1364_v42 = vpop.f32.mrf.mxu1 }
 0x145   : > { %v3463_v43 = vpop.f32.mrf.mxu0  ;;  %v3465_v44 = vpop.f32.mrf.mxu1 }
 0x147   : > { %v1177_v45 = vpop.f32.mrf.mxu0  ;;  %v1369_v46 = vpop.f32.mrf.mxu1 }
 0x149   : > { %v3467_v47 = vpop.f32.mrf.mxu0  ;;  %v3469_v48 = vpop.f32.mrf.mxu1 }
 0x14b   : > { %v1180_v50 = vpop.f32.mrf.mxu0  ;;  %v1372_v53 = vpop.f32.mrf.mxu1 }
 0x14d   : > { %v3477_v57 = vpop.f32.mrf.mxu0  ;;  %v2860_v58 = vpop.f32.mrf.mxu1 }
 0x14e   : > { %v1417_v62 = vadd.f32 %v2860_v58, %v1128_v54  ;;  %v1160_v58 = vadd.f32 %v3474_v49, %v3447_v27  ;;  %v1184_v39 = vadd.f32 %v3474_v49, %v3477_v57 }
 0x14f   : > { %v1185_v1 = vpop.f32.mrf.mxu0  ;;  %v1408_v2 = vpop.f32.mrf.mxu1 }
 0x150   : > { %v1409_v6 = vadd.f32 %v1408_v2, %v1120_v61  ;;  %vm1729_vm1 = vcmp.gt.f32.partialorder %v1417_v62, 0.2 }
 0x151   : > { %v3482_v9 = vpop.f32.mrf.mxu0  ;;  %v2861_v10 = vpop.f32.mrf.mxu1  ;;  %v2501_v63 = vsel %vm1729_vm1, 1.0, %v3152_v21 }
 0x152   : > { %v1420_v59 = vadd.f32 %v2861_v10, %v1131_v5  ;;  %vm1727_vm2 = vcmp.gt.f32.partialorder %v1409_v6, 0.2  ;;  %v1187_v57 = vadd.f32 %v3474_v49, %v3482_v9 }
 0x153   : > { %v1188_v14 = vpop.f32.mrf.mxu0  ;;  %v1411_v17 = vpop.f32.mrf.mxu1  ;;  %v2499_v30 = vsel %vm1727_vm2, 1.0, %v3152_v21 }
 0x154   : > { %vm1730_vm3 = vcmp.gt.f32.partialorder %v1420_v59, 0.2  ;;  %v1412_v51 = vadd.f32 %v1411_v17, %v1123_v13  ;;  %v1163_v14 = vadd.f32 %v3474_v49, %v3451_v31 }
 0x155   : > { %v2502_v55 = vsel %vm1730_vm3, 1.0, %v3152_v21  ;;  %v3495_v22 = vpop.f32.mrf.mxu0  ;;  %v2864_v25 = vpop.f32.mrf.mxu1 }
 0x156   : > { %v2697_v26 = vpack.c.bf16 %v2502_v55, %v2501_v63  ;;  %vm1728_vm4 = vcmp.gt.f32.partialorder %v1412_v51, 0.2  ;;  %v1433_v29 = vadd.f32 %v2864_v25, %v1144_v18 }
 0x157   : > { %v2500_v33 = vsel %vm1728_vm4, 1.0, %v3152_v21  ;;  %v1193_v34 = vpop.f32.mrf.mxu0  ;;  %v1424_v37 = vpop.f32.mrf.mxu1 }
 0x158   : > { %2789 = vst [vmem:[%s3492_s12 + $0x8] sm:$0xff] %v2697_v26   ;;  %v2694_v41 = vpack.c.bf16 %v2500_v33, %v2499_v30  ;;  %v1425_v42 = vadd.f32 %v1424_v37, %v1136_v11  ;;  %vm1733_vm5 = vcmp.gt.f32.partialorder %v1433_v29, 0.2  ;;  %v1176_v26 = vadd.f32 %v3474_v49, %v3463_v43 }
 0x159   : > { %v3504_v45 = vpop.f32.mrf.mxu0  ;;  %v2865_v46 = vpop.f32.mrf.mxu1  ;;  %v2505_v61 = vsel %vm1733_vm5, 1.0, %v3152_v21 }
 0x15a   : > { %2695 = vst [vmem:[%s3492_s12] sm:$0xff] %v2694_v41   ;;  %v1436_v50 = vadd.f32 %v2865_v46, %v1147_v38  ;;  %vm1731_vm6 = vcmp.gt.f32.partialorder %v1425_v42, 0.2 }
 0x15b   : > { %v1196_v53 = vpop.f32.mrf.mxu0  ;;  %v1427_v54 = vpop.f32.mrf.mxu1  ;;  %v2503_v27 = vsel %vm1731_vm6, 1.0, %v3152_v21 }
 0x15c   : > { %vm1734_vm7 = vcmp.gt.f32.partialorder %v1436_v50, 0.2  ;;  %v1428_v15 = vadd.f32 %v1427_v54, %v1139_v3  ;;  %v1179_v3 = vadd.f32 %v3474_v49, %v3467_v47 }
 0x15d   : > { %v2506_v62 = vsel %vm1734_vm7, 1.0, %v3152_v21  ;;  %v3513_v1 = vpop.f32.mrf.mxu0  ;;  %v2868_v2 = vpop.f32.mrf.mxu1 }
 0x15e   : > { %v2703_v5 = vpack.c.bf16 %v2506_v62, %v2505_v61  ;;  %vm1732_vm8 = vcmp.gt.f32.partialorder %v1428_v15, 0.2  ;;  %v1449_v6 = vadd.f32 %v2868_v2, %v1160_v58  ;;  %v1192_v2 = vadd.f32 %v3474_v49, %v3495_v22 }
 0x15f   : > { %v2504_v10 = vsel %vm1732_vm8, 1.0, %v3152_v21  ;;  %v1201_v13 = vpop.f32.mrf.mxu0  ;;  %v1440_v59 = vpop.f32.mrf.mxu1  ;;  %v1200_v9 = vadd.f32 %v3474_v49, %v3513_v1 }
 0x160   : > { %2791 = vst [vmem:[%s3492_s12 + $0x18] sm:$0xff] %v2703_v5   ;;  %v2700_v17 = vpack.c.bf16 %v2504_v10, %v2503_v27  ;;  %v1441_v18 = vadd.f32 %v1440_v59, %v1152_v7  ;;  %vm1737_vm9 = vcmp.gt.f32.partialorder %v1449_v6, 0.2 }
 0x161   : > { %v3522_v51 = vpop.f32.mrf.mxu0  ;;  %v2869_v63 = vpop.f32.mrf.mxu1  ;;  %v2509_v29 = vsel %vm1737_vm9, 1.0, %v3152_v21 }
 0x162   : > { %2790 = vst [vmem:[%s3492_s12 + $0x10] sm:$0xff] %v2700_v17   ;;  %v1452_v55 = vadd.f32 %v2869_v63, %v1163_v14  ;;  %vm1735_vm10 = vcmp.gt.f32.partialorder %v1441_v18, 0.2  ;;  %v1195_v18 = vadd.f32 %v3474_v49, %v3504_v45 }
 0x163   : > { %v1204_v25 = vpop.f32.mrf.mxu0  ;;  %v1443_v11 = vpop.f32.mrf.mxu1  ;;  %v2507_v41 = vsel %vm1735_vm10, 1.0, %v3152_v21 }
 0x164   : > { %vm1738_vm11 = vcmp.gt.f32.partialorder %v1452_v55, 0.2  ;;  %v1444_v31 = vadd.f32 %v1443_v11, %v1155_v19 }
 0x165   : > { %v2510_v30 = vsel %vm1738_vm11, 1.0, %v3152_v21  ;;  %v1207_v33 = vpop.f32.mrf.mxu0  ;;  %v2872_v34 = vpop.f32.mrf.mxu1 }
 0x166   : > { %v2709_v37 = vpack.c.bf16 %v2510_v30, %v2509_v29  ;;  %vm1736_vm12 = vcmp.gt.f32.partialorder %v1444_v31, 0.2  ;;  %v1465_v38 = vadd.f32 %v2872_v34, %v1176_v26  ;;  %v1208_v29 = vadd.f32 %v3474_v49, %v1207_v33 }
 0x167   : > { %v2508_v43 = vsel %vm1736_vm12, 1.0, %v3152_v21  ;;  %v1209_v42 = vpop.f32.mrf.mxu0  ;;  %v1456_v46 = vpop.f32.mrf.mxu1 }
 0x168   : > { %2793 = vst [vmem:[%s3492_s12 + $0x28] sm:$0xff] %v2709_v37   ;;  %v2706_v50 = vpack.c.bf16 %v2508_v43, %v2507_v41  ;;  %v1457_v53 = vadd.f32 %v1456_v46, %v1168_v23  ;;  %vm1741_vm13 = vcmp.gt.f32.partialorder %v1465_v38, 0.2 }
 0x169   : > { %v1210_v54 = vpop.f32.mrf.mxu0  ;;  %v2873_v58 = vpop.f32.mrf.mxu1  ;;  %v2513_v7 = vsel %vm1741_vm13, 1.0, %v3152_v21 }
 0x16a   : > { %2792 = vst [vmem:[%s3492_s12 + $0x20] sm:$0xff] %v2706_v50   ;;  %v1468_v15 = vadd.f32 %v2873_v58, %v1179_v3  ;;  %vm1739_vm14 = vcmp.gt.f32.partialorder %v1457_v53, 0.2  ;;  %v1211_v3 = vadd.f32 %v3474_v49, %v1210_v54 }
 0x16b   : > { %v1212_v61 = vpop.f32.mrf.mxu0  ;;  %v1459_v62 = vpop.f32.mrf.mxu1  ;;  %v2511_v59 = vsel %vm1739_vm14, 1.0, %v3152_v21 }
 0x16c   : > { %vm1742_vm15 = vcmp.gt.f32.partialorder %v1468_v15, 0.2  ;;  %v1460_v47 = vadd.f32 %v1459_v62, %v1171_v35  ;;  %v1203_v15 = vadd.f32 %v3474_v49, %v3522_v51 }
 0x16d   : > { %v2514_v5 = vsel %vm1742_vm15, 1.0, %v3152_v21  ;;  %v1215_v6 = vpop.f32.mrf.mxu0  ;;  %v2876_v27 = vpop.f32.mrf.mxu1 }
 0x16e   : > { %v2715_v10 = vpack.c.bf16 %v2514_v5, %v2513_v7  ;;  %vm1740_vm0 = vcmp.gt.f32.partialorder %v1460_v47, 0.2  ;;  %v1481_v13 = vadd.f32 %v2876_v27, %v1192_v2  ;;  %v1216_v51 = vadd.f32 %v3474_v49, %v1215_v6 }
 0x16f   : > { %v2512_v22 = vsel %vm1740_vm0, 1.0, %v3152_v21  ;;  %v1217_v14 = vpop.f32.mrf.mxu0  ;;  %v1472_v17 = vpop.f32.mrf.mxu1 }
 0x170   : > { %2795 = vst [vmem:[%s3492_s12 + $0x38] sm:$0xff] %v2715_v10   ;;  %v2712_v63 = vpack.c.bf16 %v2512_v22, %v2511_v59  ;;  %v1473_v19 = vadd.f32 %v1472_v17, %v1184_v39  ;;  %vm1745_vm1 = vcmp.gt.f32.partialorder %v1481_v13, 0.2 }
 0x171   : > { %v1218_v55 = vpop.f32.mrf.mxu0  ;;  %v2877_v25 = vpop.f32.mrf.mxu1  ;;  %v2517_v45 = vsel %vm1745_vm1, 1.0, %v3152_v21 }
 0x172   : > { %2794 = vst [vmem:[%s3492_s12 + $0x30] sm:$0xff] %v2712_v63   ;;  %v1484_v11 = vadd.f32 %v2877_v25, %v1195_v18  ;;  %vm1743_vm2 = vcmp.gt.f32.partialorder %v1473_v19, 0.2 }
 0x173   : > { %v1220_v26 = vpop.f32.mrf.mxu0  ;;  %v1475_v31 = vpop.f32.mrf.mxu1  ;;  %v2515_v43 = vsel %vm1743_vm2, 1.0, %v3152_v21 }
 0x174   : > { %vm1746_vm3 = vcmp.gt.f32.partialorder %v1484_v11, 0.2  ;;  %v1476_v30 = vadd.f32 %v1475_v31, %v1187_v57  ;;  %v1219_v57 = vadd.f32 %v3474_v49, %v1218_v55 }
 0x175   : > { %v2518_v34 = vsel %vm1746_vm3, 1.0, %v3152_v21  ;;  %v1223_v23 = vpop.f32.mrf.mxu0  ;;  %v2880_v37 = vpop.f32.mrf.mxu1 }
 0x176   : > { %v2721_v38 = vpack.c.bf16 %v2518_v34, %v2517_v45  ;;  %vm1744_vm4 = vcmp.gt.f32.partialorder %v1476_v30, 0.2  ;;  %v1497_v41 = vadd.f32 %v2880_v37, %v1208_v29  ;;  %v1224_v2 = vadd.f32 %v3474_v49, %v1223_v23 }
 0x177   : > { %v2516_v33 = vsel %vm1744_vm4, 1.0, %v3152_v21  ;;  %v1225_v42 = vpop.f32.mrf.mxu0  ;;  %v1488_v46 = vpop.f32.mrf.mxu1 }
 0x178   : > { %2797 = vst [vmem:[%s3492_s12 + $0x48] sm:$0xff] %v2721_v38   ;;  %v2718_v50 = vpack.c.bf16 %v2516_v33, %v2515_v43  ;;  %v1489_v53 = vadd.f32 %v1488_v46, %v1200_v9  ;;  %vm1749_vm5 = vcmp.gt.f32.partialorder %v1497_v41, 0.2 }
 0x179   : > { %v1226_v58 = vpop.f32.mrf.mxu0  ;;  %v2881_v35 = vpop.f32.mrf.mxu1  ;;  %v2521_v54 = vsel %vm1749_vm5, 1.0, %v3152_v21 }
 0x17a   : > { %2796 = vst [vmem:[%s3492_s12 + $0x40] sm:$0xff] %v2718_v50   ;;  %v1500_v1 = vadd.f32 %v2881_v35, %v1211_v3  ;;  %vm1747_vm6 = vcmp.gt.f32.partialorder %v1489_v53, 0.2  ;;  %v1227_v17 = vadd.f32 %v3474_v49, %v1226_v58 }
 0x17b   : > { %v1228_v61 = vpop.f32.mrf.mxu0  ;;  %v1491_v62 = vpop.f32.mrf.mxu1  ;;  %v2519_v13 = vsel %vm1747_vm6, 1.0, %v3152_v21 }
 0x17c   : > { %vm1750_vm7 = vcmp.gt.f32.partialorder %v1500_v1, 0.2  ;;  %v1492_v47 = vadd.f32 %v1491_v62, %v1203_v15 }
 0x17d   : > { %v2522_v7 = vsel %vm1750_vm7, 1.0, %v3152_v21  ;;  %v1231_v5 = vpop.f32.mrf.mxu0  ;;  %v2884_v27 = vpop.f32.mrf.mxu1 }
 0x17e   : > { %v2727_v39 = vpack.c.bf16 %v2522_v7, %v2521_v54  ;;  %vm1748_vm8 = vcmp.gt.f32.partialorder %v1492_v47, 0.2  ;;  %v1513_v10 = vadd.f32 %v2884_v27, %v1224_v2  ;;  %v1232_v23 = vadd.f32 %v3474_v49, %v1231_v5 }
 0x17f   : > { %v2520_v59 = vsel %vm1748_vm8, 1.0, %v3152_v21  ;;  %v1233_v22 = vpop.f32.mrf.mxu0  ;;  %v1504_v14 = vpop.f32.mrf.mxu1 }
 0x180   : > { %2799 = vst [vmem:[%s3492_s12 + $0x58] sm:$0xff] %v2727_v39   ;;  %v2724_v18 = vpack.c.bf16 %v2520_v59, %v2519_v13  ;;  %v1505_v63 = vadd.f32 %v1504_v14, %v1216_v51  ;;  %vm1753_vm9 = vcmp.gt.f32.partialorder %v1513_v10, 0.2 }
 0x181   : > { %v1234_v19 = vpop.f32.mrf.mxu0  ;;  %v2885_v25 = vpop.f32.mrf.mxu1  ;;  %v2525_v29 = vsel %vm1753_vm9, 1.0, %v3152_v21 }
 0x182   : > { %2798 = vst [vmem:[%s3492_s12 + $0x50] sm:$0xff] %v2724_v18   ;;  %v1516_v6 = vadd.f32 %v2885_v25, %v1227_v17  ;;  %vm1751_vm10 = vcmp.gt.f32.partialorder %v1505_v63, 0.2  ;;  %v1235_v53 = vadd.f32 %v3474_v49, %v1234_v19 }
 0x183   : > { %v1236_v11 = vpop.f32.mrf.mxu0  ;;  %v1507_v26 = vpop.f32.mrf.mxu1  ;;  %v2523_v9 = vsel %vm1751_vm10, 1.0, %v3152_v21 }
 0x184   : > { %vm1754_vm11 = vcmp.gt.f32.partialorder %v1516_v6, 0.2  ;;  %v1508_v31 = vadd.f32 %v1507_v26, %v1219_v57 }
 0x185   : > { %v2526_v30 = vsel %vm1754_vm11, 1.0, %v3152_v21  ;;  %v1239_v45 = vpop.f32.mrf.mxu0  ;;  %v2888_v34 = vpop.f32.mrf.mxu1 }
 0x186   : > { %v2733_v37 = vpack.c.bf16 %v2526_v30, %v2525_v29  ;;  %vm1752_vm12 = vcmp.gt.f32.partialorder %v1508_v31, 0.2  ;;  %v1240_v55 = vadd.f32 %v3474_v49, %v1239_v45 }
 0x187   : > { %v2524_v38 = vsel %vm1752_vm12, 1.0, %v3152_v21  ;;  %v1241_v41 = vpop.f32.mrf.mxu0  ;;  %v1520_v43 = vpop.f32.mrf.mxu1 }
 0x188   : > { %2801 = vst [vmem:[%s3492_s12 + $0x68] sm:$0xff] %v2733_v37   ;;  %v2730_v33 = vpack.c.bf16 %v2524_v38, %v2523_v9  ;;  %v1529_v42 = vadd.f32 %v2888_v34, %v1240_v55  ;;  %v1521_v46 = vadd.f32 %v1520_v43, %v1232_v23 }
 0x189   : > { %v1242_v3 = vpop.f32.mrf.mxu0  ;;  %v2889_v50 = vpop.f32.mrf.mxu1 }
 0x18a   : > { %2800 = vst [vmem:[%s3492_s12 + $0x60] sm:$0xff] %v2730_v33   ;;  %v1243_v58 = vadd.f32 %v3474_v49, %v1242_v3  ;;  %vm1757_vm13 = vcmp.gt.f32.partialorder %v1529_v42, 0.2  ;;  %vm1755_vm14 = vcmp.gt.f32.partialorder %v1521_v46, 0.2 }
 0x18b   : > { %v1244_v35 = vpop.f32.mrf.mxu0  ;;  %v1523_v15 = vpop.f32.mrf.mxu1  ;;  %v2529_v54 = vsel %vm1757_vm13, 1.0, %v3152_v21  ;;  %v2527_v7 = vsel %vm1755_vm14, 1.0, %v3152_v21 }
 0x18c   : > { %v1532_v1 = vadd.f32 %v2889_v50, %v1243_v58  ;;  %v1524_v61 = vadd.f32 %v1523_v15, %v1235_v53 }
 0x18d   : > { %v1247_v62 = vpop.f32.mrf.mxu0  ;;  %v2892_v2 = vpop.f32.mrf.mxu1 }
 0x18e   : > { %vm1758_vm15 = vcmp.gt.f32.partialorder %v1532_v1, 0.2  ;;  %vm1756_vm0 = vcmp.gt.f32.partialorder %v1524_v61, 0.2  ;;  %v1248_v47 = vadd.f32 %v3474_v49, %v1247_v62 }
 0x18f   : > { %v2530_v5 = vsel %vm1758_vm15, 1.0, %v3152_v21  ;;  %v2528_v27 = vsel %vm1756_vm0, 1.0, %v3152_v21  ;;  %v1249_v51 = vpop.f32.mrf.mxu0  ;;  %v1536_v39 = vpop.f32.mrf.mxu1 }
 0x190   : > { %v2739_v10 = vpack.c.bf16 %v2530_v5, %v2529_v54  ;;  %v2736_v13 = vpack.c.bf16 %v2528_v27, %v2527_v7  ;;  %v1537_v59 = vadd.f32 %v1536_v39, %v1248_v47 }
 0x191   : > { %v1250_v22 = vpop.f32.mrf.mxu0  ;;  %v2893_v14 = vpop.f32.mrf.mxu1 }
 0x192   : > { %2803 = vst [vmem:[%s3492_s12 + $0x78] sm:$0xff] %v2739_v10   ;;  %2802 = vst [vmem:[%s3492_s12 + $0x70] sm:$0xff] %v2736_v13   ;;  %v1251_v17 = vadd.f32 %v3474_v49, %v1250_v22  ;;  %vm1759_vm1 = vcmp.gt.f32.partialorder %v1537_v59, 0.2 }
 0x193   : > { %v1252_v18 = vpop.f32.mrf.mxu0  ;;  %v1539_v63 = vpop.f32.mrf.mxu1  ;;  %v2531_v11 = vsel %vm1759_vm1, 1.0, %v3152_v21 }
 0x194   : > { %v1540_v19 = vadd.f32 %v1539_v63, %v1251_v17  ;;  %v1320_v63 = vadd.f32 %v3474_v49, %v3421_v60  ;;  %v1323_v60 = vadd.f32 %v3474_v49, %v3423_v0 }
 0x195   : > { %v1255_v25 = vpop.f32.mrf.mxu0  ;;  %v2896_v57 = vpop.f32.mrf.mxu1 }
 0x196   : > { %vm1760_vm2 = vcmp.gt.f32.partialorder %v1540_v19, 0.2  ;;  %v1256_v6 = vadd.f32 %v3474_v49, %v1255_v25 }
 0x197   : > { %v2532_v26 = vsel %vm1760_vm2, 1.0, %v3152_v21  ;;  %v1257_v31 = vpop.f32.mrf.mxu0  ;;  %v1552_v29 = vpop.f32.mrf.mxu1 }
 0x198   : > { %v2742_v30 = vpack.c.bf16 %v2532_v26, %v2531_v11  ;;  %v1545_v45 = vadd.f32 %v2892_v2, %v1256_v6 }
 0x199   : > { %v1258_v34 = vpop.f32.mrf.mxu0  ;;  %v2897_v23 = vpop.f32.mrf.mxu1 }
 0x19a   : > { %2804 = vst [vmem:[%s3492_s12 + $0x80] sm:$0xff] %v2742_v30   ;;  %v1259_v37 = vadd.f32 %v3474_v49, %v1258_v34  ;;  %vm1761_vm3 = vcmp.gt.f32.partialorder %v1545_v45, 0.2 }
 0x19b   : > { %v1260_v55 = vpop.f32.mrf.mxu0  ;;  %v1555_v9 = vpop.f32.mrf.mxu1  ;;  %v2533_v42 = vsel %vm1761_vm3, 1.0, %v3152_v21 }
 0x19c   : > { %v1548_v38 = vadd.f32 %v2893_v14, %v1259_v37  ;;  %v1315_v55 = vadd.f32 %v3474_v49, %v3419_v56  ;;  %v1336_v56 = vadd.f32 %v3474_v49, %v3433_v12 }
 0x19d   : > { %v1263_v41 = vpop.f32.mrf.mxu0  ;;  %v3600_v43 = vpop.f32.mrf.mxu1 }
 0x19e   : > { %vm1762_vm4 = vcmp.gt.f32.partialorder %v1548_v38, 0.2  ;;  %v1264_v33 = vadd.f32 %v3474_v49, %v1263_v41 }
 0x19f   : > { %v2534_v46 = vsel %vm1762_vm4, 1.0, %v3152_v21  ;;  %v1265_v3 = vpop.f32.mrf.mxu0  ;;  %v1568_v50 = vpop.f32.mrf.mxu1 }
 0x1a0   : > { %v2745_v53 = vpack.c.bf16 %v2534_v46, %v2533_v42  ;;  %v1553_v58 = vadd.f32 %v1552_v29, %v1264_v33  ;;  %v1328_v33 = vadd.f32 %v3474_v49, %v3427_v4 }
 0x1a1   : > { %v1266_v35 = vpop.f32.mrf.mxu0  ;;  %v3605_v15 = vpop.f32.mrf.mxu1 }
 0x1a2   : > { %2805 = vst [vmem:[%s3492_s12 + $0x88] sm:$0xff] %v2745_v53   ;;  %v1267_v1 = vadd.f32 %v3474_v49, %v1266_v35  ;;  %vm1763_vm5 = vcmp.gt.f32.partialorder %v1553_v58, 0.2 }
 0x1a3   : > { %v1268_v61 = vpop.f32.mrf.mxu0  ;;  %v1571_v62 = vpop.f32.mrf.mxu1  ;;  %v2535_v5 = vsel %vm1763_vm5, 1.0, %v3152_v21 }
 0x1a4   : > { %v1556_v2 = vadd.f32 %v1555_v9, %v1267_v1 }
 0x1a5   : > { %v1271_v47 = vpop.f32.mrf.mxu0  ;;  %v3609_v54 = vpop.f32.mrf.mxu1 }
 0x1a6   : > { %vm1764_vm6 = vcmp.gt.f32.partialorder %v1556_v2, 0.2  ;;  %v1272_v7 = vadd.f32 %v3474_v49, %v1271_v47 }
 0x1a7   : > { %v2536_v27 = vsel %vm1764_vm6, 1.0, %v3152_v21  ;;  %v1273_v51 = vpop.f32.mrf.mxu0  ;;  %v3614_v39 = vpop.f32.mrf.mxu1 }
 0x1a8   : > { %v2748_v10 = vpack.c.bf16 %v2536_v27, %v2535_v5  ;;  %v1561_v13 = vadd.f32 %v2896_v57, %v1272_v7  ;;  %v1312_v57 = vadd.f32 %v3474_v49, %v3415_v52 }
 0x1a9   : > { %v1274_v59 = vpop.f32.mrf.mxu0  ;;  %v3616_v22 = vpop.f32.mrf.mxu1 }
 0x1aa   : > { %2806 = vst [vmem:[%s3492_s12 + $0x90] sm:$0xff] %v2748_v10   ;;  %v1275_v14 = vadd.f32 %v3474_v49, %v1274_v59  ;;  %vm1765_vm7 = vcmp.gt.f32.partialorder %v1561_v13, 0.2  ;;  %v1331_v59 = vadd.f32 %v3474_v49, %v3431_v8  ;;  %v1352_v8 = vadd.f32 %v3474_v49, %v3449_v28 }
 0x1ab   : > { %v1276_v17 = vpop.f32.mrf.mxu0  ;;  %v3620_v18 = vpop.f32.mrf.mxu1  ;;  %v2537_v31 = vsel %vm1765_vm7, 1.0, %v3152_v21 }
 0x1ac   : > { %v1564_v19 = vadd.f32 %v2897_v23, %v1275_v14  ;;  %v1339_v14 = vadd.f32 %v3474_v49, %v3437_v16 }
 0x1ad   : > { %v1279_v25 = vpop.f32.mrf.mxu0  ;;  %v2908_v6 = vpop.f32.mrf.mxu1 }
 0x1ae   : > { %vm1766_vm8 = vcmp.gt.f32.partialorder %v1564_v19, 0.2  ;;  %v1280_v11 = vadd.f32 %v3474_v49, %v1279_v25  ;;  %v1609_v26 = vadd.f32 %v2908_v6, %v1320_v63 }
 0x1af   : > { %v2538_v29 = vsel %vm1766_vm8, 1.0, %v3152_v21  ;;  %v1281_v30 = vpop.f32.mrf.mxu0  ;;  %v1600_v45 = vpop.f32.mrf.mxu1 }
 0x1b0   : > { %v2751_v34 = vpack.c.bf16 %v2538_v29, %v2537_v31  ;;  %v1569_v23 = vadd.f32 %v1568_v50, %v1280_v11  ;;  %v1601_v37 = vadd.f32 %v1600_v45, %v1312_v57  ;;  %vm1777_vm10 = vcmp.gt.f32.partialorder %v1609_v26, 0.2 }
 0x1b1   : > { %v1282_v52 = vpop.f32.mrf.mxu0  ;;  %v2909_v9 = vpop.f32.mrf.mxu1  ;;  %v2549_v53 = vsel %vm1777_vm10, 1.0, %v3152_v21 }
 0x1b2   : > { %2807 = vst [vmem:[%s3492_s12 + $0x98] sm:$0xff] %v2751_v34   ;;  %vm1767_vm9 = vcmp.gt.f32.partialorder %v1569_v23, 0.2  ;;  %v1283_v38 = vadd.f32 %v3474_v49, %v1282_v52  ;;  %v1612_v41 = vadd.f32 %v2909_v9, %v1323_v60  ;;  %vm1775_vm11 = vcmp.gt.f32.partialorder %v1601_v37, 0.2 }
 0x1b3   : > { %v1284_v42 = vpop.f32.mrf.mxu0  ;;  %v1603_v46 = vpop.f32.mrf.mxu1  ;;  %v2539_v50 = vsel %vm1767_vm9, 1.0, %v3152_v21 }
 0x1b4   : > { %v1572_v0 = vadd.f32 %v1571_v62, %v1283_v38  ;;  %vm1778_vm12 = vcmp.gt.f32.partialorder %v1612_v41, 0.2  ;;  %v1604_v3 = vadd.f32 %v1603_v46, %v1315_v55  ;;  %v2547_v62 = vsel %vm1775_vm11, 1.0, %v3152_v21 }
 0x1b5   : > { %v2550_v58 = vsel %vm1778_vm12, 1.0, %v3152_v21  ;;  %v1287_v35 = vpop.f32.mrf.mxu0  ;;  %v2912_v1 = vpop.f32.mrf.mxu1  ;;  %v1355_v42 = vadd.f32 %v3474_v49, %v3453_v32 }
 0x1b6   : > { %vm1768_vm13 = vcmp.gt.f32.partialorder %v1572_v0, 0.2  ;;  %v2769_v4 = vpack.c.bf16 %v2550_v58, %v2549_v53  ;;  %vm1776_vm14 = vcmp.gt.f32.partialorder %v1604_v3, 0.2  ;;  %v1288_v61 = vadd.f32 %v3474_v49, %v1287_v35 }
 0x1b7   : > { %v2540_v12 = vsel %vm1768_vm13, 1.0, %v3152_v21  ;;  %v2548_v2 = vsel %vm1776_vm14, 1.0, %v3152_v21  ;;  %v1625_v47 = vadd.f32 %v2912_v1, %v1336_v56  ;;  %v1289_v7 = vpop.f32.mrf.mxu0  ;;  %v1616_v5 = vpop.f32.mrf.mxu1  ;;  %v1360_v53 = vadd.f32 %v3474_v49, %v3457_v36 }
 0x1b8   : > { %v2754_v27 = vpack.c.bf16 %v2540_v12, %v2539_v50  ;;  %2813 = vst [vmem:[%s3492_s12 + $0xc8] sm:$0xff] %v2769_v4   ;;  %v2766_v51 = vpack.c.bf16 %v2548_v2, %v2547_v62  ;;  %v1577_v10 = vadd.f32 %v3600_v43, %v1288_v61  ;;  %v1617_v13 = vadd.f32 %v1616_v5, %v1328_v33 }
 0x1b9   : > { %v1290_v17 = vpop.f32.mrf.mxu0  ;;  %v2913_v63 = vpop.f32.mrf.mxu1  ;;  %vm1781_vm0 = vcmp.gt.f32.partialorder %v1625_v47, 0.2  ;;  %v1344_v43 = vadd.f32 %v3474_v49, %v3441_v20  ;;  %v1347_v33 = vadd.f32 %v3474_v49, %v3445_v24  ;;  %v1368_v24 = vadd.f32 %v3474_v49, %v3465_v44 }
 0x1ba   : > { %2808 = vst [vmem:[%s3492_s12 + $0xa0] sm:$0xff] %v2754_v27   ;;  %2812 = vst [vmem:[%s3492_s12 + $0xc0] sm:$0xff] %v2766_v51   ;;  %vm1769_vm15 = vcmp.gt.f32.partialorder %v1577_v10, 0.2  ;;  %vm1779_vm1 = vcmp.gt.f32.partialorder %v1617_v13, 0.2  ;;  %v1291_v19 = vadd.f32 %v3474_v49, %v1290_v17  ;;  %v1628_v25 = vadd.f32 %v2913_v63, %v1339_v14 }
 0x1bb   : > { %v1292_v6 = vpop.f32.mrf.mxu0  ;;  %v1619_v57 = vpop.f32.mrf.mxu1  ;;  %v2541_v26 = vsel %vm1769_vm15, 1.0, %v3152_v21  ;;  %v2553_v31 = vsel %vm1781_vm0, 1.0, %v3152_v21  ;;  %v2551_v29 = vsel %vm1779_vm1, 1.0, %v3152_v21  ;;  %v1363_v63 = vadd.f32 %v3474_v49, %v3461_v40 }
 0x1bc   : > { %v1580_v16 = vadd.f32 %v3605_v15, %v1291_v19  ;;  %v1620_v11 = vadd.f32 %v1619_v57, %v1331_v59  ;;  %vm1782_vm2 = vcmp.gt.f32.partialorder %v1628_v25, 0.2  ;;  %v1371_v59 = vadd.f32 %v3474_v49, %v3469_v48 }
 0x1bd   : > { %v1295_v30 = vpop.f32.mrf.mxu0  ;;  %v2916_v45 = vpop.f32.mrf.mxu1  ;;  %v2554_v60 = vsel %vm1782_vm2, 1.0, %v3152_v21 }
 0x1be   : > { %vm1770_vm3 = vcmp.gt.f32.partialorder %v1580_v16, 0.2  ;;  %vm1780_vm4 = vcmp.gt.f32.partialorder %v1620_v11, 0.2  ;;  %v1296_v20 = vadd.f32 %v3474_v49, %v1295_v30  ;;  %v2775_v15 = vpack.c.bf16 %v2554_v60, %v2553_v31 }
 0x1bf   : > { %v2542_v28 = vsel %vm1770_vm3, 1.0, %v3152_v21  ;;  %v2552_v34 = vsel %vm1780_vm4, 1.0, %v3152_v21  ;;  %v1641_v23 = vadd.f32 %v2916_v45, %v1352_v8  ;;  %v1297_v37 = vpop.f32.mrf.mxu0  ;;  %v1632_v55 = vpop.f32.mrf.mxu1 }
 0x1c0   : > { %v2757_v52 = vpack.c.bf16 %v2542_v28, %v2541_v26  ;;  %v2772_v9 = vpack.c.bf16 %v2552_v34, %v2551_v29  ;;  %v1585_v38 = vadd.f32 %v3614_v39, %v1296_v20  ;;  %v1633_v41 = vadd.f32 %v1632_v55, %v1344_v43  ;;  %2815 = vst [vmem:[%s3492_s12 + $0xd8] sm:$0xff] %v2775_v15  }
 0x1c1   : > { %v1298_v46 = vpop.f32.mrf.mxu0  ;;  %v2917_v0 = vpop.f32.mrf.mxu1  ;;  %vm1785_vm6 = vcmp.gt.f32.partialorder %v1641_v23, 0.2 }
 0x1c2   : > { %2809 = vst [vmem:[%s3492_s12 + $0xa8] sm:$0xff] %v2757_v52   ;;  %2814 = vst [vmem:[%s3492_s12 + $0xd0] sm:$0xff] %v2772_v9   ;;  %vm1771_vm5 = vcmp.gt.f32.partialorder %v1585_v38, 0.2  ;;  %vm1783_vm7 = vcmp.gt.f32.partialorder %v1633_v41, 0.2  ;;  %v1299_v3 = vadd.f32 %v3474_v49, %v1298_v46  ;;  %v1644_v56 = vadd.f32 %v2917_v0, %v1355_v42 }
 0x1c3   : > { %v1300_v50 = vpop.f32.mrf.mxu0  ;;  %v1635_v39 = vpop.f32.mrf.mxu1  ;;  %v2543_v35 = vsel %vm1771_vm5, 1.0, %v3152_v21  ;;  %v2557_v1 = vsel %vm1785_vm6, 1.0, %v3152_v21  ;;  %v2555_v4 = vsel %vm1783_vm7, 1.0, %v3152_v21 }
 0x1c4   : > { %v1588_v32 = vadd.f32 %v3620_v18, %v1299_v3  ;;  %v1636_v58 = vadd.f32 %v1635_v39, %v1347_v33  ;;  %vm1786_vm8 = vcmp.gt.f32.partialorder %v1644_v56, 0.2 }
 0x1c5   : > { %v1303_v61 = vpop.f32.mrf.mxu0  ;;  %v2920_v62 = vpop.f32.mrf.mxu1  ;;  %v2558_v12 = vsel %vm1786_vm8, 1.0, %v3152_v21 }
 0x1c6   : > { %vm1772_vm9 = vcmp.gt.f32.partialorder %v1588_v32, 0.2  ;;  %vm1784_vm10 = vcmp.gt.f32.partialorder %v1636_v58, 0.2  ;;  %v1304_v36 = vadd.f32 %v3474_v49, %v1303_v61  ;;  %v2781_v18 = vpack.c.bf16 %v2558_v12, %v2557_v1 }
 0x1c7   : > { %v2544_v44 = vsel %vm1772_vm9, 1.0, %v3152_v21  ;;  %v2556_v2 = vsel %vm1784_vm10, 1.0, %v3152_v21  ;;  %v1657_v47 = vadd.f32 %v2920_v62, %v1368_v24  ;;  %v1305_v7 = vpop.f32.mrf.mxu0  ;;  %v1648_v5 = vpop.f32.mrf.mxu1 }
 0x1c8   : > { %v2760_v27 = vpack.c.bf16 %v2544_v44, %v2543_v35  ;;  %v2778_v51 = vpack.c.bf16 %v2556_v2, %v2555_v4  ;;  %v1593_v10 = vadd.f32 %v3609_v54, %v1304_v36  ;;  %v1649_v13 = vadd.f32 %v1648_v5, %v1360_v53  ;;  %2817 = vst [vmem:[%s3492_s12 + $0xe8] sm:$0xff] %v2781_v18  }
 0x1c9   : > { %v1306_v14 = vpop.f32.mrf.mxu0  ;;  %v2921_v17 = vpop.f32.mrf.mxu1  ;;  %vm1789_vm11 = vcmp.gt.f32.partialorder %v1657_v47, 0.2 }
 0x1ca   : > { %2810 = vst [vmem:[%s3492_s12 + $0xb0] sm:$0xff] %v2760_v27   ;;  %2816 = vst [vmem:[%s3492_s12 + $0xe0] sm:$0xff] %v2778_v51   ;;  %v1307_v19 = vadd.f32 %v3474_v49, %v1306_v14  ;;  %vm1773_vm12 = vcmp.gt.f32.partialorder %v1593_v10, 0.2  ;;  %v1660_v25 = vadd.f32 %v2921_v17, %v1371_v59  ;;  %vm1787_vm13 = vcmp.gt.f32.partialorder %v1649_v13, 0.2 }
 0x1cb   : > { %v1308_v6 = vpop.f32.mrf.mxu0  ;;  %v1651_v57 = vpop.f32.mrf.mxu1  ;;  %v2561_v43 = vsel %vm1789_vm11, 1.0, %v3152_v21  ;;  %v2545_v40 = vsel %vm1773_vm12, 1.0, %v3152_v21  ;;  %v2559_v49 = vsel %vm1787_vm13, 1.0, %v3152_v21 }
 0x1cc   : > { %v1596_v48 = vadd.f32 %v3616_v22, %v1307_v19  ;;  %v1652_v54 = vadd.f32 %v1651_v57, %v1363_v63  ;;  %vm1790_vm14 = vcmp.gt.f32.partialorder %v1660_v25, 0.2 }
 0x1cd   : > { %v2562_v8 = vsel %vm1790_vm14, 1.0, %v3152_v21 }
 0x1ce   : > { %vm1774_vm15 = vcmp.gt.f32.partialorder %v1596_v48, 0.2  ;;  %vm1788_vm0 = vcmp.gt.f32.partialorder %v1652_v54, 0.2  ;;  %v2787_v11 = vpack.c.bf16 %v2562_v8, %v2561_v43 }
 0x1cf   : > { %v2546_v16 = vsel %vm1774_vm15, 1.0, %v3152_v21  ;;  %v2560_v26 = vsel %vm1788_vm0, 1.0, %v3152_v21 }
 0x1d0   : > { %v2763_v31 = vpack.c.bf16 %v2546_v16, %v2545_v40  ;;  %v2784_v22 = vpack.c.bf16 %v2560_v26, %v2559_v49  ;;  %2819 = vst [vmem:[%s3492_s12 + $0xf8] sm:$0xff] %v2787_v11  }
 0x1d2   : > { %2811 = vst [vmem:[%s3492_s12 + $0xb8] sm:$0xff] %v2763_v31   ;;  %2818 = vst [vmem:[%s3492_s12 + $0xf0] sm:$0xff] %v2784_v22  }
 0x1d3 PF: > { %s13_s14 = sadd.s32 1, %s3149_s14   ;;  %s3720_s12 = smov %s3145_s13 }
 0x1d4   : > { %p10_p5 = scmp.ge.s32.totalorder %s13_s14, 6   ;;  %s3721_s13 = smov %s3723_s15 }
 0x1d6   :  { %12 = sbr.rel (!%p10_p5) target bundleno = 2 (0x2), region = 68 }

// kernel: _forward_prefix.17
= control target key start
LH: loop header
LB: loop body
LE: loop exit
PB: predicated region body
PF: predicated region fallthrough
CT: control target
= control target key end

     0   :  { %s2465_s12 = smov 0   ;;  %s2960_s0 = inlined_call_operand.vmem [shape: bf16[1,2048,288], index: 0, kind: input, shape index: {}]   ;;  %s2961_s1 = inlined_call_operand.vmem [shape: bf16[288,128], index: 1, kind: input, shape index: {}]   ;;  %s2962_s2 = inlined_call_operand.vmem [shape: f32[1,128], index: 2, kind: input, shape index: {}]   ;;  %s2963_s3 = inlined_call_operand.vmem [shape: f32[2048,128], index: 3, kind: output, shape index: {}]  }
   0x1 LB: > { %s1860_s13 = sadd.s32 4294967295, %s2442_s12   ;;  %p1864_p0 = scmp.ge.s32.totalorder %s2442_s12, 1  ;;  %s2442_s12 = sphi %s2465_s12, %s13_s12  }
   0x2   : > { %p139_p1 = scmp.lt.s32.totalorder %s2442_s12, 5 }
   0x4   : > { %p140_p2 = pnand %p1864_p0, %p139_p1 }
   0x5   : > { %s1865_s16 = sshll.u32 (!%p140_p2), %s1860_s13, 6 }
   0x6   : > { %143 = sbr.rel (%p140_p2) target bundleno = 477 (0x1dd), region = 32  ;;  %p165_p3 = scmp.lt.s32.totalorder (!%p140_p2), %s1865_s16, 255 }
   0xb   : > { %v2162_v0 = vld [vmem:[%s2961_s1 + $0x38] sm:$0xff]   ;;  %v2444_v1 = vmov 0   ;;  %v2163_v2 = vld [vmem:[%s2961_s1 + $0x30] sm:$0xff]   ;;  %v2164_v3 = vld [vmem:[%s2961_s1 + $0x28] sm:$0xff]   ;;  %s2965_s16 = smov (!%p165_p3, %s1865_s16), 255  ;;  %vm937_vm0 = vcmask 261120  }
   0xc   : > { %1034 = vmatprep.subr.bf16.mxu0 %v2444_v1  ;;  %2120 = vmatprep.subr.bf16.mxu1 %v2444_v1  ;;  %v2165_v4 = vld [vmem:[%s2961_s1 + $0x20] sm:$0xff]   ;;  %s2152_s23 = smul.u32 12, %s2965_s16  ;;  %v2166_v5 = vld [vmem:[%s2961_s1 + $0x18] sm:$0xff]   ;;  %v2167_v7 = vld [vmem:[%s2961_s1 + $0x10] sm:$0xff]   ;;  %s1868_s5 = sshll.u32 %s2965_s16, 3 }
   0xd   : > { %1035 = vmatpush1.bf16.msra.mxu0 %v2162_v0  ;;  %2136 = vmatpush1.bf16.msra.mxu1 %v2162_v0  ;;  %v2168_v9 = vld [vmem:[%s2961_s1 + $0x8] sm:$0xff]   ;;  %v2169_v10 = vld [vmem:[%s2961_s1] sm:$0xff]   ;;  %v2170_v11 = vld [vmem:[%s2961_s1 + $0x78] sm:$0xff]   ;;  %s2783_s8 = scalar_lea.vmem %s2963_s3, %s1868_s5 }
   0xe   : > { %1036 = vmatprep.subr.bf16.mxu0 %v2444_v1  ;;  %2121 = vmatprep.subr.bf16.mxu1 %v2444_v1  ;;  %s2502_s28 = scalar_lea.vmem %s2960_s0, %s2152_s23  ;;  %v2171_v12 = vld [vmem:[%s2961_s1 + $0x70] sm:$0xff]   ;;  %v2172_v13 = vld [vmem:[%s2961_s1 + $0x68] sm:$0xff]   ;;  %v2173_v14 = vld [vmem:[%s2961_s1 + $0x60] sm:$0xff]  }
   0xf   : > { %v2180_v6 = vld [vmem:[%s2502_s28 + $0x4] ss:$12 sps:$4 sm:$0xff]   ;;  %v2174_v15 = vld [vmem:[%s2961_s1 + $0x58] sm:$0xff]   ;;  %v2176_v17 = vld [vmem:[%s2961_s1 + $0x48] sm:$0xff]  }
  0x10   : > { %v2183_v8 = vld [vmem:[%s2502_s28 + $0x244] ss:$12 sps:$4 sm:$0xff]   ;;  %1066 = vmatprep.mubr.bf16.mxu0 %v2180_v6  ;;  %v2184_v19 = vld [vmem:[%s2961_s1 + $0x88] sm:$0xff]   ;;  %v2191_v27 = vld [vmem:[%s2502_s28 + $0x34] ss:$12 sps:$4 sm:$0xff]  }
  0x11   : > { %1037 = vmatpush1.bf16.msra.mxu0 %v2163_v2  ;;  %2137 = vmatpush1.bf16.msra.mxu1 %v2163_v2  ;;  %v2175_v16 = vld [vmem:[%s2961_s1 + $0x50] sm:$0xff]   ;;  %v2177_v18 = vld [vmem:[%s2961_s1 + $0x40] sm:$0xff]   ;;  %v2185_v22 = vld [vmem:[%s2502_s28 + $0x1c] ss:$12 sps:$4 sm:$0xff]  }
  0x12   : > { %1038 = vmatprep.subr.bf16.mxu0 %v2444_v1  ;;  %2122 = vmatprep.subr.bf16.mxu1 %v2444_v1  ;;  %v2178_v20 = vld [vmem:[%s2502_s28] ss:$12 sps:$4 sm:$0xff]   ;;  %v2187_v23 = vld [vmem:[%s2502_s28 + $0x25c] ss:$12 sps:$4 sm:$0xff]   ;;  %v2189_v25 = vld [vmem:[%s2502_s28 + $0x18] ss:$12 sps:$4 sm:$0xff]  }
  0x13   : > { %1258 = vmatprep.mubr.bf16.mxu1 %v2183_v8  ;;  %v2181_v21 = vld [vmem:[%s2502_s28 + $0x240] ss:$12 sps:$4 sm:$0xff]   ;;  %v2190_v26 = vld [vmem:[%s2502_s28 + $0x258] ss:$12 sps:$4 sm:$0xff]   ;;  %v2195_v29 = vld [vmem:[%s2502_s28 + $0x30] ss:$12 sps:$4 sm:$0xff]  }
  0x14   : > { %v2209_v24 = vld [vmem:[%s2961_s1 + $0x80] sm:$0xff]   ;;  %v2196_v30 = vld [vmem:[%s2502_s28 + $0x270] ss:$12 sps:$4 sm:$0xff]   ;;  %v2197_v31 = vld [vmem:[%s2502_s28 + $0x4c] ss:$12 sps:$4 sm:$0xff]  }
  0x15   : > { %1039 = vmatpush1.bf16.msra.mxu0 %v2164_v3  ;;  %2138 = vmatpush1.bf16.msra.mxu1 %v2164_v3  ;;  %v2193_v28 = vld [vmem:[%s2502_s28 + $0x274] ss:$12 sps:$4 sm:$0xff]   ;;  %v2199_v32 = vld [vmem:[%s2502_s28 + $0x28c] ss:$12 sps:$4 sm:$0xff]   ;;  %v2203_v35 = vld [vmem:[%s2502_s28 + $0x64] ss:$12 sps:$4 sm:$0xff]  }
  0x16   : > { %1040 = vmatprep.subr.bf16.mxu0 %v2444_v1  ;;  %2123 = vmatprep.subr.bf16.mxu1 %v2444_v1  ;;  %v2201_v33 = vld [vmem:[%s2502_s28 + $0x48] ss:$12 sps:$4 sm:$0xff]   ;;  %v2205_v36 = vld [vmem:[%s2502_s28 + $0x2a4] ss:$12 sps:$4 sm:$0xff]   ;;  %v2207_v37 = vld [vmem:[%s2502_s28 + $0x60] ss:$12 sps:$4 sm:$0xff]  }
  0x17   : > { %v2202_v34 = vld [vmem:[%s2502_s28 + $0x288] ss:$12 sps:$4 sm:$0xff]   ;;  %v2208_v38 = vld [vmem:[%s2502_s28 + $0x2a0] ss:$12 sps:$4 sm:$0xff]   ;;  %v2214_v41 = vld [vmem:[%s2502_s28 + $0x78] ss:$12 sps:$4 sm:$0xff]  }
  0x18   : > { %v2210_v39 = vld [vmem:[%s2502_s28 + $0x7c] ss:$12 sps:$4 sm:$0xff]   ;;  %v2215_v42 = vld [vmem:[%s2502_s28 + $0x2b8] ss:$12 sps:$4 sm:$0xff]   ;;  %v2216_v43 = vld [vmem:[%s2502_s28 + $0x94] ss:$12 sps:$4 sm:$0xff]  }
  0x19   : > { %1041 = vmatpush1.bf16.msra.mxu0 %v2165_v4  ;;  %2139 = vmatpush1.bf16.msra.mxu1 %v2165_v4  ;;  %v2212_v40 = vld [vmem:[%s2502_s28 + $0x2bc] ss:$12 sps:$4 sm:$0xff]   ;;  %v2218_v44 = vld [vmem:[%s2502_s28 + $0x2d4] ss:$12 sps:$4 sm:$0xff]   ;;  %v2222_v47 = vld [vmem:[%s2502_s28 + $0xac] ss:$12 sps:$4 sm:$0xff]  }
  0x1a   : > { %1042 = vmatprep.subr.bf16.mxu0 %v2444_v1  ;;  %2124 = vmatprep.subr.bf16.mxu1 %v2444_v1  ;;  %v2220_v45 = vld [vmem:[%s2502_s28 + $0x90] ss:$12 sps:$4 sm:$0xff]   ;;  %v2224_v48 = vld [vmem:[%s2502_s28 + $0x2ec] ss:$12 sps:$4 sm:$0xff]   ;;  %v2226_v49 = vld [vmem:[%s2502_s28 + $0xa8] ss:$12 sps:$4 sm:$0xff]  }
  0x1b   : > { %v2221_v46 = vld [vmem:[%s2502_s28 + $0x2d0] ss:$12 sps:$4 sm:$0xff]   ;;  %v2227_v50 = vld [vmem:[%s2502_s28 + $0x2e8] ss:$12 sps:$4 sm:$0xff]   ;;  %v2231_v53 = vld [vmem:[%s2502_s28 + $0xc0] ss:$12 sps:$4 sm:$0xff]  }
  0x1c   : > { %v2228_v51 = vld [vmem:[%s2502_s28 + $0xc4] ss:$12 sps:$4 sm:$0xff]   ;;  %v2230_v52 = vld [vmem:[%s2502_s28 + $0x8] ss:$12 sps:$4 sm:$0xff]   ;;  %v2232_v54 = vld [vmem:[%s2502_s28 + $0x20] ss:$12 sps:$4 sm:$0xff]  }
  0x1d   : > { %1043 = vmatpush1.bf16.msra.mxu0 %v2166_v5  ;;  %2140 = vmatpush1.bf16.msra.mxu1 %v2166_v5  ;;  %v2233_v55 = vld [vmem:[%s2502_s28 + $0xdc] ss:$12 sps:$4 sm:$0xff]   ;;  %v2235_v56 = vld [vmem:[%s2502_s28 + $0x38] ss:$12 sps:$4 sm:$0xff]   ;;  %v2238_v59 = vld [vmem:[%s2502_s28 + $0xf4] ss:$12 sps:$4 sm:$0xff]  }
  0x1e   : > { %1044 = vmatprep.subr.bf16.mxu0 %v2444_v1  ;;  %2125 = vmatprep.subr.bf16.mxu1 %v2444_v1  ;;  %v2236_v57 = vld [vmem:[%s2502_s28 + $0xd8] ss:$12 sps:$4 sm:$0xff]   ;;  %v2237_v58 = vld [vmem:[%s2502_s28 + $0x50] ss:$12 sps:$4 sm:$0xff]   ;;  %v2240_v60 = vld [vmem:[%s2502_s28 + $0x68] ss:$12 sps:$4 sm:$0xff]  }
  0x1f   : > { %v2241_v61 = vld [vmem:[%s2502_s28 + $0xf0] ss:$12 sps:$4 sm:$0xff]   ;;  %v2242_v62 = vld [vmem:[%s2502_s28 + $0x80] ss:$12 sps:$4 sm:$0xff]   ;;  %v2245_v0 = vld [vmem:[%s2502_s28 + $0x98] ss:$12 sps:$4 sm:$0xff]  }
  0x20   : > { %v2243_v63 = vld [vmem:[%s2502_s28 + $0x10c] ss:$12 sps:$4 sm:$0xff]   ;;  %v2247_v2 = vld [vmem:[%s2502_s28 + $0xb0] ss:$12 sps:$4 sm:$0xff]   ;;  %v2250_v4 = vld [vmem:[%s2502_s28 + $0xc8] ss:$12 sps:$4 sm:$0xff]  }
  0x21   : > { %1045 = vmatpush1.bf16.msra.mxu0 %v2167_v7  ;;  %2141 = vmatpush1.bf16.msra.mxu1 %v2167_v7  ;;  %v2248_v3 = vld [vmem:[%s2502_s28 + $0x124] ss:$12 sps:$4 sm:$0xff]   ;;  %v2251_v5 = vld [vmem:[%s2502_s28 + $0x120] ss:$12 sps:$4 sm:$0xff]   ;;  %v2253_v7 = vld [vmem:[%s2502_s28 + $0x13c] ss:$12 sps:$4 sm:$0xff]  }
  0x22   : > { %1046 = vmatprep.subr.bf16.mxu0 %v2444_v1  ;;  %2126 = vmatprep.subr.bf16.mxu1 %v2444_v1  ;;  %v2252_v6 = vld [vmem:[%s2502_s28 + $0xe0] ss:$12 sps:$4 sm:$0xff]   ;;  %v2255_v8 = vld [vmem:[%s2502_s28 + $0xf8] ss:$12 sps:$4 sm:$0xff]  }
  0x25   : > { %1047 = vmatpush1.bf16.msra.mxu0 %v2168_v9  ;;  %2142 = vmatpush1.bf16.msra.mxu1 %v2168_v9  ;;  %v2256_v9 = vld [vmem:[%s2502_s28 + $0x138] ss:$12 sps:$4 sm:$0xff]  }
  0x26   : > { %1048 = vmatprep.subr.bf16.mxu0 %v2444_v1  ;;  %2127 = vmatprep.subr.bf16.mxu1 %v2444_v1 }
  0x29   : > { %1049 = vmatpush1.bf16.msra.mxu0 %v2169_v10  ;;  %2143 = vmatpush1.bf16.msra.mxu1 %v2169_v10  ;;  %v2257_v10 = vld [vmem:[%s2502_s28 + $0x110] ss:$12 sps:$4 sm:$0xff]  }
  0x2a   : > { %1050 = vmatprep.subr.bf16.mxu0 %v2444_v1  ;;  %2128 = vmatprep.subr.bf16.mxu1 %v2444_v1 }
  0x2d   : > { %1051 = vmatpush2.bf16.msra.mxu0 %v2170_v11  ;;  %2144 = vmatpush2.bf16.msra.mxu1 %v2170_v11  ;;  %v2258_v11 = vld [vmem:[%s2502_s28 + $0x154] ss:$12 sps:$4 sm:$0xff]  }
  0x2e   : > { %1052 = vmatprep.subr.bf16.mxu0 %v2444_v1  ;;  %2129 = vmatprep.subr.bf16.mxu1 %v2444_v1 }
  0x31   : > { %1053 = vmatpush2.bf16.msra.mxu0 %v2171_v12  ;;  %2145 = vmatpush2.bf16.msra.mxu1 %v2171_v12  ;;  %v2260_v12 = vld [vmem:[%s2502_s28 + $0x128] ss:$12 sps:$4 sm:$0xff]  }
  0x32   : > { %1054 = vmatprep.subr.bf16.mxu0 %v2444_v1  ;;  %2130 = vmatprep.subr.bf16.mxu1 %v2444_v1 }
  0x35   : > { %1055 = vmatpush2.bf16.msra.mxu0 %v2172_v13  ;;  %2146 = vmatpush2.bf16.msra.mxu1 %v2172_v13  ;;  %v2261_v13 = vld [vmem:[%s2502_s28 + $0x150] ss:$12 sps:$4 sm:$0xff]  }
  0x36   : > { %1056 = vmatprep.subr.bf16.mxu0 %v2444_v1  ;;  %2131 = vmatprep.subr.bf16.mxu1 %v2444_v1 }
  0x39   : > { %1057 = vmatpush2.bf16.msra.mxu0 %v2173_v14  ;;  %2147 = vmatpush2.bf16.msra.mxu1 %v2173_v14  ;;  %v2262_v14 = vld [vmem:[%s2502_s28 + $0x140] ss:$12 sps:$4 sm:$0xff]  }
  0x3a   : > { %1058 = vmatprep.subr.bf16.mxu0 %v2444_v1  ;;  %2132 = vmatprep.subr.bf16.mxu1 %v2444_v1 }
  0x3d   : > { %1059 = vmatpush2.bf16.msra.mxu0 %v2174_v15  ;;  %2148 = vmatpush2.bf16.msra.mxu1 %v2174_v15  ;;  %v2263_v15 = vld [vmem:[%s2502_s28 + $0x16c] ss:$12 sps:$4 sm:$0xff]  }
  0x3e   : > { %1060 = vmatprep.subr.bf16.mxu0 %v2444_v1  ;;  %2133 = vmatprep.subr.bf16.mxu1 %v2444_v1 }
  0x41   : > { %1061 = vmatpush2.bf16.msra.mxu0 %v2175_v16  ;;  %2149 = vmatpush2.bf16.msra.mxu1 %v2175_v16  ;;  %v2265_v16 = vld [vmem:[%s2502_s28 + $0x158] ss:$12 sps:$4 sm:$0xff]  }
  0x42   : > { %1062 = vmatprep.subr.bf16.mxu0 %v2444_v1  ;;  %2134 = vmatprep.subr.bf16.mxu1 %v2444_v1 }
  0x45   : > { %1063 = vmatpush2.bf16.msra.mxu0 %v2176_v17  ;;  %2150 = vmatpush2.bf16.msra.mxu1 %v2176_v17  ;;  %v2266_v17 = vld [vmem:[%s2502_s28 + $0x168] ss:$12 sps:$4 sm:$0xff]  }
  0x46   : > { %1064 = vmatprep.subr.bf16.mxu0 %v2444_v1  ;;  %2135 = vmatprep.subr.bf16.mxu1 %v2444_v1  ;;  %v2246_v1 = vld [vmem:[%s2502_s28 + $0x108] ss:$12 sps:$4 sm:$0xff]  }
  0x49   : > { %1065 = vmatpush2.bf16.msra.mxu0 %v2177_v18  ;;  %2151 = vmatpush2.bf16.msra.mxu1 %v2177_v18  ;;  %v2267_v18 = vld [vmem:[%s2502_s28 + $0x170] ss:$12 sps:$4 sm:$0xff]  }
  0x4a   : > { %2052 = vmatprep.subr.bf16.mxu1 %v2184_v19 }
  0x4c   : > { %1067 = vmatmul.mubr.bf16.vlgmr.msra.gmra.mxu0 %v2178_v20  ;;  %1259 = vmatmul.mubr.bf16.vlgmr.msra.gmra.mxu1 %v2181_v21  ;;  %v2270_v20 = vld [vmem:[%s2502_s28 + $0x188] ss:$12 sps:$4 sm:$0xff]   ;;  %v2271_v21 = vld [vmem:[%s2502_s28 + $0x180] ss:$12 sps:$4 sm:$0xff]  }
  0x4d   : > { %2053 = vmatpush3.bf16.msra.mxu1 %v2184_v19  ;;  %1074 = vmatprep.mubr.bf16.mxu0 %v2185_v22  ;;  %v2268_v19 = vld [vmem:[%s2502_s28 + $0x184] ss:$12 sps:$4 sm:$0xff]   ;;  %v2272_v22 = vld [vmem:[%s2502_s28 + $0x1a0] ss:$12 sps:$4 sm:$0xff]  }
  0x4e   : > { %1266 = vmatprep.mubr.bf16.mxu1 %v2187_v23  ;;  %2054 = vmatprep.subr.bf16.mxu1 %v2209_v24  ;;  %v2273_v23 = vld [vmem:[%s2502_s28 + $0x19c] ss:$12 sps:$4 sm:$0xff]  }
  0x51   : > { %2055 = vmatpush3.bf16.msra.mxu1 %v2209_v24  ;;  %v2275_v24 = vld [vmem:[%s2502_s28 + $0x1b8] ss:$12 sps:$4 sm:$0xff]  }
  0x54   : > { %1075 = vmatmul.mubr.bf16.gmra.mxu0 %v2189_v25  ;;  %1267 = vmatmul.mubr.bf16.gmra.mxu1 %v2190_v26  ;;  %v2276_v25 = vld [vmem:[%s2502_s28 + $0x198] ss:$12 sps:$4 sm:$0xff]   ;;  %v2277_v26 = vld [vmem:[%s2502_s28 + $0x1d0] ss:$12 sps:$4 sm:$0xff]  }
  0x55   : > { %1082 = vmatprep.mubr.bf16.mxu0 %v2191_v27  ;;  %1274 = vmatprep.mubr.bf16.mxu1 %v2193_v28  ;;  %v2278_v27 = vld [vmem:[%s2502_s28 + $0x1b4] ss:$12 sps:$4 sm:$0xff]  }
  0x56   : > { %v2280_v28 = vld [vmem:[%s2502_s28 + $0x1e8] ss:$12 sps:$4 sm:$0xff]  }
  0x5c   : > { %1083 = vmatmul.mubr.bf16.gmra.mxu0 %v2195_v29  ;;  %1275 = vmatmul.mubr.bf16.gmra.mxu1 %v2196_v30  ;;  %v2281_v29 = vld [vmem:[%s2502_s28 + $0x1b0] ss:$12 sps:$4 sm:$0xff]   ;;  %v2282_v30 = vld [vmem:[%s2502_s28 + $0x200] ss:$12 sps:$4 sm:$0xff]  }
  0x5d   : > { %1090 = vmatprep.mubr.bf16.mxu0 %v2197_v31  ;;  %1282 = vmatprep.mubr.bf16.mxu1 %v2199_v32  ;;  %v2283_v31 = vld [vmem:[%s2502_s28 + $0x1cc] ss:$12 sps:$4 sm:$0xff]  }
  0x5e   : > { %v2285_v32 = vld [vmem:[%s2502_s28 + $0x218] ss:$12 sps:$4 sm:$0xff]  }
  0x64   : > { %1091 = vmatmul.mubr.bf16.gmra.mxu0 %v2201_v33  ;;  %1283 = vmatmul.mubr.bf16.gmra.mxu1 %v2202_v34  ;;  %v2286_v33 = vld [vmem:[%s2502_s28 + $0x1c8] ss:$12 sps:$4 sm:$0xff]   ;;  %v2287_v34 = vld [vmem:[%s2502_s28 + $0x230] ss:$12 sps:$4 sm:$0xff]  }
  0x65   : > { %1098 = vmatprep.mubr.bf16.mxu0 %v2203_v35  ;;  %1290 = vmatprep.mubr.bf16.mxu1 %v2205_v36  ;;  %v2288_v35 = vld [vmem:[%s2502_s28 + $0x1e4] ss:$12 sps:$4 sm:$0xff]   ;;  %v2290_v36 = vld [vmem:[%s2502_s28 + $0x248] ss:$12 sps:$4 sm:$0xff]  }
  0x6c   : > { %1099 = vmatmul.mubr.bf16.gmra.mxu0 %v2207_v37  ;;  %1291 = vmatmul.mubr.bf16.gmra.mxu1 %v2208_v38  ;;  %v2291_v37 = vld [vmem:[%s2502_s28 + $0x1e0] ss:$12 sps:$4 sm:$0xff]  }
  0x6d   : > { %1106 = vmatprep.mubr.bf16.mxu0 %v2210_v39  ;;  %1298 = vmatprep.mubr.bf16.mxu1 %v2212_v40  ;;  %v2292_v38 = vld [vmem:[%s2502_s28 + $0x260] ss:$12 sps:$4 sm:$0xff]   ;;  %v2293_v39 = vld [vmem:[%s2502_s28 + $0x1fc] ss:$12 sps:$4 sm:$0xff]   ;;  %v2295_v40 = vld [vmem:[%s2502_s28 + $0x278] ss:$12 sps:$4 sm:$0xff]  }
  0x74   : > { %1107 = vmatmul.mubr.bf16.gmra.mxu0 %v2214_v41  ;;  %1299 = vmatmul.mubr.bf16.gmra.mxu1 %v2215_v42  ;;  %v2296_v41 = vld [vmem:[%s2502_s28 + $0x1f8] ss:$12 sps:$4 sm:$0xff]   ;;  %v2297_v42 = vld [vmem:[%s2502_s28 + $0x290] ss:$12 sps:$4 sm:$0xff]  }
  0x75   : > { %1114 = vmatprep.mubr.bf16.mxu0 %v2216_v43  ;;  %1306 = vmatprep.mubr.bf16.mxu1 %v2218_v44  ;;  %v2298_v43 = vld [vmem:[%s2502_s28 + $0x214] ss:$12 sps:$4 sm:$0xff]  }
  0x76   : > { %v2300_v44 = vld [vmem:[%s2502_s28 + $0x2a8] ss:$12 sps:$4 sm:$0xff]  }
  0x7c   : > { %1115 = vmatmul.mubr.bf16.gmra.mxu0 %v2220_v45  ;;  %1307 = vmatmul.mubr.bf16.gmra.mxu1 %v2221_v46  ;;  %v2301_v45 = vld [vmem:[%s2502_s28 + $0x210] ss:$12 sps:$4 sm:$0xff]   ;;  %v2302_v46 = vld [vmem:[%s2502_s28 + $0x2c0] ss:$12 sps:$4 sm:$0xff]  }
  0x7d   : > { %1122 = vmatprep.mubr.bf16.mxu0 %v2222_v47  ;;  %1314 = vmatprep.mubr.bf16.mxu1 %v2224_v48  ;;  %v2303_v47 = vld [vmem:[%s2502_s28 + $0x22c] ss:$12 sps:$4 sm:$0xff]  }
  0x7e   : > { %v2305_v48 = vld [vmem:[%s2502_s28 + $0x2d8] ss:$12 sps:$4 sm:$0xff]  }
  0x84   : > { %1123 = vmatmul.mubr.bf16.gmra.mxu0 %v2226_v49  ;;  %1315 = vmatmul.mubr.bf16.gmra.mxu1 %v2227_v50  ;;  %v2306_v49 = vld [vmem:[%s2502_s28 + $0x228] ss:$12 sps:$4 sm:$0xff]   ;;  %v2307_v50 = vld [vmem:[%s2502_s28 + $0x2f0] ss:$12 sps:$4 sm:$0xff]  }
  0x85   : > { %1130 = vmatprep.mubr.bf16.mxu0 %v2228_v51  ;;  %2056 = vmatprep.mubr.msk.bf16.mxu1 %vm937_vm0, %v2230_v52 }
  0x8c   : > { %1131 = vmatmul.mubr.bf16.gmra.mxu0 %v2231_v53  ;;  %2057 = vmatmul.mubr.msk.bf16.vlgmr.msra.gmra.mxu1 %vm937_vm0, %v2232_v54 }
  0x8d   : > { %1138 = vmatprep.mubr.bf16.mxu0 %v2233_v55  ;;  %2060 = vmatprep.mubr.msk.bf16.mxu1 %vm937_vm0, %v2235_v56 }
  0x94   : > { %1139 = vmatmul.mubr.bf16.gmra.mxu0 %v2236_v57  ;;  %2061 = vmatmul.mubr.msk.bf16.gmra.mxu1 %vm937_vm0, %v2237_v58 }
  0x95   : > { %1146 = vmatprep.mubr.bf16.mxu0 %v2238_v59  ;;  %2064 = vmatprep.mubr.msk.bf16.mxu1 %vm937_vm0, %v2240_v60 }
  0x9c   : > { %1147 = vmatmul.mubr.bf16.gmra.mxu0 %v2241_v61  ;;  %2065 = vmatmul.mubr.msk.bf16.gmra.mxu1 %vm937_vm0, %v2242_v62 }
  0x9d   : > { %1154 = vmatprep.mubr.bf16.mxu0 %v2243_v63  ;;  %2068 = vmatprep.mubr.msk.bf16.mxu1 %vm937_vm0, %v2245_v0 }
  0xa4   : > { %1155 = vmatmul.mubr.bf16.gmra.mxu0 %v2246_v1  ;;  %2069 = vmatmul.mubr.msk.bf16.gmra.mxu1 %vm937_vm0, %v2247_v2 }
  0xa5   : > { %1162 = vmatprep.mubr.bf16.mxu0 %v2248_v3  ;;  %2072 = vmatprep.mubr.msk.bf16.mxu1 %vm937_vm0, %v2250_v4 }
  0xac   : > { %1163 = vmatmul.mubr.bf16.gmra.mxu0 %v2251_v5  ;;  %2073 = vmatmul.mubr.msk.bf16.gmra.mxu1 %vm937_vm0, %v2252_v6 }
  0xad   : > { %1170 = vmatprep.mubr.bf16.mxu0 %v2253_v7  ;;  %2076 = vmatprep.mubr.msk.bf16.mxu1 %vm937_vm0, %v2255_v8 }
  0xb4   : > { %1171 = vmatmul.mubr.bf16.gmra.mxu0 %v2256_v9  ;;  %2077 = vmatmul.mubr.msk.bf16.gmra.mxu1 %vm937_vm0, %v2257_v10 }
  0xb5   : > { %1178 = vmatprep.mubr.bf16.mxu0 %v2258_v11  ;;  %2080 = vmatprep.mubr.msk.bf16.mxu1 %vm937_vm0, %v2260_v12 }
  0xbc   : > { %1179 = vmatmul.mubr.bf16.gmra.mxu0 %v2261_v13  ;;  %2081 = vmatmul.mubr.msk.bf16.gmra.mxu1 %vm937_vm0, %v2262_v14 }
  0xbd   : > { %1186 = vmatprep.mubr.bf16.mxu0 %v2263_v15  ;;  %2084 = vmatprep.mubr.msk.bf16.mxu1 %vm937_vm0, %v2265_v16 }
  0xc4   : > { %1187 = vmatmul.mubr.bf16.gmra.mxu0 %v2266_v17  ;;  %2085 = vmatmul.mubr.msk.bf16.gmra.mxu1 %vm937_vm0, %v2267_v18 }
  0xc5   : > { %1194 = vmatprep.mubr.bf16.mxu0 %v2268_v19  ;;  %2088 = vmatprep.mubr.msk.bf16.mxu1 %vm937_vm0, %v2270_v20 }
  0xcc   : > { %1195 = vmatmul.mubr.bf16.gmra.mxu0 %v2271_v21  ;;  %2089 = vmatmul.mubr.msk.bf16.gmra.mxu1 %vm937_vm0, %v2272_v22 }
  0xcd   : > { %1202 = vmatprep.mubr.bf16.mxu0 %v2273_v23  ;;  %2092 = vmatprep.mubr.msk.bf16.mxu1 %vm937_vm0, %v2275_v24 }
  0xd4   : > { %1203 = vmatmul.mubr.bf16.gmra.mxu0 %v2276_v25  ;;  %2093 = vmatmul.mubr.msk.bf16.gmra.mxu1 %vm937_vm0, %v2277_v26 }
  0xd5   : > { %1210 = vmatprep.mubr.bf16.mxu0 %v2278_v27  ;;  %2096 = vmatprep.mubr.msk.bf16.mxu1 %vm937_vm0, %v2280_v28 }
  0xdc   : > { %1211 = vmatmul.mubr.bf16.gmra.mxu0 %v2281_v29  ;;  %2097 = vmatmul.mubr.msk.bf16.gmra.mxu1 %vm937_vm0, %v2282_v30 }
  0xdd   : > { %1218 = vmatprep.mubr.bf16.mxu0 %v2283_v31  ;;  %2100 = vmatprep.mubr.msk.bf16.mxu1 %vm937_vm0, %v2285_v32 }
  0xe4   : > { %1219 = vmatmul.mubr.bf16.gmra.mxu0 %v2286_v33  ;;  %2101 = vmatmul.mubr.msk.bf16.gmra.mxu1 %vm937_vm0, %v2287_v34 }
  0xe5   : > { %1226 = vmatprep.mubr.bf16.mxu0 %v2288_v35  ;;  %2104 = vmatprep.mubr.msk.bf16.mxu1 %vm937_vm0, %v2290_v36 }
  0xec   : > { %1227 = vmatmul.mubr.bf16.gmra.mxu0 %v2291_v37  ;;  %2105 = vmatmul.mubr.msk.bf16.gmra.mxu1 %vm937_vm0, %v2292_v38 }
  0xed   : > { %1234 = vmatprep.mubr.bf16.mxu0 %v2293_v39  ;;  %2108 = vmatprep.mubr.msk.bf16.mxu1 %vm937_vm0, %v2295_v40 }
  0xf4   : > { %1235 = vmatmul.mubr.bf16.gmra.mxu0 %v2296_v41  ;;  %2109 = vmatmul.mubr.msk.bf16.gmra.mxu1 %vm937_vm0, %v2297_v42 }
  0xf5   : > { %1242 = vmatprep.mubr.bf16.mxu0 %v2298_v43  ;;  %2112 = vmatprep.mubr.msk.bf16.mxu1 %vm937_vm0, %v2300_v44 }
  0xfc   : > { %1243 = vmatmul.mubr.bf16.gmra.mxu0 %v2301_v45  ;;  %2113 = vmatmul.mubr.msk.bf16.gmra.mxu1 %vm937_vm0, %v2302_v46 }
  0xfd   : > { %1250 = vmatprep.mubr.bf16.mxu0 %v2303_v47  ;;  %2116 = vmatprep.mubr.msk.bf16.mxu1 %vm937_vm0, %v2305_v48 }
 0x104   : > { %1251 = vmatmul.mubr.bf16.gmra.mxu0 %v2306_v49  ;;  %2117 = vmatmul.mubr.msk.bf16.gmra.mxu1 %vm937_vm0, %v2307_v50  ;;  %v2756_v49 = vld [vmem:[%s2962_s2] ss:$0 sm:$0xff] }
 0x10c   : > { %v2695_v51 = vpop.f32.mrf.mxu0  ;;  %v2697_v52 = vpop.f32.mrf.mxu1 }
 0x10e   : > { %v1070_v53 = vpop.f32.mrf.mxu0  ;;  %v1262_v54 = vpop.f32.mrf.mxu1 }
 0x110   : > { %v2699_v55 = vpop.f32.mrf.mxu0  ;;  %v2701_v56 = vpop.f32.mrf.mxu1 }
 0x112   : > { %v1073_v57 = vpop.f32.mrf.mxu0  ;;  %v1265_v58 = vpop.f32.mrf.mxu1 }
 0x114   : > { %v1076_v59 = vpop.f32.mrf.mxu0  ;;  %v2703_v60 = vpop.f32.mrf.mxu1 }
 0x115   : > { %v1077_v54 = vadd.f32 %v2756_v49, %v1076_v59 }
 0x116   : > { %v1078_v61 = vpop.f32.mrf.mxu0  ;;  %v1270_v62 = vpop.f32.mrf.mxu1 }
 0x117   : > { %v1069_v61 = vadd.f32 %v2756_v49, %v2695_v51 }
 0x118   : > { %v1079_v63 = vpop.f32.mrf.mxu0  ;;  %v2705_v0 = vpop.f32.mrf.mxu1 }
 0x11a   : > { %v1081_v1 = vpop.f32.mrf.mxu0  ;;  %v1273_v2 = vpop.f32.mrf.mxu1 }
 0x11c   : > { %v2707_v3 = vpop.f32.mrf.mxu0  ;;  %v2709_v4 = vpop.f32.mrf.mxu1 }
 0x11e   : > { %v1086_v5 = vpop.f32.mrf.mxu0  ;;  %v1278_v6 = vpop.f32.mrf.mxu1 }
 0x11f   : > { %v1080_v5 = vadd.f32 %v2756_v49, %v1079_v63 }
 0x120   : > { %v2711_v7 = vpop.f32.mrf.mxu0  ;;  %v2713_v8 = vpop.f32.mrf.mxu1 }
 0x122   : > { %v1089_v9 = vpop.f32.mrf.mxu0  ;;  %v1281_v10 = vpop.f32.mrf.mxu1 }
 0x124   : > { %v1092_v11 = vpop.f32.mrf.mxu0  ;;  %v2715_v12 = vpop.f32.mrf.mxu1 }
 0x125   : > { %v1093_v51 = vadd.f32 %v2756_v49, %v1092_v11 }
 0x126   : > { %v1094_v13 = vpop.f32.mrf.mxu0  ;;  %v1286_v14 = vpop.f32.mrf.mxu1 }
 0x127   : > { %v1072_v13 = vadd.f32 %v2756_v49, %v2699_v55 }
 0x128   : > { %v2717_v15 = vpop.f32.mrf.mxu0  ;;  %v2719_v16 = vpop.f32.mrf.mxu1 }
 0x129   : > { %v1096_v55 = vadd.f32 %v2756_v49, %v2717_v15 }
 0x12a   : > { %v1097_v17 = vpop.f32.mrf.mxu0  ;;  %v1289_v18 = vpop.f32.mrf.mxu1 }
 0x12c   : > { %v2721_v19 = vpop.f32.mrf.mxu0  ;;  %v2723_v20 = vpop.f32.mrf.mxu1 }
 0x12e   : > { %v1102_v21 = vpop.f32.mrf.mxu0  ;;  %v1294_v22 = vpop.f32.mrf.mxu1 }
 0x12f   : > { %v1085_v22 = vadd.f32 %v2756_v49, %v2707_v3 }
 0x130   : > { %v2725_v23 = vpop.f32.mrf.mxu0  ;;  %v2727_v24 = vpop.f32.mrf.mxu1 }
 0x132   : > { %v1105_v25 = vpop.f32.mrf.mxu0  ;;  %v1297_v26 = vpop.f32.mrf.mxu1 }
 0x134   : > { %v2729_v27 = vpop.f32.mrf.mxu0  ;;  %v2731_v28 = vpop.f32.mrf.mxu1 }
 0x136   : > { %v1110_v29 = vpop.f32.mrf.mxu0  ;;  %v1302_v30 = vpop.f32.mrf.mxu1 }
 0x138   : > { %v2733_v31 = vpop.f32.mrf.mxu0  ;;  %v2735_v32 = vpop.f32.mrf.mxu1 }
 0x13a   : > { %v1113_v33 = vpop.f32.mrf.mxu0  ;;  %v1305_v34 = vpop.f32.mrf.mxu1 }
 0x13b   : > { %v1088_v34 = vadd.f32 %v2756_v49, %v2711_v7 }
 0x13c   : > { %v2737_v35 = vpop.f32.mrf.mxu0  ;;  %v2739_v36 = vpop.f32.mrf.mxu1 }
 0x13e   : > { %v1118_v37 = vpop.f32.mrf.mxu0  ;;  %v1310_v38 = vpop.f32.mrf.mxu1 }
 0x13f   : > { %v1109_v38 = vadd.f32 %v2756_v49, %v2729_v27  ;;  %v1112_v27 = vadd.f32 %v2756_v49, %v2733_v31 }
 0x140   : > { %v2741_v39 = vpop.f32.mrf.mxu0  ;;  %v2743_v40 = vpop.f32.mrf.mxu1 }
 0x142   : > { %v1121_v41 = vpop.f32.mrf.mxu0  ;;  %v1313_v42 = vpop.f32.mrf.mxu1 }
 0x144   : > { %v2745_v43 = vpop.f32.mrf.mxu0  ;;  %v2747_v44 = vpop.f32.mrf.mxu1 }
 0x145   : > { %v1125_v31 = vadd.f32 %v2756_v49, %v2745_v43 }
 0x146   : > { %v1126_v45 = vpop.f32.mrf.mxu0  ;;  %v1318_v46 = vpop.f32.mrf.mxu1 }
 0x147   : > { %v1101_v46 = vadd.f32 %v2756_v49, %v2721_v19  ;;  %v1104_v19 = vadd.f32 %v2756_v49, %v2725_v23  ;;  %v1117_v23 = vadd.f32 %v2756_v49, %v2737_v35  ;;  %v1120_v35 = vadd.f32 %v2756_v49, %v2741_v39 }
 0x148   : > { %v2749_v47 = vpop.f32.mrf.mxu0  ;;  %v2751_v48 = vpop.f32.mrf.mxu1 }
 0x149   : > { %v1128_v43 = vadd.f32 %v2756_v49, %v2749_v47 }
 0x14a   : > { %v1129_v50 = vpop.f32.mrf.mxu0  ;;  %v1321_v53 = vpop.f32.mrf.mxu1 }
 0x14c   : > { %v2759_v57 = vpop.f32.mrf.mxu0  ;;  %v2058_v58 = vpop.f32.mrf.mxu1 }
 0x14d   : > { %v1366_v62 = vadd.f32 %v2058_v58, %v1077_v54  ;;  %v1133_v39 = vadd.f32 %v2756_v49, %v2759_v57 }
 0x14e   : > { %v1134_v1 = vpop.f32.mrf.mxu0  ;;  %v1357_v2 = vpop.f32.mrf.mxu1 }
 0x14f   : > { %2308 = vtanh.f32 %v1366_v62  ;;  %v1358_v6 = vadd.f32 %v1357_v2, %v1069_v61 }
 0x150   : > { %v2764_v9 = vpop.f32.mrf.mxu0  ;;  %v2059_v10 = vpop.f32.mrf.mxu1 }
 0x151   : > { %2310 = vtanh.f32 %v1358_v6  ;;  %v1369_v59 = vadd.f32 %v2059_v10, %v1080_v5  ;;  %v1136_v57 = vadd.f32 %v2756_v49, %v2764_v9 }
 0x152   : > { %v1137_v14 = vpop.f32.mrf.mxu0  ;;  %v1360_v17 = vpop.f32.mrf.mxu1 }
 0x153   : > { %2312 = vtanh.f32 %v1369_v59  ;;  %v1361_v18 = vadd.f32 %v1360_v17, %v1072_v13 }
 0x154   : > { %v2769_v21 = vpop.f32.mrf.mxu0  ;;  %v2062_v63 = vpop.f32.mrf.mxu1 }
 0x155   : > { %2314 = vtanh.f32 %v1361_v18  ;;  %v1382_v25 = vadd.f32 %v2062_v63, %v1093_v51  ;;  %v1141_v47 = vadd.f32 %v2756_v49, %v2769_v21 }
 0x156   : > { %v1142_v26 = vpop.f32.mrf.mxu0  ;;  %v1373_v29 = vpop.f32.mrf.mxu1 }
 0x157   : > { %2316 = vtanh.f32 %v1382_v25  ;;  %v1374_v30 = vadd.f32 %v1373_v29, %v1085_v22 }
 0x158   : > { %v2776_v33 = vpop.f32.mrf.mxu0  ;;  %v2063_v11 = vpop.f32.mrf.mxu1 }
 0x159   : > { %2318 = vtanh.f32 %v1374_v30  ;;  %v1385_v37 = vadd.f32 %v2063_v11, %v1096_v55  ;;  %v1144_v21 = vadd.f32 %v2756_v49, %v2776_v33 }
 0x15a   : > { %v1145_v3 = vpop.f32.mrf.mxu0  ;;  %v1376_v15 = vpop.f32.mrf.mxu1 }
 0x15b   : > { %2320 = vtanh.f32 %v1385_v37  ;;  %v1377_v41 = vadd.f32 %v1376_v15, %v1088_v34 }
 0x15c   : > { %v2309_v42 = vpop.eup %2308  ;;  %v2787_v45 = vpop.f32.mrf.mxu0 }
 0x15d   : > { %v2066_v7 = vpop.f32.mrf.mxu1  ;;  %1742 = vst [vmem:[%s2783_s8 + $0x10] sm:$0xff] %v2309_v42  ;;  %2322 = vtanh.f32 %v1377_v41 }
 0x15e   : > { %v1398_v50 = vadd.f32 %v2066_v7, %v1109_v38  ;;  %v2311_v53 = vpop.eup %2310  ;;  %v1150_v54 = vpop.f32.mrf.mxu0 }
 0x15f   : > { %v1389_v58 = vpop.f32.mrf.mxu1  ;;  %1740 = vst [vmem:[%s2783_s8] sm:$0xff] %v2311_v53 }
 0x160   : > { %2324 = vtanh.f32 %v1398_v50  ;;  %v1390_v61 = vadd.f32 %v1389_v58, %v1101_v46  ;;  %v2313_v62 = vpop.eup %2312  ;;  %v2795_v1 = vpop.f32.mrf.mxu0 }
 0x161   : > { %v2067_v2 = vpop.f32.mrf.mxu1  ;;  %1743 = vst [vmem:[%s2783_s8 + $0x18] sm:$0xff] %v2313_v62 }
 0x162   : > { %2326 = vtanh.f32 %v1390_v61  ;;  %v1401_v5 = vadd.f32 %v2067_v2, %v1112_v27  ;;  %v2315_v6 = vpop.eup %2314  ;;  %v1153_v10 = vpop.f32.mrf.mxu0 }
 0x163   : > { %v1392_v13 = vpop.f32.mrf.mxu1  ;;  %1741 = vst [vmem:[%s2783_s8 + $0x8] sm:$0xff] %v2315_v6 }
 0x164   : > { %2328 = vtanh.f32 %v1401_v5  ;;  %v1393_v59 = vadd.f32 %v1392_v13, %v1104_v19  ;;  %v2317_v14 = vpop.eup %2316  ;;  %v1156_v17 = vpop.f32.mrf.mxu0 }
 0x165   : > { %v2070_v51 = vpop.f32.mrf.mxu1  ;;  %1746 = vst [vmem:[%s2783_s8 + $0x30] sm:$0xff] %v2317_v14  ;;  %v1157_v33 = vadd.f32 %v2756_v49, %v1156_v17 }
 0x166   : > { %2330 = vtanh.f32 %v1393_v59  ;;  %v1414_v18 = vadd.f32 %v2070_v51, %v1125_v31  ;;  %v2319_v63 = vpop.eup %2318  ;;  %v1158_v22 = vpop.f32.mrf.mxu0  ;;  %v1149_v59 = vadd.f32 %v2756_v49, %v2787_v45 }
 0x167   : > { %v1405_v25 = vpop.f32.mrf.mxu1  ;;  %1744 = vst [vmem:[%s2783_s8 + $0x20] sm:$0xff] %v2319_v63 }
 0x168   : > { %2332 = vtanh.f32 %v1414_v18  ;;  %v1406_v26 = vadd.f32 %v1405_v25, %v1117_v23  ;;  %v2321_v29 = vpop.eup %2320  ;;  %v1159_v55 = vpop.f32.mrf.mxu0 }
 0x169   : > { %v2071_v30 = vpop.f32.mrf.mxu1  ;;  %1747 = vst [vmem:[%s2783_s8 + $0x38] sm:$0xff] %v2321_v29  ;;  %v1160_v18 = vadd.f32 %v2756_v49, %v1159_v55 }
 0x16a   : > { %2334 = vtanh.f32 %v1406_v26  ;;  %v1417_v11 = vadd.f32 %v2071_v30, %v1128_v43  ;;  %v2323_v34 = vpop.eup %2322  ;;  %v1161_v37 = vpop.f32.mrf.mxu0  ;;  %v1152_v43 = vadd.f32 %v2756_v49, %v2795_v1 }
 0x16b   : > { %v1408_v3 = vpop.f32.mrf.mxu1  ;;  %1745 = vst [vmem:[%s2783_s8 + $0x28] sm:$0xff] %v2323_v34 }
 0x16c   : > { %2336 = vtanh.f32 %v1417_v11  ;;  %v1409_v15 = vadd.f32 %v1408_v3, %v1120_v35  ;;  %v1164_v41 = vpop.f32.mrf.mxu0 }
 0x16d   : > { %v2325_v38 = vpop.eup %2324  ;;  %v2074_v42 = vpop.f32.mrf.mxu1  ;;  %v1165_v3 = vadd.f32 %v2756_v49, %v1164_v41 }
 0x16e   : > { %1750 = vst [vmem:[%s2783_s8 + $0x50] sm:$0xff] %v2325_v38  ;;  %2338 = vtanh.f32 %v1409_v15  ;;  %v1430_v7 = vadd.f32 %v2074_v42, %v1141_v47  ;;  %v1166_v50 = vpop.f32.mrf.mxu0 }
 0x16f   : > { %v2327_v46 = vpop.eup %2326  ;;  %v1421_v53 = vpop.f32.mrf.mxu1 }
 0x170   : > { %1748 = vst [vmem:[%s2783_s8 + $0x40] sm:$0xff] %v2327_v46  ;;  %2340 = vtanh.f32 %v1430_v7  ;;  %v1422_v54 = vadd.f32 %v1421_v53, %v1133_v39  ;;  %v1167_v27 = vpop.f32.mrf.mxu0 }
 0x171   : > { %v2329_v58 = vpop.eup %2328  ;;  %v2075_v61 = vpop.f32.mrf.mxu1  ;;  %v1168_v53 = vadd.f32 %v2756_v49, %v1167_v27 }
 0x172   : > { %1751 = vst [vmem:[%s2783_s8 + $0x58] sm:$0xff] %v2329_v58  ;;  %2342 = vtanh.f32 %v1422_v54  ;;  %v1433_v62 = vadd.f32 %v2075_v61, %v1144_v21  ;;  %v1169_v19 = vpop.f32.mrf.mxu0 }
 0x173   : > { %v2331_v2 = vpop.eup %2330  ;;  %v1424_v5 = vpop.f32.mrf.mxu1 }
 0x174   : > { %1749 = vst [vmem:[%s2783_s8 + $0x48] sm:$0xff] %v2331_v2  ;;  %2344 = vtanh.f32 %v1433_v62  ;;  %v1425_v6 = vadd.f32 %v1424_v5, %v1136_v57  ;;  %v1172_v13 = vpop.f32.mrf.mxu0 }
 0x175   : > { %v2333_v10 = vpop.eup %2332  ;;  %v2078_v31 = vpop.f32.mrf.mxu1  ;;  %v1173_v35 = vadd.f32 %v2756_v49, %v1172_v13 }
 0x176   : > { %1754 = vst [vmem:[%s2783_s8 + $0x70] sm:$0xff] %v2333_v10  ;;  %2346 = vtanh.f32 %v1425_v6  ;;  %v1446_v9 = vadd.f32 %v2078_v31, %v1157_v33  ;;  %v1174_v51 = vpop.f32.mrf.mxu0 }
 0x177   : > { %v2335_v14 = vpop.eup %2334  ;;  %v1437_v23 = vpop.f32.mrf.mxu1 }
 0x178   : > { %1752 = vst [vmem:[%s2783_s8 + $0x60] sm:$0xff] %v2335_v14  ;;  %2348 = vtanh.f32 %v1446_v9  ;;  %v1438_v17 = vadd.f32 %v1437_v23, %v1149_v59  ;;  %v1175_v22 = vpop.f32.mrf.mxu0 }
 0x179   : > { %v2337_v63 = vpop.eup %2336  ;;  %v2079_v25 = vpop.f32.mrf.mxu1  ;;  %v1176_v42 = vadd.f32 %v2756_v49, %v1175_v22 }
 0x17a   : > { %1755 = vst [vmem:[%s2783_s8 + $0x78] sm:$0xff] %v2337_v63  ;;  %2350 = vtanh.f32 %v1438_v17  ;;  %v1449_v45 = vadd.f32 %v2079_v25, %v1160_v18  ;;  %v1177_v29 = vpop.f32.mrf.mxu0 }
 0x17b   : > { %v2339_v26 = vpop.eup %2338  ;;  %v1440_v30 = vpop.f32.mrf.mxu1 }
 0x17c   : > { %1753 = vst [vmem:[%s2783_s8 + $0x68] sm:$0xff] %v2339_v26  ;;  %2352 = vtanh.f32 %v1449_v45  ;;  %v1441_v55 = vadd.f32 %v1440_v30, %v1152_v43  ;;  %v1180_v34 = vpop.f32.mrf.mxu0 }
 0x17d   : > { %v2341_v11 = vpop.eup %2340  ;;  %v2082_v37 = vpop.f32.mrf.mxu1  ;;  %v1181_v19 = vadd.f32 %v2756_v49, %v1180_v34 }
 0x17e   : > { %1758 = vst [vmem:[%s2783_s8 + $0x90] sm:$0xff] %v2341_v11  ;;  %2354 = vtanh.f32 %v1441_v55  ;;  %v1462_v1 = vadd.f32 %v2082_v37, %v1173_v35  ;;  %v1182_v15 = vpop.f32.mrf.mxu0 }
 0x17f   : > { %v2343_v47 = vpop.eup %2342  ;;  %v1453_v38 = vpop.f32.mrf.mxu1 }
 0x180   : > { %1756 = vst [vmem:[%s2783_s8 + $0x80] sm:$0xff] %v2343_v47  ;;  %2356 = vtanh.f32 %v1462_v1  ;;  %v1454_v39 = vadd.f32 %v1453_v38, %v1165_v3  ;;  %v1183_v46 = vpop.f32.mrf.mxu0 }
 0x181   : > { %v2345_v7 = vpop.eup %2344  ;;  %v2083_v50 = vpop.f32.mrf.mxu1  ;;  %v1184_v14 = vadd.f32 %v2756_v49, %v1183_v46 }
 0x182   : > { %1759 = vst [vmem:[%s2783_s8 + $0x98] sm:$0xff] %v2345_v7  ;;  %2358 = vtanh.f32 %v1454_v39  ;;  %v1465_v41 = vadd.f32 %v2083_v50, %v1176_v42  ;;  %v1185_v54 = vpop.f32.mrf.mxu0 }
 0x183   : > { %v2347_v21 = vpop.eup %2346  ;;  %v1456_v58 = vpop.f32.mrf.mxu1 }
 0x184   : > { %1757 = vst [vmem:[%s2783_s8 + $0x88] sm:$0xff] %v2347_v21  ;;  %2360 = vtanh.f32 %v1465_v41  ;;  %v1457_v61 = vadd.f32 %v1456_v58, %v1168_v53  ;;  %v1188_v62 = vpop.f32.mrf.mxu0 }
 0x185   : > { %v2349_v57 = vpop.eup %2348  ;;  %v2086_v2 = vpop.f32.mrf.mxu1  ;;  %v1189_v27 = vadd.f32 %v2756_v49, %v1188_v62 }
 0x186   : > { %1762 = vst [vmem:[%s2783_s8 + $0xb0] sm:$0xff] %v2349_v57  ;;  %2362 = vtanh.f32 %v1457_v61  ;;  %v1190_v33 = vpop.f32.mrf.mxu0 }
 0x187   : > { %v2351_v5 = vpop.eup %2350  ;;  %v1469_v6 = vpop.f32.mrf.mxu1  ;;  %v1478_v10 = vadd.f32 %v2086_v2, %v1189_v27 }
 0x188   : > { %1760 = vst [vmem:[%s2783_s8 + $0xa0] sm:$0xff] %v2351_v5  ;;  %v1470_v13 = vadd.f32 %v1469_v6, %v1181_v19  ;;  %v1191_v59 = vpop.f32.mrf.mxu0 }
 0x189   : > { %v2353_v31 = vpop.eup %2352  ;;  %v2087_v9 = vpop.f32.mrf.mxu1  ;;  %2364 = vtanh.f32 %v1478_v10  ;;  %v1192_v51 = vadd.f32 %v2756_v49, %v1191_v59 }
 0x18a   : > { %1763 = vst [vmem:[%s2783_s8 + $0xb8] sm:$0xff] %v2353_v31  ;;  %2366 = vtanh.f32 %v1470_v13  ;;  %v1193_v18 = vpop.f32.mrf.mxu0 }
 0x18b   : > { %v2355_v23 = vpop.eup %2354  ;;  %v1472_v17 = vpop.f32.mrf.mxu1  ;;  %v1481_v63 = vadd.f32 %v2087_v9, %v1192_v51 }
 0x18c   : > { %1761 = vst [vmem:[%s2783_s8 + $0xa8] sm:$0xff] %v2355_v23  ;;  %v1473_v22 = vadd.f32 %v1472_v17, %v1184_v14  ;;  %v1196_v43 = vpop.f32.mrf.mxu0 }
 0x18d   : > { %v2357_v25 = vpop.eup %2356  ;;  %v2090_v45 = vpop.f32.mrf.mxu1  ;;  %2368 = vtanh.f32 %v1481_v63  ;;  %v1197_v26 = vadd.f32 %v2756_v49, %v1196_v43 }
 0x18e   : > { %1766 = vst [vmem:[%s2783_s8 + $0xd0] sm:$0xff] %v2357_v25  ;;  %2370 = vtanh.f32 %v1473_v22  ;;  %v1198_v30 = vpop.f32.mrf.mxu0 }
 0x18f   : > { %v2359_v29 = vpop.eup %2358  ;;  %v1485_v35 = vpop.f32.mrf.mxu1 }
 0x190   : > { %1764 = vst [vmem:[%s2783_s8 + $0xc0] sm:$0xff] %v2359_v29  ;;  %v1486_v55 = vadd.f32 %v1485_v35, %v1197_v26  ;;  %v1199_v34 = vpop.f32.mrf.mxu0 }
 0x191   : > { %v2361_v11 = vpop.eup %2360  ;;  %v2091_v37 = vpop.f32.mrf.mxu1  ;;  %v1200_v3 = vadd.f32 %v2756_v49, %v1199_v34 }
 0x192   : > { %1767 = vst [vmem:[%s2783_s8 + $0xd8] sm:$0xff] %v2361_v11  ;;  %2372 = vtanh.f32 %v1486_v55  ;;  %v1201_v47 = vpop.f32.mrf.mxu0 }
 0x193   : > { %v2363_v1 = vpop.eup %2362  ;;  %v1488_v15 = vpop.f32.mrf.mxu1 }
 0x194   : > { %1765 = vst [vmem:[%s2783_s8 + $0xc8] sm:$0xff] %v2363_v1  ;;  %v1489_v38 = vadd.f32 %v1488_v15, %v1200_v3  ;;  %v1204_v42 = vpop.f32.mrf.mxu0  ;;  %v1269_v1 = vadd.f32 %v2756_v49, %v2703_v60 }
 0x195   : > { %v2094_v39 = vpop.f32.mrf.mxu1  ;;  %v1205_v7 = vadd.f32 %v2756_v49, %v1204_v42  ;;  %v1261_v42 = vadd.f32 %v2756_v49, %v2697_v52  ;;  %v1264_v52 = vadd.f32 %v2756_v49, %v2701_v56  ;;  %v1277_v56 = vadd.f32 %v2756_v49, %v2709_v4 }
 0x196   : > { %2374 = vtanh.f32 %v1489_v38  ;;  %v2365_v46 = vpop.eup %2364  ;;  %v1206_v50 = vpop.f32.mrf.mxu0  ;;  %v1280_v4 = vadd.f32 %v2756_v49, %v2713_v8 }
 0x197   : > { %v1501_v53 = vpop.f32.mrf.mxu1  ;;  %v2367_v41 = vpop.eup %2366  ;;  %1770 = vst [vmem:[%s2783_s8 + $0xf0] sm:$0xff] %v2365_v46  ;;  %v1494_v21 = vadd.f32 %v2090_v45, %v1205_v7 }
 0x198   : > { %1768 = vst [vmem:[%s2783_s8 + $0xe0] sm:$0xff] %v2367_v41  ;;  %v1207_v54 = vpop.f32.mrf.mxu0  ;;  %v1272_v41 = vadd.f32 %v2756_v49, %v2705_v0  ;;  %v1285_v0 = vadd.f32 %v2756_v49, %v2715_v12  ;;  %v1288_v12 = vadd.f32 %v2756_v49, %v2719_v16 }
 0x199   : > { %v2095_v58 = vpop.f32.mrf.mxu1  ;;  %2376 = vtanh.f32 %v1494_v21  ;;  %v1208_v61 = vadd.f32 %v2756_v49, %v1207_v54 }
 0x19a   : > { %v2369_v57 = vpop.eup %2368  ;;  %v1209_v62 = vpop.f32.mrf.mxu0 }
 0x19b   : > { %v1504_v2 = vpop.f32.mrf.mxu1  ;;  %v2371_v19 = vpop.eup %2370  ;;  %1771 = vst [vmem:[%s2783_s8 + $0xf8] sm:$0xff] %v2369_v57  ;;  %v1497_v27 = vadd.f32 %v2091_v37, %v1208_v61 }
 0x19c   : > { %1769 = vst [vmem:[%s2783_s8 + $0xe8] sm:$0xff] %v2371_v19  ;;  %v1212_v5 = vpop.f32.mrf.mxu0 }
 0x19d   : > { %v2863_v33 = vpop.f32.mrf.mxu1  ;;  %2378 = vtanh.f32 %v1497_v27  ;;  %v1213_v6 = vadd.f32 %v2756_v49, %v1212_v5 }
 0x19e   : > { %v1214_v13 = vpop.f32.mrf.mxu0 }
 0x19f   : > { %v2373_v10 = vpop.eup %2372  ;;  %v1517_v31 = vpop.f32.mrf.mxu1  ;;  %v1502_v59 = vadd.f32 %v1501_v53, %v1213_v6 }
 0x1a0   : > { %1772 = vst [vmem:[%s2783_s8 + $0x100] sm:$0xff] %v2373_v10  ;;  %v1215_v9 = vpop.f32.mrf.mxu0 }
 0x1a1   : > { %v2867_v14 = vpop.f32.mrf.mxu1  ;;  %2380 = vtanh.f32 %v1502_v59  ;;  %v1216_v51 = vadd.f32 %v2756_v49, %v1215_v9 }
 0x1a2   : > { %v1217_v18 = vpop.f32.mrf.mxu0 }
 0x1a3   : > { %v2375_v23 = vpop.eup %2374  ;;  %v1520_v17 = vpop.f32.mrf.mxu1  ;;  %v1505_v63 = vadd.f32 %v1504_v2, %v1216_v51 }
 0x1a4   : > { %1773 = vst [vmem:[%s2783_s8 + $0x108] sm:$0xff] %v2375_v23  ;;  %v1220_v22 = vpop.f32.mrf.mxu0 }
 0x1a5   : > { %v2871_v25 = vpop.f32.mrf.mxu1  ;;  %2382 = vtanh.f32 %v1505_v63  ;;  %v1221_v43 = vadd.f32 %v2756_v49, %v1220_v22 }
 0x1a6   : > { %v2377_v45 = vpop.eup %2376  ;;  %v1222_v26 = vpop.f32.mrf.mxu0 }
 0x1a7   : > { %v2874_v29 = vpop.f32.mrf.mxu1  ;;  %1774 = vst [vmem:[%s2783_s8 + $0x110] sm:$0xff] %v2377_v45  ;;  %v1510_v30 = vadd.f32 %v2094_v39, %v1221_v43 }
 0x1a8   : > { %v1223_v35 = vpop.f32.mrf.mxu0 }
 0x1a9   : > { %v2877_v55 = vpop.f32.mrf.mxu1  ;;  %2384 = vtanh.f32 %v1510_v30  ;;  %v1224_v11 = vadd.f32 %v2756_v49, %v1223_v35  ;;  %v1301_v30 = vadd.f32 %v2756_v49, %v2731_v28 }
 0x1aa   : > { %v2379_v34 = vpop.eup %2378  ;;  %v1225_v37 = vpop.f32.mrf.mxu0 }
 0x1ab   : > { %v2880_v3 = vpop.f32.mrf.mxu1  ;;  %1775 = vst [vmem:[%s2783_s8 + $0x118] sm:$0xff] %v2379_v34  ;;  %v1513_v47 = vadd.f32 %v2095_v58, %v1224_v11  ;;  %v1293_v37 = vadd.f32 %v2756_v49, %v2723_v20 }
 0x1ac   : > { %v1228_v15 = vpop.f32.mrf.mxu0 }
 0x1ad   : > { %v2106_v38 = vpop.f32.mrf.mxu1  ;;  %2386 = vtanh.f32 %v1513_v47  ;;  %v1229_v39 = vadd.f32 %v2756_v49, %v1228_v15 }
 0x1ae   : > { %v1558_v7 = vadd.f32 %v2106_v38, %v1269_v1  ;;  %v2381_v46 = vpop.eup %2380  ;;  %v1230_v50 = vpop.f32.mrf.mxu0 }
 0x1af   : > { %v1549_v53 = vpop.f32.mrf.mxu1  ;;  %1776 = vst [vmem:[%s2783_s8 + $0x120] sm:$0xff] %v2381_v46  ;;  %v1518_v60 = vadd.f32 %v1517_v31, %v1229_v39 }
 0x1b0   : > { %2388 = vtanh.f32 %v1558_v7  ;;  %v1550_v21 = vadd.f32 %v1549_v53, %v1261_v42  ;;  %v1231_v54 = vpop.f32.mrf.mxu0  ;;  %v1304_v42 = vadd.f32 %v2756_v49, %v2735_v32  ;;  %v1296_v53 = vadd.f32 %v2756_v49, %v2727_v24 }
 0x1b1   : > { %v2107_v58 = vpop.f32.mrf.mxu1  ;;  %2390 = vtanh.f32 %v1518_v60  ;;  %v1232_v61 = vadd.f32 %v2756_v49, %v1231_v54 }
 0x1b2   : > { %v1561_v57 = vadd.f32 %v2107_v58, %v1272_v41  ;;  %v2383_v62 = vpop.eup %2382  ;;  %2392 = vtanh.f32 %v1550_v21  ;;  %v1233_v2 = vpop.f32.mrf.mxu0  ;;  %v1317_v58 = vadd.f32 %v2756_v49, %v2747_v44 }
 0x1b3   : > { %v1552_v19 = vpop.f32.mrf.mxu1  ;;  %1777 = vst [vmem:[%s2783_s8 + $0x128] sm:$0xff] %v2383_v62  ;;  %v1521_v27 = vadd.f32 %v1520_v17, %v1232_v61  ;;  %v1309_v2 = vadd.f32 %v2756_v49, %v2739_v36 }
 0x1b4   : > { %2394 = vtanh.f32 %v1561_v57  ;;  %v1553_v5 = vadd.f32 %v1552_v19, %v1264_v52  ;;  %v1236_v6 = vpop.f32.mrf.mxu0 }
 0x1b5   : > { %v2110_v10 = vpop.f32.mrf.mxu1  ;;  %2396 = vtanh.f32 %v1521_v27  ;;  %v1237_v13 = vadd.f32 %v2756_v49, %v1236_v6  ;;  %v1320_v6 = vadd.f32 %v2756_v49, %v2751_v48 }
 0x1b6   : > { %v1574_v31 = vadd.f32 %v2110_v10, %v1285_v0  ;;  %v2385_v59 = vpop.eup %2384  ;;  %2398 = vtanh.f32 %v1553_v5  ;;  %v1238_v9 = vpop.f32.mrf.mxu0 }
 0x1b7   : > { %v1565_v51 = vpop.f32.mrf.mxu1  ;;  %1778 = vst [vmem:[%s2783_s8 + $0x130] sm:$0xff] %v2385_v59  ;;  %v1526_v23 = vadd.f32 %v2863_v33, %v1237_v13  ;;  %v1312_v59 = vadd.f32 %v2756_v49, %v2743_v40 }
 0x1b8   : > { %2400 = vtanh.f32 %v1574_v31  ;;  %v1566_v18 = vadd.f32 %v1565_v51, %v1277_v56  ;;  %v1239_v17 = vpop.f32.mrf.mxu0 }
 0x1b9   : > { %v2111_v63 = vpop.f32.mrf.mxu1  ;;  %2402 = vtanh.f32 %v1526_v23  ;;  %v1240_v22 = vadd.f32 %v2756_v49, %v1239_v17 }
 0x1ba   : > { %v1577_v43 = vadd.f32 %v2111_v63, %v1288_v12  ;;  %v2387_v45 = vpop.eup %2386  ;;  %2404 = vtanh.f32 %v1566_v18  ;;  %v1241_v26 = vpop.f32.mrf.mxu0 }
 0x1bb   : > { %v1568_v16 = vpop.f32.mrf.mxu1  ;;  %1779 = vst [vmem:[%s2783_s8 + $0x138] sm:$0xff] %v2387_v45  ;;  %v1529_v33 = vadd.f32 %v2867_v14, %v1240_v22 }
 0x1bc   : > { %2406 = vtanh.f32 %v1577_v43  ;;  %v1569_v35 = vadd.f32 %v1568_v16, %v1280_v4  ;;  %v1244_v8 = vpop.f32.mrf.mxu0 }
 0x1bd   : > { %v2389_v11 = vpop.eup %2388  ;;  %v2114_v34 = vpop.f32.mrf.mxu1  ;;  %2408 = vtanh.f32 %v1529_v33  ;;  %v1245_v1 = vadd.f32 %v2756_v49, %v1244_v8 }
 0x1be   : > { %1790 = vst [vmem:[%s2783_s8 + $0x190] sm:$0xff] %v2389_v11  ;;  %v1590_v47 = vadd.f32 %v2114_v34, %v1301_v30  ;;  %v2391_v28 = vpop.eup %2390  ;;  %2410 = vtanh.f32 %v1569_v35  ;;  %v1246_v15 = vpop.f32.mrf.mxu0 }
 0x1bf   : > { %v1581_v14 = vpop.f32.mrf.mxu1  ;;  %v2393_v38 = vpop.eup %2392  ;;  %1780 = vst [vmem:[%s2783_s8 + $0x140] sm:$0xff] %v2391_v28  ;;  %v1534_v39 = vadd.f32 %v2874_v29, %v1245_v1 }
 0x1c0   : > { %2412 = vtanh.f32 %v1590_v47  ;;  %v1582_v20 = vadd.f32 %v1581_v14, %v1293_v37  ;;  %1788 = vst [vmem:[%s2783_s8 + $0x180] sm:$0xff] %v2393_v38  ;;  %v1247_v46 = vpop.f32.mrf.mxu0 }
 0x1c1   : > { %v2395_v7 = vpop.eup %2394  ;;  %v2115_v50 = vpop.f32.mrf.mxu1  ;;  %2414 = vtanh.f32 %v1534_v39  ;;  %v1248_v41 = vadd.f32 %v2756_v49, %v1247_v46 }
 0x1c2   : > { %1791 = vst [vmem:[%s2783_s8 + $0x198] sm:$0xff] %v2395_v7  ;;  %v1593_v60 = vadd.f32 %v2115_v50, %v1304_v42  ;;  %v2397_v32 = vpop.eup %2396  ;;  %2416 = vtanh.f32 %v1582_v20  ;;  %v1249_v29 = vpop.f32.mrf.mxu0 }
 0x1c3   : > { %v1584_v21 = vpop.f32.mrf.mxu1  ;;  %v2399_v54 = vpop.eup %2398  ;;  %1781 = vst [vmem:[%s2783_s8 + $0x148] sm:$0xff] %v2397_v32  ;;  %v1537_v52 = vadd.f32 %v2880_v3, %v1248_v41 }
 0x1c4   : > { %2418 = vtanh.f32 %v1593_v60  ;;  %v1585_v24 = vadd.f32 %v1584_v21, %v1296_v53  ;;  %1789 = vst [vmem:[%s2783_s8 + $0x188] sm:$0xff] %v2399_v54  ;;  %v1252_v57 = vpop.f32.mrf.mxu0 }
 0x1c5   : > { %v2401_v61 = vpop.eup %2400  ;;  %v2118_v62 = vpop.f32.mrf.mxu1  ;;  %2420 = vtanh.f32 %v1537_v52  ;;  %v1253_v19 = vadd.f32 %v2756_v49, %v1252_v57 }
 0x1c6   : > { %1794 = vst [vmem:[%s2783_s8 + $0x1b0] sm:$0xff] %v2401_v61  ;;  %v1606_v0 = vadd.f32 %v2118_v62, %v1317_v58  ;;  %v2403_v44 = vpop.eup %2402  ;;  %2422 = vtanh.f32 %v1585_v24  ;;  %v1254_v3 = vpop.f32.mrf.mxu0 }
 0x1c7   : > { %v1597_v27 = vpop.f32.mrf.mxu1  ;;  %v2405_v5 = vpop.eup %2404  ;;  %1782 = vst [vmem:[%s2783_s8 + $0x150] sm:$0xff] %v2403_v44  ;;  %v1542_v10 = vadd.f32 %v2871_v25, %v1253_v19 }
 0x1c8   : > { %2424 = vtanh.f32 %v1606_v0  ;;  %v1598_v36 = vadd.f32 %v1597_v27, %v1309_v2  ;;  %1792 = vst [vmem:[%s2783_s8 + $0x1a0] sm:$0xff] %v2405_v5  ;;  %v1255_v13 = vpop.f32.mrf.mxu0 }
 0x1c9   : > { %v2407_v56 = vpop.eup %2406  ;;  %v2119_v31 = vpop.f32.mrf.mxu1  ;;  %2426 = vtanh.f32 %v1542_v10  ;;  %v1256_v9 = vadd.f32 %v2756_v49, %v1255_v13 }
 0x1ca   : > { %1795 = vst [vmem:[%s2783_s8 + $0x1b8] sm:$0xff] %v2407_v56  ;;  %v1609_v48 = vadd.f32 %v2119_v31, %v1320_v6  ;;  %v2409_v51 = vpop.eup %2408  ;;  %2428 = vtanh.f32 %v1598_v36  ;;  %v1257_v25 = vpop.f32.mrf.mxu0 }
 0x1cb   : > { %v1600_v12 = vpop.f32.mrf.mxu1  ;;  %v2411_v23 = vpop.eup %2410  ;;  %1783 = vst [vmem:[%s2783_s8 + $0x158] sm:$0xff] %v2409_v51  ;;  %v1545_v18 = vadd.f32 %v2877_v55, %v1256_v9 }
 0x1cc   : > { %2430 = vtanh.f32 %v1609_v48  ;;  %v1601_v40 = vadd.f32 %v1600_v12, %v1312_v59  ;;  %1793 = vst [vmem:[%s2783_s8 + $0x1a8] sm:$0xff] %v2411_v23 }
 0x1cd   : > { %v2413_v17 = vpop.eup %2412  ;;  %2432 = vtanh.f32 %v1545_v18 }
 0x1ce   : > { %1798 = vst [vmem:[%s2783_s8 + $0x1d0] sm:$0xff] %v2413_v17  ;;  %v2415_v49 = vpop.eup %2414  ;;  %2434 = vtanh.f32 %v1601_v40 }
 0x1cf   : > { %v2417_v63 = vpop.eup %2416  ;;  %1784 = vst [vmem:[%s2783_s8 + $0x160] sm:$0xff] %v2415_v49 }
 0x1d0   : > { %1796 = vst [vmem:[%s2783_s8 + $0x1c0] sm:$0xff] %v2417_v63 }
 0x1d1   : > { %v2419_v4 = vpop.eup %2418 }
 0x1d2   : > { %1799 = vst [vmem:[%s2783_s8 + $0x1d8] sm:$0xff] %v2419_v4  ;;  %v2421_v55 = vpop.eup %2420 }
 0x1d3   : > { %v2423_v22 = vpop.eup %2422  ;;  %1785 = vst [vmem:[%s2783_s8 + $0x168] sm:$0xff] %v2421_v55 }
 0x1d4   : > { %1797 = vst [vmem:[%s2783_s8 + $0x1c8] sm:$0xff] %v2423_v22 }
 0x1d5   : > { %v2425_v43 = vpop.eup %2424 }
 0x1d6   : > { %1802 = vst [vmem:[%s2783_s8 + $0x1f0] sm:$0xff] %v2425_v43  ;;  %v2427_v45 = vpop.eup %2426 }
 0x1d7   : > { %v2429_v26 = vpop.eup %2428  ;;  %1786 = vst [vmem:[%s2783_s8 + $0x170] sm:$0xff] %v2427_v45 }
 0x1d8   : > { %1800 = vst [vmem:[%s2783_s8 + $0x1e0] sm:$0xff] %v2429_v26 }
 0x1d9   : > { %v2431_v16 = vpop.eup %2430 }
 0x1da   : > { %1803 = vst [vmem:[%s2783_s8 + $0x1f8] sm:$0xff] %v2431_v16  ;;  %v2433_v30 = vpop.eup %2432 }
 0x1db   : > { %v2435_v33 = vpop.eup %2434  ;;  %1787 = vst [vmem:[%s2783_s8 + $0x178] sm:$0xff] %v2433_v30 }
 0x1dc   : > { %1801 = vst [vmem:[%s2783_s8 + $0x1e8] sm:$0xff] %v2435_v33 }
 0x1dd PF: > { %s13_s12 = sadd.s32 1, %s2442_s12  }
 0x1de   : > { %p10_p4 = scmp.ge.s32.totalorder %s13_s12, 6  }
 0x1e0   :  { %12 = sbr.rel (!%p10_p4) target bundleno = 1 (0x1), region = 62 }

</bundles_post_ra>
